<compile_context>
chip_gen: v6e
topology: v6e:2x2x1
jax: 0.10.0
libtpu: 0.0.40
codegen_flags: <defaults>
</compile_context>

<pallas_src>
import functools

import jax
import jax.numpy as jnp
from jax.experimental import pallas as pl
from jax.experimental.pallas import tpu as pltpu


def _round_up(x, m):
    return (x + m - 1) // m * m


def _pad_axis(a, axis, target):
    pad = target - a.shape[axis]
    if pad <= 0:
        return a
    widths = [(0, 0)] * a.ndim
    widths[axis] = (0, pad)
    return jnp.pad(a, widths)


def _tpu_vmem_capacity_bytes():
    """Physical VMEM per TensorCore in bytes, or None if it cannot be queried."""
    try:
        info = pltpu.get_tpu_info()
        return getattr(info, "vmem_capacity_bytes", None)
    except Exception:
        return None


def iqfm_kernel(s_ref, xr_ref, xt_ref, xd_ref,
                wq_ref, bq_ref, wk_ref, bk_ref, wv_ref, bv_ref,
                wg_ref, bg_ref, wo_ref, bo_ref,
                out_ref,
                q_scr, ksum_scr, v_scr,
                *, channels, tq, compute_dtype, single_tile):
    """Grid = (batch, query_tile). Modality order everywhere: 0=rgb, 1=thermal, 2=depth."""
    cdt = compute_dtype
    inv_scale = jnp.float32(1.0 / (channels ** 0.5))   # scale uses ORIGINAL C, not padded

    # ---- once per batch: q/k/v projections written straight into VMEM scratch ----
    def project():
        xs = (xr_ref[0], xt_ref[0], xd_ref[0])
        for m in range(3):
            x = xs[m]                                              # (N, Cp) compute dtype
            s_m = s_ref[m]
            q = jnp.dot(x, wq_ref[m], preferred_element_type=jnp.float32) + bq_ref[m]
            q_scr[m] = (q * (s_m * inv_scale)).astype(cdt)         # fold s & 1/sqrt(C) into q
            v = jnp.dot(x, wv_ref[m], preferred_element_type=jnp.float32) + bv_ref[m]
            v_scr[m] = v.astype(cdt)
            k = ((jnp.dot(x, wk_ref[m], preferred_element_type=jnp.float32) + bk_ref[m])
                 * s_m).astype(cdt)
            # dot is linear in the RHS: accumulate per-query-modality key sums in place
            if m == 0:        # rgb keys feed thermal(1) and depth(2) queries
                ksum_scr[1] = k
                ksum_scr[2] = k
            elif m == 1:      # thermal keys feed rgb(0) and depth(2) queries
                ksum_scr[0] = k
                ksum_scr[2] = ksum_scr[2] + k
            else:             # depth keys feed rgb(0) and thermal(1) queries
                ksum_scr[0] = ksum_scr[0] + k
                ksum_scr[1] = ksum_scr[1] + k

    if single_tile:
        project()                       # one grid step per batch: no pl.when bubble
        start = 0
    else:
        qt_idx = pl.program_id(1)
        pl.when(qt_idx == 0)(project)   # once per batch, reused across query tiles
        start = pl.multiple_of(qt_idx * tq, tq)

    # ---- per query tile: attention + gating (accumulated, no concat/slice copies) ----
    def attend(m):
        if single_tile:
            q = q_scr[m]                                            # (N, Cp), pre-scaled
        else:
            q = q_scr[m, pl.ds(start, tq), :]                       # (tq, Cp), pre-scaled
        logits = jax.lax.dot_general(                               # (tq, N) f32, no K transpose
            q, ksum_scr[m],
            dimension_numbers=(((1,), (1,)), ((), ())),
            preferred_element_type=jnp.float32)
        row_max = jnp.max(logits, axis=-1, keepdims=True)
        e = jnp.exp(logits - row_max)
        inv_denom = pl.reciprocal(jnp.sum(e, axis=-1, keepdims=True), approx=True)
        attn = (e * inv_denom).astype(cdt)                          # reciprocal + bcast multiply
        return jnp.dot(attn, v_scr[m], preferred_element_type=jnp.float32)   # (tq, Cp) f32

    fused = None
    for m in range(3):
        w = attend(m)
        g = jax.nn.sigmoid(
            jnp.dot(w.astype(cdt), wg_ref[...], preferred_element_type=jnp.float32)
            + bg_ref[...])
        gated = g * w
        fused = gated if fused is None else fused + gated

    out = jnp.dot(fused.astype(cdt), wo_ref[...],
                  preferred_element_type=jnp.float32) + bo_ref[...]
    out_ref[0] = out.astype(out_ref.dtype)


def iqfm_pallas(x_rgb, x_th, x_dp, s, params, *,
                compute_dtype=jnp.bfloat16, tq=None, out_dtype=None):
    """x_* : (B, N, C) channels-last; s: (3,); returns (B, N, C_out)."""
    B, N, C = x_rgb.shape
    Cout = params["w_out"].shape[-1]
    assert N % 8 == 0, "N = H*W must be a multiple of 8"

    Cp = _round_up(C, 128)        # lane-dense channel padding (exact: padded lanes are zero)
    Cop = _round_up(Cout, 128)
    cdt = jnp.dtype(compute_dtype)
    if out_dtype is None:
        out_dtype = x_rgb.dtype

    vmem_cap = _tpu_vmem_capacity_bytes()
    small_vmem = vmem_cap is None or vmem_cap <= 80 * 1024 * 1024   # v7x-class budget

    if tq is None:
        if N <= 1024:
            tq = N                       # single query tile per batch: no projection bubble
        else:
            tq = 256 if small_vmem else 512
            while N % tq != 0:
                tq //= 2
    assert N % tq == 0 and tq % 8 == 0, "query tile must divide N and be a multiple of 8"
    n_qt = N // tq
    single_tile = n_qt == 1

    # ~80% of physical VMEM: ~51 MiB on v7x (64 MiB part), ~102 MiB on v5e/v6e (128 MiB);
    # leaves headroom for Mosaic internal scratch and double-buffered BlockSpec inputs.
    vmem_limit = int(vmem_cap * 0.8) if vmem_cap is not None else 48 * 1024 * 1024

    # --- pack & pad parameters (channels zero-padded to multiples of 128) ---
    def padw3(w):                  # (3, C, C) -> (3, Cp, Cp)
        return _pad_axis(_pad_axis(w, 1, Cp), 2, Cp).astype(cdt)

    def padb3(b):                  # (3, C) -> (3, 1, Cp) f32
        return _pad_axis(b, 1, Cp)[:, None, :].astype(jnp.float32)

    w_q, w_k, w_v = padw3(params["w_q"]), padw3(params["w_k"]), padw3(params["w_v"])
    b_q, b_k, b_v = padb3(params["b_q"]), padb3(params["b_k"]), padb3(params["b_v"])
    w_g = _pad_axis(_pad_axis(params["w_gate"], 0, Cp), 1, Cp).astype(cdt)
    b_g = _pad_axis(params["b_gate"], 0, Cp)[None, :].astype(jnp.float32)
    w_o = _pad_axis(_pad_axis(params["w_out"], 0, Cp), 1, Cop).astype(cdt)
    b_o = _pad_axis(params["b_out"], 0, Cop)[None, :].astype(jnp.float32)

    def padx(x):
        return _pad_axis(x, 2, Cp).astype(cdt)

    xr, xt, xd = padx(x_rgb), padx(x_th), padx(x_dp)
    s = jnp.asarray(s, jnp.float32)

    kernel = functools.partial(iqfm_kernel, channels=C, tq=tq,
                               compute_dtype=cdt, single_tile=single_tile)

    out_padded = pl.pallas_call(
        kernel,
        out_shape=jax.ShapeDtypeStruct((B, N, Cop), out_dtype),
        grid=(B, n_qt),
        in_specs=[
            pl.BlockSpec(memory_space=pltpu.MemorySpace.SMEM),        # s (3,) scalars
            pl.BlockSpec((1, N, Cp), lambda b, t: (b, 0, 0)),         # x_rgb (full per batch)
            pl.BlockSpec((1, N, Cp), lambda b, t: (b, 0, 0)),         # x_thermal
            pl.BlockSpec((1, N, Cp), lambda b, t: (b, 0, 0)),         # x_depth
            pl.BlockSpec((3, Cp, Cp), lambda b, t: (0, 0, 0)),        # query weights
            pl.BlockSpec((3, 1, Cp), lambda b, t: (0, 0, 0)),         # query biases
            pl.BlockSpec((3, Cp, Cp), lambda b, t: (0, 0, 0)),        # key weights
            pl.BlockSpec((3, 1, Cp), lambda b, t: (0, 0, 0)),         # key biases
            pl.BlockSpec((3, Cp, Cp), lambda b, t: (0, 0, 0)),        # value weights
            pl.BlockSpec((3, 1, Cp), lambda b, t: (0, 0, 0)),         # value biases
            pl.BlockSpec((Cp, Cp), lambda b, t: (0, 0)),              # gating weight
            pl.BlockSpec((1, Cp), lambda b, t: (0, 0)),               # gating bias
            pl.BlockSpec((Cp, Cop), lambda b, t: (0, 0)),             # out_proj weight
            pl.BlockSpec((1, Cop), lambda b, t: (0, 0)),              # out_proj bias
        ],
        out_specs=pl.BlockSpec((1, tq, Cop), lambda b, t: (b, t, 0)),
        scratch_shapes=[
            pltpu.VMEM((3, N, Cp), cdt),   # scaled queries (per modality)
            pltpu.VMEM((3, N, Cp), cdt),   # per-query-modality key sums
            pltpu.VMEM((3, N, Cp), cdt),   # values
        ],
        compiler_params=pltpu.CompilerParams(
            # batch axis parallel (megacore); query-tile axis serial so the per-batch
            # q/ksum/v scratch written at tile 0 can be reused across later tiles.
            dimension_semantics=("parallel", "arbitrary"),
            vmem_limit_bytes=vmem_limit),
    )(s, xr, xt, xd, w_q, b_q, w_k, b_k, w_v, b_v, w_g, b_g, w_o, b_o)

    return out_padded[:, :, :Cout]


def iqfm_ref(x_rgb, x_th, x_dp, s, params):
    """Pure-JAX f32 reference, naive/faithful to the PyTorch forward (channels-last)."""
    C = x_rgb.shape[-1]
    wq, bq = params["w_q"], params["b_q"]
    wk, bk = params["w_k"], params["b_k"]
    wv, bv = params["w_v"], params["b_v"]

    qr = (x_rgb @ wq[0] + bq[0]) * s[0]
    kr = (x_rgb @ wk[0] + bk[0]) * s[0]
    vr = x_rgb @ wv[0] + bv[0]
    qth = (x_th @ wq[1] + bq[1]) * s[1]
    kth = (x_th @ wk[1] + bk[1]) * s[1]
    vth = x_th @ wv[1] + bv[1]
    qd = (x_dp @ wq[2] + bq[2]) * s[2]
    kd = (x_dp @ wk[2] + bk[2]) * s[2]
    vd = x_dp @ wv[2] + bv[2]

    scale = C ** 0.5

    def attend(q, k1, k2, v):
        logits = (jnp.einsum("bnc,bmc->bnm", q, k1)
                  + jnp.einsum("bnc,bmc->bnm", q, k2)) / scale
        return jnp.einsum("bnm,bmc->bnc", jax.nn.softmax(logits, axis=-1), v)

    w_rgb = attend(qr, kd, kth, vr)
    w_dep = attend(qd, kr, kth, vd)
    w_thr = attend(qth, kr, kd, vth)

    def gate(w):
        return jax.nn.sigmoid(w @ params["w_gate"] + params["b_gate"]) * w

    fused = gate(w_rgb) + gate(w_dep) + gate(w_thr)
    return fused @ params["w_out"] + params["b_out"]


if __name__ == "__main__":
    B, C, H, W, Cout = 2, 64, 16, 16, 96   # C/Cout deliberately non-128 to exercise padding
    N = H * W

    key = jax.random.PRNGKey(0)
    keys = jax.random.split(key, 16)

    # PyTorch-style NCHW inputs (x[0]=rgb, x[1]=thermal, x[2]=depth)
    x_rgb_nchw = jax.random.normal(keys[0], (B, C, H, W), jnp.float32)
    x_th_nchw = jax.random.normal(keys[1], (B, C, H, W), jnp.float32)
    x_dp_nchw = jax.random.normal(keys[2], (B, C, H, W), jnp.float32)
    s = jnp.array([0.5, 1.2, 0.8], jnp.float32)

    # Conv2d weight (out,in,1,1) stored pre-transposed as (in,out); modality order
    # along the leading 3-axis is (rgb, thermal, depth).
    params = {
        "w_q": 0.2 * jax.random.normal(keys[3], (3, C, C), jnp.float32),
        "b_q": 0.1 * jax.random.normal(keys[4], (3, C), jnp.float32),
        "w_k": 0.2 * jax.random.normal(keys[5], (3, C, C), jnp.float32),
        "b_k": 0.1 * jax.random.normal(keys[6], (3, C), jnp.float32),
        "w_v": 0.2 * jax.random.normal(keys[7], (3, C, C), jnp.float32),
        "b_v": 0.1 * jax.random.normal(keys[8], (3, C), jnp.float32),
        "w_gate": 0.2 * jax.random.normal(keys[9], (C, C), jnp.float32),
        "b_gate": 0.1 * jax.random.normal(keys[10], (C,), jnp.float32),
        "w_out": 0.2 * jax.random.normal(keys[11], (C, Cout), jnp.float32),
        "b_out": 0.1 * jax.random.normal(keys[12], (Cout,), jnp.float32),
    }

    def to_nlc(x):  # NCHW -> (B, N, C)
        return x.transpose(0, 2, 3, 1).reshape(B, N, C)

    xr, xt, xd = to_nlc(x_rgb_nchw), to_nlc(x_th_nchw), to_nlc(x_dp_nchw)

    ref_nlc = iqfm_ref(xr, xt, xd, s, params)
    ref_scale = float(jnp.max(jnp.abs(ref_nlc)))

    # f32 run: semantics check against the naive reference (approx reciprocal ~1e-3 rel).
    out_f32 = iqfm_pallas(xr, xt, xd, s, params, compute_dtype=jnp.float32)
    jax.block_until_ready(out_f32)
    if not bool(jnp.allclose(out_f32, ref_nlc, atol=1e-2, rtol=1e-2)):
        max_err = float(jnp.max(jnp.abs(out_f32 - ref_nlc)))
        raise AssertionError(f"f32 Pallas kernel does not match reference (max_err={max_err})")

    # Default (bf16 operands / f32 accumulation) path: loose-tolerance check.
    out_nlc = iqfm_pallas(xr, xt, xd, s, params)
    jax.block_until_ready(out_nlc)
    max_err = float(jnp.max(jnp.abs(out_nlc - ref_nlc)))
    if not (max_err <= 0.08 * ref_scale + 1e-3):
        raise AssertionError(f"bf16 Pallas kernel too far from reference (max_err={max_err})")

    # back to PyTorch NCHW convention for the final output
    out_nchw = out_nlc.reshape(B, H, W, Cout).transpose(0, 3, 1, 2)
    jax.block_until_ready(out_nchw)

    print("KERNEL_OK")
</pallas_src>

<mosaic_0001>
module attributes {stable_mosaic.version = 11 : i64} {
  func.func @iqfm_kernel(%arg0: i32, %arg1: i32, %arg2: memref<3xf32, #tpu.memory_space<smem>>, %arg3: memref<1x256x128xf32, #tpu.memory_space<vmem>>, %arg4: memref<1x256x128xf32, #tpu.memory_space<vmem>>, %arg5: memref<1x256x128xf32, #tpu.memory_space<vmem>>, %arg6: memref<3x128x128xf32, #tpu.memory_space<vmem>>, %arg7: memref<3x1x128xf32, #tpu.memory_space<vmem>>, %arg8: memref<3x128x128xf32, #tpu.memory_space<vmem>>, %arg9: memref<3x1x128xf32, #tpu.memory_space<vmem>>, %arg10: memref<3x128x128xf32, #tpu.memory_space<vmem>>, %arg11: memref<3x1x128xf32, #tpu.memory_space<vmem>>, %arg12: memref<128x128xf32, #tpu.memory_space<vmem>>, %arg13: memref<1x128xf32, #tpu.memory_space<vmem>>, %arg14: memref<128x128xf32, #tpu.memory_space<vmem>>, %arg15: memref<1x128xf32, #tpu.memory_space<vmem>>, %arg16: memref<1x256x128xf32, #tpu.memory_space<vmem>>, %arg17: memref<3x256x128xf32, #tpu.memory_space<vmem>>, %arg18: memref<3x256x128xf32, #tpu.memory_space<vmem>>, %arg19: memref<3x256x128xf32, #tpu.memory_space<vmem>>) attributes {dimension_semantics = [#tpu.dimension_semantics<parallel>, #tpu.dimension_semantics<arbitrary>], iteration_bounds = array<i64: 2, 1>, scalar_prefetch = 0 : i64, scratch_operands = 3 : i64, tpu.core_type = #tpu.core_type<tc>, window_params = [{transform_indices = @transform_0, window_bounds = array<i64: 3>}, {transform_indices = @transform_1, window_bounds = array<i64: 1, 256, 128>}, {transform_indices = @transform_2, window_bounds = array<i64: 1, 256, 128>}, {transform_indices = @transform_3, window_bounds = array<i64: 1, 256, 128>}, {pipeline_mode = #tpu.pipeline_mode<synchronous>, transform_indices = @transform_4, window_bounds = array<i64: 3, 128, 128>}, {pipeline_mode = #tpu.pipeline_mode<synchronous>, transform_indices = @transform_5, window_bounds = array<i64: 3, 1, 128>}, {pipeline_mode = #tpu.pipeline_mode<synchronous>, transform_indices = @transform_6, window_bounds = array<i64: 3, 128, 128>}, {pipeline_mode = #tpu.pipeline_mode<synchronous>, transform_indices = @transform_7, window_bounds = array<i64: 3, 1, 128>}, {pipeline_mode = #tpu.pipeline_mode<synchronous>, transform_indices = @transform_8, window_bounds = array<i64: 3, 128, 128>}, {pipeline_mode = #tpu.pipeline_mode<synchronous>, transform_indices = @transform_9, window_bounds = array<i64: 3, 1, 128>}, {pipeline_mode = #tpu.pipeline_mode<synchronous>, transform_indices = @transform_10, window_bounds = array<i64: 128, 128>}, {pipeline_mode = #tpu.pipeline_mode<synchronous>, transform_indices = @transform_11, window_bounds = array<i64: 1, 128>}, {pipeline_mode = #tpu.pipeline_mode<synchronous>, transform_indices = @transform_12, window_bounds = array<i64: 128, 128>}, {pipeline_mode = #tpu.pipeline_mode<synchronous>, transform_indices = @transform_13, window_bounds = array<i64: 1, 128>}, {transform_indices = @transform_14, window_bounds = array<i64: 1, 256, 128>}]} {
    %c0 = arith.constant 0 : index
    %c0_0 = arith.constant 0 : index
    %c0_1 = arith.constant 0 : index
    %0 = vector.load %arg3[%c0, %c0_0, %c0_1] : memref<1x256x128xf32, #tpu.memory_space<vmem>>, vector<1x256x128xf32>
    %1 = vector.shape_cast %0 : vector<1x256x128xf32> to vector<256x128xf32>
    %c0_2 = arith.constant 0 : index
    %c0_3 = arith.constant 0 : index
    %c0_4 = arith.constant 0 : index
    %2 = vector.load %arg4[%c0_2, %c0_3, %c0_4] : memref<1x256x128xf32, #tpu.memory_space<vmem>>, vector<1x256x128xf32>
    %3 = vector.shape_cast %2 : vector<1x256x128xf32> to vector<256x128xf32>
    %c0_5 = arith.constant 0 : index
    %c0_6 = arith.constant 0 : index
    %c0_7 = arith.constant 0 : index
    %4 = vector.load %arg5[%c0_5, %c0_6, %c0_7] : memref<1x256x128xf32, #tpu.memory_space<vmem>>, vector<1x256x128xf32>
    %5 = vector.shape_cast %4 : vector<1x256x128xf32> to vector<256x128xf32>
    %c0_8 = arith.constant 0 : index
    %6 = memref.load %arg2[%c0_8] : memref<3xf32, #tpu.memory_space<smem>>
    %c0_9 = arith.constant 0 : index
    %c0_10 = arith.constant 0 : index
    %c0_11 = arith.constant 0 : index
    %7 = vector.load %arg6[%c0_9, %c0_10, %c0_11] : memref<3x128x128xf32, #tpu.memory_space<vmem>>, vector<1x128x128xf32>
    %8 = vector.shape_cast %7 : vector<1x128x128xf32> to vector<128x128xf32>
    %cst = arith.constant dense<0.000000e+00> : vector<256x128xf32>
    %9 = tpu.matmul %1, %8, %cst {dimension_numbers = #tpu.dot_dimension_numbers<[1], [0], [0], [1], [0, 0, 1, 1], [], []>} : vector<256x128xf32>, vector<128x128xf32>, vector<256x128xf32> -> vector<256x128xf32>
    %c0_12 = arith.constant 0 : index
    %c0_13 = arith.constant 0 : index
    %c0_14 = arith.constant 0 : index
    %10 = vector.load %arg7[%c0_12, %c0_13, %c0_14] : memref<3x1x128xf32, #tpu.memory_space<vmem>>, vector<1x1x128xf32>
    %11 = vector.shape_cast %10 : vector<1x1x128xf32> to vector<1x128xf32>
    %12 = vector.broadcast %11 : vector<1x128xf32> to vector<256x128xf32>
    %13 = arith.addf %9, %12 : vector<256x128xf32>
    %cst_15 = arith.constant 1.250000e-01 : f32
    %14 = arith.mulf %6, %cst_15 : f32
    %15 = vector.broadcast %14 : f32 to vector<256x128xf32>
    %16 = arith.mulf %13, %15 : vector<256x128xf32>
    %c0_16 = arith.constant 0 : index
    %c0_17 = arith.constant 0 : index
    %c0_18 = arith.constant 0 : index
    %17 = vector.load %arg17[%c0_16, %c0_17, %c0_18] : memref<3x256x128xf32, #tpu.memory_space<vmem>>, vector<1x256x128xf32>
    %18 = vector.shape_cast %17 : vector<1x256x128xf32> to vector<256x128xf32>
    %19 = vector.shape_cast %16 : vector<256x128xf32> to vector<1x256x128xf32>
    tpu.vector_store %arg17[%c0_16, %c0_17, %c0_18], %19 {strides = array<i32>} : memref<3x256x128xf32, #tpu.memory_space<vmem>>, vector<1x256x128xf32>,
    %c0_19 = arith.constant 0 : index
    %c0_20 = arith.constant 0 : index
    %c0_21 = arith.constant 0 : index
    %20 = vector.load %arg10[%c0_19, %c0_20, %c0_21] : memref<3x128x128xf32, #tpu.memory_space<vmem>>, vector<1x128x128xf32>
    %21 = vector.shape_cast %20 : vector<1x128x128xf32> to vector<128x128xf32>
    %cst_22 = arith.constant dense<0.000000e+00> : vector<256x128xf32>
    %22 = tpu.matmul %1, %21, %cst_22 {dimension_numbers = #tpu.dot_dimension_numbers<[1], [0], [0], [1], [0, 0, 1, 1], [], []>} : vector<256x128xf32>, vector<128x128xf32>, vector<256x128xf32> -> vector<256x128xf32>
    %c0_23 = arith.constant 0 : index
    %c0_24 = arith.constant 0 : index
    %c0_25 = arith.constant 0 : index
    %23 = vector.load %arg11[%c0_23, %c0_24, %c0_25] : memref<3x1x128xf32, #tpu.memory_space<vmem>>, vector<1x1x128xf32>
    %24 = vector.shape_cast %23 : vector<1x1x128xf32> to vector<1x128xf32>
    %25 = vector.broadcast %24 : vector<1x128xf32> to vector<256x128xf32>
    %26 = arith.addf %22, %25 : vector<256x128xf32>
    %c0_26 = arith.constant 0 : index
    %c0_27 = arith.constant 0 : index
    %c0_28 = arith.constant 0 : index
    %27 = vector.load %arg19[%c0_26, %c0_27, %c0_28] : memref<3x256x128xf32, #tpu.memory_space<vmem>>, vector<1x256x128xf32>
    %28 = vector.shape_cast %27 : vector<1x256x128xf32> to vector<256x128xf32>
    %29 = vector.shape_cast %26 : vector<256x128xf32> to vector<1x256x128xf32>
    tpu.vector_store %arg19[%c0_26, %c0_27, %c0_28], %29 {strides = array<i32>} : memref<3x256x128xf32, #tpu.memory_space<vmem>>, vector<1x256x128xf32>,
    %c0_29 = arith.constant 0 : index
    %c0_30 = arith.constant 0 : index
    %c0_31 = arith.constant 0 : index
    %30 = vector.load %arg8[%c0_29, %c0_30, %c0_31] : memref<3x128x128xf32, #tpu.memory_space<vmem>>, vector<1x128x128xf32>
    %31 = vector.shape_cast %30 : vector<1x128x128xf32> to vector<128x128xf32>
    %cst_32 = arith.constant dense<0.000000e+00> : vector<256x128xf32>
    %32 = tpu.matmul %1, %31, %cst_32 {dimension_numbers = #tpu.dot_dimension_numbers<[1], [0], [0], [1], [0, 0, 1, 1], [], []>} : vector<256x128xf32>, vector<128x128xf32>, vector<256x128xf32> -> vector<256x128xf32>
    %c0_33 = arith.constant 0 : index
    %c0_34 = arith.constant 0 : index
    %c0_35 = arith.constant 0 : index
    %33 = vector.load %arg9[%c0_33, %c0_34, %c0_35] : memref<3x1x128xf32, #tpu.memory_space<vmem>>, vector<1x1x128xf32>
    %34 = vector.shape_cast %33 : vector<1x1x128xf32> to vector<1x128xf32>
    %35 = vector.broadcast %34 : vector<1x128xf32> to vector<256x128xf32>
    %36 = arith.addf %32, %35 : vector<256x128xf32>
    %37 = vector.broadcast %6 : f32 to vector<256x128xf32>
    %38 = arith.mulf %36, %37 : vector<256x128xf32>
    %c1 = arith.constant 1 : index
    %c0_36 = arith.constant 0 : index
    %c0_37 = arith.constant 0 : index
    %39 = vector.load %arg18[%c1, %c0_36, %c0_37] : memref<3x256x128xf32, #tpu.memory_space<vmem>>, vector<1x256x128xf32>
    %40 = vector.shape_cast %39 : vector<1x256x128xf32> to vector<256x128xf32>
    %41 = vector.shape_cast %38 : vector<256x128xf32> to vector<1x256x128xf32>
    tpu.vector_store %arg18[%c1, %c0_36, %c0_37], %41 {strides = array<i32>} : memref<3x256x128xf32, #tpu.memory_space<vmem>>, vector<1x256x128xf32>,
    %c2 = arith.constant 2 : index
    %c0_38 = arith.constant 0 : index
    %c0_39 = arith.constant 0 : index
    %42 = vector.load %arg18[%c2, %c0_38, %c0_39] : memref<3x256x128xf32, #tpu.memory_space<vmem>>, vector<1x256x128xf32>
    %43 = vector.shape_cast %42 : vector<1x256x128xf32> to vector<256x128xf32>
    %44 = vector.shape_cast %38 : vector<256x128xf32> to vector<1x256x128xf32>
    tpu.vector_store %arg18[%c2, %c0_38, %c0_39], %44 {strides = array<i32>} : memref<3x256x128xf32, #tpu.memory_space<vmem>>, vector<1x256x128xf32>,
    %c1_40 = arith.constant 1 : index
    %45 = memref.load %arg2[%c1_40] : memref<3xf32, #tpu.memory_space<smem>>
    %c1_41 = arith.constant 1 : index
    %c0_42 = arith.constant 0 : index
    %c0_43 = arith.constant 0 : index
    %46 = vector.load %arg6[%c1_41, %c0_42, %c0_43] : memref<3x128x128xf32, #tpu.memory_space<vmem>>, vector<1x128x128xf32>
    %47 = vector.shape_cast %46 : vector<1x128x128xf32> to vector<128x128xf32>
    %cst_44 = arith.constant dense<0.000000e+00> : vector<256x128xf32>
    %48 = tpu.matmul %3, %47, %cst_44 {dimension_numbers = #tpu.dot_dimension_numbers<[1], [0], [0], [1], [0, 0, 1, 1], [], []>} : vector<256x128xf32>, vector<128x128xf32>, vector<256x128xf32> -> vector<256x128xf32>
    %c1_45 = arith.constant 1 : index
    %c0_46 = arith.constant 0 : index
    %c0_47 = arith.constant 0 : index
    %49 = vector.load %arg7[%c1_45, %c0_46, %c0_47] : memref<3x1x128xf32, #tpu.memory_space<vmem>>, vector<1x1x128xf32>
    %50 = vector.shape_cast %49 : vector<1x1x128xf32> to vector<1x128xf32>
    %51 = vector.broadcast %50 : vector<1x128xf32> to vector<256x128xf32>
    %52 = arith.addf %48, %51 : vector<256x128xf32>
    %cst_48 = arith.constant 1.250000e-01 : f32
    %53 = arith.mulf %45, %cst_48 : f32
    %54 = vector.broadcast %53 : f32 to vector<256x128xf32>
    %55 = arith.mulf %52, %54 : vector<256x128xf32>
    %c1_49 = arith.constant 1 : index
    %c0_50 = arith.constant 0 : index
    %c0_51 = arith.constant 0 : index
    %56 = vector.load %arg17[%c1_49, %c0_50, %c0_51] : memref<3x256x128xf32, #tpu.memory_space<vmem>>, vector<1x256x128xf32>
    %57 = vector.shape_cast %56 : vector<1x256x128xf32> to vector<256x128xf32>
    %58 = vector.shape_cast %55 : vector<256x128xf32> to vector<1x256x128xf32>
    tpu.vector_store %arg17[%c1_49, %c0_50, %c0_51], %58 {strides = array<i32>} : memref<3x256x128xf32, #tpu.memory_space<vmem>>, vector<1x256x128xf32>,
    %c1_52 = arith.constant 1 : index
    %c0_53 = arith.constant 0 : index
    %c0_54 = arith.constant 0 : index
    %59 = vector.load %arg10[%c1_52, %c0_53, %c0_54] : memref<3x128x128xf32, #tpu.memory_space<vmem>>, vector<1x128x128xf32>
    %60 = vector.shape_cast %59 : vector<1x128x128xf32> to vector<128x128xf32>
    %cst_55 = arith.constant dense<0.000000e+00> : vector<256x128xf32>
    %61 = tpu.matmul %3, %60, %cst_55 {dimension_numbers = #tpu.dot_dimension_numbers<[1], [0], [0], [1], [0, 0, 1, 1], [], []>} : vector<256x128xf32>, vector<128x128xf32>, vector<256x128xf32> -> vector<256x128xf32>
    %c1_56 = arith.constant 1 : index
    %c0_57 = arith.constant 0 : index
    %c0_58 = arith.constant 0 : index
    %62 = vector.load %arg11[%c1_56, %c0_57, %c0_58] : memref<3x1x128xf32, #tpu.memory_space<vmem>>, vector<1x1x128xf32>
    %63 = vector.shape_cast %62 : vector<1x1x128xf32> to vector<1x128xf32>
    %64 = vector.broadcast %63 : vector<1x128xf32> to vector<256x128xf32>
    %65 = arith.addf %61, %64 : vector<256x128xf32>
    %c1_59 = arith.constant 1 : index
    %c0_60 = arith.constant 0 : index
    %c0_61 = arith.constant 0 : index
    %66 = vector.load %arg19[%c1_59, %c0_60, %c0_61] : memref<3x256x128xf32, #tpu.memory_space<vmem>>, vector<1x256x128xf32>
    %67 = vector.shape_cast %66 : vector<1x256x128xf32> to vector<256x128xf32>
    %68 = vector.shape_cast %65 : vector<256x128xf32> to vector<1x256x128xf32>
    tpu.vector_store %arg19[%c1_59, %c0_60, %c0_61], %68 {strides = array<i32>} : memref<3x256x128xf32, #tpu.memory_space<vmem>>, vector<1x256x128xf32>,
    %c1_62 = arith.constant 1 : index
    %c0_63 = arith.constant 0 : index
    %c0_64 = arith.constant 0 : index
    %69 = vector.load %arg8[%c1_62, %c0_63, %c0_64] : memref<3x128x128xf32, #tpu.memory_space<vmem>>, vector<1x128x128xf32>
    %70 = vector.shape_cast %69 : vector<1x128x128xf32> to vector<128x128xf32>
    %cst_65 = arith.constant dense<0.000000e+00> : vector<256x128xf32>
    %71 = tpu.matmul %3, %70, %cst_65 {dimension_numbers = #tpu.dot_dimension_numbers<[1], [0], [0], [1], [0, 0, 1, 1], [], []>} : vector<256x128xf32>, vector<128x128xf32>, vector<256x128xf32> -> vector<256x128xf32>
    %c1_66 = arith.constant 1 : index
    %c0_67 = arith.constant 0 : index
    %c0_68 = arith.constant 0 : index
    %72 = vector.load %arg9[%c1_66, %c0_67, %c0_68] : memref<3x1x128xf32, #tpu.memory_space<vmem>>, vector<1x1x128xf32>
    %73 = vector.shape_cast %72 : vector<1x1x128xf32> to vector<1x128xf32>
    %74 = vector.broadcast %73 : vector<1x128xf32> to vector<256x128xf32>
    %75 = arith.addf %71, %74 : vector<256x128xf32>
    %76 = vector.broadcast %45 : f32 to vector<256x128xf32>
    %77 = arith.mulf %75, %76 : vector<256x128xf32>
    %c0_69 = arith.constant 0 : index
    %c0_70 = arith.constant 0 : index
    %c0_71 = arith.constant 0 : index
    %78 = vector.load %arg18[%c0_69, %c0_70, %c0_71] : memref<3x256x128xf32, #tpu.memory_space<vmem>>, vector<1x256x128xf32>
    %79 = vector.shape_cast %78 : vector<1x256x128xf32> to vector<256x128xf32>
    %80 = vector.shape_cast %77 : vector<256x128xf32> to vector<1x256x128xf32>
    tpu.vector_store %arg18[%c0_69, %c0_70, %c0_71], %80 {strides = array<i32>} : memref<3x256x128xf32, #tpu.memory_space<vmem>>, vector<1x256x128xf32>,
    %c2_72 = arith.constant 2 : index
    %c0_73 = arith.constant 0 : index
    %c0_74 = arith.constant 0 : index
    %81 = vector.load %arg18[%c2_72, %c0_73, %c0_74] : memref<3x256x128xf32, #tpu.memory_space<vmem>>, vector<1x256x128xf32>
    %82 = vector.shape_cast %81 : vector<1x256x128xf32> to vector<256x128xf32>
    %83 = arith.addf %82, %77 : vector<256x128xf32>
    %c2_75 = arith.constant 2 : index
    %c0_76 = arith.constant 0 : index
    %c0_77 = arith.constant 0 : index
    %84 = vector.load %arg18[%c2_75, %c0_76, %c0_77] : memref<3x256x128xf32, #tpu.memory_space<vmem>>, vector<1x256x128xf32>
    %85 = vector.shape_cast %84 : vector<1x256x128xf32> to vector<256x128xf32>
    %86 = vector.shape_cast %83 : vector<256x128xf32> to vector<1x256x128xf32>
    tpu.vector_store %arg18[%c2_75, %c0_76, %c0_77], %86 {strides = array<i32>} : memref<3x256x128xf32, #tpu.memory_space<vmem>>, vector<1x256x128xf32>,
    %c2_78 = arith.constant 2 : index
    %87 = memref.load %arg2[%c2_78] : memref<3xf32, #tpu.memory_space<smem>>
    %c2_79 = arith.constant 2 : index
    %c0_80 = arith.constant 0 : index
    %c0_81 = arith.constant 0 : index
    %88 = vector.load %arg6[%c2_79, %c0_80, %c0_81] : memref<3x128x128xf32, #tpu.memory_space<vmem>>, vector<1x128x128xf32>
    %89 = vector.shape_cast %88 : vector<1x128x128xf32> to vector<128x128xf32>
    %cst_82 = arith.constant dense<0.000000e+00> : vector<256x128xf32>
    %90 = tpu.matmul %5, %89, %cst_82 {dimension_numbers = #tpu.dot_dimension_numbers<[1], [0], [0], [1], [0, 0, 1, 1], [], []>} : vector<256x128xf32>, vector<128x128xf32>, vector<256x128xf32> -> vector<256x128xf32>
    %c2_83 = arith.constant 2 : index
    %c0_84 = arith.constant 0 : index
    %c0_85 = arith.constant 0 : index
    %91 = vector.load %arg7[%c2_83, %c0_84, %c0_85] : memref<3x1x128xf32, #tpu.memory_space<vmem>>, vector<1x1x128xf32>
    %92 = vector.shape_cast %91 : vector<1x1x128xf32> to vector<1x128xf32>
    %93 = vector.broadcast %92 : vector<1x128xf32> to vector<256x128xf32>
    %94 = arith.addf %90, %93 : vector<256x128xf32>
    %cst_86 = arith.constant 1.250000e-01 : f32
    %95 = arith.mulf %87, %cst_86 : f32
    %96 = vector.broadcast %95 : f32 to vector<256x128xf32>
    %97 = arith.mulf %94, %96 : vector<256x128xf32>
    %c2_87 = arith.constant 2 : index
    %c0_88 = arith.constant 0 : index
    %c0_89 = arith.constant 0 : index
    %98 = vector.load %arg17[%c2_87, %c0_88, %c0_89] : memref<3x256x128xf32, #tpu.memory_space<vmem>>, vector<1x256x128xf32>
    %99 = vector.shape_cast %98 : vector<1x256x128xf32> to vector<256x128xf32>
    %100 = vector.shape_cast %97 : vector<256x128xf32> to vector<1x256x128xf32>
    tpu.vector_store %arg17[%c2_87, %c0_88, %c0_89], %100 {strides = array<i32>} : memref<3x256x128xf32, #tpu.memory_space<vmem>>, vector<1x256x128xf32>,
    %c2_90 = arith.constant 2 : index
    %c0_91 = arith.constant 0 : index
    %c0_92 = arith.constant 0 : index
    %101 = vector.load %arg10[%c2_90, %c0_91, %c0_92] : memref<3x128x128xf32, #tpu.memory_space<vmem>>, vector<1x128x128xf32>
    %102 = vector.shape_cast %101 : vector<1x128x128xf32> to vector<128x128xf32>
    %cst_93 = arith.constant dense<0.000000e+00> : vector<256x128xf32>
    %103 = tpu.matmul %5, %102, %cst_93 {dimension_numbers = #tpu.dot_dimension_numbers<[1], [0], [0], [1], [0, 0, 1, 1], [], []>} : vector<256x128xf32>, vector<128x128xf32>, vector<256x128xf32> -> vector<256x128xf32>
    %c2_94 = arith.constant 2 : index
    %c0_95 = arith.constant 0 : index
    %c0_96 = arith.constant 0 : index
    %104 = vector.load %arg11[%c2_94, %c0_95, %c0_96] : memref<3x1x128xf32, #tpu.memory_space<vmem>>, vector<1x1x128xf32>
    %105 = vector.shape_cast %104 : vector<1x1x128xf32> to vector<1x128xf32>
    %106 = vector.broadcast %105 : vector<1x128xf32> to vector<256x128xf32>
    %107 = arith.addf %103, %106 : vector<256x128xf32>
    %c2_97 = arith.constant 2 : index
    %c0_98 = arith.constant 0 : index
    %c0_99 = arith.constant 0 : index
    %108 = vector.load %arg19[%c2_97, %c0_98, %c0_99] : memref<3x256x128xf32, #tpu.memory_space<vmem>>, vector<1x256x128xf32>
    %109 = vector.shape_cast %108 : vector<1x256x128xf32> to vector<256x128xf32>
    %110 = vector.shape_cast %107 : vector<256x128xf32> to vector<1x256x128xf32>
    tpu.vector_store %arg19[%c2_97, %c0_98, %c0_99], %110 {strides = array<i32>} : memref<3x256x128xf32, #tpu.memory_space<vmem>>, vector<1x256x128xf32>,
    %c2_100 = arith.constant 2 : index
    %c0_101 = arith.constant 0 : index
    %c0_102 = arith.constant 0 : index
    %111 = vector.load %arg8[%c2_100, %c0_101, %c0_102] : memref<3x128x128xf32, #tpu.memory_space<vmem>>, vector<1x128x128xf32>
    %112 = vector.shape_cast %111 : vector<1x128x128xf32> to vector<128x128xf32>
    %cst_103 = arith.constant dense<0.000000e+00> : vector<256x128xf32>
    %113 = tpu.matmul %5, %112, %cst_103 {dimension_numbers = #tpu.dot_dimension_numbers<[1], [0], [0], [1], [0, 0, 1, 1], [], []>} : vector<256x128xf32>, vector<128x128xf32>, vector<256x128xf32> -> vector<256x128xf32>
    %c2_104 = arith.constant 2 : index
    %c0_105 = arith.constant 0 : index
    %c0_106 = arith.constant 0 : index
    %114 = vector.load %arg9[%c2_104, %c0_105, %c0_106] : memref<3x1x128xf32, #tpu.memory_space<vmem>>, vector<1x1x128xf32>
    %115 = vector.shape_cast %114 : vector<1x1x128xf32> to vector<1x128xf32>
    %116 = vector.broadcast %115 : vector<1x128xf32> to vector<256x128xf32>
    %117 = arith.addf %113, %116 : vector<256x128xf32>
    %118 = vector.broadcast %87 : f32 to vector<256x128xf32>
    %119 = arith.mulf %117, %118 : vector<256x128xf32>
    %c0_107 = arith.constant 0 : index
    %c0_108 = arith.constant 0 : index
    %c0_109 = arith.constant 0 : index
    %120 = vector.load %arg18[%c0_107, %c0_108, %c0_109] : memref<3x256x128xf32, #tpu.memory_space<vmem>>, vector<1x256x128xf32>
    %121 = vector.shape_cast %120 : vector<1x256x128xf32> to vector<256x128xf32>
    %122 = arith.addf %121, %119 : vector<256x128xf32>
    %c0_110 = arith.constant 0 : index
    %c0_111 = arith.constant 0 : index
    %c0_112 = arith.constant 0 : index
    %123 = vector.load %arg18[%c0_110, %c0_111, %c0_112] : memref<3x256x128xf32, #tpu.memory_space<vmem>>, vector<1x256x128xf32>
    %124 = vector.shape_cast %123 : vector<1x256x128xf32> to vector<256x128xf32>
    %125 = vector.shape_cast %122 : vector<256x128xf32> to vector<1x256x128xf32>
    tpu.vector_store %arg18[%c0_110, %c0_111, %c0_112], %125 {strides = array<i32>} : memref<3x256x128xf32, #tpu.memory_space<vmem>>, vector<1x256x128xf32>,
    %c1_113 = arith.constant 1 : index
    %c0_114 = arith.constant 0 : index
    %c0_115 = arith.constant 0 : index
    %126 = vector.load %arg18[%c1_113, %c0_114, %c0_115] : memref<3x256x128xf32, #tpu.memory_space<vmem>>, vector<1x256x128xf32>
    %127 = vector.shape_cast %126 : vector<1x256x128xf32> to vector<256x128xf32>
    %128 = arith.addf %127, %119 : vector<256x128xf32>
    %c1_116 = arith.constant 1 : index
    %c0_117 = arith.constant 0 : index
    %c0_118 = arith.constant 0 : index
    %129 = vector.load %arg18[%c1_116, %c0_117, %c0_118] : memref<3x256x128xf32, #tpu.memory_space<vmem>>, vector<1x256x128xf32>
    %130 = vector.shape_cast %129 : vector<1x256x128xf32> to vector<256x128xf32>
    %131 = vector.shape_cast %128 : vector<256x128xf32> to vector<1x256x128xf32>
    tpu.vector_store %arg18[%c1_116, %c0_117, %c0_118], %131 {strides = array<i32>} : memref<3x256x128xf32, #tpu.memory_space<vmem>>, vector<1x256x128xf32>,
    %c0_119 = arith.constant 0 : index
    %c0_120 = arith.constant 0 : index
    %c0_121 = arith.constant 0 : index
    %132 = vector.load %arg17[%c0_119, %c0_120, %c0_121] : memref<3x256x128xf32, #tpu.memory_space<vmem>>, vector<1x256x128xf32>
    %133 = vector.shape_cast %132 : vector<1x256x128xf32> to vector<256x128xf32>
    %c0_122 = arith.constant 0 : index
    %c0_123 = arith.constant 0 : index
    %c0_124 = arith.constant 0 : index
    %134 = vector.load %arg18[%c0_122, %c0_123, %c0_124] : memref<3x256x128xf32, #tpu.memory_space<vmem>>, vector<1x256x128xf32>
    %135 = vector.shape_cast %134 : vector<1x256x128xf32> to vector<256x128xf32>
    %cst_125 = arith.constant dense<0.000000e+00> : vector<256x256xf32>
    %136 = tpu.matmul %133, %135, %cst_125 {dimension_numbers = #tpu.dot_dimension_numbers<[1], [1], [0], [0], [0, 0, 1, 0], [], []>} : vector<256x128xf32>, vector<256x128xf32>, vector<256x256xf32> -> vector<256x256xf32>
    %cst_126 = arith.constant dense<0xFF800000> : vector<256xf32>
    %137 = vector.multi_reduction <maximumf>, %136, %cst_126 [1] : vector<256x256xf32> to vector<256xf32>
    %138 = vector.shape_cast %137 : vector<256xf32> to vector<256x1xf32>
    %139 = vector.broadcast %138 : vector<256x1xf32> to vector<256x256xf32>
    %140 = arith.subf %136, %139 : vector<256x256xf32>
    %141 = math.exp %140 : vector<256x256xf32>
    %cst_127 = arith.constant dense<0.000000e+00> : vector<256xf32>
    %142 = vector.multi_reduction <add>, %141, %cst_127 [1] : vector<256x256xf32> to vector<256xf32>
    %143 = vector.shape_cast %142 : vector<256xf32> to vector<256x1xf32>
    %144 = tpu.reciprocal %143 {approx = true} : vector<256x1xf32> -> vector<256x1xf32>
    %145 = vector.broadcast %144 : vector<256x1xf32> to vector<256x256xf32>
    %146 = arith.mulf %141, %145 : vector<256x256xf32>
    %c0_128 = arith.constant 0 : index
    %c0_129 = arith.constant 0 : index
    %c0_130 = arith.constant 0 : index
    %147 = vector.load %arg19[%c0_128, %c0_129, %c0_130] : memref<3x256x128xf32, #tpu.memory_space<vmem>>, vector<1x256x128xf32>
    %148 = vector.shape_cast %147 : vector<1x256x128xf32> to vector<256x128xf32>
    %cst_131 = arith.constant dense<0.000000e+00> : vector<256x128xf32>
    %149 = tpu.matmul %146, %148, %cst_131 {dimension_numbers = #tpu.dot_dimension_numbers<[1], [0], [0], [1], [0, 0, 1, 1], [], []>} : vector<256x256xf32>, vector<256x128xf32>, vector<256x128xf32> -> vector<256x128xf32>
    %c0_132 = arith.constant 0 : index
    %c0_133 = arith.constant 0 : index
    %150 = vector.load %arg12[%c0_132, %c0_133] : memref<128x128xf32, #tpu.memory_space<vmem>>, vector<128x128xf32>
    %cst_134 = arith.constant dense<0.000000e+00> : vector<256x128xf32>
    %151 = tpu.matmul %149, %150, %cst_134 {dimension_numbers = #tpu.dot_dimension_numbers<[1], [0], [0], [1], [0, 0, 1, 1], [], []>} : vector<256x128xf32>, vector<128x128xf32>, vector<256x128xf32> -> vector<256x128xf32>
    %c0_135 = arith.constant 0 : index
    %c0_136 = arith.constant 0 : index
    %152 = vector.load %arg13[%c0_135, %c0_136] : memref<1x128xf32, #tpu.memory_space<vmem>>, vector<1x128xf32>
    %153 = vector.broadcast %152 : vector<1x128xf32> to vector<256x128xf32>
    %154 = arith.addf %151, %153 : vector<256x128xf32>
    %155 = arith.negf %154 : vector<256x128xf32>
    %156 = math.exp %155 : vector<256x128xf32>
    %cst_137 = arith.constant 1.000000e+00 : f32
    %157 = vector.broadcast %cst_137 : f32 to vector<256x128xf32>
    %158 = arith.addf %157, %156 : vector<256x128xf32>
    %159 = arith.divf %157, %158 : vector<256x128xf32>
    %160 = arith.mulf %159, %149 : vector<256x128xf32>
    %c1_138 = arith.constant 1 : index
    %c0_139 = arith.constant 0 : index
    %c0_140 = arith.constant 0 : index
    %161 = vector.load %arg17[%c1_138, %c0_139, %c0_140] : memref<3x256x128xf32, #tpu.memory_space<vmem>>, vector<1x256x128xf32>
    %162 = vector.shape_cast %161 : vector<1x256x128xf32> to vector<256x128xf32>
    %c1_141 = arith.constant 1 : index
    %c0_142 = arith.constant 0 : index
    %c0_143 = arith.constant 0 : index
    %163 = vector.load %arg18[%c1_141, %c0_142, %c0_143] : memref<3x256x128xf32, #tpu.memory_space<vmem>>, vector<1x256x128xf32>
    %164 = vector.shape_cast %163 : vector<1x256x128xf32> to vector<256x128xf32>
    %cst_144 = arith.constant dense<0.000000e+00> : vector<256x256xf32>
    %165 = tpu.matmul %162, %164, %cst_144 {dimension_numbers = #tpu.dot_dimension_numbers<[1], [1], [0], [0], [0, 0, 1, 0], [], []>} : vector<256x128xf32>, vector<256x128xf32>, vector<256x256xf32> -> vector<256x256xf32>
    %cst_145 = arith.constant dense<0xFF800000> : vector<256xf32>
    %166 = vector.multi_reduction <maximumf>, %165, %cst_145 [1] : vector<256x256xf32> to vector<256xf32>
    %167 = vector.shape_cast %166 : vector<256xf32> to vector<256x1xf32>
    %168 = vector.broadcast %167 : vector<256x1xf32> to vector<256x256xf32>
    %169 = arith.subf %165, %168 : vector<256x256xf32>
    %170 = math.exp %169 : vector<256x256xf32>
    %cst_146 = arith.constant dense<0.000000e+00> : vector<256xf32>
    %171 = vector.multi_reduction <add>, %170, %cst_146 [1] : vector<256x256xf32> to vector<256xf32>
    %172 = vector.shape_cast %171 : vector<256xf32> to vector<256x1xf32>
    %173 = tpu.reciprocal %172 {approx = true} : vector<256x1xf32> -> vector<256x1xf32>
    %174 = vector.broadcast %173 : vector<256x1xf32> to vector<256x256xf32>
    %175 = arith.mulf %170, %174 : vector<256x256xf32>
    %c1_147 = arith.constant 1 : index
    %c0_148 = arith.constant 0 : index
    %c0_149 = arith.constant 0 : index
    %176 = vector.load %arg19[%c1_147, %c0_148, %c0_149] : memref<3x256x128xf32, #tpu.memory_space<vmem>>, vector<1x256x128xf32>
    %177 = vector.shape_cast %176 : vector<1x256x128xf32> to vector<256x128xf32>
    %cst_150 = arith.constant dense<0.000000e+00> : vector<256x128xf32>
    %178 = tpu.matmul %175, %177, %cst_150 {dimension_numbers = #tpu.dot_dimension_numbers<[1], [0], [0], [1], [0, 0, 1, 1], [], []>} : vector<256x256xf32>, vector<256x128xf32>, vector<256x128xf32> -> vector<256x128xf32>
    %c0_151 = arith.constant 0 : index
    %c0_152 = arith.constant 0 : index
    %179 = vector.load %arg12[%c0_151, %c0_152] : memref<128x128xf32, #tpu.memory_space<vmem>>, vector<128x128xf32>
    %cst_153 = arith.constant dense<0.000000e+00> : vector<256x128xf32>
    %180 = tpu.matmul %178, %179, %cst_153 {dimension_numbers = #tpu.dot_dimension_numbers<[1], [0], [0], [1], [0, 0, 1, 1], [], []>} : vector<256x128xf32>, vector<128x128xf32>, vector<256x128xf32> -> vector<256x128xf32>
    %c0_154 = arith.constant 0 : index
    %c0_155 = arith.constant 0 : index
    %181 = vector.load %arg13[%c0_154, %c0_155] : memref<1x128xf32, #tpu.memory_space<vmem>>, vector<1x128xf32>
    %182 = vector.broadcast %181 : vector<1x128xf32> to vector<256x128xf32>
    %183 = arith.addf %180, %182 : vector<256x128xf32>
    %184 = arith.negf %183 : vector<256x128xf32>
    %185 = math.exp %184 : vector<256x128xf32>
    %cst_156 = arith.constant 1.000000e+00 : f32
    %186 = vector.broadcast %cst_156 : f32 to vector<256x128xf32>
    %187 = arith.addf %186, %185 : vector<256x128xf32>
    %188 = arith.divf %186, %187 : vector<256x128xf32>
    %189 = arith.mulf %188, %178 : vector<256x128xf32>
    %190 = arith.addf %160, %189 : vector<256x128xf32>
    %c2_157 = arith.constant 2 : index
    %c0_158 = arith.constant 0 : index
    %c0_159 = arith.constant 0 : index
    %191 = vector.load %arg17[%c2_157, %c0_158, %c0_159] : memref<3x256x128xf32, #tpu.memory_space<vmem>>, vector<1x256x128xf32>
    %192 = vector.shape_cast %191 : vector<1x256x128xf32> to vector<256x128xf32>
    %c2_160 = arith.constant 2 : index
    %c0_161 = arith.constant 0 : index
    %c0_162 = arith.constant 0 : index
    %193 = vector.load %arg18[%c2_160, %c0_161, %c0_162] : memref<3x256x128xf32, #tpu.memory_space<vmem>>, vector<1x256x128xf32>
    %194 = vector.shape_cast %193 : vector<1x256x128xf32> to vector<256x128xf32>
    %cst_163 = arith.constant dense<0.000000e+00> : vector<256x256xf32>
    %195 = tpu.matmul %192, %194, %cst_163 {dimension_numbers = #tpu.dot_dimension_numbers<[1], [1], [0], [0], [0, 0, 1, 0], [], []>} : vector<256x128xf32>, vector<256x128xf32>, vector<256x256xf32> -> vector<256x256xf32>
    %cst_164 = arith.constant dense<0xFF800000> : vector<256xf32>
    %196 = vector.multi_reduction <maximumf>, %195, %cst_164 [1] : vector<256x256xf32> to vector<256xf32>
    %197 = vector.shape_cast %196 : vector<256xf32> to vector<256x1xf32>
    %198 = vector.broadcast %197 : vector<256x1xf32> to vector<256x256xf32>
    %199 = arith.subf %195, %198 : vector<256x256xf32>
    %200 = math.exp %199 : vector<256x256xf32>
    %cst_165 = arith.constant dense<0.000000e+00> : vector<256xf32>
    %201 = vector.multi_reduction <add>, %200, %cst_165 [1] : vector<256x256xf32> to vector<256xf32>
    %202 = vector.shape_cast %201 : vector<256xf32> to vector<256x1xf32>
    %203 = tpu.reciprocal %202 {approx = true} : vector<256x1xf32> -> vector<256x1xf32>
    %204 = vector.broadcast %203 : vector<256x1xf32> to vector<256x256xf32>
    %205 = arith.mulf %200, %204 : vector<256x256xf32>
    %c2_166 = arith.constant 2 : index
    %c0_167 = arith.constant 0 : index
    %c0_168 = arith.constant 0 : index
    %206 = vector.load %arg19[%c2_166, %c0_167, %c0_168] : memref<3x256x128xf32, #tpu.memory_space<vmem>>, vector<1x256x128xf32>
    %207 = vector.shape_cast %206 : vector<1x256x128xf32> to vector<256x128xf32>
    %cst_169 = arith.constant dense<0.000000e+00> : vector<256x128xf32>
    %208 = tpu.matmul %205, %207, %cst_169 {dimension_numbers = #tpu.dot_dimension_numbers<[1], [0], [0], [1], [0, 0, 1, 1], [], []>} : vector<256x256xf32>, vector<256x128xf32>, vector<256x128xf32> -> vector<256x128xf32>
    %c0_170 = arith.constant 0 : index
    %c0_171 = arith.constant 0 : index
    %209 = vector.load %arg12[%c0_170, %c0_171] : memref<128x128xf32, #tpu.memory_space<vmem>>, vector<128x128xf32>
    %cst_172 = arith.constant dense<0.000000e+00> : vector<256x128xf32>
    %210 = tpu.matmul %208, %209, %cst_172 {dimension_numbers = #tpu.dot_dimension_numbers<[1], [0], [0], [1], [0, 0, 1, 1], [], []>} : vector<256x128xf32>, vector<128x128xf32>, vector<256x128xf32> -> vector<256x128xf32>
    %c0_173 = arith.constant 0 : index
    %c0_174 = arith.constant 0 : index
    %211 = vector.load %arg13[%c0_173, %c0_174] : memref<1x128xf32, #tpu.memory_space<vmem>>, vector<1x128xf32>
    %212 = vector.broadcast %211 : vector<1x128xf32> to vector<256x128xf32>
    %213 = arith.addf %210, %212 : vector<256x128xf32>
    %214 = arith.negf %213 : vector<256x128xf32>
    %215 = math.exp %214 : vector<256x128xf32>
    %cst_175 = arith.constant 1.000000e+00 : f32
    %216 = vector.broadcast %cst_175 : f32 to vector<256x128xf32>
    %217 = arith.addf %216, %215 : vector<256x128xf32>
    %218 = arith.divf %216, %217 : vector<256x128xf32>
    %219 = arith.mulf %218, %208 : vector<256x128xf32>
    %220 = arith.addf %190, %219 : vector<256x128xf32>
    %c0_176 = arith.constant 0 : index
    %c0_177 = arith.constant 0 : index
    %221 = vector.load %arg14[%c0_176, %c0_177] : memref<128x128xf32, #tpu.memory_space<vmem>>, vector<128x128xf32>
    %cst_178 = arith.constant dense<0.000000e+00> : vector<256x128xf32>
    %222 = tpu.matmul %220, %221, %cst_178 {dimension_numbers = #tpu.dot_dimension_numbers<[1], [0], [0], [1], [0, 0, 1, 1], [], []>} : vector<256x128xf32>, vector<128x128xf32>, vector<256x128xf32> -> vector<256x128xf32>
    %c0_179 = arith.constant 0 : index
    %c0_180 = arith.constant 0 : index
    %223 = vector.load %arg15[%c0_179, %c0_180] : memref<1x128xf32, #tpu.memory_space<vmem>>, vector<1x128xf32>
    %224 = vector.broadcast %223 : vector<1x128xf32> to vector<256x128xf32>
    %225 = arith.addf %222, %224 : vector<256x128xf32>
    %c0_181 = arith.constant 0 : index
    %c0_182 = arith.constant 0 : index
    %c0_183 = arith.constant 0 : index
    %226 = vector.load %arg16[%c0_181, %c0_182, %c0_183] : memref<1x256x128xf32, #tpu.memory_space<vmem>>, vector<1x256x128xf32>
    %227 = vector.shape_cast %226 : vector<1x256x128xf32> to vector<256x128xf32>
    %228 = vector.shape_cast %225 : vector<256x128xf32> to vector<1x256x128xf32>
    tpu.vector_store %arg16[%c0_181, %c0_182, %c0_183], %228 {strides = array<i32>} : memref<1x256x128xf32, #tpu.memory_space<vmem>>, vector<1x256x128xf32>,
    return
  }
  func.func @transform_0(%arg0: i32, %arg1: i32) -> i32 {
    %c0_i32 = arith.constant 0 : i32
    %c0_i32_0 = arith.constant 0 : i32
    return %c0_i32 : i32
  }
  func.func @transform_1(%arg0: i32, %arg1: i32) -> (i32, i32, i32) {
    %c0_i32 = arith.constant 0 : i32
    %c0_i32_0 = arith.constant 0 : i32
    %c0_i32_1 = arith.constant 0 : i32
    return %arg0, %c0_i32, %c0_i32_0 : i32, i32, i32
  }
  func.func @transform_2(%arg0: i32, %arg1: i32) -> (i32, i32, i32) {
    %c0_i32 = arith.constant 0 : i32
    %c0_i32_0 = arith.constant 0 : i32
    %c0_i32_1 = arith.constant 0 : i32
    return %arg0, %c0_i32, %c0_i32_0 : i32, i32, i32
  }
  func.func @transform_3(%arg0: i32, %arg1: i32) -> (i32, i32, i32) {
    %c0_i32 = arith.constant 0 : i32
    %c0_i32_0 = arith.constant 0 : i32
    %c0_i32_1 = arith.constant 0 : i32
    return %arg0, %c0_i32, %c0_i32_0 : i32, i32, i32
  }
  func.func @transform_4(%arg0: i32, %arg1: i32) -> (i32, i32, i32) {
    %c0_i32 = arith.constant 0 : i32
    %c0_i32_0 = arith.constant 0 : i32
    %c0_i32_1 = arith.constant 0 : i32
    %c0_i32_2 = arith.constant 0 : i32
    return %c0_i32, %c0_i32_0, %c0_i32_1 : i32, i32, i32
  }
  func.func @transform_5(%arg0: i32, %arg1: i32) -> (i32, i32, i32) {
    %c0_i32 = arith.constant 0 : i32
    %c0_i32_0 = arith.constant 0 : i32
    %c0_i32_1 = arith.constant 0 : i32
    %c0_i32_2 = arith.constant 0 : i32
    return %c0_i32, %c0_i32_0, %c0_i32_1 : i32, i32, i32
  }
  func.func @transform_6(%arg0: i32, %arg1: i32) -> (i32, i32, i32) {
    %c0_i32 = arith.constant 0 : i32
    %c0_i32_0 = arith.constant 0 : i32
    %c0_i32_1 = arith.constant 0 : i32
    %c0_i32_2 = arith.constant 0 : i32
    return %c0_i32, %c0_i32_0, %c0_i32_1 : i32, i32, i32
  }
  func.func @transform_7(%arg0: i32, %arg1: i32) -> (i32, i32, i32) {
    %c0_i32 = arith.constant 0 : i32
    %c0_i32_0 = arith.constant 0 : i32
    %c0_i32_1 = arith.constant 0 : i32
    %c0_i32_2 = arith.constant 0 : i32
    return %c0_i32, %c0_i32_0, %c0_i32_1 : i32, i32, i32
  }
  func.func @transform_8(%arg0: i32, %arg1: i32) -> (i32, i32, i32) {
    %c0_i32 = arith.constant 0 : i32
    %c0_i32_0 = arith.constant 0 : i32
    %c0_i32_1 = arith.constant 0 : i32
    %c0_i32_2 = arith.constant 0 : i32
    return %c0_i32, %c0_i32_0, %c0_i32_1 : i32, i32, i32
  }
  func.func @transform_9(%arg0: i32, %arg1: i32) -> (i32, i32, i32) {
    %c0_i32 = arith.constant 0 : i32
    %c0_i32_0 = arith.constant 0 : i32
    %c0_i32_1 = arith.constant 0 : i32
    %c0_i32_2 = arith.constant 0 : i32
    return %c0_i32, %c0_i32_0, %c0_i32_1 : i32, i32, i32
  }
  func.func @transform_10(%arg0: i32, %arg1: i32) -> (i32, i32) {
    %c0_i32 = arith.constant 0 : i32
    %c0_i32_0 = arith.constant 0 : i32
    %c0_i32_1 = arith.constant 0 : i32
    return %c0_i32, %c0_i32_0 : i32, i32
  }
  func.func @transform_11(%arg0: i32, %arg1: i32) -> (i32, i32) {
    %c0_i32 = arith.constant 0 : i32
    %c0_i32_0 = arith.constant 0 : i32
    %c0_i32_1 = arith.constant 0 : i32
    return %c0_i32, %c0_i32_0 : i32, i32
  }
  func.func @transform_12(%arg0: i32, %arg1: i32) -> (i32, i32) {
    %c0_i32 = arith.constant 0 : i32
    %c0_i32_0 = arith.constant 0 : i32
    %c0_i32_1 = arith.constant 0 : i32
    return %c0_i32, %c0_i32_0 : i32, i32
  }
  func.func @transform_13(%arg0: i32, %arg1: i32) -> (i32, i32) {
    %c0_i32 = arith.constant 0 : i32
    %c0_i32_0 = arith.constant 0 : i32
    %c0_i32_1 = arith.constant 0 : i32
    return %c0_i32, %c0_i32_0 : i32, i32
  }
  func.func @transform_14(%arg0: i32, %arg1: i32) -> (i32, i32, i32) {
    %c0_i32 = arith.constant 0 : i32
    %c0_i32_0 = arith.constant 0 : i32
    return %arg0, %arg1, %c0_i32 : i32, i32, i32
  }
}

</mosaic_0001>

<bundles_post_ra>
// kernel: tpu_custom_call.1
= control target key start
LH: loop header
LB: loop body
LE: loop exit
PB: predicated region body
PF: predicated region fallthrough
CT: control target
= control target key end

     0   :  { %s17680_s0 = inlined_call_operand.hbm [shape: f32[3], index: 0, kind: input, shape index: {}]   ;;  %s17681_s1 = inlined_call_operand.hbm [shape: f32[2,256,128], index: 1, kind: input, shape index: {}]   ;;  %s17682_s2 = inlined_call_operand.hbm [shape: f32[2,256,128], index: 2, kind: input, shape index: {}]   ;;  %s17683_s3 = inlined_call_operand.hbm [shape: f32[2,256,128], index: 3, kind: input, shape index: {}]   ;;  %s17684_s4 = inlined_call_operand.hbm [shape: f32[3,128,128], index: 4, kind: input, shape index: {}]   ;;  %s17685_s5 = inlined_call_operand.vmem [shape: f32[3,1,128], index: 5, kind: input, shape index: {}]   ;;  %s17686_s6 = inlined_call_operand.hbm [shape: f32[3,128,128], index: 6, kind: input, shape index: {}]   ;;  %s17687_s7 = inlined_call_operand.vmem [shape: f32[3,1,128], index: 7, kind: input, shape index: {}]   ;;  %s17688_s8 = inlined_call_operand.hbm [shape: f32[3,128,128], index: 8, kind: input, shape index: {}]   ;;  %s17689_s9 = inlined_call_operand.vmem [shape: f32[3,1,128], index: 9, kind: input, shape index: {}]   ;;  %s17690_s10 = inlined_call_operand.hbm [shape: f32[128,128], index: 10, kind: input, shape index: {}]   ;;  %s17691_s11 = inlined_call_operand.vmem [shape: f32[1,128], index: 11, kind: input, shape index: {}]   ;;  %s17692_s12 = inlined_call_operand.hbm [shape: f32[128,128], index: 12, kind: input, shape index: {}]   ;;  %s17693_s13 = inlined_call_operand.vmem [shape: f32[1,128], index: 13, kind: input, shape index: {}]   ;;  %s17694_s14 = inlined_call_operand.hbm [shape: f32[2,256,128], index: 14, kind: output, shape index: {}]  }
   0x1   :  { %18025 = sst [smem:[#allocation266_spill]] %s17682_s2 }
   0x2   :  { %18026 = sst [smem:[#allocation267_spill]] %s17684_s4 }
   0x3   :  { %18027 = sst [smem:[#allocation268_spill]] %s17688_s8 }
   0x4   :  { %18028 = sst [smem:[#allocation269_spill]] %s17689_s9 }
   0x5   :  { %18029 = sst [smem:[#allocation270_spill]] %s17691_s11 }
   0x6   :  { %18030 = sst [smem:[#allocation271_spill]] %s17693_s13 }
   0x7   :  { %18031 = sst [smem:[#allocation272_spill]] %s17694_s14 }
   0x8   :  { %19 = vsyncpa [#allocation8], 0 }
   0x9   :  { %20 = vsyncpa [#allocation6], 0 }
   0xa   :  { %22 = vsyncpa [#allocation6 + $0x1], 0 }
   0xb   :  { %23 = vsyncpa [#allocation11], 0 }
   0xc   :  { %25 = vsyncpa [#allocation11 + $0x1], 0 }
   0xd   :  { %26 = vsyncpa [#allocation14], 0 }
   0xe   :  { %27 = vsyncpa [#allocation17], 0 }
   0xf   :  { %28 = vsyncpa [#allocation20], 0 }
  0x10   :  { %29 = vsyncpa [#allocation7], 0 }
  0x11   :  { %31 = vsyncpa [#allocation7 + $0x1], 0  ;;  %s12553_s29 = smov 0   ;;  %s12555_s30 = smov 0  }
  0x12   :  { %s12557_s15 = smov 0   ;;  %s12559_s16 = smov 0  }
  0x13   :  { %s12561_s17 = smov 0   ;;  %s12563_s18 = smov 0  }
  0x14 LB: > { %18032 = sst [smem:[#allocation29_spill]] %s12441_s29  ;;  %s12463_s19 = smov [#allocation13]   ;;  %s12461_s18 = sphi %s12563_s18, %s37_s18   ;;  %s12457_s17 = sphi %s12561_s17, %s19022_s17   ;;  %s12453_s16 = sphi %s12559_s16, %s19021_s16   ;;  %s12449_s15 = sphi %s12557_s15, %s19025_s15   ;;  %s12445_s30 = sphi %s12555_s30, %s19024_s30   ;;  %s12441_s29 = sphi %s12553_s29, %s19023_s29  }
  0x15   : > { %18033 = sst [smem:[#allocation30_spill]] %s12453_s16  ;;  %s412_s20 = sshll.u32 %s12463_s19, 4  ;;  %s413_s20 = int_to_ptr.vmem [resolvable:$true] %s412_s20 }
  0x16   : > { %18034 = sst [smem:[#allocation31_spill]] %s12457_s17  ;;  %s12584_s21 = sadd.s32 4294967295, %s12461_s18  }
  0x17   : > { %18035 = sst [smem:[#allocation32_spill]] %s12461_s18  ;;  %p8882_p0 = scmp.ge.s32.totalorder %s12461_s18, 1 }
  0x18   : > { %p17710_p1 = scmp.eq.s32.totalorder %s12584_s21, 0  ;;  %p391_p2 = scmp.lt.s32.totalorder %s12461_s18, 3 }
  0x19   : > { %s12464_s23 = smov [#allocation16]   ;;  %s12147_s27 = scalar_lea.vmem %s413_s20, 6144 }
  0x1a   : > { %p12589_p3 = pnand %p8882_p0, %p391_p2  ;;  %s444_s24 = sshll.u32 %s12464_s23, 4  ;;  %s445_s24 = int_to_ptr.vmem [resolvable:$true] %s444_s24 }
  0x1b   : > { %p12148_p8 = scmp.ne.s32.totalorder %s413_s20, %s12147_s27  ;;  %p12155_p11 = scmp.lt.s32.totalorder %s413_s20, %s413_s20 }
  0x1c   : > { %p11050_p5 = pneg %p12589_p3  ;;  %p12156_p12 = scmp.lt.s32.totalorder %s12147_s27, %s12147_s27 }
  0x1e   : > { %p12598_p6 = pnand %p11050_p5, %p17710_p1  ;;  %p12157_p13 = por %p12156_p12, %p12155_p11 }
  0x20   : > { %p12604_p7 = pneg %p12598_p6 }
  0x22   : > { %p12150_p9 = pnand %p12148_p8, %p12604_p7 }
  0x24   : > { %p12151_p10 = pneg %p12150_p9 }
  0x26   : > { %p12158_p0 = pnand %p12157_p13, %p12151_p10 }
  0x28   : > { %12161 = shalt.err (!%p12158_p0)
}
  0x29   : > { %s17696_s28 = smov 128   ;;  %s17698_s19 = smov 8  }
  0x2a   : > { %s18039_s4 = sld [smem:[#allocation267_spill]]  ;;  %s12173_s16 = scalar_lea.vmem %s445_s24, 6144 }
  0x2b   : > { %p12174_p2 = scmp.ne.s32.totalorder %s445_s24, %s12173_s16  ;;  %p12181_p9 = scmp.lt.s32.totalorder %s445_s24, %s445_s24 }
  0x2c   : > { %p12182_p10 = scmp.lt.s32.totalorder %s12173_s16, %s12173_s16 }
  0x2d   : > { %p12176_p5 = pnand %p12174_p2, %p12604_p7 }
  0x2e   : > { %p12183_p11 = por %p12182_p10, %p12181_p9 }
  0x2f   : > { %p12177_p8 = pneg %p12176_p5 }
  0x30   : > { %11056 = dma.hbm_to_vmem [thread:$0]  (!%p12598_p6), %s18039_s4, 6144, %s413_s20, [#allocation14], %s17696_s28, %s17696_s28, %s17698_s19  }
  0x31   : > { %p12184_p12 = pnand %p12183_p11, %p12177_p8 }
  0x33   : > { %12187 = shalt.err (!%p12184_p12)
}
  0x34   : > { %s18040_s8 = sld [smem:[#allocation268_spill]]  ;;  %s8881_s14 = sadd.s32 4294967294, %s12461_s18  }
  0x35   : > { %s49_s16 = sadd.s32 1, %s12457_s17  ;;  %s77_s20 = sadd.s32 1, %s12449_s15 }
  0x36   : > { %p51_p13 = scmp.ge.s32.totalorder %s49_s16, 2  ;;  %p84_p0 = scmp.ne.s32.totalorder %s12449_s15, %s12445_s30 }
  0x37   : > { %p85_p2 = scmp.eq.s32.totalorder %s12461_s18, 0  ;;  %p90_p8 = scmp.ne.s32.totalorder %s12445_s30, %s12441_s29 }
  0x38   : > { %s19027_s16 = smov (%p51_p13, %s49_s16), 0  ;;  %p378_p9 = scmp.eq.s32.totalorder %s12584_s21, 1 }
  0x39   : > { %18041 = sst [smem:[#allocation33_spill]] %s19027_s16  ;;  %p12636_p5 = por %p85_p2, %p84_p0 }
  0x3a   : > { %11062 = dma.hbm_to_vmem [thread:$0]  (!%p12598_p6), %s18040_s8, 6144, %s445_s24, [#allocation17], %s17696_s28, %s17696_s28, %s17698_s19  }
  0x3b   : > { %s74_s24 = ssub.s32 %s12457_s17, %s19027_s16  ;;  %p12647_p11 = por %p17710_p1, %p90_p8 }
  0x3c   : > { %p75_p10 = scmp.eq.s32.totalorder %s74_s24, 0  ;;  %p12651_p12 = por %p378_p9, %p84_p0 }
  0x3d   : > { %s18043_s23 = scalar_select %p12647_p11, 1, 0 }
  0x3e   : > { %s18044_s27 = scalar_select %p12651_p12, 1, 0 }
  0x3f   : > { %p384_p13 = scmp.eq.s32.totalorder %s8881_s14, 1  ;;  %p11089_p4 = scmp.lt.s32.totalorder %s12461_s18, 2 }
  0x40   : > { %18045 = sst [smem:[#allocation34_spill]] %s18044_s27  ;;  %s17706_s4 = sand.u32 1, %s12449_s15  }
  0x41   : > { %s12656_s28 = scalar_select %p75_p10, %s12449_s15, %s77_s20  }
  0x42   : > { %p12658_p2 = por %p384_p13, %p90_p8  ;;  %s12665_s8 = sshll.u32 %s12457_s17, 12 }
  0x43   : > { %18046 = sst [smem:[#allocation35_spill]] %s12656_s28  ;;  %s12669_s24 = sshll.u32 %s17706_s4, 8 }
  0x44   : > { %s18047_s19 = scalar_select %p12658_p2, 1, 0 }
  0x45   : > { %p12673_p0 = pnand %p11089_p4, %p12636_p5  ;;  %s514_s14 = sand.u32 1, %s12461_s18  }
  0x46   : > { %18048 = sst [smem:[#allocation36_spill]] %s18047_s19  ;;  %s518_s29 = scalar_lea.vmem [#allocation10], %s12669_s24 }
  0x47   : > { %s18050_s2 = sld [smem:[#allocation266_spill]]  ;;  %s525_s17 = sshll.u32 %s518_s29, 4  ;;  %s526_s17 = int_to_ptr.vmem [resolvable:$true] %s525_s17 }
  0x48   : > { %s12683_s27 = scalar_lea.sflag [#allocation11], %s514_s14  ;;  %p17712_p8 = pneg %p12673_p0 }
  0x49   : > { %s12201_s13 = scalar_lea.vmem %s526_s17, 4096  ;;  %s12467_s4 = smov [#allocation10]  }
  0x4a   : > { %p12202_p9 = scmp.ne.s32.totalorder %s526_s17, %s12201_s13  ;;  %s12206_s11 = sshll.u32 %s12467_s4, 4  ;;  %s12207_s11 = int_to_ptr.vmem [resolvable:$false] %s12206_s11 }
  0x4b   : > { %s12208_s18 = scalar_lea.vmem %s12207_s11, 8192  ;;  %p12209_p10 = scmp.lt.s32.totalorder %s526_s17, %s12207_s11 }
  0x4c   : > { %p12204_p4 = pnand %p12202_p9, %p17712_p8  ;;  %p12210_p13 = scmp.lt.s32.totalorder %s12208_s18, %s12201_s13 }
  0x4d   : > { %s524_s19 = scalar_lea.hbm %s18050_s2, %s12665_s8 }
  0x4e   : > { %p12205_p5 = pneg %p12204_p4  ;;  %p12211_p1 = por %p12210_p13, %p12209_p10 }
  0x50   : > { %p12212_p2 = pnand %p12211_p1, %p12205_p5 }
  0x52   : > { %12215 = shalt.err (!%p12212_p2)
}
  0x53   : > { %s18051_s29 = smov 8   ;;  %s18052_s28 = smov 128  }
  0x54   : > { %11075 = dma.hbm_to_vmem [thread:$0]  (!%p12673_p0), %s524_s19, 4096, %s526_s17, %s12683_s27, %s18052_s28, %s18052_s28, %s18051_s29  }
  0x55   : > { %s12468_s14 = smov [#allocation5]   ;;  %s12469_s11 = smov [#allocation15]  }
  0x56   : > { %11053 = dma.hbm_to_smem (!%p12598_p6), %s17680_s0, 16, %s12468_s14, [#allocation8]  }
  0x57   : > { %s428_s18 = sshll.u32 %s12469_s11, 4  ;;  %s12470_s13 = smov [#allocation18]   ;;  %s429_s18 = int_to_ptr.vmem [resolvable:$true] %s428_s18 }
  0x58   : > { %s460_s2 = sshll.u32 %s12470_s13, 4  ;;  %s12238_s9 = scalar_lea.vmem %s429_s18, 6144  ;;  %s461_s2 = int_to_ptr.vmem [resolvable:$true] %s460_s2 }
  0x59   : > { %p12239_p1 = scmp.ne.s32.totalorder %s429_s18, %s12238_s9  ;;  %p12246_p4 = scmp.lt.s32.totalorder %s429_s18, %s429_s18 }
  0x5a   : > { %p12247_p5 = scmp.lt.s32.totalorder %s12238_s9, %s12238_s9 }
  0x5b   : > { %p12241_p2 = pnand %p12239_p1, %p12604_p7 }
  0x5c   : > { %p12248_p10 = por %p12247_p5, %p12246_p4 }
  0x5d   : > { %p12242_p9 = pneg %p12241_p2 }
  0x5f   : > { %p12249_p13 = pnand %p12248_p10, %p12242_p9 }
  0x61   : > { %12252 = shalt.err (!%p12249_p13)
}
  0x62   : > { %11059 = dma.hbm_to_vmem [thread:$0]  (!%p12598_p6), %s17686_s6, 6144, %s429_s18, [#allocation14], %s18052_s28, %s18052_s28, %s18051_s29  }
  0x63   : > { %s12264_s14 = scalar_lea.vmem %s461_s2, 2048  ;;  %p12272_p12 = scmp.lt.s32.totalorder %s461_s2, %s461_s2 }
  0x64   : > { %p12265_p8 = scmp.ne.s32.totalorder %s461_s2, %s12264_s14  ;;  %p12273_p11 = scmp.lt.s32.totalorder %s12264_s14, %s12264_s14 }
  0x66   : > { %p12267_p1 = pnand %p12265_p8, %p12604_p7  ;;  %p12274_p4 = por %p12273_p11, %p12272_p12 }
  0x68   : > { %p12268_p2 = pneg %p12267_p1 }
  0x6a   : > { %p12275_p9 = pnand %p12274_p4, %p12268_p2 }
  0x6c   : > { %12278 = shalt.err (!%p12275_p9)
}
  0x6d   : > { %11065 = dma.hbm_to_vmem [thread:$0]  (!%p12598_p6), %s17690_s10, 2048, %s461_s2, [#allocation17], %s18052_s28, %s18052_s28, %s18051_s29  }
  0x6e   : > { %s12471_s4 = smov [#allocation19]  }
  0x6f   : > { %s476_s11 = sshll.u32 %s12471_s4, 4  ;;  %s477_s11 = int_to_ptr.vmem [resolvable:$true] %s476_s11 }
  0x70   : > { %s12290_s19 = scalar_lea.vmem %s477_s11, 2048  ;;  %p12298_p5 = scmp.lt.s32.totalorder %s477_s11, %s477_s11 }
  0x71   : > { %p12291_p11 = scmp.ne.s32.totalorder %s477_s11, %s12290_s19  ;;  %p12299_p10 = scmp.lt.s32.totalorder %s12290_s19, %s12290_s19 }
  0x73   : > { %p12293_p12 = pnand %p12291_p11, %p12604_p7  ;;  %p12300_p13 = por %p12299_p10, %p12298_p5 }
  0x75   : > { %p12294_p8 = pneg %p12293_p12 }
  0x77   : > { %p12301_p1 = pnand %p12300_p13, %p12294_p8 }
  0x79   : > { %12304 = shalt.err (!%p12301_p1)
}
  0x7a   : > { %11068 = dma.hbm_to_vmem [thread:$0]  (!%p12598_p6), %s17692_s12, 2048, %s477_s11, [#allocation20], %s18052_s28, %s18052_s28, %s18051_s29  }
  0x7b   : > { %s497_s26 = scalar_lea.vmem [#allocation9], %s12669_s24  ;;  %s545_s18 = scalar_lea.hbm %s17683_s3, %s12665_s8 }
  0x7c   : > { %s504_s9 = sshll.u32 %s497_s26, 4  ;;  %s18053_s13 = sand.u32 1, %s12449_s15   ;;  %s505_s9 = int_to_ptr.vmem [resolvable:$true] %s504_s9 }
  0x7d   : > { %s494_s25 = scalar_lea.sflag [#allocation6], %s18053_s13  ;;  %s12318_s19 = scalar_lea.vmem %s505_s9, 4096 }
  0x7e   : > { %p12319_p7 = scmp.ne.s32.totalorder %s505_s9, %s12318_s19  ;;  %p18054_p2 = pneg %p12673_p0 }
  0x7f   : > { %s12472_s2 = smov [#allocation9]  }
  0x80   : > { %p12321_p4 = pnand %p12319_p7, %p18054_p2  ;;  %s12323_s14 = sshll.u32 %s12472_s2, 4  ;;  %s12324_s14 = int_to_ptr.vmem [resolvable:$false] %s12323_s14 }
  0x81   : > { %s12325_s17 = scalar_lea.vmem %s12324_s14, 8192  ;;  %p12326_p6 = scmp.lt.s32.totalorder %s505_s9, %s12324_s14 }
  0x82   : > { %p12322_p9 = pneg %p12321_p4  ;;  %p12327_p11 = scmp.lt.s32.totalorder %s12325_s17, %s12318_s19 }
  0x84   : > { %p12328_p12 = por %p12327_p11, %p12326_p6 }
  0x86   : > { %p12329_p8 = pnand %p12328_p12, %p12322_p9 }
  0x88   : > { %12332 = shalt.err (!%p12329_p8)
}
  0x89   : > { %s18055_s20 = scalar_lea.hbm %s17681_s1, %s12665_s8  ;;  %s539_s4 = scalar_lea.vmem [#allocation12], %s12669_s24 }
  0x8a   : > { %11072 = dma.hbm_to_vmem [thread:$0]  (!%p12673_p0), %s18055_s20, 4096, %s505_s9, %s494_s25, %s18052_s28, %s18052_s28, %s18051_s29  }
  0x8b   : > { %s546_s13 = sshll.u32 %s539_s4, 4  ;;  %p18056_p10 = pmov %p18054_p2  ;;  %s547_s13 = int_to_ptr.vmem [resolvable:$true] %s546_s13 }
  0x8c   : > { %s12346_s17 = scalar_lea.vmem %s547_s13, 4096  ;;  %s12473_s19 = smov [#allocation12]  }
  0x8d   : > { %p12347_p5 = scmp.ne.s32.totalorder %s547_s13, %s12346_s17  ;;  %s12351_s2 = sshll.u32 %s12473_s19, 4  ;;  %s12352_s2 = int_to_ptr.vmem [resolvable:$false] %s12351_s2 }
  0x8e   : > { %s12353_s14 = scalar_lea.vmem %s12352_s2, 8192  ;;  %p12354_p7 = scmp.lt.s32.totalorder %s547_s13, %s12352_s2 }
  0x8f   : > { %p12349_p13 = pnand %p12347_p5, %p18056_p10  ;;  %p12355_p2 = scmp.lt.s32.totalorder %s12353_s14, %s12346_s17 }
  0x91   : > { %p12350_p1 = pneg %p12349_p13  ;;  %p12356_p4 = por %p12355_p2, %p12354_p7 }
  0x93   : > { %p12357_p9 = pnand %p12356_p4, %p12350_p1 }
  0x95   : > { %12360 = shalt.err (!%p12357_p9)
}
  0x96   : > { %11078 = dma.hbm_to_vmem [thread:$0]  (!%p12673_p0), %s545_s18, 4096, %s547_s13, %s12683_s27, %s18052_s28, %s18052_s28, %s18051_s29  }
  0x97   : > { %558 = sbr.rel (%p12589_p3) target bundleno = 3331 (0xd03), region = 76 }
  0x9c   : > { %p18057_p6 = scmp.eq.s32.totalorder %s12584_s21, 0 }
  0x9e   : > { %12412 = dma.done.wait (%p18057_p6), [#allocation8], 16   ;;  %p18058_p11 = pmov %p18057_p6 }
  0x9f   : > { %s12777_s16 = sand.u32 1, %s12445_s30   ;;  %p18059_p0 = scmp.ne.s32.totalorder %s18043_s23, 0 }
  0xa0   : > { %12414 = vsyncadd (%p18058_p11), [#allocation8], 4294967280  ;;  %s12780_s25 = sshll.u32 %s12777_s16, 8  ;;  %s565_s8 = scalar_lea.sflag [#allocation6], %s12777_s16 }
  0xa1   : > { %s12784_s27 = scalar_lea.vmem [#allocation9], %s12780_s25 }
  0xa2   : > { %12416 = dma.done.wait (%p18059_p0), %s565_s8, 4096  }
  0xa3   : > { %12418 = vsyncadd (%p18059_p0), %s565_s8, 4294963200  ;;  %s573_s22 = sand.u32 1, %s12584_s21   ;;  %s12792_s28 = scalar_lea.vmem [#allocation10], %s12780_s25 }
  0xa4   : > { %s574_s29 = scalar_lea.sflag [#allocation11], %s573_s22 }
  0xa5   : > { %12420 = dma.done.wait (%p18059_p0), %s574_s29, 8192  }
  0xa6   : > { %12422 = vsyncadd (%p18059_p0), %s574_s29, 4294959104  ;;  %s12799_s18 = scalar_lea.vmem [#allocation12], %s12780_s25  ;;  %p18060_p3 = pmov %p18057_p6 }
  0xa8   : > { %12424 = dma.done.wait (%p18060_p3), [#allocation14], 12288   ;;  %p18061_p12 = pmov %p18060_p3 }
  0xa9   : > { %p18062_p8 = pmov %p18060_p3 }
  0xaa   : > { %12426 = vsyncadd (%p18061_p12), [#allocation14], 4294955008 }
  0xab   : > { %12428 = dma.done.wait (%p18062_p8), [#allocation17], 8192   ;;  %p18063_p5 = pmov %p18060_p3 }
  0xac   : > { %p18064_p10 = pmov %p18060_p3 }
  0xad   : > { %12430 = vsyncadd (%p18063_p5), [#allocation17], 4294959104 }
  0xae   : > { %12432 = dma.done.wait (%p18064_p10), [#allocation20], 2048   ;;  %p18065_p13 = pmov %p18060_p3 }
  0xb0   : > { %12434 = vsyncadd (%p18065_p13), [#allocation20], 4294965248 }
  0xb1   : > { %611 = sfence }
  0xb2   : > { %v775_v0 = vld [vmem:[#allocation13 + $0x78] sm:$0xff]  ;;  %v774_v1 = vld [vmem:[#allocation13 + $0x70] sm:$0xff]  ;;  %v773_v2 = vld [vmem:[#allocation13 + $0x68] sm:$0xff]  ;;  %s13188_s21 = sld [smem:[#allocation5]]  ;;  %s17560_s11 = scalar_lea.vmem [#allocation21], %s12780_s25 }
  0xb3   : > { %9946 = vmatprep.subr.mxu0 %v775_v0  ;;  %10986 = vmatprep.subr.mxu1 %v775_v0  ;;  %v772_v3 = vld [vmem:[#allocation13 + $0x60] sm:$0xff]  ;;  %v771_v4 = vld [vmem:[#allocation13 + $0x58] sm:$0xff]  ;;  %v770_v5 = vld [vmem:[#allocation13 + $0x50] sm:$0xff]  ;;  %s18109_s19 = sld [smem:[#allocation269_spill]]  ;;  %s8693_s4 = sshll.u32 %s17560_s11, 4  ;;  %s17629_s4 = int_to_ptr.vmem [resolvable:$true] %s8693_s4 }
  0xb4   : > { %9947 = vmatpush3.msra.mxu0 %v775_v0  ;;  %11002 = vmatpush3.msra.mxu1 %v775_v0  ;;  %v769_v6 = vld [vmem:[#allocation13 + $0x48] sm:$0xff]  ;;  %v768_v7 = vld [vmem:[#allocation13 + $0x40] sm:$0xff]  ;;  %v767_v8 = vld [vmem:[#allocation13 + $0x38] sm:$0xff]  ;;  %s13697_s2 = sld [smem:[#allocation5 + $0x1]]  ;;  %s8678_s24 = scalar_lea.sflag [#allocation7], %s12777_s16 }
  0xb5   : > { %9948 = vmatprep.subr.mxu0 %v774_v1  ;;  %10987 = vmatprep.subr.mxu1 %v774_v1  ;;  %v766_v9 = vld [vmem:[#allocation13 + $0x30] sm:$0xff]  ;;  %v765_v10 = vld [vmem:[#allocation13 + $0x28] sm:$0xff]  ;;  %v764_v11 = vld [vmem:[#allocation13 + $0x20] sm:$0xff]  ;;  %s13957_s8 = sld [smem:[#allocation5 + $0x2]]  ;;  %s12361_s9 = scalar_lea.vmem %s17629_s4, 4096 }
  0xb6   : > { %9949 = vmatpush3.msra.mxu0 %v774_v1  ;;  %11003 = vmatpush3.msra.mxu1 %v774_v1  ;;  %v763_v12 = vld [vmem:[#allocation13 + $0x18] sm:$0xff]  ;;  %v762_v13 = vld [vmem:[#allocation13 + $0x10] sm:$0xff]  ;;  %v761_v14 = vld [vmem:[#allocation13 + $0x8] sm:$0xff]  ;;  %s19011_s25 = sld [smem:[#allocation30_spill]]  ;;  %p12362_p1 = scmp.ne.s32.totalorder %s17629_s4, %s12361_s9 }
  0xb7   : > { %9950 = vmatprep.subr.mxu0 %v773_v2  ;;  %10988 = vmatprep.subr.mxu1 %v773_v2  ;;  %v760_v15 = vld [vmem:[#allocation13] sm:$0xff]  ;;  %v12820_v18 = vld [vmem:[%s12784_s27 + $0x8] sm:$0xff]  ;;  %v1089_v20 = vld [vmem:[#allocation16 + $0x78] sm:$0xff]  ;;  %s19012_s26 = sld [smem:[#allocation34_spill]] }
  0xb8   : > { %9951 = vmatpush3.msra.mxu0 %v773_v2  ;;  %11004 = vmatpush3.msra.mxu1 %v773_v2  ;;  %v12814_v16 = vld [vmem:[%s12784_s27] sm:$0xff]  ;;  %v12823_v19 = vld [vmem:[%s12784_s27 + $0x88] sm:$0xff]  ;;  %v1369_v21 = vld [vmem:[#allocation15 + $0x78] sm:$0xff]  ;;  %s1008_s23 = smul.f32 0.125, %s13188_s21 }
  0xb9   : > { %9952 = vmatprep.subr.mxu0 %v772_v3  ;;  %10989 = vmatprep.subr.mxu1 %v772_v3  ;;  %v12817_v17 = vld [vmem:[%s12784_s27 + $0x80] sm:$0xff]  ;;  %v1088_v22 = vld [vmem:[#allocation16 + $0x70] sm:$0xff]  ;;  %v12836_v26 = vld [vmem:[%s12784_s27 + $0x18] sm:$0xff] }
  0xba   : > { %9953 = vmatpush3.msra.mxu0 %v772_v3  ;;  %11005 = vmatpush3.msra.mxu1 %v772_v3  ;;  %v1368_v23 = vld [vmem:[#allocation15 + $0x70] sm:$0xff]  ;;  %v12839_v27 = vld [vmem:[%s12784_s27 + $0x98] sm:$0xff]  ;;  %v1087_v28 = vld [vmem:[#allocation16 + $0x68] sm:$0xff]  ;;  %s1952_s14 = smul.f32 0.125, %s13697_s2 }
  0xbb   : > { %9954 = vmatprep.subr.mxu0 %v771_v4  ;;  %10990 = vmatprep.subr.mxu1 %v771_v4  ;;  %v12830_v24 = vld [vmem:[%s12784_s27 + $0x10] sm:$0xff]  ;;  %v1367_v29 = vld [vmem:[#allocation15 + $0x68] sm:$0xff]  ;;  %v1086_v30 = vld [vmem:[#allocation16 + $0x60] sm:$0xff] }
  0xbc   : > { %9955 = vmatpush3.msra.mxu0 %v771_v4  ;;  %11006 = vmatpush3.msra.mxu1 %v771_v4  ;;  %v12833_v25 = vld [vmem:[%s12784_s27 + $0x90] sm:$0xff]  ;;  %v1366_v31 = vld [vmem:[#allocation15 + $0x60] sm:$0xff]  ;;  %v12852_v34 = vld [vmem:[%s12784_s27 + $0x28] sm:$0xff]  ;;  %s9033_s20 = sshll.u32 %s19011_s25, 12 }
  0xbd   : > { %9956 = vmatprep.subr.mxu0 %v770_v5  ;;  %10991 = vmatprep.subr.mxu1 %v770_v5  ;;  %v12846_v32 = vld [vmem:[%s12784_s27 + $0x20] sm:$0xff]  ;;  %v12855_v35 = vld [vmem:[%s12784_s27 + $0xa8] sm:$0xff]  ;;  %v1085_v36 = vld [vmem:[#allocation16 + $0x58] sm:$0xff]  ;;  %p19014_p7 = scmp.ne.s32.totalorder %s19012_s26, 0 }
  0xbe   : > { %9957 = vmatpush3.msra.mxu0 %v770_v5  ;;  %11007 = vmatpush3.msra.mxu1 %v770_v5  ;;  %v12849_v33 = vld [vmem:[%s12784_s27 + $0xa0] sm:$0xff]  ;;  %v1365_v37 = vld [vmem:[#allocation15 + $0x58] sm:$0xff]  ;;  %v1084_v38 = vld [vmem:[#allocation16 + $0x50] sm:$0xff] }
  0xbf   : > { %9958 = vmatprep.subr.mxu0 %v769_v6  ;;  %10992 = vmatprep.subr.mxu1 %v769_v6  ;;  %v1364_v39 = vld [vmem:[#allocation15 + $0x50] sm:$0xff]  ;;  %v12868_v42 = vld [vmem:[%s12784_s27 + $0x38] sm:$0xff]  ;;  %v1083_v44 = vld [vmem:[#allocation16 + $0x48] sm:$0xff]  ;;  %p12363_p2 = pnand %p12362_p1, %p19014_p7 }
  0xc0   : > { %9959 = vmatpush3.msra.mxu0 %v769_v6  ;;  %11008 = vmatpush3.msra.mxu1 %v769_v6  ;;  %v12862_v40 = vld [vmem:[%s12784_s27 + $0x30] sm:$0xff]  ;;  %v12871_v43 = vld [vmem:[%s12784_s27 + $0xb8] sm:$0xff]  ;;  %v1363_v45 = vld [vmem:[#allocation15 + $0x48] sm:$0xff] }
  0xc1   : > { %9960 = vmatprep.subr.mxu0 %v768_v7  ;;  %10993 = vmatprep.subr.mxu1 %v768_v7  ;;  %v12865_v41 = vld [vmem:[%s12784_s27 + $0xb0] sm:$0xff]  ;;  %v1082_v46 = vld [vmem:[#allocation16 + $0x40] sm:$0xff]  ;;  %v12884_v50 = vld [vmem:[%s12784_s27 + $0x48] sm:$0xff]  ;;  %p12364_p4 = pneg %p12363_p2 }
  0xc2   : > { %9961 = vmatpush3.msra.mxu0 %v768_v7  ;;  %11009 = vmatpush3.msra.mxu1 %v768_v7  ;;  %v1362_v47 = vld [vmem:[#allocation15 + $0x40] sm:$0xff]  ;;  %v12887_v51 = vld [vmem:[%s12784_s27 + $0xc8] sm:$0xff]  ;;  %v1081_v52 = vld [vmem:[#allocation16 + $0x38] sm:$0xff] }
  0xc3   : > { %9962 = vmatprep.subr.mxu0 %v767_v8  ;;  %10994 = vmatprep.subr.mxu1 %v767_v8  ;;  %v12878_v48 = vld [vmem:[%s12784_s27 + $0x40] sm:$0xff]  ;;  %v1361_v53 = vld [vmem:[#allocation15 + $0x38] sm:$0xff]  ;;  %v1080_v54 = vld [vmem:[#allocation16 + $0x30] sm:$0xff] }
  0xc4   : > { %9963 = vmatpush3.msra.mxu0 %v767_v8  ;;  %11010 = vmatpush3.msra.mxu1 %v767_v8  ;;  %v12881_v49 = vld [vmem:[%s12784_s27 + $0xc0] sm:$0xff]  ;;  %v1360_v55 = vld [vmem:[#allocation15 + $0x30] sm:$0xff]  ;;  %v12900_v58 = vld [vmem:[%s12784_s27 + $0x58] sm:$0xff] }
  0xc5   : > { %9964 = vmatprep.subr.mxu0 %v766_v9  ;;  %10995 = vmatprep.subr.mxu1 %v766_v9  ;;  %v12894_v56 = vld [vmem:[%s12784_s27 + $0x50] sm:$0xff]  ;;  %v12903_v59 = vld [vmem:[%s12784_s27 + $0xd8] sm:$0xff]  ;;  %v1079_v60 = vld [vmem:[#allocation16 + $0x28] sm:$0xff] }
  0xc6   : > { %9965 = vmatpush3.msra.mxu0 %v766_v9  ;;  %11011 = vmatpush3.msra.mxu1 %v766_v9  ;;  %v12897_v57 = vld [vmem:[%s12784_s27 + $0xd0] sm:$0xff]  ;;  %v1359_v61 = vld [vmem:[#allocation15 + $0x28] sm:$0xff]  ;;  %v1078_v62 = vld [vmem:[#allocation16 + $0x20] sm:$0xff] }
  0xc7   : > { %9966 = vmatprep.subr.mxu0 %v765_v10  ;;  %10996 = vmatprep.subr.mxu1 %v765_v10  ;;  %v1358_v63 = vld [vmem:[#allocation15 + $0x20] sm:$0xff]  ;;  %v12916_v2 = vld [vmem:[%s12784_s27 + $0x68] sm:$0xff]  ;;  %v1077_v4 = vld [vmem:[#allocation16 + $0x18] sm:$0xff] }
  0xc8   : > { %9967 = vmatpush3.msra.mxu0 %v765_v10  ;;  %11012 = vmatpush3.msra.mxu1 %v765_v10  ;;  %v12910_v0 = vld [vmem:[%s12784_s27 + $0x60] sm:$0xff]  ;;  %v12919_v3 = vld [vmem:[%s12784_s27 + $0xe8] sm:$0xff]  ;;  %v1357_v5 = vld [vmem:[#allocation15 + $0x18] sm:$0xff] }
  0xc9   : > { %9968 = vmatprep.subr.mxu0 %v764_v11  ;;  %10997 = vmatprep.subr.mxu1 %v764_v11  ;;  %v12913_v1 = vld [vmem:[%s12784_s27 + $0xe0] sm:$0xff]  ;;  %v1076_v6 = vld [vmem:[#allocation16 + $0x10] sm:$0xff]  ;;  %v12932_v10 = vld [vmem:[%s12784_s27 + $0x78] sm:$0xff] }
  0xca   : > { %9969 = vmatpush3.msra.mxu0 %v764_v11  ;;  %11013 = vmatpush3.msra.mxu1 %v764_v11  ;;  %v1356_v7 = vld [vmem:[#allocation15 + $0x10] sm:$0xff]  ;;  %v12935_v11 = vld [vmem:[%s12784_s27 + $0xf8] sm:$0xff] }
  0xcb   : > { %9970 = vmatprep.subr.mxu0 %v763_v12  ;;  %10998 = vmatprep.subr.mxu1 %v763_v12  ;;  %v12926_v8 = vld [vmem:[%s12784_s27 + $0x70] sm:$0xff] }
  0xcc   : > { %9971 = vmatpush3.msra.mxu0 %v763_v12  ;;  %11014 = vmatpush3.msra.mxu1 %v763_v12  ;;  %v12929_v9 = vld [vmem:[%s12784_s27 + $0xf0] sm:$0xff]  ;;  %v1075_v12 = vld [vmem:[#allocation16 + $0x8] sm:$0xff]  ;;  %s2964_s27 = smul.f32 0.125, %s13957_s8 }
  0xcd   : > { %9972 = vmatprep.subr.mxu0 %v762_v13  ;;  %10999 = vmatprep.subr.mxu1 %v762_v13 }
  0xce   : > { %9973 = vmatpush3.msra.mxu0 %v762_v13  ;;  %11015 = vmatpush3.msra.mxu1 %v762_v13  ;;  %v1355_v13 = vld [vmem:[#allocation15 + $0x8] sm:$0xff] }
  0xcf   : > { %9974 = vmatprep.subr.mxu0 %v761_v14  ;;  %11000 = vmatprep.subr.mxu1 %v761_v14 }
  0xd0   : > { %9975 = vmatpush3.msra.mxu0 %v761_v14  ;;  %11016 = vmatpush3.msra.mxu1 %v761_v14  ;;  %v1074_v14 = vld [vmem:[#allocation16] sm:$0xff] }
  0xd1   : > { %9976 = vmatprep.subr.mxu0 %v760_v15  ;;  %11001 = vmatprep.subr.mxu1 %v760_v15 }
  0xd2   : > { %9977 = vmatpush3.msra.mxu0 %v760_v15  ;;  %11017 = vmatpush3.msra.mxu1 %v760_v15  ;;  %v1354_v15 = vld [vmem:[#allocation15] sm:$0xff] }
  0xd3   : > { %9978 = vmatprep.mubr.f32.mxu0 %v12814_v16  ;;  %10002 = vmatprep.mubr.f32.mxu1 %v12817_v17 }
  0xd4   : > { %9979 = vmatmul.mubr.f32.vlgmr.msra.gmra.mxu0 %v12820_v18  ;;  %10003 = vmatmul.mubr.f32.vlgmr.msra.gmra.mxu1 %v12823_v19 }
  0xd5   : > { %10026 = vmatprep.subr.mxu1 %v1089_v20  ;;  %10106 = vmatprep.subr.mxu0 %v1369_v21 }
  0xd6   : > { %10027 = vmatpush3.msra.mxu1 %v1089_v20  ;;  %10107 = vmatpush3.msra.mxu0 %v1369_v21  ;;  %v2035_v20 = vld [vmem:[#allocation16 + $0xf8] sm:$0xff]  ;;  %v2034_v21 = vld [vmem:[#allocation16 + $0xf0] sm:$0xff] }
  0xd7   : > { %10028 = vmatprep.subr.mxu1 %v1088_v22  ;;  %10108 = vmatprep.subr.mxu0 %v1368_v23 }
  0xd8   : > { %9981 = vmatprep.mubr.f32.mxu0 %v12830_v24  ;;  %10005 = vmatprep.mubr.f32.mxu1 %v12833_v25 }
  0xd9   : > { %10029 = vmatpush3.msra.mxu1 %v1088_v22  ;;  %10109 = vmatpush3.msra.mxu0 %v1368_v23  ;;  %v1718_v22 = vld [vmem:[#allocation13 + $0xf8] sm:$0xff]  ;;  %v2033_v23 = vld [vmem:[#allocation16 + $0xe8] sm:$0xff] }
  0xda   : > { %9982 = vmatmul.mubr.f32.gmra.mxu0 %v12836_v26  ;;  %10006 = vmatmul.mubr.f32.gmra.mxu1 %v12839_v27 }
  0xdb   : > { %10030 = vmatprep.subr.mxu1 %v1087_v28  ;;  %10110 = vmatprep.subr.mxu0 %v1367_v29 }
  0xdc   : > { %10031 = vmatpush3.msra.mxu1 %v1087_v28  ;;  %10111 = vmatpush3.msra.mxu0 %v1367_v29  ;;  %v2030_v28 = vld [vmem:[#allocation16 + $0xd0] sm:$0xff]  ;;  %v1715_v29 = vld [vmem:[#allocation13 + $0xe0] sm:$0xff] }
  0xdd   : > { %10032 = vmatprep.subr.mxu1 %v1086_v30  ;;  %10112 = vmatprep.subr.mxu0 %v1366_v31 }
  0xde   : > { %9984 = vmatprep.mubr.f32.mxu0 %v12846_v32  ;;  %10008 = vmatprep.mubr.f32.mxu1 %v12849_v33 }
  0xdf   : > { %10033 = vmatpush3.msra.mxu1 %v1086_v30  ;;  %10113 = vmatpush3.msra.mxu0 %v1366_v31  ;;  %v2029_v30 = vld [vmem:[#allocation16 + $0xc8] sm:$0xff]  ;;  %v1714_v31 = vld [vmem:[#allocation13 + $0xd8] sm:$0xff] }
  0xe0   : > { %9985 = vmatmul.mubr.f32.gmra.mxu0 %v12852_v34  ;;  %10009 = vmatmul.mubr.f32.gmra.mxu1 %v12855_v35 }
  0xe1   : > { %10034 = vmatprep.subr.mxu1 %v1085_v36  ;;  %10114 = vmatprep.subr.mxu0 %v1365_v37 }
  0xe2   : > { %10035 = vmatpush3.msra.mxu1 %v1085_v36  ;;  %10115 = vmatpush3.msra.mxu0 %v1365_v37  ;;  %v2027_v36 = vld [vmem:[#allocation16 + $0xb8] sm:$0xff]  ;;  %v1712_v37 = vld [vmem:[#allocation13 + $0xc8] sm:$0xff] }
  0xe3   : > { %10036 = vmatprep.subr.mxu1 %v1084_v38  ;;  %10116 = vmatprep.subr.mxu0 %v1364_v39 }
  0xe4   : > { %9987 = vmatprep.mubr.f32.mxu0 %v12862_v40  ;;  %10011 = vmatprep.mubr.f32.mxu1 %v12865_v41 }
  0xe5   : > { %10037 = vmatpush3.msra.mxu1 %v1084_v38  ;;  %10117 = vmatpush3.msra.mxu0 %v1364_v39  ;;  %v2026_v38 = vld [vmem:[#allocation16 + $0xb0] sm:$0xff]  ;;  %v1711_v39 = vld [vmem:[#allocation13 + $0xc0] sm:$0xff] }
  0xe6   : > { %9988 = vmatmul.mubr.f32.gmra.mxu0 %v12868_v42  ;;  %10012 = vmatmul.mubr.f32.gmra.mxu1 %v12871_v43 }
  0xe7   : > { %10038 = vmatprep.subr.mxu1 %v1083_v44  ;;  %10118 = vmatprep.subr.mxu0 %v1363_v45 }
  0xe8   : > { %10039 = vmatpush3.msra.mxu1 %v1083_v44  ;;  %10119 = vmatpush3.msra.mxu0 %v1363_v45  ;;  %v1705_v44 = vld [vmem:[#allocation13 + $0x90] sm:$0xff]  ;;  %v1704_v45 = vld [vmem:[#allocation13 + $0x88] sm:$0xff] }
  0xe9   : > { %10040 = vmatprep.subr.mxu1 %v1082_v46  ;;  %10120 = vmatprep.subr.mxu0 %v1362_v47 }
  0xea   : > { %9990 = vmatprep.mubr.f32.mxu0 %v12878_v48  ;;  %10014 = vmatprep.mubr.f32.mxu1 %v12881_v49 }
  0xeb   : > { %10041 = vmatpush3.msra.mxu1 %v1082_v46  ;;  %10121 = vmatpush3.msra.mxu0 %v1362_v47  ;;  %v2020_v46 = vld [vmem:[#allocation16 + $0x80] sm:$0xff] }
  0xec   : > { %9991 = vmatmul.mubr.f32.gmra.mxu0 %v12884_v50  ;;  %10015 = vmatmul.mubr.f32.gmra.mxu1 %v12887_v51  ;;  %v1703_v47 = vld [vmem:[#allocation13 + $0x80] sm:$0xff] }
  0xed   : > { %10042 = vmatprep.subr.mxu1 %v1081_v52  ;;  %10122 = vmatprep.subr.mxu0 %v1361_v53 }
  0xee   : > { %10043 = vmatpush3.msra.mxu1 %v1081_v52  ;;  %10123 = vmatpush3.msra.mxu0 %v1361_v53  ;;  %v2729_v52 = vld [vmem:[#allocation13 + $0x170] sm:$0xff]  ;;  %v2318_v53 = vld [vmem:[#allocation15 + $0xf8] sm:$0xff] }
  0xef   : > { %10044 = vmatprep.subr.mxu1 %v1080_v54  ;;  %10124 = vmatprep.subr.mxu0 %v1360_v55 }
  0xf0   : > { %9993 = vmatprep.mubr.f32.mxu0 %v12894_v56  ;;  %10017 = vmatprep.mubr.f32.mxu1 %v12897_v57 }
  0xf1   : > { %10045 = vmatpush3.msra.mxu1 %v1080_v54  ;;  %10125 = vmatpush3.msra.mxu0 %v1360_v55  ;;  %v13020_v54 = vld [vmem:[%s12792_s28 + $0x18] sm:$0xff]  ;;  %v13024_v55 = vld [vmem:[%s12792_s28 + $0x20] sm:$0xff] }
  0xf2   : > { %9994 = vmatmul.mubr.f32.gmra.mxu0 %v12900_v58  ;;  %10018 = vmatmul.mubr.f32.gmra.mxu1 %v12903_v59 }
  0xf3   : > { %10046 = vmatprep.subr.mxu1 %v1079_v60  ;;  %10126 = vmatprep.subr.mxu0 %v1359_v61 }
  0xf4   : > { %10047 = vmatpush3.msra.mxu1 %v1079_v60  ;;  %10127 = vmatpush3.msra.mxu0 %v1359_v61  ;;  %v2317_v60 = vld [vmem:[#allocation15 + $0xf0] sm:$0xff]  ;;  %v13041_v61 = vld [vmem:[%s12792_s28 + $0x38] sm:$0xff] }
  0xf5   : > { %10048 = vmatprep.subr.mxu1 %v1078_v62  ;;  %10128 = vmatprep.subr.mxu0 %v1358_v63 }
  0xf6   : > { %9996 = vmatprep.mubr.f32.mxu0 %v12910_v0  ;;  %10020 = vmatprep.mubr.f32.mxu1 %v12913_v1 }
  0xf7   : > { %10049 = vmatpush3.msra.mxu1 %v1078_v62  ;;  %10129 = vmatpush3.msra.mxu0 %v1358_v63  ;;  %v13044_v62 = vld [vmem:[%s12792_s28 + $0x40] sm:$0xff]  ;;  %v2726_v63 = vld [vmem:[#allocation13 + $0x158] sm:$0xff] }
  0xf8   : > { %9997 = vmatmul.mubr.f32.gmra.mxu0 %v12916_v2  ;;  %10021 = vmatmul.mubr.f32.gmra.mxu1 %v12919_v3 }
  0xf9   : > { %10050 = vmatprep.subr.mxu1 %v1077_v4  ;;  %10130 = vmatprep.subr.mxu0 %v1357_v5 }
  0xfa   : > { %10051 = vmatpush3.msra.mxu1 %v1077_v4  ;;  %10131 = vmatpush3.msra.mxu0 %v1357_v5  ;;  %v2315_v4 = vld [vmem:[#allocation15 + $0xe0] sm:$0xff]  ;;  %v13061_v5 = vld [vmem:[%s12792_s28 + $0x58] sm:$0xff] }
  0xfb   : > { %10052 = vmatprep.subr.mxu1 %v1076_v6  ;;  %10132 = vmatprep.subr.mxu0 %v1356_v7 }
  0xfc   : > { %9999 = vmatprep.mubr.f32.mxu0 %v12926_v8  ;;  %10023 = vmatprep.mubr.f32.mxu1 %v12929_v9 }
  0xfd   : > { %10053 = vmatpush3.msra.mxu1 %v1076_v6  ;;  %10133 = vmatpush3.msra.mxu0 %v1356_v7  ;;  %v13064_v6 = vld [vmem:[%s12792_s28 + $0x60] sm:$0xff]  ;;  %v2724_v7 = vld [vmem:[#allocation13 + $0x148] sm:$0xff] }
  0xfe   : > { %10000 = vmatmul.mubr.f32.gmra.mxu0 %v12932_v10  ;;  %10024 = vmatmul.mubr.f32.gmra.mxu1 %v12935_v11 }
  0xff   : > { %10054 = vmatprep.subr.mxu1 %v1075_v12  ;;  %10134 = vmatprep.subr.mxu0 %v1355_v13 }
 0x100   : > { %10055 = vmatpush3.msra.mxu1 %v1075_v12  ;;  %10135 = vmatpush3.msra.mxu0 %v1355_v13  ;;  %v2313_v12 = vld [vmem:[#allocation15 + $0xd0] sm:$0xff]  ;;  %v13081_v13 = vld [vmem:[%s12792_s28 + $0x78] sm:$0xff] }
 0x101   : > { %10056 = vmatprep.subr.mxu1 %v1074_v14  ;;  %10136 = vmatprep.subr.mxu0 %v1354_v15 }
 0x102   : > { %10057 = vmatpush3.msra.mxu1 %v1074_v14  ;;  %10058 = vmatprep.mubr.f32.mxu1 %v12814_v16  ;;  %v13084_v14 = vld [vmem:[%s12792_s28 + $0x80] sm:$0xff] }
 0x103   : > { %10137 = vmatpush3.msra.mxu0 %v1354_v15  ;;  %10138 = vmatprep.mubr.f32.mxu0 %v12814_v16  ;;  %v2032_v16 = vld [vmem:[#allocation16 + $0xe0] sm:$0xff]  ;;  %v2722_v15 = vld [vmem:[#allocation13 + $0x138] sm:$0xff] }
 0x104   : > { %10059 = vmatmul.mubr.f32.vlgmr.msra.gmra.mxu1 %v12820_v18  ;;  %10139 = vmatmul.mubr.f32.vlgmr.msra.gmra.mxu0 %v12820_v18  ;;  %v1717_v18 = vld [vmem:[#allocation13 + $0xf0] sm:$0xff] }
 0x105   : > { %10266 = vmatprep.subr.mxu0 %v2035_v20  ;;  %10061 = vmatprep.mubr.f32.mxu1 %v12830_v24 }
 0x106   : > { %10267 = vmatpush3.msra.mxu0 %v2035_v20  ;;  %10141 = vmatprep.mubr.f32.mxu0 %v12830_v24  ;;  %v2031_v24 = vld [vmem:[#allocation16 + $0xd8] sm:$0xff]  ;;  %v2312_v20 = vld [vmem:[#allocation15 + $0xc8] sm:$0xff] }
 0x107   : > { %10268 = vmatprep.subr.mxu0 %v2034_v21  ;;  %10186 = vmatprep.subr.mxu1 %v1718_v22 }
 0x108   : > { %10062 = vmatmul.mubr.f32.gmra.mxu1 %v12836_v26  ;;  %10142 = vmatmul.mubr.f32.gmra.mxu0 %v12836_v26  ;;  %v1716_v26 = vld [vmem:[#allocation13 + $0xe8] sm:$0xff] }
 0x109   : > { %10269 = vmatpush3.msra.mxu0 %v2034_v21  ;;  %10064 = vmatprep.mubr.f32.mxu1 %v12846_v32  ;;  %v13091_v21 = vld [vmem:[%s12792_s28 + $0x88] sm:$0xff] }
 0x10a   : > { %10144 = vmatprep.mubr.f32.mxu0 %v12846_v32  ;;  %10270 = vmatprep.subr.mxu0 %v2033_v23  ;;  %v2028_v32 = vld [vmem:[#allocation16 + $0xc0] sm:$0xff] }
 0x10b   : > { %10271 = vmatpush3.msra.mxu0 %v2033_v23  ;;  %10187 = vmatpush3.msra.mxu1 %v1718_v22  ;;  %v13094_v22 = vld [vmem:[%s12792_s28 + $0x90] sm:$0xff] }
 0x10c   : > { %10065 = vmatmul.mubr.f32.gmra.mxu1 %v12852_v34  ;;  %10145 = vmatmul.mubr.f32.gmra.mxu0 %v12852_v34  ;;  %v1713_v34 = vld [vmem:[#allocation13 + $0xd0] sm:$0xff] }
 0x10d   : > { %10067 = vmatprep.mubr.f32.mxu1 %v12862_v40  ;;  %10147 = vmatprep.mubr.f32.mxu0 %v12862_v40  ;;  %v2025_v40 = vld [vmem:[#allocation16 + $0xa8] sm:$0xff]  ;;  %v2721_v23 = vld [vmem:[#allocation13 + $0x130] sm:$0xff] }
 0x10e   : > { %10272 = vmatprep.subr.mxu0 %v2032_v16  ;;  %10188 = vmatprep.subr.mxu1 %v1717_v18 }
 0x10f   : > { %10273 = vmatpush3.msra.mxu0 %v2032_v16  ;;  %10189 = vmatpush3.msra.mxu1 %v1717_v18  ;;  %v2311_v16 = vld [vmem:[#allocation15 + $0xc0] sm:$0xff]  ;;  %v13101_v18 = vld [vmem:[%s12792_s28 + $0x98] sm:$0xff] }
 0x110   : > { %10068 = vmatmul.mubr.f32.gmra.mxu1 %v12868_v42  ;;  %10148 = vmatmul.mubr.f32.gmra.mxu0 %v12868_v42  ;;  %v1706_v42 = vld [vmem:[#allocation13 + $0x98] sm:$0xff] }
 0x111   : > { %10070 = vmatprep.mubr.f32.mxu1 %v12878_v48  ;;  %10150 = vmatprep.mubr.f32.mxu0 %v12878_v48  ;;  %v13004_v48 = vld [vmem:[%s12792_s28] sm:$0xff] }
 0x112   : > { %10274 = vmatprep.subr.mxu0 %v2031_v24  ;;  %10190 = vmatprep.subr.mxu1 %v1716_v26 }
 0x113   : > { %10275 = vmatpush3.msra.mxu0 %v2031_v24  ;;  %10191 = vmatpush3.msra.mxu1 %v1716_v26  ;;  %v13104_v24 = vld [vmem:[%s12792_s28 + $0xa0] sm:$0xff]  ;;  %v2720_v26 = vld [vmem:[#allocation13 + $0x128] sm:$0xff] }
 0x114   : > { %10071 = vmatmul.mubr.f32.gmra.mxu1 %v12884_v50  ;;  %10151 = vmatmul.mubr.f32.gmra.mxu0 %v12884_v50  ;;  %v2730_v50 = vld [vmem:[#allocation13 + $0x178] sm:$0xff] }
 0x115   : > { %10073 = vmatprep.mubr.f32.mxu1 %v12894_v56  ;;  %10153 = vmatprep.mubr.f32.mxu0 %v12894_v56  ;;  %v2728_v56 = vld [vmem:[#allocation13 + $0x168] sm:$0xff] }
 0x116   : > { %10276 = vmatprep.subr.mxu0 %v2030_v28  ;;  %10192 = vmatprep.subr.mxu1 %v1715_v29 }
 0x117   : > { %10277 = vmatpush3.msra.mxu0 %v2030_v28  ;;  %10193 = vmatpush3.msra.mxu1 %v1715_v29  ;;  %v2310_v28 = vld [vmem:[#allocation15 + $0xb8] sm:$0xff]  ;;  %v13111_v29 = vld [vmem:[%s12792_s28 + $0xa8] sm:$0xff] }
 0x118   : > { %10074 = vmatmul.mubr.f32.gmra.mxu1 %v12900_v58  ;;  %10154 = vmatmul.mubr.f32.gmra.mxu0 %v12900_v58  ;;  %v13034_v58 = vld [vmem:[%s12792_s28 + $0x30] sm:$0xff] }
 0x119   : > { %10076 = vmatprep.mubr.f32.mxu1 %v12910_v0  ;;  %10156 = vmatprep.mubr.f32.mxu0 %v12910_v0  ;;  %v2316_v0 = vld [vmem:[#allocation15 + $0xe8] sm:$0xff] }
 0x11a   : > { %10278 = vmatprep.subr.mxu0 %v2029_v30  ;;  %10194 = vmatprep.subr.mxu1 %v1714_v31 }
 0x11b   : > { %10279 = vmatpush3.msra.mxu0 %v2029_v30  ;;  %10195 = vmatpush3.msra.mxu1 %v1714_v31  ;;  %v13114_v30 = vld [vmem:[%s12792_s28 + $0xb0] sm:$0xff]  ;;  %v2719_v31 = vld [vmem:[#allocation13 + $0x120] sm:$0xff] }
 0x11c   : > { %10077 = vmatmul.mubr.f32.gmra.mxu1 %v12916_v2  ;;  %10157 = vmatmul.mubr.f32.gmra.mxu0 %v12916_v2  ;;  %v13054_v2 = vld [vmem:[%s12792_s28 + $0x50] sm:$0xff] }
 0x11d   : > { %10079 = vmatprep.mubr.f32.mxu1 %v12926_v8  ;;  %10159 = vmatprep.mubr.f32.mxu0 %v12926_v8  ;;  %v2314_v8 = vld [vmem:[#allocation15 + $0xd8] sm:$0xff] }
 0x11e   : > { %10280 = vmatprep.subr.mxu0 %v2028_v32  ;;  %10196 = vmatprep.subr.mxu1 %v1713_v34 }
 0x11f   : > { %10281 = vmatpush3.msra.mxu0 %v2028_v32  ;;  %10197 = vmatpush3.msra.mxu1 %v1713_v34  ;;  %v2309_v32 = vld [vmem:[#allocation15 + $0xb0] sm:$0xff]  ;;  %v13121_v34 = vld [vmem:[%s12792_s28 + $0xb8] sm:$0xff] }
 0x120   : > { %10080 = vmatmul.mubr.f32.gmra.mxu1 %v12932_v10  ;;  %10160 = vmatmul.mubr.f32.gmra.mxu0 %v12932_v10  ;;  %v13074_v10 = vld [vmem:[%s12792_s28 + $0x70] sm:$0xff] }
 0x121   : > { %10082 = vmatprep.mubr.f32.mxu1 %v12817_v17  ;;  %10162 = vmatprep.mubr.f32.mxu0 %v12817_v17  ;;  %v1710_v17 = vld [vmem:[#allocation13 + $0xb8] sm:$0xff] }
 0x122   : > { %10282 = vmatprep.subr.mxu0 %v2027_v36  ;;  %10198 = vmatprep.subr.mxu1 %v1712_v37 }
 0x123   : > { %10283 = vmatpush3.msra.mxu0 %v2027_v36  ;;  %10199 = vmatpush3.msra.mxu1 %v1712_v37  ;;  %v13124_v36 = vld [vmem:[%s12792_s28 + $0xc0] sm:$0xff]  ;;  %v2718_v37 = vld [vmem:[#allocation13 + $0x118] sm:$0xff] }
 0x124   : > { %10083 = vmatmul.mubr.f32.gmra.mxu1 %v12823_v19  ;;  %10163 = vmatmul.mubr.f32.gmra.mxu0 %v12823_v19  ;;  %v2024_v19 = vld [vmem:[#allocation16 + $0xa0] sm:$0xff] }
 0x125   : > { %10085 = vmatprep.mubr.f32.mxu1 %v12833_v25  ;;  %10165 = vmatprep.mubr.f32.mxu0 %v12833_v25  ;;  %v1709_v25 = vld [vmem:[#allocation13 + $0xb0] sm:$0xff] }
 0x126   : > { %10284 = vmatprep.subr.mxu0 %v2026_v38  ;;  %10200 = vmatprep.subr.mxu1 %v1711_v39 }
 0x127   : > { %10285 = vmatpush3.msra.mxu0 %v2026_v38  ;;  %10201 = vmatpush3.msra.mxu1 %v1711_v39  ;;  %v2308_v38 = vld [vmem:[#allocation15 + $0xa8] sm:$0xff] }
 0x128   : > { %10086 = vmatmul.mubr.f32.gmra.mxu1 %v12839_v27  ;;  %10166 = vmatmul.mubr.f32.gmra.mxu0 %v12839_v27  ;;  %v2023_v27 = vld [vmem:[#allocation16 + $0x98] sm:$0xff]  ;;  %v13131_v39 = vld [vmem:[%s12792_s28 + $0xc8] sm:$0xff] }
 0x129   : > { %10088 = vmatprep.mubr.f32.mxu1 %v12849_v33  ;;  %10168 = vmatprep.mubr.f32.mxu0 %v12849_v33  ;;  %v1708_v33 = vld [vmem:[#allocation13 + $0xa8] sm:$0xff] }
 0x12a   : > { %10286 = vmatprep.subr.mxu0 %v2025_v40  ;;  %10202 = vmatprep.subr.mxu1 %v1710_v17 }
 0x12b   : > { %10287 = vmatpush3.msra.mxu0 %v2025_v40  ;;  %10203 = vmatpush3.msra.mxu1 %v1710_v17  ;;  %v13134_v40 = vld [vmem:[%s12792_s28 + $0xd0] sm:$0xff] }
 0x12c   : > { %10089 = vmatmul.mubr.f32.gmra.mxu1 %v12855_v35  ;;  %10169 = vmatmul.mubr.f32.gmra.mxu0 %v12855_v35  ;;  %v2022_v35 = vld [vmem:[#allocation16 + $0x90] sm:$0xff] }
 0x12d   : > { %10091 = vmatprep.mubr.f32.mxu1 %v12865_v41  ;;  %10171 = vmatprep.mubr.f32.mxu0 %v12865_v41  ;;  %v1707_v41 = vld [vmem:[#allocation13 + $0xa0] sm:$0xff]  ;;  %v2717_v17 = vld [vmem:[#allocation13 + $0x110] sm:$0xff] }
 0x12e   : > { %10288 = vmatprep.subr.mxu0 %v2024_v19  ;;  %10204 = vmatprep.subr.mxu1 %v1709_v25 }
 0x12f   : > { %10289 = vmatpush3.msra.mxu0 %v2024_v19  ;;  %10205 = vmatpush3.msra.mxu1 %v1709_v25  ;;  %v2307_v19 = vld [vmem:[#allocation15 + $0xa0] sm:$0xff]  ;;  %v13141_v25 = vld [vmem:[%s12792_s28 + $0xd8] sm:$0xff] }
 0x130   : > { %10092 = vmatmul.mubr.f32.gmra.mxu1 %v12871_v43  ;;  %10172 = vmatmul.mubr.f32.gmra.mxu0 %v12871_v43  ;;  %v2021_v43 = vld [vmem:[#allocation16 + $0x88] sm:$0xff] }
 0x131   : > { %10094 = vmatprep.mubr.f32.mxu1 %v12881_v49  ;;  %10174 = vmatprep.mubr.f32.mxu0 %v12881_v49  ;;  %v13009_v49 = vld [vmem:[%s12792_s28 + $0x8] sm:$0xff] }
 0x132   : > { %10290 = vmatprep.subr.mxu0 %v2023_v27  ;;  %10206 = vmatprep.subr.mxu1 %v1708_v33 }
 0x133   : > { %10291 = vmatpush3.msra.mxu0 %v2023_v27  ;;  %10207 = vmatpush3.msra.mxu1 %v1708_v33  ;;  %v13144_v27 = vld [vmem:[%s12792_s28 + $0xe0] sm:$0xff]  ;;  %v2306_v33 = vld [vmem:[#allocation15 + $0x98] sm:$0xff] }
 0x134   : > { %10095 = vmatmul.mubr.f32.gmra.mxu1 %v12887_v51  ;;  %10175 = vmatmul.mubr.f32.gmra.mxu0 %v12887_v51  ;;  %v13013_v51 = vld [vmem:[%s12792_s28 + $0x10] sm:$0xff] }
 0x135   : > { %10097 = vmatprep.mubr.f32.mxu1 %v12897_v57  ;;  %10177 = vmatprep.mubr.f32.mxu0 %v12897_v57  ;;  %v13030_v57 = vld [vmem:[%s12792_s28 + $0x28] sm:$0xff] }
 0x136   : > { %10292 = vmatprep.subr.mxu0 %v2022_v35  ;;  %10208 = vmatprep.subr.mxu1 %v1707_v41 }
 0x137   : > { %10293 = vmatpush3.msra.mxu0 %v2022_v35  ;;  %10209 = vmatpush3.msra.mxu1 %v1707_v41  ;;  %v2716_v35 = vld [vmem:[#allocation13 + $0x108] sm:$0xff] }
 0x138   : > { %10098 = vmatmul.mubr.f32.gmra.mxu1 %v12903_v59  ;;  %10178 = vmatmul.mubr.f32.gmra.mxu0 %v12903_v59  ;;  %v2727_v59 = vld [vmem:[#allocation13 + $0x160] sm:$0xff]  ;;  %v13151_v41 = vld [vmem:[%s12792_s28 + $0xe8] sm:$0xff] }
 0x139   : > { %10100 = vmatprep.mubr.f32.mxu1 %v12913_v1  ;;  %10180 = vmatprep.mubr.f32.mxu0 %v12913_v1  ;;  %v13051_v1 = vld [vmem:[%s12792_s28 + $0x48] sm:$0xff] }
 0x13a   : > { %10210 = vmatprep.subr.mxu1 %v1706_v42  ;;  %10294 = vmatprep.subr.mxu0 %v2021_v43 }
 0x13b   : > { %10211 = vmatpush3.msra.mxu1 %v1706_v42  ;;  %10295 = vmatpush3.msra.mxu0 %v2021_v43  ;;  %v2305_v42 = vld [vmem:[#allocation15 + $0x90] sm:$0xff] }
 0x13c   : > { %10101 = vmatmul.mubr.f32.gmra.mxu1 %v12919_v3  ;;  %10181 = vmatmul.mubr.f32.gmra.mxu0 %v12919_v3  ;;  %v2725_v3 = vld [vmem:[#allocation13 + $0x150] sm:$0xff] }
 0x13d   : > { %10212 = vmatprep.subr.mxu1 %v1705_v44  ;;  %10103 = vmatprep.mubr.f32.mxu1 %v12929_v9  ;;  %v13154_v43 = vld [vmem:[%s12792_s28 + $0xf0] sm:$0xff] }
 0x13e   : > { %10183 = vmatprep.mubr.f32.mxu0 %v12929_v9  ;;  %10213 = vmatpush3.msra.mxu1 %v1705_v44  ;;  %v13071_v9 = vld [vmem:[%s12792_s28 + $0x68] sm:$0xff] }
 0x13f   : > { %10214 = vmatprep.subr.mxu1 %v1704_v45  ;;  %10296 = vmatprep.subr.mxu0 %v2020_v46  ;;  %v2304_v44 = vld [vmem:[#allocation15 + $0x88] sm:$0xff] }
 0x140   : > { %10104 = vmatmul.mubr.f32.gmra.mxu1 %v12935_v11  ;;  %10184 = vmatmul.mubr.f32.gmra.mxu0 %v12935_v11  ;;  %v2723_v11 = vld [vmem:[#allocation13 + $0x140] sm:$0xff] }
 0x141   : > { %10215 = vmatpush3.msra.mxu1 %v1704_v45  ;;  %10297 = vmatpush3.msra.mxu0 %v2020_v46  ;;  %v2715_v45 = vld [vmem:[#allocation13 + $0x100] sm:$0xff]  ;;  %v13160_v46 = vld [vmem:[%s12792_s28 + $0xf8] sm:$0xff] }
 0x142   : > { %10216 = vmatprep.subr.mxu1 %v1703_v47  ;;  %10218 = vmatprep.mubr.f32.mxu1 %v13004_v48 }
 0x143   : > { %10217 = vmatpush3.msra.mxu1 %v1703_v47  ;;  %10298 = vmatprep.mubr.f32.mxu0 %v13004_v48  ;;  %v2303_v47 = vld [vmem:[#allocation15 + $0x80] sm:$0xff] }
 0x144   : > { %10219 = vmatmul.mubr.f32.vlgmr.msra.gmra.mxu1 %v13009_v49  ;;  %10299 = vmatmul.mubr.f32.vlgmr.msra.gmra.mxu0 %v13009_v49 }
 0x145   : > { %10426 = vmatprep.subr.mxu0 %v2730_v50  ;;  %10221 = vmatprep.mubr.f32.mxu1 %v13013_v51 }
 0x146   : > { %10427 = vmatpush3.msra.mxu0 %v2730_v50  ;;  %10301 = vmatprep.mubr.f32.mxu0 %v13013_v51  ;;  %v13166_v50 = vld [vmem:[%s12799_s18] sm:$0xff] }
 0x147   : > { %10428 = vmatprep.subr.mxu0 %v2729_v52  ;;  %10346 = vmatprep.subr.mxu1 %v2318_v53 }
 0x148   : > { %10222 = vmatmul.mubr.f32.gmra.mxu1 %v13020_v54  ;;  %10302 = vmatmul.mubr.f32.gmra.mxu0 %v13020_v54 }
 0x149   : > { %10429 = vmatpush3.msra.mxu0 %v2729_v52  ;;  %10224 = vmatprep.mubr.f32.mxu1 %v13024_v55  ;;  %v13169_v52 = vld [vmem:[%s12799_s18 + $0x8] sm:$0xff] }
 0x14a   : > { %10304 = vmatprep.mubr.f32.mxu0 %v13024_v55  ;;  %10430 = vmatprep.subr.mxu0 %v2728_v56 }
 0x14b   : > { %10431 = vmatpush3.msra.mxu0 %v2728_v56  ;;  %10347 = vmatpush3.msra.mxu1 %v2318_v53  ;;  %v3330_v53 = vld [vmem:[#allocation15 + $0x178] sm:$0xff]  ;;  %v13174_v56 = vld [vmem:[%s12799_s18 + $0x10] sm:$0xff] }
 0x14c   : > { %10225 = vmatmul.mubr.f32.gmra.mxu1 %v13030_v57  ;;  %10305 = vmatmul.mubr.f32.gmra.mxu0 %v13030_v57 }
 0x14d   : > { %10227 = vmatprep.mubr.f32.mxu1 %v13034_v58  ;;  %10307 = vmatprep.mubr.f32.mxu0 %v13034_v58 }
 0x14e   : > { %10432 = vmatprep.subr.mxu0 %v2727_v59  ;;  %10348 = vmatprep.subr.mxu1 %v2317_v60 }
 0x14f   : > { %10433 = vmatpush3.msra.mxu0 %v2727_v59  ;;  %10349 = vmatpush3.msra.mxu1 %v2317_v60  ;;  %v3329_v59 = vld [vmem:[#allocation15 + $0x170] sm:$0xff]  ;;  %v3047_v60 = vld [vmem:[#allocation16 + $0x178] sm:$0xff] }
 0x150   : > { %10228 = vmatmul.mubr.f32.gmra.mxu1 %v13041_v61  ;;  %10308 = vmatmul.mubr.f32.gmra.mxu0 %v13041_v61 }
 0x151   : > { %10230 = vmatprep.mubr.f32.mxu1 %v13044_v62  ;;  %10310 = vmatprep.mubr.f32.mxu0 %v13044_v62 }
 0x152   : > { %10434 = vmatprep.subr.mxu0 %v2726_v63  ;;  %10350 = vmatprep.subr.mxu1 %v2316_v0 }
 0x153   : > { %10435 = vmatpush3.msra.mxu0 %v2726_v63  ;;  %10351 = vmatpush3.msra.mxu1 %v2316_v0  ;;  %v13180_v63 = vld [vmem:[%s12799_s18 + $0x18] sm:$0xff]  ;;  %v3328_v0 = vld [vmem:[#allocation15 + $0x168] sm:$0xff] }
 0x154   : > { %10231 = vmatmul.mubr.f32.gmra.mxu1 %v13051_v1  ;;  %10311 = vmatmul.mubr.f32.gmra.mxu0 %v13051_v1 }
 0x155   : > { %10233 = vmatprep.mubr.f32.mxu1 %v13054_v2  ;;  %10313 = vmatprep.mubr.f32.mxu0 %v13054_v2 }
 0x156   : > { %10436 = vmatprep.subr.mxu0 %v2725_v3  ;;  %10352 = vmatprep.subr.mxu1 %v2315_v4 }
 0x157   : > { %10437 = vmatpush3.msra.mxu0 %v2725_v3  ;;  %10353 = vmatpush3.msra.mxu1 %v2315_v4  ;;  %v3327_v3 = vld [vmem:[#allocation15 + $0x160] sm:$0xff] }
 0x158   : > { %10234 = vmatmul.mubr.f32.gmra.mxu1 %v13061_v5  ;;  %10314 = vmatmul.mubr.f32.gmra.mxu0 %v13061_v5  ;;  %v13206_v4 = vld [vmem:[%s12799_s18 + $0x40] sm:$0xff] }
 0x159   : > { %10236 = vmatprep.mubr.f32.mxu1 %v13064_v6  ;;  %10316 = vmatprep.mubr.f32.mxu0 %v13064_v6 }
 0x15a   : > { %10438 = vmatprep.subr.mxu0 %v2724_v7  ;;  %10354 = vmatprep.subr.mxu1 %v2314_v8 }
 0x15b   : > { %10439 = vmatpush3.msra.mxu0 %v2724_v7  ;;  %10355 = vmatpush3.msra.mxu1 %v2314_v8  ;;  %v3326_v7 = vld [vmem:[#allocation15 + $0x158] sm:$0xff]  ;;  %v3045_v8 = vld [vmem:[#allocation16 + $0x168] sm:$0xff] }
 0x15c   : > { %10237 = vmatmul.mubr.f32.gmra.mxu1 %v13071_v9  ;;  %10317 = vmatmul.mubr.f32.gmra.mxu0 %v13071_v9 }
 0x15d   : > { %10239 = vmatprep.mubr.f32.mxu1 %v13074_v10  ;;  %10319 = vmatprep.mubr.f32.mxu0 %v13074_v10 }
 0x15e   : > { %10440 = vmatprep.subr.mxu0 %v2723_v11  ;;  %10356 = vmatprep.subr.mxu1 %v2313_v12 }
 0x15f   : > { %10441 = vmatpush3.msra.mxu0 %v2723_v11  ;;  %10357 = vmatpush3.msra.mxu1 %v2313_v12  ;;  %v13222_v11 = vld [vmem:[%s17685_s5] ss:$0 sm:$0xff] }
 0x160   : > { %10240 = vmatmul.mubr.f32.gmra.mxu1 %v13081_v13  ;;  %10320 = vmatmul.mubr.f32.gmra.mxu0 %v13081_v13  ;;  %v3044_v12 = vld [vmem:[#allocation16 + $0x160] sm:$0xff] }
 0x161   : > { %10242 = vmatprep.mubr.f32.mxu1 %v13084_v14  ;;  %10322 = vmatprep.mubr.f32.mxu0 %v13084_v14 }
 0x162   : > { %10442 = vmatprep.subr.mxu0 %v2722_v15  ;;  %10358 = vmatprep.subr.mxu1 %v2312_v20 }
 0x163   : > { %10443 = vmatpush3.msra.mxu0 %v2722_v15  ;;  %10359 = vmatpush3.msra.mxu1 %v2312_v20  ;;  %v13226_v15 = vstv %s1008_s23  ;;  %s19010_s23 = sld [smem:[#allocation271_spill]] }
 0x164   : > { %10243 = vmatmul.mubr.f32.gmra.mxu1 %v13091_v21  ;;  %10323 = vmatmul.mubr.f32.gmra.mxu0 %v13091_v21 }
 0x165   : > { %10245 = vmatprep.mubr.f32.mxu1 %v13094_v22  ;;  %10325 = vmatprep.mubr.f32.mxu0 %v13094_v22 }
 0x166   : > { %10444 = vmatprep.subr.mxu0 %v2721_v23  ;;  %10360 = vmatprep.subr.mxu1 %v2311_v16 }
 0x167   : > { %10445 = vmatpush3.msra.mxu0 %v2721_v23  ;;  %10361 = vmatpush3.msra.mxu1 %v2311_v16  ;;  %v13231_v23 = vld [vmem:[%s12799_s18 + $0x58] sm:$0xff] }
 0x168   : > { %10246 = vmatmul.mubr.f32.gmra.mxu1 %v13101_v18  ;;  %10326 = vmatmul.mubr.f32.gmra.mxu0 %v13101_v18 }
 0x169   : > { %10248 = vmatprep.mubr.f32.mxu1 %v13104_v24  ;;  %10328 = vmatprep.mubr.f32.mxu0 %v13104_v24 }
 0x16a   : > { %10446 = vmatprep.subr.mxu0 %v2720_v26  ;;  %10362 = vmatprep.subr.mxu1 %v2310_v28 }
 0x16b   : > { %10447 = vmatpush3.msra.mxu0 %v2720_v26  ;;  %10363 = vmatpush3.msra.mxu1 %v2310_v28  ;;  %v13236_v28 = vld [vmem:[%s12799_s18 + $0x60] sm:$0xff] }
 0x16c   : > { %10249 = vmatmul.mubr.f32.gmra.mxu1 %v13111_v29  ;;  %10329 = vmatmul.mubr.f32.gmra.mxu0 %v13111_v29 }
 0x16d   : > { %10251 = vmatprep.mubr.f32.mxu1 %v13114_v30  ;;  %10331 = vmatprep.mubr.f32.mxu0 %v13114_v30 }
 0x16e   : > { %10448 = vmatprep.subr.mxu0 %v2719_v31  ;;  %10364 = vmatprep.subr.mxu1 %v2309_v32 }
 0x16f   : > { %10449 = vmatpush3.msra.mxu0 %v2719_v31  ;;  %10365 = vmatpush3.msra.mxu1 %v2309_v32  ;;  %v3324_v32 = vld [vmem:[#allocation15 + $0x148] sm:$0xff] }
 0x170   : > { %10252 = vmatmul.mubr.f32.gmra.mxu1 %v13121_v34  ;;  %10332 = vmatmul.mubr.f32.gmra.mxu0 %v13121_v34 }
 0x171   : > { %10254 = vmatprep.mubr.f32.mxu1 %v13124_v36  ;;  %10334 = vmatprep.mubr.f32.mxu0 %v13124_v36 }
 0x172   : > { %10450 = vmatprep.subr.mxu0 %v2718_v37  ;;  %10366 = vmatprep.subr.mxu1 %v2308_v38 }
 0x173   : > { %10451 = vmatpush3.msra.mxu0 %v2718_v37  ;;  %10367 = vmatpush3.msra.mxu1 %v2308_v38 }
 0x174   : > { %10255 = vmatmul.mubr.f32.gmra.mxu1 %v13131_v39  ;;  %10335 = vmatmul.mubr.f32.gmra.mxu0 %v13131_v39 }
 0x175   : > { %10257 = vmatprep.mubr.f32.mxu1 %v13134_v40  ;;  %10337 = vmatprep.mubr.f32.mxu0 %v13134_v40 }
 0x176   : > { %10452 = vmatprep.subr.mxu0 %v2717_v17  ;;  %10368 = vmatprep.subr.mxu1 %v2307_v19 }
 0x177   : > { %10453 = vmatpush3.msra.mxu0 %v2717_v17  ;;  %10369 = vmatpush3.msra.mxu1 %v2307_v19  ;;  %v3043_v17 = vld [vmem:[#allocation16 + $0x158] sm:$0xff]  ;;  %v13252_v19 = vld [vmem:[%s12799_s18 + $0x68] sm:$0xff] }
 0x178   : > { %10258 = vmatmul.mubr.f32.gmra.mxu1 %v13141_v25  ;;  %10338 = vmatmul.mubr.f32.gmra.mxu0 %v13141_v25 }
 0x179   : > { %10260 = vmatprep.mubr.f32.mxu1 %v13144_v27  ;;  %10340 = vmatprep.mubr.f32.mxu0 %v13144_v27 }
 0x17a   : > { %10370 = vmatprep.subr.mxu1 %v2306_v33  ;;  %10454 = vmatprep.subr.mxu0 %v2716_v35 }
 0x17b   : > { %10371 = vmatpush3.msra.mxu1 %v2306_v33  ;;  %10455 = vmatpush3.msra.mxu0 %v2716_v35  ;;  %v13258_v35 = vld [vmem:[%s12799_s18 + $0x70] sm:$0xff] }
 0x17c   : > { %10261 = vmatmul.mubr.f32.gmra.mxu1 %v13151_v41  ;;  %10341 = vmatmul.mubr.f32.gmra.mxu0 %v13151_v41 }
 0x17d   : > { %10372 = vmatprep.subr.mxu1 %v2305_v42  ;;  %10263 = vmatprep.mubr.f32.mxu1 %v13154_v43 }
 0x17e   : > { %10343 = vmatprep.mubr.f32.mxu0 %v13154_v43  ;;  %10373 = vmatpush3.msra.mxu1 %v2305_v42 }
 0x17f   : > { %10374 = vmatprep.subr.mxu1 %v2304_v44  ;;  %10456 = vmatprep.subr.mxu0 %v2715_v45 }
 0x180   : > { %10264 = vmatmul.mubr.f32.gmra.mxu1 %v13160_v46  ;;  %10344 = vmatmul.mubr.f32.gmra.mxu0 %v13160_v46 }
 0x181   : > { %10375 = vmatpush3.msra.mxu1 %v2304_v44  ;;  %10457 = vmatpush3.msra.mxu0 %v2715_v45 }
 0x182   : > { %10376 = vmatprep.subr.mxu1 %v2303_v47  ;;  %10378 = vmatprep.mubr.f32.mxu1 %v13004_v48  ;;  %v13184_v48 = vld [vmem:[%s12799_s18 + $0x20] sm:$0xff] }
 0x183   : > { %10377 = vmatpush3.msra.mxu1 %v2303_v47  ;;  %10458 = vmatprep.mubr.f32.mxu0 %v13166_v50 }
 0x184   : > { %10379 = vmatmul.mubr.f32.vlgmr.msra.gmra.mxu1 %v13009_v49  ;;  %10459 = vmatmul.mubr.f32.vlgmr.msra.gmra.mxu0 %v13169_v52  ;;  %v13192_v49 = vld [vmem:[%s12799_s18 + $0x28] sm:$0xff] }
 0x185   : > { %10586 = vmatprep.subr.mxu0 %v3330_v53  ;;  %10381 = vmatprep.mubr.f32.mxu1 %v13013_v51  ;;  %v13196_v51 = vld [vmem:[%s12799_s18 + $0x30] sm:$0xff] }
 0x186   : > { %10587 = vmatpush3.msra.mxu0 %v3330_v53  ;;  %10461 = vmatprep.mubr.f32.mxu0 %v13174_v56 }
 0x187   : > { %10588 = vmatprep.subr.mxu0 %v3329_v59  ;;  %10506 = vmatprep.subr.mxu1 %v3047_v60 }
 0x188   : > { %10382 = vmatmul.mubr.f32.gmra.mxu1 %v13020_v54  ;;  %10462 = vmatmul.mubr.f32.gmra.mxu0 %v13180_v63  ;;  %v3046_v54 = vld [vmem:[#allocation16 + $0x170] sm:$0xff] }
 0x189   : > { %10589 = vmatpush3.msra.mxu0 %v3329_v59  ;;  %10384 = vmatprep.mubr.f32.mxu1 %v13024_v55  ;;  %v13203_v55 = vld [vmem:[%s12799_s18 + $0x38] sm:$0xff]  ;;  %v3042_v59 = vld [vmem:[#allocation16 + $0x150] sm:$0xff] }
 0x18a   : > { %10464 = vmatprep.mubr.f32.mxu0 %v13184_v48  ;;  %10590 = vmatprep.subr.mxu0 %v3328_v0 }
 0x18b   : > { %10591 = vmatpush3.msra.mxu0 %v3328_v0  ;;  %10507 = vmatpush3.msra.mxu1 %v3047_v60  ;;  %v13267_v60 = vld [vmem:[%s12799_s18 + $0x78] sm:$0xff] }
 0x18c   : > { %10385 = vmatmul.mubr.f32.gmra.mxu1 %v13030_v57  ;;  %10465 = vmatmul.mubr.f32.gmra.mxu0 %v13192_v49  ;;  %v13214_v57 = vld [vmem:[%s12799_s18 + $0x48] sm:$0xff] }
 0x18d   : > { %10387 = vmatprep.mubr.f32.mxu1 %v13034_v58  ;;  %10467 = vmatprep.mubr.f32.mxu0 %v13196_v51  ;;  %v13217_v58 = vld [vmem:[%s12799_s18 + $0x50] sm:$0xff] }
 0x18e   : > { %10592 = vmatprep.subr.mxu0 %v3327_v3  ;;  %10508 = vmatprep.subr.mxu1 %v3046_v54 }
 0x18f   : > { %10593 = vmatpush3.msra.mxu0 %v3327_v3  ;;  %10509 = vmatpush3.msra.mxu1 %v3046_v54 }
 0x190   : > { %10388 = vmatmul.mubr.f32.gmra.mxu1 %v13041_v61  ;;  %10468 = vmatmul.mubr.f32.gmra.mxu0 %v13203_v55  ;;  %v3325_v61 = vld [vmem:[#allocation15 + $0x150] sm:$0xff] }
 0x191   : > { %10390 = vmatprep.mubr.f32.mxu1 %v13044_v62  ;;  %10470 = vmatprep.mubr.f32.mxu0 %v13206_v4 }
 0x192   : > { %10594 = vmatprep.subr.mxu0 %v3326_v7  ;;  %10510 = vmatprep.subr.mxu1 %v3045_v8 }
 0x193   : > { %10595 = vmatpush3.msra.mxu0 %v3326_v7  ;;  %10511 = vmatpush3.msra.mxu1 %v3045_v8 }
 0x194   : > { %10391 = vmatmul.mubr.f32.gmra.mxu1 %v13051_v1  ;;  %10471 = vmatmul.mubr.f32.gmra.mxu0 %v13214_v57  ;;  %v9980_v62 = vpop.f32.mrf.mxu0  ;;  %v10004_v20 = vpop.f32.mrf.mxu1 }
 0x195   : > { %10393 = vmatprep.mubr.f32.mxu1 %v13054_v2  ;;  %10473 = vmatprep.mubr.f32.mxu0 %v13217_v58  ;;  %v855_v16 = vadd.f32 %v9980_v62, %v13222_v11  ;;  %v935_v26 = vadd.f32 %v10004_v20, %v13222_v11  ;;  %v13291_v20 = vld [vmem:[%s12799_s18 + $0x88] sm:$0xff] }
 0x196   : > { %10596 = vmatprep.subr.mxu0 %v3325_v61  ;;  %v13238_v1 = vpop.f32.mrf.mxu0  ;;  %v929_v31 = vpop.f32.mrf.mxu1  ;;  %10512 = vmatprep.subr.mxu1 %v3044_v12 }
 0x197   : > { %10597 = vmatpush3.msra.mxu0 %v3325_v61  ;;  %v13241_v2 = vmul.f32 %v13226_v15, %v855_v16  ;;  %v13244_v37 = vmul.f32 %v13226_v15, %v935_v26  ;;  %v930_v38 = vadd.f32 %v13222_v11, %v929_v31  ;;  %10513 = vmatpush3.msra.mxu1 %v3044_v12 }
 0x198   : > { %10394 = vmatmul.mubr.f32.gmra.mxu1 %v13061_v5  ;;  %10474 = vmatmul.mubr.f32.gmra.mxu0 %v13231_v23  ;;  %v3323_v5 = vld [vmem:[#allocation15 + $0x140] sm:$0xff] }
 0x199   : > { %18066 = vst [vmem:[#allocation37_spill] sm:$0xff] %v13241_v2  ;;  %18067 = vst [vmem:[#allocation38_spill] sm:$0xff] %v13244_v37  ;;  %10396 = vmatprep.mubr.f32.mxu1 %v13064_v6  ;;  %10476 = vmatprep.mubr.f32.mxu0 %v13236_v28  ;;  %v13255_v33 = vmul.f32 %v13226_v15, %v930_v38  ;;  %v3321_v38 = vld [vmem:[#allocation15 + $0x130] sm:$0xff] }
 0x19a   : > { %10598 = vmatprep.subr.mxu0 %v3324_v32  ;;  %v9983_v42 = vpop.f32.mrf.mxu0  ;;  %v10007_v44 = vpop.f32.mrf.mxu1  ;;  %10514 = vmatprep.subr.mxu1 %v3043_v17 }
 0x19b   : > { %18068 = vst [vmem:[#allocation39_spill] sm:$0xff] %v13255_v33  ;;  %10599 = vmatpush3.msra.mxu0 %v3324_v32  ;;  %v865_v45 = vadd.f32 %v9983_v42, %v13222_v11  ;;  %v945_v6 = vadd.f32 %v10007_v44, %v13222_v11  ;;  %10515 = vmatpush3.msra.mxu1 %v3043_v17 }
 0x19c   : > { %10397 = vmatmul.mubr.f32.gmra.mxu1 %v13071_v9  ;;  %10477 = vmatmul.mubr.f32.gmra.mxu0 %v13252_v19  ;;  %v859_v47 = vpop.f32.mrf.mxu0  ;;  %v939_v53 = vpop.f32.mrf.mxu1  ;;  %v13277_v9 = vld [vmem:[%s12799_s18 + $0x80] sm:$0xff] }
 0x19d   : > { %10399 = vmatprep.mubr.f32.mxu1 %v13074_v10  ;;  %10479 = vmatprep.mubr.f32.mxu0 %v13258_v35  ;;  %v13270_v0 = vmul.f32 %v13226_v15, %v865_v45  ;;  %v13273_v3 = vmul.f32 %v13226_v15, %v945_v6  ;;  %v860_v54 = vadd.f32 %v13222_v11, %v859_v47  ;;  %v3322_v10 = vld [vmem:[#allocation15 + $0x138] sm:$0xff] }
 0x19e   : > { %10600 = vmatprep.subr.mxu0 %v3323_v5  ;;  %v940_v7 = vadd.f32 %v13222_v11, %v939_v53  ;;  %10516 = vmatprep.subr.mxu1 %v3042_v59  ;;  %v13311_v45 = vld [vmem:[%s12799_s18 + $0x98] sm:$0xff]  ;;  %v13320_v53 = vld [vmem:[%s12799_s18 + $0xa0] sm:$0xff] }
 0x19f   : > { %18069 = vst [vmem:[#allocation40_spill] sm:$0xff] %v13270_v0  ;;  %18070 = vst [vmem:[#allocation41_spill] sm:$0xff] %v13273_v3  ;;  %10601 = vmatpush3.msra.mxu0 %v3323_v5  ;;  %v13281_v8 = vmul.f32 %v13226_v15, %v860_v54  ;;  %10517 = vmatpush3.msra.mxu1 %v3042_v59  ;;  %v3041_v5 = vld [vmem:[#allocation16 + $0x148] sm:$0xff]  ;;  %v3315_v3 = vld [vmem:[#allocation15 + $0x100] sm:$0xff] }
 0x1a0   : > { %10400 = vmatmul.mubr.f32.gmra.mxu1 %v13081_v13  ;;  %10480 = vmatmul.mubr.f32.gmra.mxu0 %v13267_v60  ;;  %v13286_v61 = vmul.f32 %v13226_v15, %v940_v7  ;;  %v9986_v12 = vpop.f32.mrf.mxu0  ;;  %v10010_v62 = vpop.f32.mrf.mxu1  ;;  %v13296_v13 = vld [vmem:[%s12799_s18 + $0x90] sm:$0xff]  ;;  %v3320_v54 = vld [vmem:[#allocation15 + $0x128] sm:$0xff] }
 0x1a1   : > { %18071 = vst [vmem:[#allocation42_spill] sm:$0xff] %v13281_v8  ;;  %10402 = vmatprep.mubr.f32.mxu1 %v13084_v14  ;;  %10482 = vmatprep.mubr.f32.mxu0 %v13277_v9  ;;  %v875_v16 = vadd.f32 %v9986_v12, %v13222_v11  ;;  %v955_v26 = vadd.f32 %v10010_v62, %v13222_v11 }
 0x1a2   : > { %18072 = vst [vmem:[#allocation43_spill] sm:$0xff] %v13286_v61  ;;  %10602 = vmatprep.subr.mxu0 %v3322_v10  ;;  %v869_v31 = vpop.f32.mrf.mxu0  ;;  %v949_v32 = vpop.f32.mrf.mxu1  ;;  %10518 = vmatprep.subr.mxu1 %v3041_v5 }
 0x1a3   : > { %10603 = vmatpush3.msra.mxu0 %v3322_v10  ;;  %v13299_v14 = vmul.f32 %v13226_v15, %v875_v16  ;;  %v13302_v17 = vmul.f32 %v13226_v15, %v955_v26  ;;  %v870_v42 = vadd.f32 %v13222_v11, %v869_v31  ;;  %v950_v44 = vadd.f32 %v13222_v11, %v949_v32  ;;  %v3040_v10 = vld [vmem:[#allocation16 + $0x140] sm:$0xff]  ;;  %v13329_v16 = vld [vmem:[%s12799_s18 + $0xa8] sm:$0xff] }
 0x1a4   : > { %10403 = vmatmul.mubr.f32.gmra.mxu1 %v13091_v21  ;;  %10483 = vmatmul.mubr.f32.gmra.mxu0 %v13291_v20 }
 0x1a5   : > { %18073 = vst [vmem:[#allocation44_spill] sm:$0xff] %v13299_v14  ;;  %18074 = vst [vmem:[#allocation45_spill] sm:$0xff] %v13302_v17  ;;  %10405 = vmatprep.mubr.f32.mxu1 %v13094_v22  ;;  %10485 = vmatprep.mubr.f32.mxu0 %v13296_v13  ;;  %v13314_v6 = vmul.f32 %v13226_v15, %v870_v42  ;;  %v13317_v47 = vmul.f32 %v13226_v15, %v950_v44  ;;  %v3039_v44 = vld [vmem:[#allocation16 + $0x138] sm:$0xff]  ;;  %v14271_v14 = vstv %s13957_s8  ;;  %s18792_s8 = sld [smem:[#allocation270_spill]] }
 0x1a6   : > { %10604 = vmatprep.subr.mxu0 %v3321_v38  ;;  %v9989_v59 = vpop.f32.mrf.mxu0  ;;  %v10013_v21 = vpop.f32.mrf.mxu1  ;;  %10519 = vmatpush3.msra.mxu1 %v3041_v5 }
 0x1a7   : > { %18075 = vst [vmem:[#allocation46_spill] sm:$0xff] %v13314_v6  ;;  %18076 = vst [vmem:[#allocation47_spill] sm:$0xff] %v13317_v47  ;;  %10605 = vmatpush3.msra.mxu0 %v3321_v38  ;;  %v885_v22 = vadd.f32 %v9989_v59, %v13222_v11  ;;  %v965_v7 = vadd.f32 %v10013_v21, %v13222_v11  ;;  %10520 = vmatprep.subr.mxu1 %v3040_v10  ;;  %v3033_v47 = vld [vmem:[#allocation16 + $0x108] sm:$0xff] }
 0x1a8   : > { %10406 = vmatmul.mubr.f32.gmra.mxu1 %v13101_v18  ;;  %10486 = vmatmul.mubr.f32.gmra.mxu0 %v13311_v45  ;;  %v879_v12 = vpop.f32.mrf.mxu0  ;;  %v959_v62 = vpop.f32.mrf.mxu1  ;;  %v13339_v18 = vld [vmem:[%s12799_s18 + $0xb0] sm:$0xff] }
 0x1a9   : > { %10408 = vmatprep.mubr.f32.mxu1 %v13104_v24  ;;  %10488 = vmatprep.mubr.f32.mxu0 %v13320_v53  ;;  %v13332_v26 = vmul.f32 %v13226_v15, %v885_v22  ;;  %v13335_v31 = vmul.f32 %v13226_v15, %v965_v7  ;;  %v880_v32 = vadd.f32 %v13222_v11, %v879_v12  ;;  %v3319_v24 = vld [vmem:[#allocation15 + $0x120] sm:$0xff] }
 0x1aa   : > { %10606 = vmatprep.subr.mxu0 %v3320_v54  ;;  %v960_v38 = vadd.f32 %v13222_v11, %v959_v62  ;;  %10521 = vmatpush3.msra.mxu1 %v3040_v10  ;;  %v13358_v10 = vld [vmem:[%s12799_s18 + $0xc0] sm:$0xff] }
 0x1ab   : > { %18077 = vst [vmem:[#allocation48_spill] sm:$0xff] %v13332_v26  ;;  %18078 = vst [vmem:[#allocation49_spill] sm:$0xff] %v13335_v31  ;;  %10607 = vmatpush3.msra.mxu0 %v3320_v54  ;;  %v13343_v42 = vmul.f32 %v13226_v15, %v880_v32  ;;  %v13353_v54 = vld [vmem:[%s12799_s18 + $0xb8] sm:$0xff]  ;;  %10522 = vmatprep.subr.mxu1 %v3039_v44  ;;  %v3317_v31 = vld [vmem:[#allocation15 + $0x110] sm:$0xff] }
 0x1ac   : > { %10409 = vmatmul.mubr.f32.gmra.mxu1 %v13111_v29  ;;  %10489 = vmatmul.mubr.f32.gmra.mxu0 %v13329_v16  ;;  %v13348_v5 = vmul.f32 %v13226_v15, %v960_v38  ;;  %v9992_v59 = vpop.f32.mrf.mxu0  ;;  %v10016_v21 = vpop.f32.mrf.mxu1  ;;  %v3318_v32 = vld [vmem:[#allocation15 + $0x118] sm:$0xff] }
 0x1ad   : > { %18079 = vst [vmem:[#allocation50_spill] sm:$0xff] %v13343_v42  ;;  %10411 = vmatprep.mubr.f32.mxu1 %v13114_v30  ;;  %10491 = vmatprep.mubr.f32.mxu0 %v13339_v18  ;;  %v895_v22 = vadd.f32 %v9992_v59, %v13222_v11  ;;  %v975_v7 = vadd.f32 %v10016_v21, %v13222_v11  ;;  %v3038_v59 = vld [vmem:[#allocation16 + $0x130] sm:$0xff] }
 0x1ae   : > { %18080 = vst [vmem:[#allocation51_spill] sm:$0xff] %v13348_v5  ;;  %10608 = vmatprep.subr.mxu0 %v3319_v24  ;;  %v889_v29 = vpop.f32.mrf.mxu0  ;;  %v969_v12 = vpop.f32.mrf.mxu1  ;;  %10523 = vmatpush3.msra.mxu1 %v3039_v44  ;;  %v3035_v5 = vld [vmem:[#allocation16 + $0x118] sm:$0xff] }
 0x1af   : > { %10609 = vmatpush3.msra.mxu0 %v3319_v24  ;;  %v13361_v62 = vmul.f32 %v13226_v15, %v895_v22  ;;  %v13364_v30 = vmul.f32 %v13226_v15, %v975_v7  ;;  %v890_v38 = vadd.f32 %v13222_v11, %v889_v29  ;;  %v970_v21 = vadd.f32 %v13222_v11, %v969_v12  ;;  %v13373_v24 = vld [vmem:[%s12799_s18 + $0xc8] sm:$0xff]  ;;  %v13382_v7 = vld [vmem:[%s12799_s18 + $0xd0] sm:$0xff] }
 0x1b0   : > { %10412 = vmatmul.mubr.f32.gmra.mxu1 %v13121_v34  ;;  %10492 = vmatmul.mubr.f32.gmra.mxu0 %v13353_v54 }
 0x1b1   : > { %18081 = vst [vmem:[#allocation52_spill] sm:$0xff] %v13361_v62  ;;  %18082 = vst [vmem:[#allocation53_spill] sm:$0xff] %v13364_v30  ;;  %10414 = vmatprep.mubr.f32.mxu1 %v13124_v36  ;;  %10494 = vmatprep.mubr.f32.mxu0 %v13358_v10  ;;  %v13376_v22 = vmul.f32 %v13226_v15, %v890_v38  ;;  %v13379_v44 = vmul.f32 %v13226_v15, %v970_v21  ;;  %v3037_v30 = vld [vmem:[#allocation16 + $0x128] sm:$0xff] }
 0x1b2   : > { %10610 = vmatprep.subr.mxu0 %v3318_v32  ;;  %10524 = vmatprep.subr.mxu1 %v3038_v59  ;;  %v9995_v34 = vpop.f32.mrf.mxu0  ;;  %v10019_v29 = vpop.f32.mrf.mxu1 }
 0x1b3   : > { %18083 = vst [vmem:[#allocation54_spill] sm:$0xff] %v13376_v22  ;;  %18084 = vst [vmem:[#allocation55_spill] sm:$0xff] %v13379_v44  ;;  %10611 = vmatpush3.msra.mxu0 %v3318_v32  ;;  %10525 = vmatpush3.msra.mxu1 %v3038_v59  ;;  %v905_v36 = vadd.f32 %v9995_v34, %v13222_v11  ;;  %v985_v12 = vadd.f32 %v10019_v29, %v13222_v11  ;;  %v13397_v34 = vld [vmem:[%s12799_s18 + $0xd8] sm:$0xff]  ;;  %v3036_v44 = vld [vmem:[#allocation16 + $0x120] sm:$0xff] }
 0x1b4   : > { %10415 = vmatmul.mubr.f32.gmra.mxu1 %v13131_v39  ;;  %10495 = vmatmul.mubr.f32.gmra.mxu0 %v13373_v24  ;;  %v899_v38 = vpop.f32.mrf.mxu0  ;;  %v979_v21 = vpop.f32.mrf.mxu1  ;;  %v14267_v22 = vld [vmem:[%s17687_s7 + $0x2] ss:$0 sm:$0xff] }
 0x1b5   : > { %10417 = vmatprep.mubr.f32.mxu1 %v13134_v40  ;;  %10497 = vmatprep.mubr.f32.mxu0 %v13382_v7  ;;  %v13391_v32 = vmul.f32 %v13226_v15, %v905_v36  ;;  %v13394_v59 = vmul.f32 %v13226_v15, %v985_v12  ;;  %v900_v29 = vadd.f32 %v13222_v11, %v899_v38  ;;  %v13405_v36 = vld [vmem:[%s12799_s18 + $0xe0] sm:$0xff] }
 0x1b6   : > { %10526 = vmatprep.subr.mxu1 %v3037_v30  ;;  %10612 = vmatprep.subr.mxu0 %v3317_v31  ;;  %v980_v39 = vadd.f32 %v13222_v11, %v979_v21  ;;  %v3316_v21 = vld [vmem:[#allocation15 + $0x108] sm:$0xff] }
 0x1b7   : > { %18085 = vst [vmem:[#allocation56_spill] sm:$0xff] %v13391_v32  ;;  %18086 = vst [vmem:[#allocation57_spill] sm:$0xff] %v13394_v59  ;;  %10527 = vmatpush3.msra.mxu1 %v3037_v30  ;;  %10613 = vmatpush3.msra.mxu0 %v3317_v31  ;;  %v13402_v40 = vmul.f32 %v13226_v15, %v900_v29  ;;  %v13416_v29 = vld [vmem:[%s12799_s18 + $0xe8] sm:$0xff] }
 0x1b8   : > { %10418 = vmatmul.mubr.f32.gmra.mxu1 %v13141_v25  ;;  %10498 = vmatmul.mubr.f32.gmra.mxu0 %v13397_v34  ;;  %v13410_v12 = vmul.f32 %v13226_v15, %v980_v39  ;;  %v9998_v38 = vpop.f32.mrf.mxu0  ;;  %v10022_v59 = vpop.f32.mrf.mxu1 }
 0x1b9   : > { %18087 = vst [vmem:[#allocation58_spill] sm:$0xff] %v13402_v40  ;;  %10528 = vmatprep.subr.mxu1 %v3036_v44  ;;  %10420 = vmatprep.mubr.f32.mxu1 %v13144_v27  ;;  %v915_v31 = vadd.f32 %v9998_v38, %v13222_v11  ;;  %v995_v30 = vadd.f32 %v10022_v59, %v13222_v11  ;;  %v3034_v38 = vld [vmem:[#allocation16 + $0x110] sm:$0xff] }
 0x1ba   : > { %18088 = vst [vmem:[#allocation59_spill] sm:$0xff] %v13410_v12  ;;  %10500 = vmatprep.mubr.f32.mxu0 %v13405_v36  ;;  %10529 = vmatpush3.msra.mxu1 %v3036_v44  ;;  %v909_v25 = vpop.f32.mrf.mxu0  ;;  %v989_v39 = vpop.f32.mrf.mxu1  ;;  %v13430_v59 = vld [vmem:[%s12799_s18 + $0xf0] sm:$0xff] }
 0x1bb   : > { %v13420_v12 = vmul.f32 %v13226_v15, %v915_v31  ;;  %v13423_v17 = vmul.f32 %v13226_v15, %v995_v30  ;;  %10530 = vmatprep.subr.mxu1 %v3035_v5  ;;  %10614 = vmatprep.subr.mxu0 %v3316_v21  ;;  %v910_v27 = vadd.f32 %v13222_v11, %v909_v25  ;;  %v13436_v30 = vld [vmem:[%s12799_s18 + $0xf8] sm:$0xff] }
 0x1bc   : > { %10421 = vmatmul.mubr.f32.gmra.mxu1 %v13151_v41  ;;  %10501 = vmatmul.mubr.f32.gmra.mxu0 %v13416_v29  ;;  %v990_v44 = vadd.f32 %v13222_v11, %v989_v39 }
 0x1bd   : > { %18089 = vst [vmem:[#allocation60_spill] sm:$0xff] %v13420_v12  ;;  %18090 = vst [vmem:[#allocation61_spill] sm:$0xff] %v13423_v17  ;;  %10531 = vmatpush3.msra.mxu1 %v3035_v5  ;;  %10615 = vmatpush3.msra.mxu0 %v3316_v21  ;;  %v13433_v31 = vmul.f32 %v13226_v15, %v910_v27 }
 0x1be   : > { %v13439_v17 = vmul.f32 %v13226_v15, %v990_v44  ;;  %10532 = vmatprep.subr.mxu1 %v3034_v38  ;;  %10423 = vmatprep.mubr.f32.mxu1 %v13154_v43  ;;  %v10001_v41 = vpop.f32.mrf.mxu0  ;;  %v10025_v25 = vpop.f32.mrf.mxu1  ;;  %v3032_v44 = vld [vmem:[#allocation16 + $0x100] sm:$0xff] }
 0x1bf   : > { %18091 = vst [vmem:[#allocation62_spill] sm:$0xff] %v13433_v31  ;;  %10503 = vmatprep.mubr.f32.mxu0 %v13430_v59  ;;  %10533 = vmatpush3.msra.mxu1 %v3034_v38  ;;  %v925_v5 = vadd.f32 %v10001_v41, %v13222_v11  ;;  %v1005_v21 = vadd.f32 %v10025_v25, %v13222_v11  ;;  %v13458_v41 = vld [vmem:[%s17687_s7] ss:$0 sm:$0xff] }
 0x1c0   : > { %18092 = vst [vmem:[#allocation63_spill] sm:$0xff] %v13439_v17  ;;  %10424 = vmatmul.mubr.f32.gmra.mxu1 %v13160_v46  ;;  %10504 = vmatmul.mubr.f32.gmra.mxu0 %v13436_v30  ;;  %v919_v39 = vpop.f32.mrf.mxu0  ;;  %v999_v27 = vpop.f32.mrf.mxu1 }
 0x1c1   : > { %v13448_v43 = vmul.f32 %v13226_v15, %v925_v5  ;;  %v13451_v17 = vmul.f32 %v13226_v15, %v1005_v21  ;;  %10534 = vmatprep.subr.mxu1 %v3033_v47  ;;  %10616 = vmatprep.subr.mxu0 %v3315_v3  ;;  %v920_v38 = vadd.f32 %v13222_v11, %v919_v39  ;;  %v13471_v21 = vstv %s13188_s21 }
 0x1c2   : > { %10535 = vmatpush3.msra.mxu1 %v3033_v47  ;;  %10617 = vmatpush3.msra.mxu0 %v3315_v3  ;;  %v1000_v46 = vadd.f32 %v13222_v11, %v999_v27 }
 0x1c3   : > { %18093 = vst [vmem:[#allocation64_spill] sm:$0xff] %v13448_v43  ;;  %18094 = vst [vmem:[#allocation65_spill] sm:$0xff] %v13451_v17  ;;  %v13461_v25 = vmul.f32 %v13226_v15, %v920_v38  ;;  %10536 = vmatprep.subr.mxu1 %v3032_v44  ;;  %10538 = vmatprep.mubr.f32.mxu1 %v13166_v50 }
 0x1c4   : > { %v13465_v5 = vmul.f32 %v13226_v15, %v1000_v46  ;;  %10537 = vmatpush3.msra.mxu1 %v3032_v44  ;;  %10618 = vmatprep.mubr.f32.mxu0 %v13166_v50  ;;  %v13468_v3 = vpop.f32.mrf.mxu1  ;;  %v10140_v47 = vpop.f32.mrf.mxu0  ;;  %v17728_v46 = vmov 0.0  }
 0x1c5   : > { %18095 = vst [vmem:[#allocation66_spill] sm:$0xff] %v13461_v25  ;;  %v1449_v39 = vadd.f32 %v10140_v47, %v13458_v41  ;;  %10539 = vmatmul.mubr.f32.vlgmr.msra.gmra.mxu1 %v13169_v52  ;;  %10619 = vmatmul.mubr.f32.vlgmr.msra.gmra.mxu0 %v13169_v52 }
 0x1c6   : > { %18096 = vst [vmem:[#allocation67_spill] sm:$0xff] %v13465_v5  ;;  %v13476_v27 = vpop.f32.mrf.mxu1  ;;  %v1443_v38 = vpop.f32.mrf.mxu0  ;;  %10541 = vmatprep.mubr.f32.mxu1 %v13174_v56  ;;  %10621 = vmatprep.mubr.f32.mxu0 %v13174_v56 }
 0x1c7   : > { %v13481_v50 = vmul.f32 %v13471_v21, %v1449_v39  ;;  %v1444_v44 = vadd.f32 %v13458_v41, %v1443_v38  ;;  %4622 = vmatprep.subr.mxu0 %v17728_v46 }
 0x1c8   : > { %v13485_v47 = vpop.f32.mrf.mxu1  ;;  %v10143_v17 = vpop.f32.mrf.mxu0 }
 0x1c9   : > { %18097 = vst [vmem:[#allocation68_spill] sm:$0xff] %v13481_v50  ;;  %v13488_v52 = vmul.f32 %v13471_v21, %v1444_v44  ;;  %v1459_v5 = vadd.f32 %v10143_v17, %v13458_v41  ;;  %10542 = vmatmul.mubr.f32.gmra.mxu1 %v13180_v63  ;;  %10622 = vmatmul.mubr.f32.gmra.mxu0 %v13180_v63 }
 0x1ca   : > { %v13493_v56 = vpop.f32.mrf.mxu1  ;;  %v1453_v39 = vpop.f32.mrf.mxu0  ;;  %10544 = vmatprep.mubr.f32.mxu1 %v13184_v48  ;;  %10624 = vmatprep.mubr.f32.mxu0 %v13184_v48 }
 0x1cb   : > { %18098 = vst [vmem:[#allocation69_spill] sm:$0xff] %v13488_v52  ;;  %v13498_v38 = vmul.f32 %v13471_v21, %v1459_v5  ;;  %v1454_v46 = vadd.f32 %v13458_v41, %v1453_v39 }
 0x1cc   : > { %v13501_v44 = vpop.f32.mrf.mxu1  ;;  %v10146_v52 = vpop.f32.mrf.mxu0 }
 0x1cd   : > { %18099 = vst [vmem:[#allocation70_spill] sm:$0xff] %v13498_v38  ;;  %v13504_v17 = vmul.f32 %v13471_v21, %v1454_v46  ;;  %v1469_v63 = vadd.f32 %v10146_v52, %v13458_v41  ;;  %10545 = vmatmul.mubr.f32.gmra.mxu1 %v13192_v49  ;;  %10625 = vmatmul.mubr.f32.gmra.mxu0 %v13192_v49 }
 0x1ce   : > { %v13509_v50 = vpop.f32.mrf.mxu1  ;;  %v1463_v48 = vpop.f32.mrf.mxu0  ;;  %10547 = vmatprep.mubr.f32.mxu1 %v13196_v51  ;;  %10627 = vmatprep.mubr.f32.mxu0 %v13196_v51 }
 0x1cf   : > { %18100 = vst [vmem:[#allocation71_spill] sm:$0xff] %v13504_v17  ;;  %v13514_v5 = vmul.f32 %v13471_v21, %v1469_v63  ;;  %v1464_v39 = vadd.f32 %v13458_v41, %v1463_v48 }
 0x1d0   : > { %v13517_v46 = vpop.f32.mrf.mxu1  ;;  %v10149_v17 = vpop.f32.mrf.mxu0 }
 0x1d1   : > { %18101 = vst [vmem:[#allocation72_spill] sm:$0xff] %v13514_v5  ;;  %v13520_v52 = vmul.f32 %v13471_v21, %v1464_v39  ;;  %v1479_v49 = vadd.f32 %v10149_v17, %v13458_v41  ;;  %10548 = vmatmul.mubr.f32.gmra.mxu1 %v13203_v55  ;;  %10628 = vmatmul.mubr.f32.gmra.mxu0 %v13203_v55 }
 0x1d2   : > { %v13525_v38 = vpop.f32.mrf.mxu1  ;;  %v1473_v51 = vpop.f32.mrf.mxu0  ;;  %10550 = vmatprep.mubr.f32.mxu1 %v13206_v4  ;;  %10630 = vmatprep.mubr.f32.mxu0 %v13206_v4 }
 0x1d3   : > { %18102 = vst [vmem:[#allocation73_spill] sm:$0xff] %v13520_v52  ;;  %v13530_v63 = vmul.f32 %v13471_v21, %v1479_v49  ;;  %v1474_v48 = vadd.f32 %v13458_v41, %v1473_v51 }
 0x1d4   : > { %v13533_v39 = vpop.f32.mrf.mxu1  ;;  %v10152_v52 = vpop.f32.mrf.mxu0 }
 0x1d5   : > { %18103 = vst [vmem:[#allocation74_spill] sm:$0xff] %v13530_v63  ;;  %v13536_v17 = vmul.f32 %v13471_v21, %v1474_v48  ;;  %v1489_v55 = vadd.f32 %v10152_v52, %v13458_v41  ;;  %10551 = vmatmul.mubr.f32.gmra.mxu1 %v13214_v57  ;;  %10631 = vmatmul.mubr.f32.gmra.mxu0 %v13214_v57 }
 0x1d6   : > { %v13541_v5 = vpop.f32.mrf.mxu1  ;;  %v1483_v4 = vpop.f32.mrf.mxu0  ;;  %10553 = vmatprep.mubr.f32.mxu1 %v13217_v58  ;;  %10633 = vmatprep.mubr.f32.mxu0 %v13217_v58 }
 0x1d7   : > { %18104 = vst [vmem:[#allocation75_spill] sm:$0xff] %v13536_v17  ;;  %v13546_v49 = vmul.f32 %v13471_v21, %v1489_v55  ;;  %v1484_v51 = vadd.f32 %v13458_v41, %v1483_v4 }
 0x1d8   : > { %v13549_v48 = vpop.f32.mrf.mxu1  ;;  %v10155_v17 = vpop.f32.mrf.mxu0 }
 0x1d9   : > { %18105 = vst [vmem:[#allocation76_spill] sm:$0xff] %v13546_v49  ;;  %v13552_v52 = vmul.f32 %v13471_v21, %v1484_v51  ;;  %v1499_v57 = vadd.f32 %v10155_v17, %v13458_v41  ;;  %10554 = vmatmul.mubr.f32.gmra.mxu1 %v13231_v23  ;;  %10634 = vmatmul.mubr.f32.gmra.mxu0 %v13231_v23  ;;  %v13574_v23 = vld [vmem:[%s18109_s19] ss:$0 sm:$0xff] }
 0x1da   : > { %v13557_v63 = vpop.f32.mrf.mxu1  ;;  %v1493_v58 = vpop.f32.mrf.mxu0  ;;  %10556 = vmatprep.mubr.f32.mxu1 %v13236_v28  ;;  %10636 = vmatprep.mubr.f32.mxu0 %v13236_v28 }
 0x1db   : > { %18106 = vst [vmem:[#allocation77_spill] sm:$0xff] %v13552_v52  ;;  %v13562_v55 = vmul.f32 %v13471_v21, %v1499_v57  ;;  %v1494_v4 = vadd.f32 %v13458_v41, %v1493_v58 }
 0x1dc   : > { %v10078_v51 = vpop.f32.mrf.mxu1  ;;  %v10158_v52 = vpop.f32.mrf.mxu0 }
 0x1dd   : > { %18107 = vst [vmem:[#allocation78_spill] sm:$0xff] %v13562_v55  ;;  %v13566_v17 = vmul.f32 %v13471_v21, %v1494_v4  ;;  %v1509_v49 = vadd.f32 %v10158_v52, %v13458_v41  ;;  %10557 = vmatmul.mubr.f32.gmra.mxu1 %v13252_v19  ;;  %10637 = vmatmul.mubr.f32.gmra.mxu0 %v13252_v19 }
 0x1de   : > { %v1223_v28 = vpop.f32.mrf.mxu1  ;;  %v1503_v57 = vpop.f32.mrf.mxu0  ;;  %10559 = vmatprep.mubr.f32.mxu1 %v13258_v35  ;;  %10639 = vmatprep.mubr.f32.mxu0 %v13258_v35 }
 0x1df   : > { %18108 = vst [vmem:[#allocation79_spill] sm:$0xff] %v13566_v17  ;;  %v13579_v58 = vmul.f32 %v13471_v21, %v1509_v49  ;;  %v1504_v52 = vadd.f32 %v13458_v41, %v1503_v57 }
 0x1e0   : > { %v10081_v4 = vpop.f32.mrf.mxu1  ;;  %v10161_v17 = vpop.f32.mrf.mxu0 }
 0x1e1   : > { %18110 = vst [vmem:[#allocation80_spill] sm:$0xff] %v13579_v58  ;;  %v13583_v19 = vmul.f32 %v13471_v21, %v1504_v52  ;;  %v1239_v55 = vadd.f32 %v10081_v4, %v13574_v23  ;;  %v1519_v61 = vadd.f32 %v10161_v17, %v13458_v41  ;;  %10560 = vmatmul.mubr.f32.gmra.mxu1 %v13267_v60 }
 0x1e2   : > { %10640 = vmatmul.mubr.f32.gmra.mxu0 %v13267_v60  ;;  %v1233_v37 = vpop.f32.mrf.mxu1  ;;  %v1513_v35 = vpop.f32.mrf.mxu0  ;;  %10562 = vmatprep.mubr.f32.mxu1 %v13277_v9 }
 0x1e3   : > { %18111 = vst [vmem:[#allocation81_spill] sm:$0xff] %v13583_v19  ;;  %10642 = vmatprep.mubr.f32.mxu0 %v13277_v9  ;;  %v13592_v49 = vmul.f32 %v13471_v21, %v1519_v61  ;;  %v1234_v57 = vadd.f32 %v13574_v23, %v1233_v37  ;;  %v1514_v52 = vadd.f32 %v13458_v41, %v1513_v35  ;;  %v18113_v19 = vmov 0.0  }
 0x1e4   : > { %4623 = vmatpush1.msra.mxu0 %v1239_v55  ;;  %v13596_v4 = vpop.f32.mrf.mxu1  ;;  %v10164_v17 = vpop.f32.mrf.mxu0  ;;  %v1229_v61 = vadd.f32 %v10078_v51, %v13574_v23 }
 0x1e5   : > { %18112 = vst [vmem:[#allocation82_spill] sm:$0xff] %v13592_v49  ;;  %4624 = vmatprep.subr.mxu0 %v18113_v19  ;;  %v13600_v60 = vmul.f32 %v13471_v21, %v1514_v52  ;;  %v1529_v58 = vadd.f32 %v10164_v17, %v13458_v41  ;;  %10563 = vmatmul.mubr.f32.gmra.mxu1 %v13291_v20 }
 0x1e6   : > { %10643 = vmatmul.mubr.f32.gmra.mxu0 %v13291_v20  ;;  %v13605_v9 = vpop.f32.mrf.mxu1  ;;  %v1523_v37 = vpop.f32.mrf.mxu0  ;;  %10565 = vmatprep.mubr.f32.mxu1 %v13296_v13 }
 0x1e7   : > { %18114 = vst [vmem:[#allocation83_spill] sm:$0xff] %v13600_v60  ;;  %10645 = vmatprep.mubr.f32.mxu0 %v13296_v13  ;;  %v13611_v55 = vmul.f32 %v13471_v21, %v1529_v58  ;;  %v1524_v35 = vadd.f32 %v13458_v41, %v1523_v37  ;;  %4625 = vmatpush1.msra.mxu0 %v1234_v57 }
 0x1e8   : > { %v13614_v52 = vpop.f32.mrf.mxu1  ;;  %v10167_v17 = vpop.f32.mrf.mxu0  ;;  %4626 = vmatprep.subr.mxu0 %v18113_v19  ;;  %v1224_v58 = vadd.f32 %v13574_v23, %v1223_v28 }
 0x1e9   : > { %v13618_v20 = vmul.f32 %v13471_v21, %v1524_v35  ;;  %v1539_v60 = vadd.f32 %v10167_v17, %v13458_v41  ;;  %10566 = vmatmul.mubr.f32.gmra.mxu1 %v13311_v45  ;;  %4627 = vmatpush1.msra.mxu0 %v1229_v61 }
 0x1ea   : > { %10646 = vmatmul.mubr.f32.gmra.mxu0 %v13311_v45  ;;  %v13623_v13 = vpop.f32.mrf.mxu1  ;;  %v1533_v51 = vpop.f32.mrf.mxu0  ;;  %10568 = vmatprep.mubr.f32.mxu1 %v13320_v53 }
 0x1eb   : > { %10648 = vmatprep.mubr.f32.mxu0 %v13320_v53  ;;  %v13629_v57 = vmul.f32 %v13471_v21, %v1539_v60  ;;  %v1534_v37 = vadd.f32 %v13458_v41, %v1533_v51  ;;  %4628 = vmatprep.subr.mxu0 %v18113_v19  ;;  %v1219_v53 = vadd.f32 %v13549_v48, %v13574_v23 }
 0x1ec   : > { %v13632_v35 = vpop.f32.mrf.mxu1  ;;  %v10170_v17 = vpop.f32.mrf.mxu0  ;;  %4629 = vmatpush1.msra.mxu0 %v1224_v58 }
 0x1ed   : > { %v13636_v45 = vmul.f32 %v13471_v21, %v1534_v37  ;;  %v1549_v49 = vadd.f32 %v10170_v17, %v13458_v41  ;;  %10569 = vmatmul.mubr.f32.gmra.mxu1 %v13329_v16  ;;  %v1214_v37 = vadd.f32 %v13574_v23, %v13557_v63  ;;  %4630 = vmatprep.subr.mxu0 %v18113_v19 }
 0x1ee   : > { %10649 = vmatmul.mubr.f32.gmra.mxu0 %v13329_v16  ;;  %v13643_v28 = vpop.f32.mrf.mxu1  ;;  %v1543_v60 = vpop.f32.mrf.mxu0  ;;  %10571 = vmatprep.mubr.f32.mxu1 %v13339_v18  ;;  %v1209_v63 = vadd.f32 %v13533_v39, %v13574_v23 }
 0x1ef   : > { %10651 = vmatprep.mubr.f32.mxu0 %v13339_v18  ;;  %v13648_v61 = vmul.f32 %v13471_v21, %v1549_v49  ;;  %v1544_v51 = vadd.f32 %v13458_v41, %v1543_v60  ;;  %4631 = vmatpush1.msra.mxu0 %v1219_v53 }
 0x1f0   : > { %v13653_v16 = vpop.f32.mrf.mxu1  ;;  %v10173_v17 = vpop.f32.mrf.mxu0  ;;  %4632 = vmatprep.subr.mxu0 %v18113_v19 }
 0x1f1   : > { %v13657_v48 = vmul.f32 %v13471_v21, %v1544_v51  ;;  %v1559_v33 = vadd.f32 %v10173_v17, %v13458_v41  ;;  %10572 = vmatmul.mubr.f32.gmra.mxu1 %v13353_v54  ;;  %4633 = vmatpush1.msra.mxu0 %v1214_v37  ;;  %v1204_v51 = vadd.f32 %v13574_v23, %v13541_v5 }
 0x1f2   : > { %10652 = vmatmul.mubr.f32.gmra.mxu0 %v13353_v54  ;;  %v13662_v18 = vpop.f32.mrf.mxu1  ;;  %v1553_v49 = vpop.f32.mrf.mxu0  ;;  %10574 = vmatprep.mubr.f32.mxu1 %v13358_v10  ;;  %v1199_v37 = vadd.f32 %v13517_v46, %v13574_v23 }
 0x1f3   : > { %v13668_v58 = vmul.f32 %v13471_v21, %v1559_v33  ;;  %v1554_v60 = vadd.f32 %v13458_v41, %v1553_v49  ;;  %10654 = vmatprep.mubr.f32.mxu0 %v13358_v10  ;;  %4634 = vmatprep.subr.mxu0 %v18113_v19 }
 0x1f4   : > { %v13673_v54 = vpop.f32.mrf.mxu1  ;;  %v10176_v53 = vpop.f32.mrf.mxu0  ;;  %4635 = vmatpush1.msra.mxu0 %v1209_v63 }
 0x1f5   : > { %v13678_v17 = vmul.f32 %v13471_v21, %v1554_v60  ;;  %v1569_v39 = vadd.f32 %v10176_v53, %v13458_v41  ;;  %10575 = vmatmul.mubr.f32.gmra.mxu1 %v13373_v24  ;;  %4636 = vmatprep.subr.mxu0 %v18113_v19  ;;  %v1194_v53 = vadd.f32 %v13574_v23, %v13525_v38 }
 0x1f6   : > { %10655 = vmatmul.mubr.f32.gmra.mxu0 %v13373_v24  ;;  %v13684_v33 = vpop.f32.mrf.mxu1  ;;  %v1563_v10 = vpop.f32.mrf.mxu0  ;;  %10577 = vmatprep.mubr.f32.mxu1 %v13382_v7 }
 0x1f7   : > { %v13690_v5 = vmul.f32 %v13471_v21, %v1569_v39  ;;  %v1564_v49 = vadd.f32 %v13458_v41, %v1563_v10  ;;  %10657 = vmatprep.mubr.f32.mxu0 %v13382_v7  ;;  %4637 = vmatpush1.msra.mxu0 %v1204_v51  ;;  %v1189_v10 = vadd.f32 %v13501_v44, %v13574_v23 }
 0x1f8   : > { %v13695_v24 = vpop.f32.mrf.mxu1  ;;  %v10179_v60 = vpop.f32.mrf.mxu0  ;;  %4638 = vmatprep.subr.mxu0 %v18113_v19  ;;  %v1184_v44 = vadd.f32 %v13574_v23, %v13509_v50 }
 0x1f9   : > { %v13702_v46 = vmul.f32 %v13471_v21, %v1564_v49  ;;  %v1579_v63 = vadd.f32 %v10179_v60, %v13458_v41  ;;  %10578 = vmatmul.mubr.f32.gmra.mxu1 %v13397_v34  ;;  %4639 = vmatpush1.msra.mxu0 %v1199_v37  ;;  %v850_v49 = vadd.f32 %v13222_v11, %v13238_v1 }
 0x1fa   : > { %10658 = vmatmul.mubr.f32.gmra.mxu0 %v13397_v34  ;;  %v13708_v7 = vpop.f32.mrf.mxu1  ;;  %v1573_v39 = vpop.f32.mrf.mxu0  ;;  %10580 = vmatprep.mubr.f32.mxu1 %v13405_v36 }
 0x1fb   : > { %v13713_v38 = vmul.f32 %v13471_v21, %v1579_v63  ;;  %v1574_v51 = vadd.f32 %v13458_v41, %v1573_v39  ;;  %4640 = vmatprep.subr.mxu0 %v18113_v19  ;;  %10660 = vmatprep.mubr.f32.mxu0 %v13405_v36  ;;  %v1179_v36 = vadd.f32 %v13485_v47, %v13574_v23 }
 0x1fc   : > { %v10102_v34 = vpop.f32.mrf.mxu1  ;;  %v10182_v60 = vpop.f32.mrf.mxu0  ;;  %4641 = vmatpush1.msra.mxu0 %v1194_v53  ;;  %v13738_v39 = vmul.f32 %v13226_v15, %v850_v49  ;;  %v1174_v47 = vadd.f32 %v13574_v23, %v13493_v56  ;;  %v13755_v49 = vld [vmem:[%s17685_s5 + $0x1] ss:$0 sm:$0xff]  ;;  %v1169_v56 = vadd.f32 %v13468_v3, %v13574_v23 }
 0x1fd   : > { %18115 = vst [vmem:[#allocation84_spill] sm:$0xff] %v13713_v38  ;;  %v13724_v63 = vmul.f32 %v13471_v21, %v1574_v51  ;;  %v1589_v37 = vadd.f32 %v10182_v60, %v13458_v41  ;;  %10581 = vmatmul.mubr.f32.gmra.mxu1 %v13416_v29  ;;  %4642 = vmatprep.subr.mxu0 %v18113_v19 }
 0x1fe   : > { %10661 = vmatmul.mubr.f32.gmra.mxu0 %v13416_v29  ;;  %v1303_v11 = vpop.f32.mrf.mxu1  ;;  %v1583_v1 = vpop.f32.mrf.mxu0  ;;  %10583 = vmatprep.mubr.f32.mxu1 %v13430_v59  ;;  %18118 = vst [vmem:[#allocation87_spill] sm:$0xff] %v13738_v39 }
 0x1ff   : > { %18116 = vst [vmem:[#allocation85_spill] sm:$0xff] %v13724_v63  ;;  %v13733_v50 = vmul.f32 %v13471_v21, %v1589_v37  ;;  %4643 = vmatpush1.msra.mxu0 %v1189_v10  ;;  %v1584_v53 = vadd.f32 %v13458_v41, %v1583_v1  ;;  %10663 = vmatprep.mubr.f32.mxu0 %v13430_v59  ;;  %v13765_v1 = vstv %s1952_s14 }
 0x200   : > { %4644 = vmatprep.subr.mxu0 %v18113_v19  ;;  %v10105_v29 = vpop.f32.mrf.mxu1  ;;  %v10185_v51 = vpop.f32.mrf.mxu0  ;;  %18121 = vst [vmem:[#allocation90_spill] sm:$0xff] %v13765_v1 }
 0x201   : > { %18117 = vst [vmem:[#allocation86_spill] sm:$0xff] %v13733_v50  ;;  %v13746_v60 = vmul.f32 %v13471_v21, %v1584_v53  ;;  %4645 = vmatpush1.msra.mxu0 %v1184_v44  ;;  %v1599_v10 = vadd.f32 %v10185_v51, %v13458_v41  ;;  %10584 = vmatmul.mubr.f32.gmra.mxu1 %v13436_v30 }
 0x202   : > { %10664 = vmatmul.mubr.f32.gmra.mxu0 %v13436_v30  ;;  %4646 = vmatprep.subr.mxu0 %v18113_v19  ;;  %v1313_v15 = vpop.f32.mrf.mxu1  ;;  %v1593_v59 = vpop.f32.mrf.mxu0  ;;  %v1164_v51 = vadd.f32 %v13574_v23, %v13476_v27 }
 0x203   : > { %18119 = vst [vmem:[#allocation88_spill] sm:$0xff] %v13746_v60  ;;  %v13760_v44 = vmul.f32 %v13471_v21, %v1599_v10  ;;  %9498 = vmatprep.mubr.f32.mxu1 %v13738_v39  ;;  %4647 = vmatpush1.msra.mxu0 %v1179_v36  ;;  %v1594_v30 = vadd.f32 %v13458_v41, %v1593_v59 }
 0x204   : > { %4648 = vmatprep.subr.mxu0 %v18113_v19  ;;  %v10220_v37 = vpop.f32.mrf.mxu1  ;;  %v13767_v53 = vpop.f32.mrf.mxu0  ;;  %v1319_v59 = vadd.f32 %v10105_v29, %v13574_v23  ;;  %v1309_v29 = vadd.f32 %v10102_v34, %v13574_v23  ;;  %v1299_v34 = vadd.f32 %v13695_v24, %v13574_v23 }
 0x205   : > { %18120 = vst [vmem:[#allocation89_spill] sm:$0xff] %v13760_v44  ;;  %18122 = vst [vmem:[#allocation91_spill] sm:$0xff] %v13767_v53  ;;  %v13772_v3 = vmul.f32 %v13471_v21, %v1594_v30  ;;  %4649 = vmatpush1.msra.mxu0 %v1174_v47  ;;  %v1799_v10 = vadd.f32 %v10220_v37, %v13755_v49  ;;  %v1314_v47 = vadd.f32 %v13574_v23, %v1313_v15 }
 0x206   : > { %4650 = vmatprep.subr.mxu0 %v18113_v19  ;;  %v13776_v36 = vpop.f32.mrf.mxu1  ;;  %v13778_v41 = vpop.f32.mrf.mxu0  ;;  %v1304_v15 = vadd.f32 %v13574_v23, %v1303_v11 }
 0x207   : > { %18123 = vst [vmem:[#allocation92_spill] sm:$0xff] %v13772_v3  ;;  %18124 = vst [vmem:[#allocation93_spill] sm:$0xff] %v13776_v36  ;;  %v13782_v63 = vmul.f32 %v13765_v1, %v1799_v10  ;;  %4651 = vmatpush1.msra.mxu0 %v1169_v56 }
 0x208   : > { %18125 = vst [vmem:[#allocation94_spill] sm:$0xff] %v13778_v41  ;;  %4652 = vmatprep.subr.mxu0 %v18113_v19  ;;  %v10223_v27 = vpop.f32.mrf.mxu1  ;;  %v13785_v21 = vpop.f32.mrf.mxu0 }
 0x209   : > { %18126 = vst [vmem:[#allocation95_spill] sm:$0xff] %v13782_v63  ;;  %18127 = vst [vmem:[#allocation96_spill] sm:$0xff] %v13785_v21  ;;  %4653 = vmatpush1.msra.mxu0 %v1164_v51  ;;  %v1809_v30 = vadd.f32 %v10223_v27, %v13755_v49 }
 0x20a   : > { %4654 = vmatprep.subr.mxu0 %v18113_v19  ;;  %v13790_v37 = vpop.f32.mrf.mxu1  ;;  %v13792_v41 = vpop.f32.mrf.mxu0 }
 0x20b   : > { %18128 = vst [vmem:[#allocation97_spill] sm:$0xff] %v13790_v37  ;;  %18129 = vst [vmem:[#allocation98_spill] sm:$0xff] %v13792_v41  ;;  %v13796_v56 = vmul.f32 %v13765_v1, %v1809_v30  ;;  %4655 = vmatpush2.msra.mxu0 %v1319_v59 }
 0x20c   : > { %4656 = vmatprep.subr.mxu0 %v18113_v19  ;;  %v10226_v10 = vpop.f32.mrf.mxu1  ;;  %v13799_v53 = vpop.f32.mrf.mxu0 }
 0x20d   : > { %18130 = vst [vmem:[#allocation99_spill] sm:$0xff] %v13796_v56  ;;  %18131 = vst [vmem:[#allocation100_spill] sm:$0xff] %v13799_v53  ;;  %4657 = vmatpush2.msra.mxu0 %v1314_v47  ;;  %v1819_v51 = vadd.f32 %v10226_v10, %v13755_v49  ;;  %v1294_v47 = vadd.f32 %v13574_v23, %v13708_v7  ;;  %v14091_v56 = vstv %s13697_s2  ;;  %s19013_s2 = sld [smem:[#allocation272_spill]] }
 0x20e   : > { %4658 = vmatprep.subr.mxu0 %v18113_v19  ;;  %v13804_v27 = vpop.f32.mrf.mxu1  ;;  %v13806_v41 = vpop.f32.mrf.mxu0 }
 0x20f   : > { %18132 = vst [vmem:[#allocation101_spill] sm:$0xff] %v13804_v27  ;;  %18133 = vst [vmem:[#allocation102_spill] sm:$0xff] %v13806_v41  ;;  %v13811_v59 = vmul.f32 %v13765_v1, %v1819_v51  ;;  %4659 = vmatpush2.msra.mxu0 %v1309_v29  ;;  %v1289_v29 = vadd.f32 %v13673_v54, %v13574_v23 }
 0x210   : > { %4660 = vmatprep.subr.mxu0 %v18113_v19  ;;  %v10229_v30 = vpop.f32.mrf.mxu1  ;;  %v13814_v11 = vpop.f32.mrf.mxu0 }
 0x211   : > { %18134 = vst [vmem:[#allocation103_spill] sm:$0xff] %v13811_v59  ;;  %18135 = vst [vmem:[#allocation104_spill] sm:$0xff] %v13814_v11  ;;  %4661 = vmatpush2.msra.mxu0 %v1304_v15  ;;  %v1829_v10 = vadd.f32 %v10229_v30, %v13755_v49  ;;  %v1284_v15 = vadd.f32 %v13574_v23, %v13684_v33 }
 0x212   : > { %4662 = vmatprep.subr.mxu0 %v18113_v19  ;;  %v13820_v21 = vpop.f32.mrf.mxu1  ;;  %v13822_v24 = vpop.f32.mrf.mxu0 }
 0x213   : > { %18136 = vst [vmem:[#allocation105_spill] sm:$0xff] %v13820_v21  ;;  %18137 = vst [vmem:[#allocation106_spill] sm:$0xff] %v13822_v24  ;;  %v13827_v51 = vmul.f32 %v13765_v1, %v1829_v10  ;;  %4663 = vmatpush2.msra.mxu0 %v1299_v34  ;;  %v1279_v34 = vadd.f32 %v13653_v16, %v13574_v23  ;;  %s17627_s14 = scalar_lea.hbm %s19013_s2, %s9033_s20 }
 0x214   : > { %4664 = vmatprep.subr.mxu0 %v18113_v19  ;;  %v10232_v41 = vpop.f32.mrf.mxu1  ;;  %v13830_v7 = vpop.f32.mrf.mxu0 }
 0x215   : > { %18138 = vst [vmem:[#allocation107_spill] sm:$0xff] %v13827_v51  ;;  %18139 = vst [vmem:[#allocation108_spill] sm:$0xff] %v13830_v7  ;;  %4665 = vmatpush2.msra.mxu0 %v1294_v47  ;;  %v1839_v30 = vadd.f32 %v10232_v41, %v13755_v49  ;;  %v1274_v41 = vadd.f32 %v13574_v23, %v13662_v18 }
 0x216   : > { %4666 = vmatprep.subr.mxu0 %v18113_v19  ;;  %v13836_v53 = vpop.f32.mrf.mxu1  ;;  %v13838_v54 = vpop.f32.mrf.mxu0 }
 0x217   : > { %18140 = vst [vmem:[#allocation109_spill] sm:$0xff] %v13836_v53  ;;  %18141 = vst [vmem:[#allocation110_spill] sm:$0xff] %v13838_v54  ;;  %v13843_v10 = vmul.f32 %v13765_v1, %v1839_v30  ;;  %4667 = vmatpush2.msra.mxu0 %v1289_v29  ;;  %v1269_v29 = vadd.f32 %v13632_v35, %v13574_v23 }
 0x218   : > { %4668 = vmatprep.subr.mxu0 %v18113_v19  ;;  %v10235_v24 = vpop.f32.mrf.mxu1  ;;  %v13846_v33 = vpop.f32.mrf.mxu0 }
 0x219   : > { %18142 = vst [vmem:[#allocation111_spill] sm:$0xff] %v13843_v10  ;;  %18143 = vst [vmem:[#allocation112_spill] sm:$0xff] %v13846_v33  ;;  %4669 = vmatpush2.msra.mxu0 %v1284_v15  ;;  %v1849_v47 = vadd.f32 %v10235_v24, %v13755_v49  ;;  %v1264_v24 = vadd.f32 %v13574_v23, %v13643_v28 }
 0x21a   : > { %4670 = vmatprep.subr.mxu0 %v18113_v19  ;;  %v13852_v11 = vpop.f32.mrf.mxu1  ;;  %v13854_v16 = vpop.f32.mrf.mxu0 }
 0x21b   : > { %18144 = vst [vmem:[#allocation113_spill] sm:$0xff] %v13852_v11  ;;  %18145 = vst [vmem:[#allocation114_spill] sm:$0xff] %v13854_v16  ;;  %v13859_v30 = vmul.f32 %v13765_v1, %v1849_v47  ;;  %4671 = vmatpush2.msra.mxu0 %v1279_v34  ;;  %v1259_v34 = vadd.f32 %v13614_v52, %v13574_v23 }
 0x21c   : > { %4672 = vmatprep.subr.mxu0 %v18113_v19  ;;  %v10238_v54 = vpop.f32.mrf.mxu1  ;;  %v13862_v18 = vpop.f32.mrf.mxu0 }
 0x21d   : > { %18146 = vst [vmem:[#allocation115_spill] sm:$0xff] %v13859_v30  ;;  %18147 = vst [vmem:[#allocation116_spill] sm:$0xff] %v13862_v18  ;;  %4673 = vmatpush2.msra.mxu0 %v1274_v41  ;;  %v1859_v15 = vadd.f32 %v10238_v54, %v13755_v49  ;;  %v1254_v54 = vadd.f32 %v13574_v23, %v13623_v13 }
 0x21e   : > { %4674 = vmatprep.subr.mxu0 %v18113_v19  ;;  %v13868_v7 = vpop.f32.mrf.mxu1  ;;  %v13870_v35 = vpop.f32.mrf.mxu0 }
 0x21f   : > { %18148 = vst [vmem:[#allocation117_spill] sm:$0xff] %v13868_v7  ;;  %18149 = vst [vmem:[#allocation118_spill] sm:$0xff] %v13870_v35  ;;  %v13875_v47 = vmul.f32 %v13765_v1, %v1859_v15  ;;  %4675 = vmatpush2.msra.mxu0 %v1269_v29  ;;  %v1249_v29 = vadd.f32 %v13596_v4, %v13574_v23 }
 0x220   : > { %4676 = vmatprep.subr.mxu0 %v18113_v19  ;;  %v10241_v16 = vpop.f32.mrf.mxu1  ;;  %v13878_v28 = vpop.f32.mrf.mxu0 }
 0x221   : > { %18150 = vst [vmem:[#allocation119_spill] sm:$0xff] %v13875_v47  ;;  %18151 = vst [vmem:[#allocation120_spill] sm:$0xff] %v13878_v28  ;;  %4677 = vmatpush2.msra.mxu0 %v1264_v24  ;;  %v1869_v41 = vadd.f32 %v10241_v16, %v13755_v49  ;;  %v1244_v16 = vadd.f32 %v13574_v23, %v13605_v9 }
 0x222   : > { %4678 = vmatprep.subr.mxu0 %v18113_v19  ;;  %v13884_v33 = vpop.f32.mrf.mxu1  ;;  %v13886_v52 = vpop.f32.mrf.mxu0 }
 0x223   : > { %18152 = vst [vmem:[#allocation121_spill] sm:$0xff] %v13884_v33  ;;  %18153 = vst [vmem:[#allocation122_spill] sm:$0xff] %v13886_v52  ;;  %v13891_v15 = vmul.f32 %v13765_v1, %v1869_v41  ;;  %4679 = vmatpush2.msra.mxu0 %v1259_v34 }
 0x224   : > { %4680 = vmatprep.subr.mxu0 %v18113_v19  ;;  %v10244_v35 = vpop.f32.mrf.mxu1  ;;  %v13894_v13 = vpop.f32.mrf.mxu0 }
 0x225   : > { %18154 = vst [vmem:[#allocation123_spill] sm:$0xff] %v13891_v15  ;;  %18155 = vst [vmem:[#allocation124_spill] sm:$0xff] %v13894_v13  ;;  %4681 = vmatpush2.msra.mxu0 %v1254_v54  ;;  %v1879_v24 = vadd.f32 %v10244_v35, %v13755_v49 }
 0x226   : > { %4682 = vmatprep.subr.mxu0 %v18113_v19  ;;  %v1873_v18 = vpop.f32.mrf.mxu1  ;;  %v13900_v52 = vpop.f32.mrf.mxu0 }
 0x227   : > { %18156 = vst [vmem:[#allocation125_spill] sm:$0xff] %v13900_v52  ;;  %v13903_v4 = vmul.f32 %v13765_v1, %v1879_v24  ;;  %4683 = vmatpush2.msra.mxu0 %v1249_v29  ;;  %v1874_v34 = vadd.f32 %v13755_v49, %v1873_v18 }
 0x228   : > { %4684 = vmatprep.subr.mxu0 %v18113_v19  ;;  %v10247_v41 = vpop.f32.mrf.mxu1  ;;  %v13907_v13 = vpop.f32.mrf.mxu0 }
 0x229   : > { %18157 = vst [vmem:[#allocation126_spill] sm:$0xff] %v13903_v4  ;;  %18158 = vst [vmem:[#allocation127_spill] sm:$0xff] %v13907_v13  ;;  %v13910_v23 = vmul.f32 %v13765_v1, %v1874_v34  ;;  %4685 = vmatpush2.msra.mxu0 %v1244_v16  ;;  %v1889_v9 = vadd.f32 %v10247_v41, %v13755_v49 }
 0x22a   : > { %v1883_v35 = vpop.f32.mrf.mxu1  ;;  %v13913_v54 = vpop.f32.mrf.mxu0 }
 0x22b   : > { %18159 = vst [vmem:[#allocation128_spill] sm:$0xff] %v13910_v23  ;;  %18160 = vst [vmem:[#allocation129_spill] sm:$0xff] %v13913_v54  ;;  %v13916_v24 = vmul.f32 %v13765_v1, %v1889_v9  ;;  %v1884_v29 = vadd.f32 %v13755_v49, %v1883_v35 }
 0x22c   : > { %v10250_v18 = vpop.f32.mrf.mxu1  ;;  %v13919_v52 = vpop.f32.mrf.mxu0 }
 0x22d   : > { %18161 = vst [vmem:[#allocation130_spill] sm:$0xff] %v13916_v24  ;;  %18162 = vst [vmem:[#allocation131_spill] sm:$0xff] %v13919_v52  ;;  %v13922_v28 = vmul.f32 %v13765_v1, %v1884_v29  ;;  %v1899_v34 = vadd.f32 %v10250_v18, %v13755_v49 }
 0x22e   : > { %v1893_v13 = vpop.f32.mrf.mxu1  ;;  %v13925_v16 = vpop.f32.mrf.mxu0 }
 0x22f   : > { %18163 = vst [vmem:[#allocation132_spill] sm:$0xff] %v13922_v28  ;;  %18164 = vst [vmem:[#allocation133_spill] sm:$0xff] %v13925_v16  ;;  %v13928_v41 = vmul.f32 %v13765_v1, %v1899_v34  ;;  %v1894_v54 = vadd.f32 %v13755_v49, %v1893_v13 }
 0x230   : > { %v10253_v9 = vpop.f32.mrf.mxu1  ;;  %v13931_v24 = vpop.f32.mrf.mxu0 }
 0x231   : > { %18165 = vst [vmem:[#allocation134_spill] sm:$0xff] %v13928_v41  ;;  %18166 = vst [vmem:[#allocation135_spill] sm:$0xff] %v13931_v24  ;;  %v13934_v35 = vmul.f32 %v13765_v1, %v1894_v54  ;;  %v1909_v52 = vadd.f32 %v10253_v9, %v13755_v49 }
 0x232   : > { %v1903_v29 = vpop.f32.mrf.mxu1  ;;  %v13937_v28 = vpop.f32.mrf.mxu0 }
 0x233   : > { %18167 = vst [vmem:[#allocation136_spill] sm:$0xff] %v13934_v35  ;;  %18168 = vst [vmem:[#allocation137_spill] sm:$0xff] %v13937_v28  ;;  %v13940_v18 = vmul.f32 %v13765_v1, %v1909_v52  ;;  %v1904_v16 = vadd.f32 %v13755_v49, %v1903_v29 }
 0x234   : > { %v10256_v34 = vpop.f32.mrf.mxu1  ;;  %v13943_v41 = vpop.f32.mrf.mxu0 }
 0x235   : > { %18169 = vst [vmem:[#allocation138_spill] sm:$0xff] %v13940_v18  ;;  %18170 = vst [vmem:[#allocation139_spill] sm:$0xff] %v13943_v41  ;;  %v13946_v13 = vmul.f32 %v13765_v1, %v1904_v16  ;;  %v1919_v24 = vadd.f32 %v10256_v34, %v13755_v49 }
 0x236   : > { %v1913_v54 = vpop.f32.mrf.mxu1  ;;  %v13949_v35 = vpop.f32.mrf.mxu0 }
 0x237   : > { %18171 = vst [vmem:[#allocation140_spill] sm:$0xff] %v13946_v13  ;;  %18172 = vst [vmem:[#allocation141_spill] sm:$0xff] %v13949_v35  ;;  %v13952_v9 = vmul.f32 %v13765_v1, %v1919_v24  ;;  %v1914_v28 = vadd.f32 %v13755_v49, %v1913_v54 }
 0x238   : > { %v10259_v52 = vpop.f32.mrf.mxu1  ;;  %v13955_v18 = vpop.f32.mrf.mxu0 }
 0x239   : > { %18173 = vst [vmem:[#allocation142_spill] sm:$0xff] %v13952_v9  ;;  %18174 = vst [vmem:[#allocation143_spill] sm:$0xff] %v13955_v18  ;;  %v13960_v29 = vmul.f32 %v13765_v1, %v1914_v28  ;;  %v1929_v16 = vadd.f32 %v10259_v52, %v13755_v49 }
 0x23a   : > { %v1923_v34 = vpop.f32.mrf.mxu1  ;;  %v13963_v41 = vpop.f32.mrf.mxu0 }
 0x23b   : > { %18175 = vst [vmem:[#allocation144_spill] sm:$0xff] %v13960_v29  ;;  %18176 = vst [vmem:[#allocation145_spill] sm:$0xff] %v13963_v41  ;;  %v13966_v35 = vmul.f32 %v13765_v1, %v1929_v16  ;;  %v1924_v24 = vadd.f32 %v13755_v49, %v1923_v34 }
 0x23c   : > { %v10262_v54 = vpop.f32.mrf.mxu1  ;;  %v13969_v9 = vpop.f32.mrf.mxu0 }
 0x23d   : > { %18177 = vst [vmem:[#allocation146_spill] sm:$0xff] %v13966_v35  ;;  %18178 = vst [vmem:[#allocation147_spill] sm:$0xff] %v13969_v9  ;;  %v13972_v18 = vmul.f32 %v13765_v1, %v1924_v24  ;;  %v1939_v28 = vadd.f32 %v10262_v54, %v13755_v49  ;;  %v13993_v54 = vld [vmem:[%s17685_s5 + $0x2] ss:$0 sm:$0xff] }
 0x23e   : > { %v1933_v29 = vpop.f32.mrf.mxu1  ;;  %v13975_v13 = vpop.f32.mrf.mxu0 }
 0x23f   : > { %18179 = vst [vmem:[#allocation148_spill] sm:$0xff] %v13972_v18  ;;  %18180 = vst [vmem:[#allocation149_spill] sm:$0xff] %v13975_v13  ;;  %v13978_v52 = vmul.f32 %v13765_v1, %v1939_v28  ;;  %v1934_v41 = vadd.f32 %v13755_v49, %v1933_v29 }
 0x240   : > { %v10265_v16 = vpop.f32.mrf.mxu1  ;;  %v13981_v35 = vpop.f32.mrf.mxu0 }
 0x241   : > { %18181 = vst [vmem:[#allocation150_spill] sm:$0xff] %v13978_v52  ;;  %18182 = vst [vmem:[#allocation151_spill] sm:$0xff] %v13981_v35  ;;  %v13985_v34 = vmul.f32 %v13765_v1, %v1934_v41  ;;  %v1949_v24 = vadd.f32 %v10265_v16, %v13755_v49  ;;  %v14001_v41 = vstv %s2964_s27  ;;  %s12475_s27 = smov [#allocation21]  }
 0x242   : > { %v1943_v9 = vpop.f32.mrf.mxu1  ;;  %v13988_v18 = vpop.f32.mrf.mxu0  ;;  %18187 = vst [vmem:[#allocation156_spill] sm:$0xff] %v14001_v41  ;;  %s12365_s22 = sshll.u32 %s12475_s27, 4  ;;  %s12366_s22 = int_to_ptr.vmem [resolvable:$false] %s12365_s22 }
 0x243   : > { %18183 = vst [vmem:[#allocation152_spill] sm:$0xff] %v13985_v34  ;;  %18184 = vst [vmem:[#allocation153_spill] sm:$0xff] %v13988_v18  ;;  %v13996_v28 = vmul.f32 %v13765_v1, %v1949_v24  ;;  %v1944_v29 = vadd.f32 %v13755_v49, %v1943_v9  ;;  %s12367_s29 = scalar_lea.vmem %s12366_s22, 8192  ;;  %p12368_p9 = scmp.lt.s32.totalorder %s17629_s4, %s12366_s22 }
 0x244   : > { %v13999_v52 = vpop.f32.mrf.mxu1  ;;  %v10460_v13 = vpop.f32.mrf.mxu0  ;;  %p12369_p6 = scmp.lt.s32.totalorder %s12367_s29, %s12361_s9 }
 0x245   : > { %18185 = vst [vmem:[#allocation154_spill] sm:$0xff] %v13996_v28  ;;  %18186 = vst [vmem:[#allocation155_spill] sm:$0xff] %v13999_v52  ;;  %v14004_v16 = vmul.f32 %v13765_v1, %v1944_v29  ;;  %v2811_v34 = vadd.f32 %v10460_v13, %v13993_v54 }
 0x246   : > { %v14007_v18 = vpop.f32.mrf.mxu1  ;;  %v14009_v35 = vpop.f32.mrf.mxu0  ;;  %p12370_p11 = por %p12369_p6, %p12368_p9 }
 0x247   : > { %18188 = vst [vmem:[#allocation157_spill] sm:$0xff] %v14004_v16  ;;  %18189 = vst [vmem:[#allocation158_spill] sm:$0xff] %v14007_v18  ;;  %v14012_v4 = vmul.f32 %v14001_v41, %v2811_v34 }
 0x248   : > { %18190 = vst [vmem:[#allocation159_spill] sm:$0xff] %v14009_v35  ;;  %v14014_v24 = vpop.f32.mrf.mxu1  ;;  %v10463_v49 = vpop.f32.mrf.mxu0  ;;  %p12371_p0 = pnand %p12370_p11, %p12364_p4 }
 0x249   : > { %18191 = vst [vmem:[#allocation160_spill] sm:$0xff] %v14012_v4  ;;  %v2821_v9 = vadd.f32 %v10463_v49, %v13993_v54 }
 0x24a   : > { %v14017_v28 = vpop.f32.mrf.mxu1  ;;  %v14019_v23 = vpop.f32.mrf.mxu0 }
 0x24b   : > { %18192 = vst [vmem:[#allocation161_spill] sm:$0xff] %v14017_v28  ;;  %18193 = vst [vmem:[#allocation162_spill] sm:$0xff] %v14019_v23  ;;  %v14022_v29 = vmul.f32 %v14001_v41, %v2821_v9 }
 0x24c   : > { %v14024_v13 = vpop.f32.mrf.mxu1  ;;  %v10466_v16 = vpop.f32.mrf.mxu0 }
 0x24d   : > { %18194 = vst [vmem:[#allocation163_spill] sm:$0xff] %v14022_v29  ;;  %v2831_v35 = vadd.f32 %v10466_v16, %v13993_v54 }
 0x24e   : > { %v14027_v15 = vpop.f32.mrf.mxu1  ;;  %v14029_v34 = vpop.f32.mrf.mxu0 }
 0x24f   : > { %18195 = vst [vmem:[#allocation164_spill] sm:$0xff] %v14029_v34  ;;  %v14032_v4 = vmul.f32 %v14001_v41, %v2831_v35 }
 0x250   : > { %v14034_v49 = vpop.f32.mrf.mxu1  ;;  %v10469_v47 = vpop.f32.mrf.mxu0 }
 0x251   : > { %18196 = vst [vmem:[#allocation165_spill] sm:$0xff] %v14032_v4  ;;  %v2841_v23 = vadd.f32 %v10469_v47, %v13993_v54 }
 0x252   : > { %v14037_v33 = vpop.f32.mrf.mxu1  ;;  %v14039_v9 = vpop.f32.mrf.mxu0 }
 0x253   : > { %18197 = vst [vmem:[#allocation166_spill] sm:$0xff] %v14039_v9  ;;  %v14042_v29 = vmul.f32 %v14001_v41, %v2841_v23 }
 0x254   : > { %v14044_v16 = vpop.f32.mrf.mxu1  ;;  %v10472_v30 = vpop.f32.mrf.mxu0 }
 0x255   : > { %18198 = vst [vmem:[#allocation167_spill] sm:$0xff] %v14042_v29  ;;  %v2851_v34 = vadd.f32 %v10472_v30, %v13993_v54 }
 0x256   : > { %v14047_v7 = vpop.f32.mrf.mxu1  ;;  %v14049_v35 = vpop.f32.mrf.mxu0 }
 0x257   : > { %18199 = vst [vmem:[#allocation168_spill] sm:$0xff] %v14049_v35  ;;  %v14052_v4 = vmul.f32 %v14001_v41, %v2851_v34 }
 0x258   : > { %v14054_v47 = vpop.f32.mrf.mxu1  ;;  %v10475_v10 = vpop.f32.mrf.mxu0 }
 0x259   : > { %18200 = vst [vmem:[#allocation169_spill] sm:$0xff] %v14052_v4  ;;  %v2861_v9 = vadd.f32 %v10475_v10, %v13993_v54 }
 0x25a   : > { %v14057_v11 = vpop.f32.mrf.mxu1  ;;  %v14059_v23 = vpop.f32.mrf.mxu0 }
 0x25b   : > { %18201 = vst [vmem:[#allocation170_spill] sm:$0xff] %v14059_v23  ;;  %v14062_v29 = vmul.f32 %v14001_v41, %v2861_v9 }
 0x25c   : > { %v14064_v30 = vpop.f32.mrf.mxu1  ;;  %v10478_v51 = vpop.f32.mrf.mxu0 }
 0x25d   : > { %18202 = vst [vmem:[#allocation171_spill] sm:$0xff] %v14062_v29  ;;  %v2871_v35 = vadd.f32 %v10478_v51, %v13993_v54  ;;  %v14084_v51 = vld [vmem:[%s17687_s7 + $0x1] ss:$0 sm:$0xff] }
 0x25e   : > { %v14067_v34 = vpop.f32.mrf.mxu1  ;;  %v14069_v4 = vpop.f32.mrf.mxu0 }
 0x25f   : > { %18203 = vst [vmem:[#allocation172_spill] sm:$0xff] %v14069_v4  ;;  %v14072_v53 = vmul.f32 %v14001_v41, %v2871_v35 }
 0x260   : > { %v14074_v10 = vpop.f32.mrf.mxu1  ;;  %v10481_v59 = vpop.f32.mrf.mxu0 }
 0x261   : > { %18204 = vst [vmem:[#allocation173_spill] sm:$0xff] %v14072_v53  ;;  %v2881_v23 = vadd.f32 %v10481_v59, %v13993_v54 }
 0x262   : > { %v14077_v9 = vpop.f32.mrf.mxu1  ;;  %v14079_v29 = vpop.f32.mrf.mxu0 }
 0x263   : > { %18205 = vst [vmem:[#allocation174_spill] sm:$0xff] %v14079_v29  ;;  %v14087_v21 = vmul.f32 %v14001_v41, %v2881_v23 }
 0x264   : > { %v10404_v4 = vpop.f32.mrf.mxu1  ;;  %v10484_v35 = vpop.f32.mrf.mxu0 }
 0x265   : > { %18206 = vst [vmem:[#allocation175_spill] sm:$0xff] %v14087_v21  ;;  %v2479_v53 = vadd.f32 %v10404_v4, %v14084_v51  ;;  %v2891_v59 = vadd.f32 %v10484_v35, %v13993_v54 }
 0x266   : > { %v2473_v27 = vpop.f32.mrf.mxu1  ;;  %v2885_v63 = vpop.f32.mrf.mxu0 }
 0x267   : > { %v14095_v29 = vmul.f32 %v14091_v56, %v2479_v53  ;;  %v2474_v37 = vadd.f32 %v14084_v51, %v2473_v27  ;;  %v2886_v1 = vadd.f32 %v13993_v54, %v2885_v63  ;;  %v14100_v23 = vmul.f32 %v14001_v41, %v2891_v59 }
 0x268   : > { %v10407_v21 = vpop.f32.mrf.mxu1  ;;  %v10487_v36 = vpop.f32.mrf.mxu0 }
 0x269   : > { %18207 = vst [vmem:[#allocation176_spill] sm:$0xff] %v14100_v23  ;;  %v14103_v4 = vmul.f32 %v14091_v56, %v2474_v37  ;;  %v14106_v19 = vmul.f32 %v14001_v41, %v2886_v1  ;;  %v2489_v35 = vadd.f32 %v10407_v21, %v14084_v51  ;;  %v2901_v53 = vadd.f32 %v10487_v36, %v13993_v54 }
 0x26a   : > { %v2483_v38 = vpop.f32.mrf.mxu1  ;;  %v2895_v60 = vpop.f32.mrf.mxu0  ;;  %v14112_v63 = vadd.f32 %v14095_v29, %v13611_v55 }
 0x26b   : > { %18208 = vst [vmem:[#allocation177_spill] sm:$0xff] %v14103_v4  ;;  %18209 = vst [vmem:[#allocation178_spill] sm:$0xff] %v14106_v19  ;;  %v14115_v27 = vmul.f32 %v14091_v56, %v2489_v35  ;;  %v14118_v59 = vmul.f32 %v14001_v41, %v2901_v53  ;;  %v2484_v37 = vadd.f32 %v14084_v51, %v2483_v38 }
 0x26c   : > { %18210 = vst [vmem:[#allocation179_spill] sm:$0xff] %v14112_v63  ;;  %v2896_v1 = vadd.f32 %v13993_v54, %v2895_v60  ;;  %v10410_v23 = vpop.f32.mrf.mxu1  ;;  %v10490_v21 = vpop.f32.mrf.mxu0  ;;  %v14124_v36 = vadd.f32 %v14103_v4, %v13618_v20 }
 0x26d   : > { %18211 = vst [vmem:[#allocation180_spill] sm:$0xff] %v14118_v59  ;;  %v14127_v19 = vmul.f32 %v14091_v56, %v2484_v37  ;;  %v2499_v35 = vadd.f32 %v10410_v23, %v14084_v51  ;;  %v2911_v53 = vadd.f32 %v10490_v21, %v13993_v54  ;;  %v14136_v60 = vadd.f32 %v14115_v27, %v13629_v57 }
 0x26e   : > { %18212 = vst [vmem:[#allocation181_spill] sm:$0xff] %v14124_v36  ;;  %v14130_v63 = vmul.f32 %v14001_v41, %v2896_v1  ;;  %v2493_v59 = vpop.f32.mrf.mxu1  ;;  %v2905_v38 = vpop.f32.mrf.mxu0 }
 0x26f   : > { %18213 = vst [vmem:[#allocation182_spill] sm:$0xff] %v14127_v19  ;;  %18215 = vst [vmem:[#allocation184_spill] sm:$0xff] %v14136_v60  ;;  %v14139_v50 = vmul.f32 %v14091_v56, %v2499_v35  ;;  %v14142_v36 = vmul.f32 %v14001_v41, %v2911_v53  ;;  %v2494_v37 = vadd.f32 %v14084_v51, %v2493_v59 }
 0x270   : > { %18214 = vst [vmem:[#allocation183_spill] sm:$0xff] %v14130_v63  ;;  %v2906_v1 = vadd.f32 %v13993_v54, %v2905_v38  ;;  %v10413_v63 = vpop.f32.mrf.mxu1  ;;  %v10493_v23 = vpop.f32.mrf.mxu0  ;;  %v14148_v21 = vadd.f32 %v14127_v19, %v13636_v45 }
 0x271   : > { %18216 = vst [vmem:[#allocation185_spill] sm:$0xff] %v14142_v36  ;;  %v14151_v3 = vmul.f32 %v14091_v56, %v2494_v37  ;;  %v2509_v35 = vadd.f32 %v10413_v63, %v14084_v51  ;;  %v2921_v53 = vadd.f32 %v10493_v23, %v13993_v54  ;;  %v14160_v38 = vadd.f32 %v14139_v50, %v13648_v61 }
 0x272   : > { %18217 = vst [vmem:[#allocation186_spill] sm:$0xff] %v14148_v21  ;;  %v14154_v60 = vmul.f32 %v14001_v41, %v2906_v1  ;;  %v2503_v36 = vpop.f32.mrf.mxu1  ;;  %v2915_v59 = vpop.f32.mrf.mxu0 }
 0x273   : > { %18219 = vst [vmem:[#allocation188_spill] sm:$0xff] %v14160_v38  ;;  %v14163_v43 = vmul.f32 %v14091_v56, %v2509_v35  ;;  %v14166_v21 = vmul.f32 %v14001_v41, %v2921_v53  ;;  %v2504_v37 = vadd.f32 %v14084_v51, %v2503_v36  ;;  %v2916_v1 = vadd.f32 %v13993_v54, %v2915_v59 }
 0x274   : > { %18218 = vst [vmem:[#allocation187_spill] sm:$0xff] %v14154_v60  ;;  %v10416_v60 = vpop.f32.mrf.mxu1  ;;  %v10496_v63 = vpop.f32.mrf.mxu0  ;;  %v14172_v23 = vadd.f32 %v14151_v3, %v13657_v48 }
 0x275   : > { %18220 = vst [vmem:[#allocation189_spill] sm:$0xff] %v14166_v21  ;;  %v14175_v25 = vmul.f32 %v14091_v56, %v2504_v37  ;;  %v14178_v38 = vmul.f32 %v14001_v41, %v2916_v1  ;;  %v2519_v35 = vadd.f32 %v10416_v60, %v14084_v51  ;;  %v2931_v53 = vadd.f32 %v10496_v63, %v13993_v54 }
 0x276   : > { %18221 = vst [vmem:[#allocation190_spill] sm:$0xff] %v14172_v23  ;;  %v2513_v21 = vpop.f32.mrf.mxu1  ;;  %v2925_v36 = vpop.f32.mrf.mxu0  ;;  %v14184_v59 = vadd.f32 %v14163_v43, %v13668_v58 }
 0x277   : > { %18222 = vst [vmem:[#allocation191_spill] sm:$0xff] %v14178_v38  ;;  %v14187_v12 = vmul.f32 %v14091_v56, %v2519_v35  ;;  %v14190_v23 = vmul.f32 %v14001_v41, %v2931_v53  ;;  %v2514_v37 = vadd.f32 %v14084_v51, %v2513_v21  ;;  %v2926_v1 = vadd.f32 %v13993_v54, %v2925_v36 }
 0x278   : > { %18223 = vst [vmem:[#allocation192_spill] sm:$0xff] %v14184_v59  ;;  %v10499_v38 = vpop.f32.mrf.mxu0  ;;  %v14196_v60 = vadd.f32 %v14175_v25, %v13678_v17  ;;  %v14285_v52 = vpop.f32.mrf.mxu1 }
 0x279   : > { %18224 = vst [vmem:[#allocation193_spill] sm:$0xff] %v14190_v23  ;;  %v14199_v63 = vmul.f32 %v14091_v56, %v2514_v37  ;;  %v14202_v59 = vmul.f32 %v14001_v41, %v2926_v1  ;;  %v2941_v35 = vadd.f32 %v10499_v38, %v13993_v54  ;;  %v14207_v53 = vadd.f32 %v14187_v12, %v13690_v5 }
 0x27a   : > { %18225 = vst [vmem:[#allocation194_spill] sm:$0xff] %v14196_v60  ;;  %v2935_v31 = vpop.f32.mrf.mxu0 }
 0x27b   : > { %18226 = vst [vmem:[#allocation195_spill] sm:$0xff] %v14202_v59  ;;  %18227 = vst [vmem:[#allocation196_spill] sm:$0xff] %v14207_v53  ;;  %v14210_v21 = vmul.f32 %v14001_v41, %v2941_v35  ;;  %v2936_v36 = vadd.f32 %v13993_v54, %v2935_v31  ;;  %v14215_v37 = vadd.f32 %v14199_v63, %v13702_v46 }
 0x27c   : > { %v10502_v23 = vpop.f32.mrf.mxu0 }
 0x27d   : > { %18228 = vst [vmem:[#allocation197_spill] sm:$0xff] %v14210_v21  ;;  %18229 = vst [vmem:[#allocation198_spill] sm:$0xff] %v14215_v37  ;;  %v14218_v1 = vmul.f32 %v14001_v41, %v2936_v36  ;;  %v2951_v38 = vadd.f32 %v10502_v23, %v13993_v54 }
 0x27e   : > { %v2945_v59 = vpop.f32.mrf.mxu0 }
 0x27f   : > { %18230 = vst [vmem:[#allocation199_spill] sm:$0xff] %v14218_v1  ;;  %v14222_v60 = vmul.f32 %v14001_v41, %v2951_v38  ;;  %v2946_v53 = vadd.f32 %v13993_v54, %v2945_v59 }
 0x280   : > { %v10505_v35 = vpop.f32.mrf.mxu0 }
 0x281   : > { %18231 = vst [vmem:[#allocation200_spill] sm:$0xff] %v14222_v60  ;;  %v14226_v21 = vmul.f32 %v14001_v41, %v2946_v53  ;;  %v2961_v31 = vadd.f32 %v10505_v35, %v13993_v54 }
 0x282   : > { %v2955_v32 = vpop.f32.mrf.mxu0 }
 0x283   : > { %18232 = vst [vmem:[#allocation201_spill] sm:$0xff] %v14226_v21  ;;  %v14230_v37 = vmul.f32 %v14001_v41, %v2961_v31  ;;  %v2956_v36 = vadd.f32 %v13993_v54, %v2955_v32 }
 0x285   : > { %18233 = vst [vmem:[#allocation202_spill] sm:$0xff] %v14230_v37  ;;  %v14234_v23 = vmul.f32 %v14001_v41, %v2956_v36  ;;  %v14236_v1 = vpop.f32.mrf.mxu0 }
 0x286   : > { %18235 = vst [vmem:[#allocation204_spill] sm:$0xff] %v14236_v1 }
 0x287   : > { %18234 = vst [vmem:[#allocation203_spill] sm:$0xff] %v14234_v23  ;;  %v14238_v38 = vpop.f32.mrf.mxu0 }
 0x288   : > { %18236 = vst [vmem:[#allocation205_spill] sm:$0xff] %v14238_v38 }
 0x289   : > { %v14240_v59 = vpop.f32.mrf.mxu0 }
 0x28b   : > { %v14242_v60 = vpop.f32.mrf.mxu0 }
 0x28c   : > { %18237 = vst [vmem:[#allocation206_spill] sm:$0xff] %v14242_v60 }
 0x28d   : > { %v14244_v53 = vpop.f32.mrf.mxu0 }
 0x28f   : > { %v14246_v35 = vpop.f32.mrf.mxu0 }
 0x291   : > { %v14248_v31 = vpop.f32.mrf.mxu0 }
 0x293   : > { %v14250_v37 = vpop.f32.mrf.mxu0 }
 0x295   : > { %v14252_v32 = vpop.f32.mrf.mxu0 }
 0x297   : > { %v14254_v54 = vpop.f32.mrf.mxu0 }
 0x299   : > { %v14256_v36 = vpop.f32.mrf.mxu0 }
 0x29b   : > { %v14258_v23 = vpop.f32.mrf.mxu0 }
 0x29d   : > { %v14260_v21 = vpop.f32.mrf.mxu0 }
 0x29f   : > { %v14262_v41 = vpop.f32.mrf.mxu0 }
 0x2a2   : > { %v10641_v40 = vpop.f32.mrf.mxu0 }
 0x2a4   : > { %v3475_v62 = vpop.f32.mrf.mxu0 }
 0x2a6   : > { %v10644_v26 = vpop.f32.mrf.mxu0 }
 0x2a7   : > { %v3491_v42 = vadd.f32 %v10644_v26, %v14267_v22 }
 0x2a8   : > { %v3485_v6 = vpop.f32.mrf.mxu0 }
 0x2a9   : > { %v3582_v0 = vmul.f32 %v14271_v14, %v3491_v42  ;;  %v3486_v8 = vadd.f32 %v14267_v22, %v3485_v6 }
 0x2aa   : > { %v10647_v2 = vpop.f32.mrf.mxu0 }
 0x2ab   : > { %v14276_v39 = vmul.f32 %v14271_v14, %v3486_v8  ;;  %v3501_v4 = vadd.f32 %v10647_v2, %v14267_v22  ;;  %v14280_v18 = vadd.f32 %v3582_v0, %v14095_v29  ;;  %v14283_v38 = vadd.f32 %v3582_v0, %v13611_v55 }
 0x2ac   : > { %v3495_v26 = vpop.f32.mrf.mxu0 }
 0x2ad   : > { %18238 = vst [vmem:[#allocation207_spill] sm:$0xff] %v14276_v39  ;;  %18239 = vst [vmem:[#allocation208_spill] sm:$0xff] %v14280_v18  ;;  %v3584_v19 = vmul.f32 %v14271_v14, %v3501_v4  ;;  %v3496_v42 = vadd.f32 %v14267_v22, %v3495_v26  ;;  %v14291_v6 = vadd.f32 %v14276_v39, %v13618_v20  ;;  %v14303_v4 = vpop.f32.mrf.mxu1 }
 0x2ae   : > { %18240 = vst [vmem:[#allocation209_spill] sm:$0xff] %v14283_v38  ;;  %v10650_v8 = vpop.f32.mrf.mxu0 }
 0x2af   : > { %18241 = vst [vmem:[#allocation210_spill] sm:$0xff] %v14291_v6  ;;  %v14294_v2 = vmul.f32 %v14271_v14, %v3496_v42  ;;  %v3511_v29 = vadd.f32 %v10650_v8, %v14267_v22  ;;  %v14298_v0 = vadd.f32 %v3584_v19, %v14115_v27  ;;  %v14301_v55 = vadd.f32 %v3584_v19, %v13629_v57 }
 0x2b0   : > { %v3505_v38 = vpop.f32.mrf.mxu0 }
 0x2b1   : > { %18242 = vst [vmem:[#allocation211_spill] sm:$0xff] %v14294_v2  ;;  %18243 = vst [vmem:[#allocation212_spill] sm:$0xff] %v14298_v0  ;;  %v14306_v26 = vmul.f32 %v14271_v14, %v3511_v29  ;;  %v3506_v20 = vadd.f32 %v14267_v22, %v3505_v38  ;;  %v14311_v42 = vadd.f32 %v14294_v2, %v13636_v45 }
 0x2b2   : > { %18244 = vst [vmem:[#allocation213_spill] sm:$0xff] %v14301_v55  ;;  %v10653_v6 = vpop.f32.mrf.mxu0  ;;  %v10422_v55 = vpop.f32.mrf.mxu1  ;;  %v3481_v2 = vadd.f32 %v10641_v40, %v14267_v22 }
 0x2b3   : > { %18245 = vst [vmem:[#allocation214_spill] sm:$0xff] %v14311_v42  ;;  %v14314_v8 = vmul.f32 %v14271_v14, %v3506_v20  ;;  %v3521_v27 = vadd.f32 %v10653_v6, %v14267_v22  ;;  %v14319_v19 = vadd.f32 %v14306_v26, %v13648_v61 }
 0x2b4   : > { %v3515_v57 = vpop.f32.mrf.mxu0  ;;  %v2533_v39 = vpop.f32.mrf.mxu1  ;;  %v14363_v0 = vmul.f32 %v14271_v14, %v3481_v2  ;;  %v2539_v2 = vadd.f32 %v10422_v55, %v14084_v51 }
 0x2b5   : > { %18246 = vst [vmem:[#allocation215_spill] sm:$0xff] %v14319_v19  ;;  %v14322_v29 = vmul.f32 %v14271_v14, %v3521_v27  ;;  %v3516_v38 = vadd.f32 %v14267_v22, %v3515_v57  ;;  %v14327_v45 = vadd.f32 %v14314_v8, %v13657_v48 }
 0x2b6   : > { %v10656_v42 = vpop.f32.mrf.mxu0  ;;  %18252 = vst [vmem:[#allocation221_spill] sm:$0xff] %v14363_v0 }
 0x2b7   : > { %18247 = vst [vmem:[#allocation216_spill] sm:$0xff] %v14327_v45  ;;  %v14330_v20 = vmul.f32 %v14271_v14, %v3516_v38  ;;  %v3531_v6 = vadd.f32 %v10656_v42, %v14267_v22  ;;  %v14335_v61 = vadd.f32 %v14322_v29, %v13668_v58  ;;  %v10425_v58 = vpop.f32.mrf.mxu1 }
 0x2b8   : > { %v3525_v19 = vpop.f32.mrf.mxu0 }
 0x2b9   : > { %18248 = vst [vmem:[#allocation217_spill] sm:$0xff] %v14335_v61  ;;  %v14338_v27 = vmul.f32 %v14271_v14, %v3531_v6  ;;  %v3526_v57 = vadd.f32 %v14267_v22, %v3525_v19  ;;  %v14343_v48 = vadd.f32 %v14330_v20, %v13678_v17  ;;  %v2543_v19 = vpop.f32.mrf.mxu1 }
 0x2ba   : > { %v10659_v45 = vpop.f32.mrf.mxu0 }
 0x2bb   : > { %18249 = vst [vmem:[#allocation218_spill] sm:$0xff] %v14343_v48  ;;  %v14346_v38 = vmul.f32 %v14271_v14, %v3526_v57  ;;  %v14350_v42 = vadd.f32 %v14338_v27, %v13690_v5  ;;  %v2549_v48 = vadd.f32 %v10425_v58, %v14084_v51  ;;  %v2469_v57 = vadd.f32 %v14074_v10, %v14084_v51 }
 0x2bc   : > { %v3535_v61 = vpop.f32.mrf.mxu0  ;;  %v2544_v5 = vadd.f32 %v14084_v51, %v2543_v19 }
 0x2bd   : > { %18250 = vst [vmem:[#allocation219_spill] sm:$0xff] %v14350_v42  ;;  %v14354_v6 = vadd.f32 %v14346_v38, %v13702_v46  ;;  %v3476_v46 = vadd.f32 %v14267_v22, %v3475_v62  ;;  %v14367_v28 = vmul.f32 %v14091_v56, %v2549_v48  ;;  %v14373_v60 = vmul.f32 %v14091_v56, %v2469_v57 }
 0x2be   : > { %v10662_v18 = vpop.f32.mrf.mxu0  ;;  %v14379_v62 = vmul.f32 %v14091_v56, %v2544_v5 }
 0x2bf   : > { %18251 = vst [vmem:[#allocation220_spill] sm:$0xff] %v14354_v6  ;;  %18253 = vst [vmem:[#allocation222_spill] sm:$0xff] %v14367_v28  ;;  %v3551_v40 = vadd.f32 %v10662_v18, %v14267_v22  ;;  %v3644_v19 = vadd.f32 %v14363_v0, %v14373_v60 }
 0x2c0   : > { %v3545_v17 = vpop.f32.mrf.mxu0  ;;  %18254 = vst [vmem:[#allocation223_spill] sm:$0xff] %v14373_v60  ;;  %18255 = vst [vmem:[#allocation224_spill] sm:$0xff] %v14379_v62 }
 0x2c1   : > { %v14394_v55 = vmul.f32 %v14271_v14, %v3551_v40  ;;  %v3546_v57 = vadd.f32 %v14267_v22, %v3545_v17  ;;  %v2534_v40 = vadd.f32 %v14084_v51, %v2533_v39 }
 0x2c2   : > { %v10665_v1 = vpop.f32.mrf.mxu0 }
 0x2c3   : > { %v3561_v42 = vadd.f32 %v10665_v1, %v14267_v22  ;;  %v2464_v1 = vadd.f32 %v14084_v51, %v14077_v9  ;;  %v14391_v9 = vmul.f32 %v14271_v14, %v3476_v46  ;;  %18258 = vst [vmem:[#allocation227_spill] sm:$0xff] %v14394_v55  ;;  %v14405_v46 = vmul.f32 %v14091_v56, %v2539_v2 }
 0x2c4   : > { %v3555_v6 = vpop.f32.mrf.mxu0 }
 0x2c5   : > { %v3596_v58 = vmul.f32 %v14271_v14, %v3561_v42  ;;  %v3556_v10 = vadd.f32 %v14267_v22, %v3555_v6  ;;  %v3471_v6 = vadd.f32 %v14260_v21, %v14267_v22  ;;  %18257 = vst [vmem:[#allocation226_spill] sm:$0xff] %v14391_v9  ;;  %v14402_v21 = vmul.f32 %v14091_v56, %v2464_v1 }
 0x2c6   : > { %18260 = vst [vmem:[#allocation229_spill] sm:$0xff] %v14405_v46  ;;  %v14417_v1 = vmul.f32 %v14271_v14, %v3546_v57  ;;  %v3658_v2 = vadd.f32 %v14394_v55, %v14405_v46 }
 0x2c7   : > { %v14382_v48 = vmul.f32 %v14271_v14, %v3556_v10  ;;  %v3660_v18 = vadd.f32 %v3596_v58, %v14367_v28  ;;  %v3756_v42 = vadd.f32 %v3596_v58, %v13760_v44  ;;  %v2459_v58 = vadd.f32 %v14064_v30, %v14084_v51  ;;  %18259 = vst [vmem:[#allocation228_spill] sm:$0xff] %v14402_v21 }
 0x2c8   : > { %v14409_v17 = vmul.f32 %v14271_v14, %v3471_v6  ;;  %v3466_v10 = vadd.f32 %v14267_v22, %v14262_v41  ;;  %v3541_v30 = vadd.f32 %v10659_v45, %v14267_v22  ;;  %18262 = vst [vmem:[#allocation231_spill] sm:$0xff] %v14417_v1  ;;  %v2529_v41 = vadd.f32 %v14285_v52, %v14084_v51 }
 0x2c9   : > { %18256 = vst [vmem:[#allocation225_spill] sm:$0xff] %v14382_v48  ;;  %9466 = vmatprep.subr.mxu1 %v3660_v18  ;;  %9610 = vmatprep.subr.mxu0 %v3756_v42  ;;  %v3659_v5 = vadd.f32 %v14382_v48, %v14379_v62  ;;  %v3643_v18 = vadd.f32 %v14391_v9, %v14402_v21 }
 0x2ca   : > { %9467 = vmatpush3.xpose.msra.mxu1 %v3644_v19  ;;  %18261 = vst [vmem:[#allocation230_spill] sm:$0xff] %v14409_v17  ;;  %v14422_v39 = vmul.f32 %v14091_v56, %v2459_v58  ;;  %v2454_v42 = vadd.f32 %v14084_v51, %v14067_v34  ;;  %v14429_v6 = vmul.f32 %v14091_v56, %v2534_v40 }
 0x2cb   : > { %9468 = vmatprep.subr.mxu1 %v3659_v5  ;;  %v3461_v45 = vadd.f32 %v14256_v36, %v14267_v22  ;;  %v14436_v57 = vmul.f32 %v14271_v14, %v3466_v10  ;;  %v14439_v5 = vmul.f32 %v14271_v14, %v3541_v30  ;;  %v3536_v34 = vadd.f32 %v14267_v22, %v3535_v61 }
 0x2cc   : > { %18263 = vst [vmem:[#allocation232_spill] sm:$0xff] %v14422_v39  ;;  %18264 = vst [vmem:[#allocation233_spill] sm:$0xff] %v14429_v6  ;;  %v3642_v19 = vadd.f32 %v14409_v17, %v14422_v39  ;;  %v3657_v52 = vadd.f32 %v14417_v1, %v14429_v6  ;;  %v2449_v58 = vadd.f32 %v14054_v47, %v14084_v51 }
 0x2cd   : > { %18265 = vst [vmem:[#allocation234_spill] sm:$0xff] %v14436_v57  ;;  %18266 = vst [vmem:[#allocation235_spill] sm:$0xff] %v14439_v5  ;;  %v14447_v40 = vmul.f32 %v14091_v56, %v2454_v42  ;;  %v14450_v36 = vmul.f32 %v14091_v56, %v2529_v41  ;;  %v2524_v10 = vadd.f32 %v14084_v51, %v14303_v4 }
 0x2ce   : > { %9469 = vmatpush3.xpose.msra.mxu1 %v3643_v18  ;;  %v14455_v18 = vmul.f32 %v14271_v14, %v3461_v45  ;;  %v3456_v61 = vadd.f32 %v14267_v22, %v14258_v23  ;;  %v14462_v30 = vmul.f32 %v14271_v14, %v3536_v34  ;;  %v14467_v42 = vmul.f32 %v14091_v56, %v2449_v58 }
 0x2cf   : > { %9470 = vmatprep.subr.mxu1 %v3658_v2  ;;  %18267 = vst [vmem:[#allocation236_spill] sm:$0xff] %v14447_v40  ;;  %18268 = vst [vmem:[#allocation237_spill] sm:$0xff] %v14450_v36  ;;  %v3641_v47 = vadd.f32 %v14436_v57, %v14447_v40  ;;  %v3656_v2 = vadd.f32 %v14439_v5, %v14450_v36  ;;  %v2444_v4 = vadd.f32 %v14084_v51, %v14057_v11 }
 0x2d0   : > { %18269 = vst [vmem:[#allocation238_spill] sm:$0xff] %v14455_v18  ;;  %18270 = vst [vmem:[#allocation239_spill] sm:$0xff] %v14462_v30  ;;  %v14472_v41 = vmul.f32 %v14091_v56, %v2524_v10  ;;  %v3451_v23 = vadd.f32 %v14252_v32, %v14267_v22  ;;  %v3640_v45 = vadd.f32 %v14455_v18, %v14467_v42 }
 0x2d1   : > { %18271 = vst [vmem:[#allocation240_spill] sm:$0xff] %v14467_v42  ;;  %v2439_v11 = vadd.f32 %v14044_v16, %v14084_v51  ;;  %v3446_v32 = vadd.f32 %v14267_v22, %v14254_v54  ;;  %v2434_v16 = vadd.f32 %v14084_v51, %v14047_v7 }
 0x2d2   : > { %9471 = vmatpush3.xpose.msra.mxu1 %v3642_v19  ;;  %18272 = vst [vmem:[#allocation241_spill] sm:$0xff] %v14472_v41  ;;  %v14479_v19 = vmul.f32 %v14271_v14, %v3456_v61  ;;  %v3655_v34 = vadd.f32 %v14462_v30, %v14472_v41  ;;  %v14489_v58 = vmul.f32 %v14271_v14, %v3451_v23 }
 0x2d3   : > { %9472 = vmatprep.subr.mxu1 %v3657_v52  ;;  %v14486_v52 = vmul.f32 %v14091_v56, %v2444_v4  ;;  %v3654_v61 = vadd.f32 %v14338_v27, %v14187_v12  ;;  %v14507_v4 = vmul.f32 %v14271_v14, %v3446_v32  ;;  %v3653_v12 = vadd.f32 %v14346_v38, %v14199_v63 }
 0x2d4   : > { %18273 = vst [vmem:[#allocation242_spill] sm:$0xff] %v14479_v19  ;;  %18275 = vst [vmem:[#allocation244_spill] sm:$0xff] %v14489_v58  ;;  %v2429_v27 = vadd.f32 %v14034_v49, %v14084_v51  ;;  %v14514_v23 = vmul.f32 %v14091_v56, %v2434_v16  ;;  %v3652_v63 = vadd.f32 %v14322_v29, %v14163_v43 }
 0x2d5   : > { %18274 = vst [vmem:[#allocation243_spill] sm:$0xff] %v14486_v52  ;;  %v3639_v10 = vadd.f32 %v14479_v19, %v14486_v52  ;;  %18277 = vst [vmem:[#allocation246_spill] sm:$0xff] %v14507_v4  ;;  %v2424_v49 = vadd.f32 %v14084_v51, %v14037_v33  ;;  %v3651_v43 = vadd.f32 %v14330_v20, %v14175_v25 }
 0x2d6   : > { %9473 = vmatpush3.xpose.msra.mxu1 %v3641_v47  ;;  %v14498_v47 = vmul.f32 %v14091_v56, %v2439_v11  ;;  %18278 = vst [vmem:[#allocation247_spill] sm:$0xff] %v14514_v23  ;;  %v14526_v38 = vmul.f32 %v14091_v56, %v2429_v27  ;;  %v2419_v29 = vadd.f32 %v14024_v13, %v14084_v51 }
 0x2d7   : > { %9474 = vmatprep.subr.mxu1 %v3656_v2  ;;  %v3441_v2 = vadd.f32 %v14248_v31, %v14267_v22  ;;  %v3436_v31 = vadd.f32 %v14267_v22, %v14250_v37  ;;  %v14542_v32 = vmul.f32 %v14091_v56, %v2424_v49  ;;  %v3650_v25 = vadd.f32 %v14306_v26, %v14139_v50 }
 0x2d8   : > { %18276 = vst [vmem:[#allocation245_spill] sm:$0xff] %v14498_v47  ;;  %v3638_v54 = vadd.f32 %v14489_v58, %v14498_v47  ;;  %18280 = vst [vmem:[#allocation249_spill] sm:$0xff] %v14526_v38  ;;  %v14554_v20 = vmul.f32 %v14091_v56, %v2419_v29  ;;  %v2414_v13 = vadd.f32 %v14084_v51, %v14027_v15  ;;  %v18296_v29 = vld [vmem:[#allocation155_spill] sm:$0xff] }
 0x2d9   : > { %v14517_v7 = vmul.f32 %v14271_v14, %v3441_v2  ;;  %v14535_v11 = vmul.f32 %v14271_v14, %v3436_v31  ;;  %18282 = vst [vmem:[#allocation251_spill] sm:$0xff] %v14542_v32  ;;  %v3649_v50 = vadd.f32 %v14314_v8, %v14151_v3  ;;  %v2409_v26 = vadd.f32 %v14014_v24, %v14084_v51  ;;  %v18290_v3 = vld [vmem:[#allocation161_spill] sm:$0xff]  ;;  %v18291_v8 = vld [vmem:[#allocation212_spill] sm:$0xff] }
 0x2da   : > { %9475 = vmatpush3.xpose.msra.mxu1 %v3640_v45  ;;  %v3637_v45 = vadd.f32 %v14507_v4, %v14514_v23  ;;  %18284 = vst [vmem:[#allocation253_spill] sm:$0xff] %v14554_v20  ;;  %v14570_v2 = vmul.f32 %v14091_v56, %v2414_v13  ;;  %v2404_v24 = vadd.f32 %v14084_v51, %v18290_v3  ;;  %v18292_v31 = vld [vmem:[#allocation204_spill] sm:$0xff]  ;;  %v18299_v13 = vld [vmem:[#allocation205_spill] sm:$0xff] }
 0x2db   : > { %9476 = vmatprep.subr.mxu1 %v3655_v34  ;;  %18279 = vst [vmem:[#allocation248_spill] sm:$0xff] %v14517_v7  ;;  %v3431_v34 = vadd.f32 %v14244_v53, %v14267_v22  ;;  %v3636_v37 = vadd.f32 %v14517_v7, %v14526_v38  ;;  %18281 = vst [vmem:[#allocation250_spill] sm:$0xff] %v14535_v11  ;;  %v3426_v53 = vadd.f32 %v14267_v22, %v14246_v35 }
 0x2dc   : > { %18286 = vst [vmem:[#allocation255_spill] sm:$0xff] %v14570_v2  ;;  %v14580_v27 = vmul.f32 %v14091_v56, %v2409_v26  ;;  %v18301_v26 = vld [vmem:[#allocation158_spill] sm:$0xff] }
 0x2dd   : > { %v14545_v33 = vmul.f32 %v14271_v14, %v3431_v34  ;;  %v14563_v16 = vmul.f32 %v14271_v14, %v3426_v53  ;;  %v18294_v34 = vld [vmem:[#allocation182_spill] sm:$0xff]  ;;  %v2399_v53 = vadd.f32 %v18296_v29, %v14084_v51  ;;  %v18314_v29 = vld [vmem:[#allocation48_spill] sm:$0xff] }
 0x2de   : > { %9477 = vmatpush3.xpose.msra.mxu1 %v3639_v10  ;;  %v3635_v10 = vadd.f32 %v14535_v11, %v14542_v32 }
 0x2df   : > { %9478 = vmatprep.subr.mxu1 %v3654_v61  ;;  %18283 = vst [vmem:[#allocation252_spill] sm:$0xff] %v14545_v33  ;;  %v3421_v61 = vadd.f32 %v14240_v59, %v14267_v22  ;;  %v3634_v35 = vadd.f32 %v14545_v33, %v14554_v20  ;;  %18285 = vst [vmem:[#allocation254_spill] sm:$0xff] %v14563_v16  ;;  %v18288_v59 = vld [vmem:[#allocation206_spill] sm:$0xff] }
 0x2e0   : > { %18289 = vst [vmem:[#allocation206_spill] sm:$0xff] %v14580_v27 }
 0x2e1   : > { %v14573_v15 = vmul.f32 %v14271_v14, %v3421_v61  ;;  %v3406_v61 = vadd.f32 %v14267_v22, %v18299_v13  ;;  %v18316_v13 = vld [vmem:[#allocation52_spill] sm:$0xff] }
 0x2e2   : > { %9479 = vmatpush3.xpose.msra.mxu1 %v3638_v54  ;;  %v3416_v54 = vadd.f32 %v14267_v22, %v18288_v59  ;;  %v2394_v59 = vadd.f32 %v14084_v51, %v18301_v26  ;;  %v18319_v26 = vld [vmem:[#allocation62_spill] sm:$0xff] }
 0x2e3   : > { %9480 = vmatprep.subr.mxu1 %v3653_v12  ;;  %18287 = vst [vmem:[#allocation256_spill] sm:$0xff] %v14573_v15  ;;  %v3633_v12 = vadd.f32 %v14563_v16, %v14570_v2  ;;  %v14615_v3 = vmul.f32 %v14271_v14, %v3406_v61  ;;  %v18317_v61 = vld [vmem:[#allocation58_spill] sm:$0xff] }
 0x2e4   : > { %v14590_v49 = vmul.f32 %v14271_v14, %v3416_v54  ;;  %v18302_v54 = vld [vmem:[#allocation208_spill] sm:$0xff] }
 0x2e6   : > { %9481 = vmatpush3.xpose.msra.mxu1 %v3637_v45  ;;  %v3411_v45 = vadd.f32 %v18292_v31, %v14267_v22  ;;  %18293 = vst [vmem:[#allocation161_spill] sm:$0xff] %v14590_v49  ;;  %v18305_v22 = vld [vmem:[#allocation207_spill] sm:$0xff]  ;;  %v14620_v31 = vmul.f32 %v14091_v56, %v2394_v59  ;;  %v18320_v59 = vld [vmem:[#allocation60_spill] sm:$0xff] }
 0x2e7   : > { %9482 = vmatprep.subr.mxu1 %v3652_v63  ;;  %v3632_v63 = vadd.f32 %v14573_v15, %v14580_v27 }
 0x2e8   : > { %18306 = vst [vmem:[#allocation155_spill] sm:$0xff] %v14620_v31  ;;  %v3629_v51 = vadd.f32 %v14615_v3, %v14620_v31 }
 0x2ea   : > { %9483 = vmatpush3.xpose.msra.mxu1 %v3636_v37  ;;  %v18295_v37 = vld [vmem:[#allocation211_spill] sm:$0xff] }
 0x2eb   : > { %9484 = vmatprep.subr.mxu1 %v3651_v43  ;;  %v3647_v43 = vadd.f32 %v18295_v37, %v18294_v34  ;;  %18303 = vst [vmem:[#allocation211_spill] sm:$0xff] %v14615_v3  ;;  %v18310_v34 = vld [vmem:[#allocation40_spill] sm:$0xff] }
 0x2ec   : > { %v18312_v37 = vld [vmem:[#allocation44_spill] sm:$0xff] }
 0x2ee   : > { %9485 = vmatpush3.xpose.msra.mxu1 %v3635_v10  ;;  %v14597_v10 = vmul.f32 %v14091_v56, %v2404_v24  ;;  %v18304_v24 = vld [vmem:[#allocation177_spill] sm:$0xff] }
 0x2ef   : > { %9486 = vmatprep.subr.mxu1 %v3650_v25  ;;  %v14600_v25 = vmul.f32 %v14271_v14, %v3411_v45  ;;  %v18307_v45 = vld [vmem:[#allocation87_spill] sm:$0xff]  ;;  %v18309_v14 = vld [vmem:[#allocation42_spill] sm:$0xff] }
 0x2f0   : > { %18297 = vst [vmem:[#allocation212_spill] sm:$0xff] %v14597_v10 }
 0x2f1   : > { %18298 = vst [vmem:[#allocation204_spill] sm:$0xff] %v14600_v25 }
 0x2f2   : > { %9487 = vmatpush3.xpose.msra.mxu1 %v3634_v35  ;;  %v3631_v35 = vadd.f32 %v14590_v49, %v14597_v10 }
 0x2f3   : > { %9488 = vmatprep.subr.mxu1 %v3649_v50  ;;  %v14607_v50 = vmul.f32 %v14091_v56, %v2399_v53  ;;  %v18311_v56 = vld [vmem:[#allocation46_spill] sm:$0xff] }
 0x2f4   : > { %v18315_v53 = vld [vmem:[#allocation54_spill] sm:$0xff] }
 0x2f5   : > { %18300 = vst [vmem:[#allocation182_spill] sm:$0xff] %v14607_v50 }
 0x2f6   : > { %9489 = vmatpush3.xpose.msra.mxu1 %v3633_v12  ;;  %v3630_v12 = vadd.f32 %v14600_v25, %v14607_v50 }
 0x2f7   : > { %9490 = vmatprep.subr.mxu1 %v18291_v8  ;;  %v3645_v8 = vadd.f32 %v18305_v22, %v18304_v24  ;;  %v18323_v24 = vld [vmem:[#allocation39_spill] sm:$0xff]  ;;  %v18324_v22 = vld [vmem:[#allocation38_spill] sm:$0xff] }
 0x2fa   : > { %9491 = vmatpush3.xpose.msra.mxu1 %v3632_v63  ;;  %v18308_v63 = vld [vmem:[#allocation37_spill] sm:$0xff] }
 0x2fb   : > { %9492 = vmatprep.subr.mxu1 %v3647_v43  ;;  %v18313_v43 = vld [vmem:[#allocation50_spill] sm:$0xff] }
 0x2fe   : > { %9493 = vmatpush3.xpose.msra.mxu1 %v3631_v35  ;;  %v18318_v35 = vld [vmem:[#allocation56_spill] sm:$0xff] }
 0x2ff   : > { %9494 = vmatprep.subr.mxu1 %v18302_v54  ;;  %v18321_v54 = vld [vmem:[#allocation66_spill] sm:$0xff] }
 0x302   : > { %9495 = vmatpush3.xpose.msra.mxu1 %v3630_v12  ;;  %v18322_v12 = vld [vmem:[#allocation64_spill] sm:$0xff] }
 0x303   : > { %9496 = vmatprep.subr.mxu1 %v3645_v8  ;;  %v14658_v8 = vpop.f32.mrf.mxu1 }
 0x304   : > { %18325 = vst [vmem:[#allocation205_spill] sm:$0xff] %v14658_v8 }
 0x306   : > { %9497 = vmatpush3.xpose.msra.mxu1 %v3629_v51  ;;  %v18326_v51 = vld [vmem:[#allocation43_spill] sm:$0xff] }
 0x309   : > { %9499 = vmatmul.mubr.f32.vlgmr.msra.gmra.mxu1 %v18307_v45  ;;  %v14662_v45 = vpop.f32.mrf.mxu1 }
 0x30a   : > { %9500 = vmatprep.mubr.f32.mxu1 %v18308_v63  ;;  %18327 = vst [vmem:[#allocation158_spill] sm:$0xff] %v14662_v45 }
 0x30d   : > { %9501 = vmatmul.mubr.f32.gmra.mxu1 %v18308_v63  ;;  %v18328_v63 = vld [vmem:[#allocation41_spill] sm:$0xff] }
 0x30e   : > { %9502 = vmatprep.mubr.f32.mxu1 %v18309_v14 }
 0x311   : > { %9503 = vmatmul.mubr.f32.gmra.mxu1 %v18309_v14  ;;  %v14666_v14 = vpop.f32.mrf.mxu1 }
 0x312   : > { %9504 = vmatprep.mubr.f32.mxu1 %v18310_v34  ;;  %18329 = vst [vmem:[#allocation208_spill] sm:$0xff] %v14666_v14 }
 0x315   : > { %9505 = vmatmul.mubr.f32.gmra.mxu1 %v18310_v34  ;;  %v18330_v34 = vld [vmem:[#allocation47_spill] sm:$0xff] }
 0x316   : > { %9506 = vmatprep.mubr.f32.mxu1 %v18311_v56 }
 0x319   : > { %9507 = vmatmul.mubr.f32.gmra.mxu1 %v18311_v56  ;;  %v14670_v56 = vpop.f32.mrf.mxu1 }
 0x31a   : > { %9508 = vmatprep.mubr.f32.mxu1 %v18312_v37  ;;  %18331 = vst [vmem:[#allocation177_spill] sm:$0xff] %v14670_v56 }
 0x31d   : > { %9509 = vmatmul.mubr.f32.gmra.mxu1 %v18312_v37  ;;  %v18332_v37 = vld [vmem:[#allocation45_spill] sm:$0xff] }
 0x31e   : > { %9510 = vmatprep.mubr.f32.mxu1 %v18313_v43 }
 0x321   : > { %9511 = vmatmul.mubr.f32.gmra.mxu1 %v18313_v43  ;;  %v14674_v43 = vpop.f32.mrf.mxu1 }
 0x322   : > { %9512 = vmatprep.mubr.f32.mxu1 %v18314_v29  ;;  %18333 = vst [vmem:[#allocation207_spill] sm:$0xff] %v14674_v43 }
 0x325   : > { %9513 = vmatmul.mubr.f32.gmra.mxu1 %v18314_v29  ;;  %v18334_v29 = vld [vmem:[#allocation51_spill] sm:$0xff] }
 0x326   : > { %9514 = vmatprep.mubr.f32.mxu1 %v18315_v53 }
 0x329   : > { %9515 = vmatmul.mubr.f32.gmra.mxu1 %v18315_v53  ;;  %v14678_v53 = vpop.f32.mrf.mxu1 }
 0x32a   : > { %9516 = vmatprep.mubr.f32.mxu1 %v18316_v13  ;;  %18335 = vst [vmem:[#allocation87_spill] sm:$0xff] %v14678_v53 }
 0x32d   : > { %9517 = vmatmul.mubr.f32.gmra.mxu1 %v18316_v13  ;;  %v18336_v13 = vld [vmem:[#allocation49_spill] sm:$0xff] }
 0x32e   : > { %9518 = vmatprep.mubr.f32.mxu1 %v18317_v61 }
 0x331   : > { %9519 = vmatmul.mubr.f32.gmra.mxu1 %v18317_v61  ;;  %v14682_v61 = vpop.f32.mrf.mxu1 }
 0x332   : > { %9520 = vmatprep.mubr.f32.mxu1 %v18318_v35  ;;  %18337 = vst [vmem:[#allocation37_spill] sm:$0xff] %v14682_v61 }
 0x335   : > { %9521 = vmatmul.mubr.f32.gmra.mxu1 %v18318_v35  ;;  %v18338_v35 = vld [vmem:[#allocation55_spill] sm:$0xff] }
 0x336   : > { %9522 = vmatprep.mubr.f32.mxu1 %v18319_v26 }
 0x339   : > { %9523 = vmatmul.mubr.f32.gmra.mxu1 %v18319_v26  ;;  %v14686_v26 = vpop.f32.mrf.mxu1 }
 0x33a   : > { %9524 = vmatprep.mubr.f32.mxu1 %v18320_v59  ;;  %18339 = vst [vmem:[#allocation42_spill] sm:$0xff] %v14686_v26 }
 0x33d   : > { %9525 = vmatmul.mubr.f32.gmra.mxu1 %v18320_v59  ;;  %v18340_v59 = vld [vmem:[#allocation53_spill] sm:$0xff] }
 0x33e   : > { %9526 = vmatprep.mubr.f32.mxu1 %v18321_v54 }
 0x341   : > { %9527 = vmatmul.mubr.f32.gmra.mxu1 %v18321_v54  ;;  %v14690_v54 = vpop.f32.mrf.mxu1 }
 0x342   : > { %9528 = vmatprep.mubr.f32.mxu1 %v18322_v12  ;;  %18341 = vst [vmem:[#allocation40_spill] sm:$0xff] %v14690_v54 }
 0x345   : > { %9529 = vmatmul.mubr.f32.gmra.mxu1 %v18322_v12  ;;  %v18342_v12 = vld [vmem:[#allocation59_spill] sm:$0xff] }
 0x346   : > { %9530 = vmatprep.mubr.f32.mxu1 %v18323_v24 }
 0x349   : > { %9531 = vmatmul.mubr.f32.gmra.mxu1 %v18323_v24  ;;  %v14694_v24 = vpop.f32.mrf.mxu1 }
 0x34a   : > { %9532 = vmatprep.mubr.f32.mxu1 %v18324_v22  ;;  %18343 = vst [vmem:[#allocation46_spill] sm:$0xff] %v14694_v24 }
 0x34d   : > { %9533 = vmatmul.mubr.f32.gmra.mxu1 %v18324_v22  ;;  %v18344_v22 = vld [vmem:[#allocation57_spill] sm:$0xff] }
 0x34e   : > { %9534 = vmatprep.mubr.f32.mxu1 %v18326_v51 }
 0x351   : > { %9535 = vmatmul.mubr.f32.gmra.mxu1 %v18326_v51  ;;  %v14698_v51 = vpop.f32.mrf.mxu1 }
 0x352   : > { %9536 = vmatprep.mubr.f32.mxu1 %v18328_v63  ;;  %18345 = vst [vmem:[#allocation44_spill] sm:$0xff] %v14698_v51 }
 0x355   : > { %9537 = vmatmul.mubr.f32.gmra.mxu1 %v18328_v63  ;;  %v18346_v63 = vld [vmem:[#allocation63_spill] sm:$0xff] }
 0x356   : > { %9538 = vmatprep.mubr.f32.mxu1 %v18330_v34 }
 0x359   : > { %9539 = vmatmul.mubr.f32.gmra.mxu1 %v18330_v34  ;;  %v14702_v34 = vpop.f32.mrf.mxu1 }
 0x35a   : > { %9540 = vmatprep.mubr.f32.mxu1 %v18332_v37  ;;  %18347 = vst [vmem:[#allocation50_spill] sm:$0xff] %v14702_v34 }
 0x35d   : > { %9541 = vmatmul.mubr.f32.gmra.mxu1 %v18332_v37  ;;  %v18348_v37 = vld [vmem:[#allocation61_spill] sm:$0xff] }
 0x35e   : > { %9542 = vmatprep.mubr.f32.mxu1 %v18334_v29 }
 0x361   : > { %9543 = vmatmul.mubr.f32.gmra.mxu1 %v18334_v29  ;;  %v14706_v29 = vpop.f32.mrf.mxu1 }
 0x362   : > { %9544 = vmatprep.mubr.f32.mxu1 %v18336_v13  ;;  %18349 = vst [vmem:[#allocation48_spill] sm:$0xff] %v14706_v29 }
 0x365   : > { %9545 = vmatmul.mubr.f32.gmra.mxu1 %v18336_v13  ;;  %v18350_v13 = vld [vmem:[#allocation67_spill] sm:$0xff] }
 0x366   : > { %9546 = vmatprep.mubr.f32.mxu1 %v18338_v35 }
 0x369   : > { %9547 = vmatmul.mubr.f32.gmra.mxu1 %v18338_v35  ;;  %v14710_v35 = vpop.f32.mrf.mxu1 }
 0x36a   : > { %9548 = vmatprep.mubr.f32.mxu1 %v18340_v59  ;;  %18351 = vst [vmem:[#allocation54_spill] sm:$0xff] %v14710_v35 }
 0x36d   : > { %9549 = vmatmul.mubr.f32.gmra.mxu1 %v18340_v59  ;;  %v18352_v59 = vld [vmem:[#allocation65_spill] sm:$0xff] }
 0x36e   : > { %9550 = vmatprep.mubr.f32.mxu1 %v18342_v12 }
 0x371   : > { %9551 = vmatmul.mubr.f32.gmra.mxu1 %v18342_v12  ;;  %v14714_v12 = vpop.f32.mrf.mxu1 }
 0x372   : > { %9552 = vmatprep.mubr.f32.mxu1 %v18344_v22  ;;  %18353 = vst [vmem:[#allocation52_spill] sm:$0xff] %v14714_v12 }
 0x375   : > { %9553 = vmatmul.mubr.f32.gmra.mxu1 %v18344_v22  ;;  %v14717_v22 = vpop.f32.mrf.mxu1 }
 0x376   : > { %9554 = vmatprep.mubr.f32.mxu1 %v18346_v63  ;;  %18354 = vst [vmem:[#allocation58_spill] sm:$0xff] %v14717_v22 }
 0x379   : > { %9555 = vmatmul.mubr.f32.gmra.mxu1 %v18346_v63  ;;  %v14719_v63 = vpop.f32.mrf.mxu1 }
 0x37a   : > { %9556 = vmatprep.mubr.f32.mxu1 %v18348_v37  ;;  %18355 = vst [vmem:[#allocation56_spill] sm:$0xff] %v14719_v63 }
 0x37b   : > { %v14721_v45 = vpop.f32.mrf.mxu1 }
 0x37c   : > { %18356 = vst [vmem:[#allocation62_spill] sm:$0xff] %v14721_v45 }
 0x37d   : > { %9557 = vmatmul.mubr.f32.gmra.mxu1 %v18348_v37  ;;  %v14723_v8 = vpop.f32.mrf.mxu1 }
 0x37e   : > { %9558 = vmatprep.mubr.f32.mxu1 %v18350_v13  ;;  %18357 = vst [vmem:[#allocation60_spill] sm:$0xff] %v14723_v8 }
 0x37f   : > { %v14725_v37 = vpop.f32.mrf.mxu1 }
 0x380   : > { %18358 = vst [vmem:[#allocation66_spill] sm:$0xff] %v14725_v37 }
 0x381   : > { %9559 = vmatmul.mubr.f32.gmra.mxu1 %v18350_v13  ;;  %v14727_v56 = vpop.f32.mrf.mxu1 }
 0x382   : > { %9560 = vmatprep.mubr.f32.mxu1 %v18352_v59  ;;  %18359 = vst [vmem:[#allocation64_spill] sm:$0xff] %v14727_v56 }
 0x383   : > { %v14729_v14 = vpop.f32.mrf.mxu1 }
 0x384   : > { %18360 = vst [vmem:[#allocation39_spill] sm:$0xff] %v14729_v14 }
 0x385   : > { %9561 = vmatmul.mubr.f32.gmra.mxu1 %v18352_v59  ;;  %v14731_v13 = vpop.f32.mrf.mxu1 }
 0x386   : > { %18361 = vst [vmem:[#allocation38_spill] sm:$0xff] %v14731_v13 }
 0x387   : > { %v14733_v53 = vpop.f32.mrf.mxu1 }
 0x388   : > { %18362 = vst [vmem:[#allocation43_spill] sm:$0xff] %v14733_v53 }
 0x389   : > { %v14735_v43 = vpop.f32.mrf.mxu1 }
 0x38a   : > { %18363 = vst [vmem:[#allocation41_spill] sm:$0xff] %v14735_v43 }
 0x38b   : > { %v14737_v59 = vpop.f32.mrf.mxu1 }
 0x38c   : > { %18364 = vst [vmem:[#allocation47_spill] sm:$0xff] %v14737_v59 }
 0x38d   : > { %v14739_v26 = vpop.f32.mrf.mxu1 }
 0x38e   : > { %18365 = vst [vmem:[#allocation45_spill] sm:$0xff] %v14739_v26 }
 0x38f   : > { %v14741_v63 = vpop.f32.mrf.mxu1 }
 0x390   : > { %18366 = vst [vmem:[#allocation51_spill] sm:$0xff] %v14741_v63 }
 0x391   : > { %v14743_v45 = vpop.f32.mrf.mxu1 }
 0x392   : > { %18367 = vst [vmem:[#allocation49_spill] sm:$0xff] %v14743_v45 }
 0x393   : > { %v14745_v8 = vpop.f32.mrf.mxu1 }
 0x394   : > { %18368 = vst [vmem:[#allocation55_spill] sm:$0xff] %v14745_v8 }
 0x395   : > { %v14747_v37 = vpop.f32.mrf.mxu1 }
 0x396   : > { %18369 = vst [vmem:[#allocation53_spill] sm:$0xff] %v14747_v37 }
 0x397   : > { %v14749_v56 = vpop.f32.mrf.mxu1 }
 0x398   : > { %18370 = vst [vmem:[#allocation59_spill] sm:$0xff] %v14749_v56 }
 0x3c9   : > { %v14751_v14 = vpop.f32.mrf.mxu1 }
 0x3cb   : > { %v14753_v13 = vpop.f32.mrf.mxu1 }
 0x3cc   : > { %v4110_v53 = vmax.f32 %v14751_v14, %v14753_v13 }
 0x3cd   : > { %v14757_v59 = vpop.f32.mrf.mxu1 }
 0x3ce   : > { %4111 = vmax.xlane.f32.xlu0 %v4110_v53 }
 0x3cf   : > { %v14759_v43 = vpop.f32.mrf.mxu1 }
 0x3d0   : > { %v4113_v63 = vmax.f32 %v14757_v59, %v14759_v43 }
 0x3d1   : > { %v14763_v26 = vpop.f32.mrf.mxu1 }
 0x3d2   : > { %4114 = vmax.xlane.f32.xlu0 %v4113_v63 }
 0x3d3   : > { %v14765_v8 = vpop.f32.mrf.mxu1 }
 0x3d4   : > { %v4116_v45 = vmax.f32 %v14763_v26, %v14765_v8 }
 0x3d5   : > { %v14769_v56 = vpop.f32.mrf.mxu1 }
 0x3d6   : > { %4117 = vmax.xlane.f32.xlu1 %v4116_v45 }
 0x3d7   : > { %v14771_v37 = vpop.f32.mrf.mxu1 }
 0x3d8   : > { %v4119_v53 = vmax.f32 %v14769_v56, %v14771_v37 }
 0x3d9   : > { %v14775_v61 = vpop.f32.mrf.mxu1 }
 0x3da   : > { %4120 = vmax.xlane.f32.xlu1 %v4119_v53 }
 0x3db   : > { %v14777_v24 = vpop.f32.mrf.mxu1 }
 0x3dc   : > { %v4122_v63 = vmax.f32 %v14775_v61, %v14777_v24 }
 0x3dd   : > { %v14781_v54 = vpop.f32.mrf.mxu1 }
 0x3de   : > { %4123 = vmax.xlane.f32.xlu0 %v4122_v63 }
 0x3df   : > { %v14783_v34 = vpop.f32.mrf.mxu1 }
 0x3e0   : > { %v4125_v45 = vmax.f32 %v14781_v54, %v14783_v34 }
 0x3e1   : > { %v14787_v51 = vpop.f32.mrf.mxu1 }
 0x3e2   : > { %4126 = vmax.xlane.f32.xlu1 %v4125_v45 }
 0x3e3   : > { %v14789_v35 = vpop.f32.mrf.mxu1 }
 0x3e4   : > { %v4128_v53 = vmax.f32 %v14787_v51, %v14789_v35 }
 0x3e5   : > { %v14793_v29 = vpop.f32.mrf.mxu1 }
 0x3e6   : > { %4129 = vmax.xlane.f32.xlu0 %v4128_v53 }
 0x3e7   : > { %v14795_v22 = vpop.f32.mrf.mxu1 }
 0x3e8   : > { %v4131_v63 = vmax.f32 %v14793_v29, %v14795_v22 }
 0x3e9   : > { %v14799_v12 = vpop.f32.mrf.mxu1 }
 0x3ea   : > { %4132 = vmax.xlane.f32.xlu1 %v4131_v63 }
 0x3eb   : > { %v14801_v31 = vpop.f32.mrf.mxu1 }
 0x3ec   : > { %v4134_v45 = vmax.f32 %v14799_v12, %v14801_v31 }
 0x3ed   : > { %v14805_v50 = vpop.f32.mrf.mxu1 }
 0x3ee   : > { %4135 = vmax.xlane.f32.xlu0 %v4134_v45 }
 0x3ef   : > { %v14807_v10 = vpop.f32.mrf.mxu1 }
 0x3f0   : > { %v4137_v53 = vmax.f32 %v14805_v50, %v14807_v10 }
 0x3f1   : > { %v14811_v27 = vpop.f32.mrf.mxu1 }
 0x3f2   : > { %4138 = vmax.xlane.f32.xlu1 %v4137_v53 }
 0x3f3   : > { %v14813_v2 = vpop.f32.mrf.mxu1 }
 0x3f4   : > { %v4140_v63 = vmax.f32 %v14811_v27, %v14813_v2 }
 0x3f5   : > { %v14817_v20 = vpop.f32.mrf.mxu1 }
 0x3f6   : > { %4141 = vmax.xlane.f32.xlu0 %v4140_v63 }
 0x3f7   : > { %v14819_v32 = vpop.f32.mrf.mxu1 }
 0x3f8   : > { %v4143_v45 = vmax.f32 %v14817_v20, %v14819_v32 }
 0x3f9   : > { %v14823_v38 = vpop.f32.mrf.mxu1 }
 0x3fa   : > { %4144 = vmax.xlane.f32.xlu1 %v4143_v45 }
 0x3fb   : > { %v14825_v23 = vpop.f32.mrf.mxu1 }
 0x3fc   : > { %v4146_v53 = vmax.f32 %v14823_v38, %v14825_v23 }
 0x3fd   : > { %v14829_v47 = vpop.f32.mrf.mxu1 }
 0x3fe   : > { %4147 = vmax.xlane.f32.xlu0 %v4146_v53 }
 0x3ff   : > { %v14831_v52 = vpop.f32.mrf.mxu1 }
 0x400   : > { %v4149_v63 = vmax.f32 %v14829_v47, %v14831_v52 }
 0x401   : > { %v14835_v41 = vpop.f32.mrf.mxu1 }
 0x402   : > { %4150 = vmax.xlane.f32.xlu1 %v4149_v63 }
 0x403   : > { %v14837_v42 = vpop.f32.mrf.mxu1 }
 0x404   : > { %v4152_v45 = vmax.f32 %v14835_v41, %v14837_v42 }
 0x405   : > { %v14841_v36 = vpop.f32.mrf.mxu1 }
 0x406   : > { %4153 = vmax.xlane.f32.xlu0 %v4152_v45 }
 0x407   : > { %v14843_v40 = vpop.f32.mrf.mxu1 }
 0x408   : > { %v4155_v53 = vmax.f32 %v14841_v36, %v14843_v40 }
 0x409   : > { %v14847_v6 = vpop.f32.mrf.mxu1 }
 0x40a   : > { %4156 = vmax.xlane.f32.xlu1 %v4155_v53 }
 0x40b   : > { %v14849_v39 = vpop.f32.mrf.mxu1 }
 0x40c   : > { %v4158_v63 = vmax.f32 %v14847_v6, %v14849_v39 }
 0x40d   : > { %v14853_v46 = vpop.f32.mrf.mxu1 }
 0x40e   : > { %4159 = vmax.xlane.f32.xlu0 %v4158_v63 }
 0x40f   : > { %v14855_v21 = vpop.f32.mrf.mxu1 }
 0x410   : > { %v4161_v45 = vmax.f32 %v14853_v46, %v14855_v21 }
 0x411   : > { %v14859_v62 = vpop.f32.mrf.mxu1 }
 0x412   : > { %4162 = vmax.xlane.f32.xlu1 %v4161_v45 }
 0x413   : > { %v14861_v60 = vpop.f32.mrf.mxu1 }
 0x414   : > { %v4164_v53 = vmax.f32 %v14859_v62, %v14861_v60 }
 0x415   : > { %v14865_v28 = vpop.f32.mrf.mxu1 }
 0x416   : > { %4165 = vmax.xlane.f32.xlu0 %v4164_v53 }
 0x417   : > { %v14867_v44 = vpop.f32.mrf.mxu1 }
 0x418   : > { %v4167_v63 = vmax.f32 %v14865_v28, %v14867_v44 }
 0x419   : > { %v14871_v3 = vpop.f32.mrf.mxu1 }
 0x41a   : > { %4168 = vmax.xlane.f32.xlu1 %v4167_v63 }
 0x41b   : > { %v14873_v25 = vpop.f32.mrf.mxu1 }
 0x41c   : > { %v4170_v45 = vmax.f32 %v14871_v3, %v14873_v25 }
 0x41d   : > { %v14877_v49 = vpop.f32.mrf.mxu1 }
 0x41e   : > { %4171 = vmax.xlane.f32.xlu0 %v4170_v45 }
 0x41f   : > { %v14879_v15 = vpop.f32.mrf.mxu1 }
 0x420   : > { %v4173_v53 = vmax.f32 %v14877_v49, %v14879_v15 }
 0x421   : > { %v14883_v16 = vpop.f32.mrf.mxu1 }
 0x422   : > { %4174 = vmax.xlane.f32.xlu1 %v4173_v53 }
 0x423   : > { %v14885_v33 = vpop.f32.mrf.mxu1 }
 0x424   : > { %v4176_v63 = vmax.f32 %v14883_v16, %v14885_v33 }
 0x425   : > { %v14889_v11 = vpop.f32.mrf.mxu1 }
 0x426   : > { %4177 = vmax.xlane.f32.xlu0 %v4176_v63 }
 0x427   : > { %v14891_v7 = vpop.f32.mrf.mxu1 }
 0x428   : > { %v4179_v45 = vmax.f32 %v14889_v11, %v14891_v7 }
 0x429   : > { %v14895_v4 = vpop.f32.mrf.mxu1 }
 0x42a   : > { %4180 = vmax.xlane.f32.xlu0 %v4179_v45 }
 0x42b   : > { %v14897_v58 = vpop.f32.mrf.mxu1 }
 0x42c   : > { %v4182_v53 = vmax.f32 %v14895_v4, %v14897_v58 }
 0x42d   : > { %v14901_v19 = vpop.f32.mrf.mxu1 }
 0x42e   : > { %18371 = vst [vmem:[#allocation57_spill] sm:$0xff] %v14901_v19  ;;  %4183 = vmax.xlane.f32.xlu0 %v4182_v53 }
 0x42f   : > { %v14903_v30 = vpop.f32.mrf.mxu1 }
 0x430   : > { %18372 = vst [vmem:[#allocation63_spill] sm:$0xff] %v14903_v30  ;;  %v4185_v63 = vmax.f32 %v14901_v19, %v14903_v30 }
 0x431   : > { %v14907_v18 = vpop.f32.mrf.mxu1 }
 0x432   : > { %18373 = vst [vmem:[#allocation61_spill] sm:$0xff] %v14907_v18  ;;  %4186 = vmax.xlane.f32.xlu0 %v4185_v63 }
 0x433   : > { %v14909_v5 = vpop.f32.mrf.mxu1 }
 0x434   : > { %18374 = vst [vmem:[#allocation67_spill] sm:$0xff] %v14909_v5  ;;  %v4188_v45 = vmax.f32 %v14907_v18, %v14909_v5 }
 0x435   : > { %v14913_v57 = vpop.f32.mrf.mxu1 }
 0x436   : > { %18375 = vst [vmem:[#allocation65_spill] sm:$0xff] %v14913_v57  ;;  %4189 = vmax.xlane.f32.xlu0 %v4188_v45 }
 0x437   : > { %v14915_v1 = vpop.f32.mrf.mxu1 }
 0x438   : > { %18376 = vst [vmem:[#allocation257_spill] sm:$0xff] %v14915_v1  ;;  %v4191_v53 = vmax.f32 %v14913_v57, %v14915_v1 }
 0x439   : > { %v14919_v17 = vpop.f32.mrf.mxu1 }
 0x43a   : > { %18377 = vst [vmem:[#allocation258_spill] sm:$0xff] %v14919_v17  ;;  %4192 = vmax.xlane.f32.xlu0 %v4191_v53 }
 0x43b   : > { %v14921_v55 = vpop.f32.mrf.mxu1 }
 0x43c   : > { %18378 = vst [vmem:[#allocation259_spill] sm:$0xff] %v14921_v55  ;;  %v4194_v63 = vmax.f32 %v14919_v17, %v14921_v55 }
 0x43d   : > { %v14925_v9 = vpop.f32.mrf.mxu1 }
 0x43e   : > { %18379 = vst [vmem:[#allocation260_spill] sm:$0xff] %v14925_v9  ;;  %4195 = vmax.xlane.f32.xlu0 %v4194_v63 }
 0x43f   : > { %v14927_v48 = vpop.f32.mrf.mxu1 }
 0x440   : > { %18380 = vst [vmem:[#allocation261_spill] sm:$0xff] %v14927_v48  ;;  %v4197_v45 = vmax.f32 %v14925_v9, %v14927_v48 }
 0x441   : > { %v14931_v0 = vpop.f32.mrf.mxu1 }
 0x442   : > { %18381 = vst [vmem:[#allocation262_spill] sm:$0xff] %v14931_v0  ;;  %4198 = vmax.xlane.f32.xlu0 %v4197_v45 }
 0x443   : > { %v14933_v1 = vpop.f32.mrf.mxu1 }
 0x444   : > { %18382 = vst [vmem:[#allocation263_spill] sm:$0xff] %v14933_v1  ;;  %v4200_v53 = vmax.f32 %v14931_v0, %v14933_v1 }
 0x445   : > { %v14937_v57 = vpop.f32.mrf.mxu1 }
 0x446   : > { %4201 = vmax.xlane.f32.xlu0 %v4200_v53 }
 0x447   : > { %v14939_v55 = vpop.f32.mrf.mxu1 }
 0x448   : > { %18383 = vst [vmem:[#allocation264_spill] sm:$0xff] %v14939_v55  ;;  %v4203_v63 = vmax.f32 %v14937_v57, %v14939_v55 }
 0x44a   : > { %4204 = vmax.xlane.f32.xlu0 %v4203_v63 }
 0x457   : > { %v4112_v17 = vpop.xlane.xlu0 %4111 }
 0x458   : > { %v4206_v48 = vsub.f32 %v14751_v14, %v4112_v17  ;;  %v4207_v9 = vsub.f32 %v14753_v13, %v4112_v17 }
 0x45a   : > { %v4270_v45 = vmul.f32 1.442695, %v4206_v48  ;;  %v4272_v5 = vmul.f32 1.442695, %v4207_v9 }
 0x45b   : > { %v4115_v18 = vpop.xlane.xlu0 %4114 }
 0x45c   : > { %11156 = vpow2.f32 %v4270_v45  ;;  %v4208_v1 = vsub.f32 %v14757_v59, %v4115_v18  ;;  %v4209_v0 = vsub.f32 %v14759_v43, %v4115_v18 }
 0x45d   : > { %11158 = vpow2.f32 %v4272_v5 }
 0x45e   : > { %v4274_v53 = vmul.f32 1.442695, %v4208_v1  ;;  %v4276_v30 = vmul.f32 1.442695, %v4209_v0 }
 0x45f   : > { %v4118_v19 = vpop.xlane.xlu1 %4117 }
 0x460   : > { %11160 = vpow2.f32 %v4274_v53  ;;  %v4210_v63 = vsub.f32 %v14763_v26, %v4118_v19  ;;  %v4211_v55 = vsub.f32 %v14765_v8, %v4118_v19 }
 0x461   : > { %11162 = vpow2.f32 %v4276_v30 }
 0x462   : > { %v4278_v14 = vmul.f32 1.442695, %v4210_v63  ;;  %v4280_v17 = vmul.f32 1.442695, %v4211_v55 }
 0x463   : > { %v4121_v48 = vpop.xlane.xlu1 %4120 }
 0x464   : > { %11164 = vpow2.f32 %v4278_v14  ;;  %v4212_v9 = vsub.f32 %v14769_v56, %v4121_v48  ;;  %v4213_v13 = vsub.f32 %v14771_v37, %v4121_v48 }
 0x465   : > { %11166 = vpow2.f32 %v4280_v17 }
 0x466   : > { %v4282_v18 = vmul.f32 1.442695, %v4212_v9  ;;  %v4284_v5 = vmul.f32 1.442695, %v4213_v13 }
 0x467   : > { %v4124_v1 = vpop.xlane.xlu0 %4123 }
 0x468   : > { %11168 = vpow2.f32 %v4282_v18  ;;  %v4214_v0 = vsub.f32 %v14775_v61, %v4124_v1  ;;  %v4215_v43 = vsub.f32 %v14777_v24, %v4124_v1 }
 0x469   : > { %v14953_v26 = vpop.eup %11156  ;;  %11170 = vpow2.f32 %v4284_v5 }
 0x46a   : > { %v14955_v30 = vpop.eup %11158  ;;  %v4286_v55 = vmul.f32 1.442695, %v4214_v0  ;;  %v4288_v19 = vmul.f32 1.442695, %v4215_v43 }
 0x46b   : > { %v4127_v8 = vpop.xlane.xlu1 %4126  ;;  %v4398_v56 = vadd.f32 %v14955_v30, %v14953_v26 }
 0x46c   : > { %11172 = vpow2.f32 %v4286_v55  ;;  %v4216_v37 = vsub.f32 %v14781_v54, %v4127_v8  ;;  %v4217_v59 = vsub.f32 %v14783_v34, %v4127_v8 }
 0x46d   : > { %v14961_v45 = vpop.eup %11160  ;;  %11174 = vpow2.f32 %v4288_v19  ;;  %4399 = vadd.xlane.f32.xlu1 %v4398_v56 }
 0x46e   : > { %v14963_v61 = vpop.eup %11162  ;;  %v4290_v24 = vmul.f32 1.442695, %v4216_v37  ;;  %v4292_v53 = vmul.f32 1.442695, %v4217_v59 }
 0x46f   : > { %v4130_v63 = vpop.xlane.xlu0 %4129  ;;  %v4401_v14 = vadd.f32 %v14963_v61, %v14961_v45 }
 0x470   : > { %11176 = vpow2.f32 %v4290_v24  ;;  %v4218_v17 = vsub.f32 %v14787_v51, %v4130_v63  ;;  %v4219_v48 = vsub.f32 %v14789_v35, %v4130_v63 }
 0x471   : > { %v14969_v54 = vpop.eup %11164  ;;  %11178 = vpow2.f32 %v4292_v53  ;;  %4402 = vadd.xlane.f32.xlu1 %v4401_v14 }
 0x472   : > { %v14971_v34 = vpop.eup %11166  ;;  %v4294_v9 = vmul.f32 1.442695, %v4218_v17  ;;  %v4296_v13 = vmul.f32 1.442695, %v4219_v48 }
 0x473   : > { %v4133_v18 = vpop.xlane.xlu1 %4132  ;;  %v4404_v5 = vadd.f32 %v14971_v34, %v14969_v54 }
 0x474   : > { %11180 = vpow2.f32 %v4294_v9  ;;  %v4220_v1 = vsub.f32 %v14793_v29, %v4133_v18  ;;  %v4221_v0 = vsub.f32 %v14795_v22, %v4133_v18 }
 0x475   : > { %v14977_v51 = vpop.eup %11168  ;;  %11182 = vpow2.f32 %v4296_v13  ;;  %4405 = vadd.xlane.f32.xlu1 %v4404_v5 }
 0x476   : > { %v14979_v35 = vpop.eup %11170  ;;  %v4298_v43 = vmul.f32 1.442695, %v4220_v1  ;;  %v4300_v55 = vmul.f32 1.442695, %v4221_v0 }
 0x477   : > { %v4136_v19 = vpop.xlane.xlu0 %4135  ;;  %v4407_v8 = vadd.f32 %v14979_v35, %v14977_v51 }
 0x478   : > { %11184 = vpow2.f32 %v4298_v43  ;;  %v4222_v56 = vsub.f32 %v14799_v12, %v4136_v19  ;;  %v4223_v37 = vsub.f32 %v14801_v31, %v4136_v19 }
 0x479   : > { %v14985_v29 = vpop.eup %11172  ;;  %11186 = vpow2.f32 %v4300_v55  ;;  %4408 = vadd.xlane.f32.xlu1 %v4407_v8 }
 0x47a   : > { %v14987_v22 = vpop.eup %11174  ;;  %v4302_v59 = vmul.f32 1.442695, %v4222_v56  ;;  %v4304_v24 = vmul.f32 1.442695, %v4223_v37 }
 0x47b   : > { %v4139_v53 = vpop.xlane.xlu1 %4138  ;;  %v4410_v63 = vadd.f32 %v14987_v22, %v14985_v29 }
 0x47c   : > { %11188 = vpow2.f32 %v4302_v59  ;;  %v4224_v14 = vsub.f32 %v14805_v50, %v4139_v53  ;;  %v4225_v17 = vsub.f32 %v14807_v10, %v4139_v53 }
 0x47d   : > { %v14993_v12 = vpop.eup %11176  ;;  %11190 = vpow2.f32 %v4304_v24  ;;  %4411 = vadd.xlane.f32.xlu1 %v4410_v63 }
 0x47e   : > { %v14995_v31 = vpop.eup %11178  ;;  %v4306_v48 = vmul.f32 1.442695, %v4224_v14  ;;  %v4308_v9 = vmul.f32 1.442695, %v4225_v17 }
 0x47f   : > { %v4142_v13 = vpop.xlane.xlu0 %4141  ;;  %v4413_v18 = vadd.f32 %v14995_v31, %v14993_v12 }
 0x480   : > { %11192 = vpow2.f32 %v4306_v48  ;;  %v4226_v5 = vsub.f32 %v14811_v27, %v4142_v13  ;;  %v4227_v1 = vsub.f32 %v14813_v2, %v4142_v13 }
 0x481   : > { %v15001_v50 = vpop.eup %11180  ;;  %11194 = vpow2.f32 %v4308_v9  ;;  %4414 = vadd.xlane.f32.xlu1 %v4413_v18 }
 0x482   : > { %v15003_v10 = vpop.eup %11182  ;;  %v4310_v0 = vmul.f32 1.442695, %v4226_v5  ;;  %v4312_v43 = vmul.f32 1.442695, %v4227_v1 }
 0x483   : > { %v4145_v55 = vpop.xlane.xlu1 %4144  ;;  %v4416_v19 = vadd.f32 %v15003_v10, %v15001_v50 }
 0x484   : > { %11196 = vpow2.f32 %v4310_v0  ;;  %v4228_v8 = vsub.f32 %v14817_v20, %v4145_v55  ;;  %v4229_v56 = vsub.f32 %v14819_v32, %v4145_v55 }
 0x485   : > { %v15009_v27 = vpop.eup %11184  ;;  %11198 = vpow2.f32 %v4312_v43  ;;  %4417 = vadd.xlane.f32.xlu1 %v4416_v19 }
 0x486   : > { %v15011_v2 = vpop.eup %11186  ;;  %v4314_v37 = vmul.f32 1.442695, %v4228_v8  ;;  %v4316_v59 = vmul.f32 1.442695, %v4229_v56 }
 0x487   : > { %v4148_v24 = vpop.xlane.xlu0 %4147  ;;  %v4419_v53 = vadd.f32 %v15011_v2, %v15009_v27 }
 0x488   : > { %11200 = vpow2.f32 %v4314_v37  ;;  %v4230_v63 = vsub.f32 %v14823_v38, %v4148_v24  ;;  %v4231_v14 = vsub.f32 %v14825_v23, %v4148_v24 }
 0x489   : > { %v15017_v20 = vpop.eup %11188  ;;  %11202 = vpow2.f32 %v4316_v59  ;;  %4420 = vadd.xlane.f32.xlu1 %v4419_v53 }
 0x48a   : > { %v15019_v32 = vpop.eup %11190  ;;  %v4318_v17 = vmul.f32 1.442695, %v4230_v63  ;;  %v4320_v48 = vmul.f32 1.442695, %v4231_v14 }
 0x48b   : > { %v4151_v9 = vpop.xlane.xlu1 %4150  ;;  %v4422_v13 = vadd.f32 %v15019_v32, %v15017_v20 }
 0x48c   : > { %11204 = vpow2.f32 %v4318_v17  ;;  %v4232_v18 = vsub.f32 %v14829_v47, %v4151_v9  ;;  %v4233_v5 = vsub.f32 %v14831_v52, %v4151_v9 }
 0x48d   : > { %v15025_v38 = vpop.eup %11192  ;;  %11206 = vpow2.f32 %v4320_v48  ;;  %4423 = vadd.xlane.f32.xlu1 %v4422_v13 }
 0x48e   : > { %v15027_v23 = vpop.eup %11194  ;;  %v4322_v1 = vmul.f32 1.442695, %v4232_v18  ;;  %v4324_v0 = vmul.f32 1.442695, %v4233_v5 }
 0x48f   : > { %v4154_v43 = vpop.xlane.xlu0 %4153  ;;  %v4425_v55 = vadd.f32 %v15027_v23, %v15025_v38 }
 0x490   : > { %11208 = vpow2.f32 %v4322_v1  ;;  %v4234_v19 = vsub.f32 %v14835_v41, %v4154_v43  ;;  %v4235_v8 = vsub.f32 %v14837_v42, %v4154_v43 }
 0x491   : > { %v15033_v47 = vpop.eup %11196  ;;  %11210 = vpow2.f32 %v4324_v0  ;;  %4426 = vadd.xlane.f32.xlu1 %v4425_v55 }
 0x492   : > { %v15035_v52 = vpop.eup %11198  ;;  %v4326_v56 = vmul.f32 1.442695, %v4234_v19  ;;  %v4328_v37 = vmul.f32 1.442695, %v4235_v8 }
 0x493   : > { %v4157_v59 = vpop.xlane.xlu1 %4156  ;;  %v4428_v24 = vadd.f32 %v15035_v52, %v15033_v47 }
 0x494   : > { %11212 = vpow2.f32 %v4326_v56  ;;  %v4236_v53 = vsub.f32 %v14841_v36, %v4157_v59  ;;  %v4237_v63 = vsub.f32 %v14843_v40, %v4157_v59 }
 0x495   : > { %v15041_v41 = vpop.eup %11200  ;;  %11214 = vpow2.f32 %v4328_v37  ;;  %4429 = vadd.xlane.f32.xlu0 %v4428_v24 }
 0x496   : > { %v15043_v42 = vpop.eup %11202  ;;  %v4330_v14 = vmul.f32 1.442695, %v4236_v53  ;;  %v4332_v17 = vmul.f32 1.442695, %v4237_v63 }
 0x497   : > { %v4160_v48 = vpop.xlane.xlu0 %4159  ;;  %v4431_v9 = vadd.f32 %v15043_v42, %v15041_v41 }
 0x498   : > { %11216 = vpow2.f32 %v4330_v14  ;;  %v4238_v13 = vsub.f32 %v14847_v6, %v4160_v48  ;;  %v4239_v18 = vsub.f32 %v14849_v39, %v4160_v48 }
 0x499   : > { %v15049_v36 = vpop.eup %11204  ;;  %11218 = vpow2.f32 %v4332_v17  ;;  %4432 = vadd.xlane.f32.xlu1 %v4431_v9 }
 0x49a   : > { %v15051_v40 = vpop.eup %11206  ;;  %v4334_v5 = vmul.f32 1.442695, %v4238_v13  ;;  %v4336_v1 = vmul.f32 1.442695, %v4239_v18 }
 0x49b   : > { %v4163_v0 = vpop.xlane.xlu1 %4162  ;;  %v4434_v43 = vadd.f32 %v15051_v40, %v15049_v36 }
 0x49c   : > { %11220 = vpow2.f32 %v4334_v5  ;;  %v4240_v55 = vsub.f32 %v14853_v46, %v4163_v0  ;;  %v4241_v19 = vsub.f32 %v14855_v21, %v4163_v0 }
 0x49d   : > { %v15057_v6 = vpop.eup %11208  ;;  %11222 = vpow2.f32 %v4336_v1  ;;  %4435 = vadd.xlane.f32.xlu0 %v4434_v43 }
 0x49e   : > { %v15059_v39 = vpop.eup %11210  ;;  %v4338_v8 = vmul.f32 1.442695, %v4240_v55  ;;  %v4340_v56 = vmul.f32 1.442695, %v4241_v19 }
 0x49f   : > { %v4166_v37 = vpop.xlane.xlu0 %4165  ;;  %v4437_v59 = vadd.f32 %v15059_v39, %v15057_v6 }
 0x4a0   : > { %11224 = vpow2.f32 %v4338_v8  ;;  %v4242_v24 = vsub.f32 %v14859_v62, %v4166_v37  ;;  %v4243_v53 = vsub.f32 %v14861_v60, %v4166_v37 }
 0x4a1   : > { %v15065_v46 = vpop.eup %11212  ;;  %11226 = vpow2.f32 %v4340_v56  ;;  %4438 = vadd.xlane.f32.xlu1 %v4437_v59 }
 0x4a2   : > { %v15067_v21 = vpop.eup %11214  ;;  %v4342_v63 = vmul.f32 1.442695, %v4242_v24  ;;  %v4344_v14 = vmul.f32 1.442695, %v4243_v53 }
 0x4a3   : > { %v4169_v17 = vpop.xlane.xlu1 %4168  ;;  %v4440_v48 = vadd.f32 %v15067_v21, %v15065_v46 }
 0x4a4   : > { %11228 = vpow2.f32 %v4342_v63  ;;  %v4244_v9 = vsub.f32 %v14865_v28, %v4169_v17  ;;  %v4245_v13 = vsub.f32 %v14867_v44, %v4169_v17 }
 0x4a5   : > { %v15073_v62 = vpop.eup %11216  ;;  %11230 = vpow2.f32 %v4344_v14  ;;  %4441 = vadd.xlane.f32.xlu0 %v4440_v48 }
 0x4a6   : > { %v15075_v60 = vpop.eup %11218  ;;  %v4346_v18 = vmul.f32 1.442695, %v4244_v9  ;;  %v4348_v5 = vmul.f32 1.442695, %v4245_v13 }
 0x4a7   : > { %v4172_v1 = vpop.xlane.xlu0 %4171  ;;  %v4443_v0 = vadd.f32 %v15075_v60, %v15073_v62 }
 0x4a8   : > { %11232 = vpow2.f32 %v4346_v18  ;;  %v4246_v43 = vsub.f32 %v14871_v3, %v4172_v1  ;;  %v4247_v55 = vsub.f32 %v14873_v25, %v4172_v1 }
 0x4a9   : > { %v15081_v28 = vpop.eup %11220  ;;  %11234 = vpow2.f32 %v4348_v5  ;;  %4444 = vadd.xlane.f32.xlu1 %v4443_v0 }
 0x4aa   : > { %v15083_v44 = vpop.eup %11222  ;;  %v4350_v19 = vmul.f32 1.442695, %v4246_v43  ;;  %v4352_v8 = vmul.f32 1.442695, %v4247_v55 }
 0x4ab   : > { %v4175_v56 = vpop.xlane.xlu1 %4174  ;;  %v4446_v37 = vadd.f32 %v15083_v44, %v15081_v28 }
 0x4ac   : > { %11236 = vpow2.f32 %v4350_v19  ;;  %v4248_v59 = vsub.f32 %v14877_v49, %v4175_v56  ;;  %v4249_v24 = vsub.f32 %v14879_v15, %v4175_v56 }
 0x4ad   : > { %v15089_v3 = vpop.eup %11224  ;;  %11238 = vpow2.f32 %v4352_v8  ;;  %4447 = vadd.xlane.f32.xlu0 %v4446_v37 }
 0x4ae   : > { %v15091_v25 = vpop.eup %11226  ;;  %v4354_v53 = vmul.f32 1.442695, %v4248_v59  ;;  %v4356_v63 = vmul.f32 1.442695, %v4249_v24 }
 0x4af   : > { %v4178_v14 = vpop.xlane.xlu0 %4177  ;;  %v4449_v17 = vadd.f32 %v15091_v25, %v15089_v3 }
 0x4b0   : > { %11240 = vpow2.f32 %v4354_v53  ;;  %v4250_v48 = vsub.f32 %v14883_v16, %v4178_v14  ;;  %v4251_v9 = vsub.f32 %v14885_v33, %v4178_v14 }
 0x4b1   : > { %v15097_v49 = vpop.eup %11228  ;;  %11242 = vpow2.f32 %v4356_v63  ;;  %4450 = vadd.xlane.f32.xlu1 %v4449_v17  ;;  %v18384_v17 = vld [vmem:[#allocation57_spill] sm:$0xff] }
 0x4b2   : > { %v15099_v15 = vpop.eup %11230  ;;  %v4358_v13 = vmul.f32 1.442695, %v4250_v48  ;;  %v4360_v18 = vmul.f32 1.442695, %v4251_v9  ;;  %v18385_v9 = vld [vmem:[#allocation63_spill] sm:$0xff] }
 0x4b3   : > { %v4181_v5 = vpop.xlane.xlu0 %4180  ;;  %v4452_v1 = vadd.f32 %v15099_v15, %v15097_v49 }
 0x4b4   : > { %11244 = vpow2.f32 %v4358_v13  ;;  %v4252_v0 = vsub.f32 %v14889_v11, %v4181_v5  ;;  %v4253_v43 = vsub.f32 %v14891_v7, %v4181_v5 }
 0x4b5   : > { %v15105_v16 = vpop.eup %11232  ;;  %11246 = vpow2.f32 %v4360_v18  ;;  %4453 = vadd.xlane.f32.xlu0 %v4452_v1 }
 0x4b6   : > { %v15107_v33 = vpop.eup %11234  ;;  %v4362_v55 = vmul.f32 1.442695, %v4252_v0  ;;  %v4364_v19 = vmul.f32 1.442695, %v4253_v43  ;;  %v18386_v43 = vld [vmem:[#allocation61_spill] sm:$0xff] }
 0x4b7   : > { %v4184_v8 = vpop.xlane.xlu0 %4183  ;;  %v4455_v56 = vadd.f32 %v15107_v33, %v15105_v16 }
 0x4b8   : > { %11248 = vpow2.f32 %v4362_v55  ;;  %v4254_v37 = vsub.f32 %v14895_v4, %v4184_v8  ;;  %v4255_v59 = vsub.f32 %v14897_v58, %v4184_v8 }
 0x4b9   : > { %v15113_v11 = vpop.eup %11236  ;;  %11250 = vpow2.f32 %v4364_v19  ;;  %4456 = vadd.xlane.f32.xlu1 %v4455_v56  ;;  %v18387_v19 = vld [vmem:[#allocation67_spill] sm:$0xff] }
 0x4ba   : > { %v15115_v7 = vpop.eup %11238  ;;  %v4366_v24 = vmul.f32 1.442695, %v4254_v37  ;;  %v4368_v53 = vmul.f32 1.442695, %v4255_v59 }
 0x4bb   : > { %v4187_v63 = vpop.xlane.xlu0 %4186  ;;  %v4458_v14 = vadd.f32 %v15115_v7, %v15113_v11 }
 0x4bc   : > { %11252 = vpow2.f32 %v4366_v24  ;;  %v4256_v48 = vsub.f32 %v18384_v17, %v4187_v63  ;;  %v4257_v13 = vsub.f32 %v18385_v9, %v4187_v63 }
 0x4bd   : > { %v15121_v4 = vpop.eup %11240  ;;  %11254 = vpow2.f32 %v4368_v53  ;;  %4459 = vadd.xlane.f32.xlu0 %v4458_v14  ;;  %v18388_v14 = vld [vmem:[#allocation65_spill] sm:$0xff] }
 0x4be   : > { %v15123_v58 = vpop.eup %11242  ;;  %v4370_v18 = vmul.f32 1.442695, %v4256_v48  ;;  %v4372_v5 = vmul.f32 1.442695, %v4257_v13  ;;  %v18389_v48 = vld [vmem:[#allocation257_spill] sm:$0xff] }
 0x4bf   : > { %v4190_v1 = vpop.xlane.xlu0 %4189  ;;  %v4461_v0 = vadd.f32 %v15123_v58, %v15121_v4 }
 0x4c0   : > { %11256 = vpow2.f32 %v4370_v18  ;;  %v4258_v55 = vsub.f32 %v18386_v43, %v4190_v1  ;;  %v4259_v8 = vsub.f32 %v18387_v19, %v4190_v1 }
 0x4c1   : > { %v15129_v56 = vpop.eup %11244  ;;  %11258 = vpow2.f32 %v4372_v5  ;;  %4462 = vadd.xlane.f32.xlu1 %v4461_v0 }
 0x4c2   : > { %v15131_v37 = vpop.eup %11246  ;;  %v4374_v59 = vmul.f32 1.442695, %v4258_v55  ;;  %v4376_v24 = vmul.f32 1.442695, %v4259_v8  ;;  %v18392_v55 = vld [vmem:[#allocation258_spill] sm:$0xff]  ;;  %v18393_v8 = vld [vmem:[#allocation259_spill] sm:$0xff] }
 0x4c3   : > { %v4193_v53 = vpop.xlane.xlu0 %4192  ;;  %v4464_v63 = vadd.f32 %v15131_v37, %v15129_v56 }
 0x4c4   : > { %11260 = vpow2.f32 %v4374_v59  ;;  %v4260_v17 = vsub.f32 %v18388_v14, %v4193_v53  ;;  %v4261_v9 = vsub.f32 %v18389_v48, %v4193_v53 }
 0x4c5   : > { %v15137_v13 = vpop.eup %11248  ;;  %11262 = vpow2.f32 %v4376_v24  ;;  %4465 = vadd.xlane.f32.xlu0 %v4464_v63 }
 0x4c6   : > { %18390 = vst [vmem:[#allocation57_spill] sm:$0xff] %v15137_v13  ;;  %v15139_v18 = vpop.eup %11250  ;;  %v4378_v5 = vmul.f32 1.442695, %v4260_v17  ;;  %v4380_v1 = vmul.f32 1.442695, %v4261_v9  ;;  %v18396_v9 = vld [vmem:[#allocation260_spill] sm:$0xff] }
 0x4c7   : > { %18391 = vst [vmem:[#allocation63_spill] sm:$0xff] %v15139_v18  ;;  %v4196_v0 = vpop.xlane.xlu0 %4195  ;;  %v4467_v43 = vadd.f32 %v15139_v18, %v15137_v13 }
 0x4c8   : > { %11264 = vpow2.f32 %v4378_v5  ;;  %v4262_v19 = vsub.f32 %v18392_v55, %v4196_v0  ;;  %v4263_v59 = vsub.f32 %v18393_v8, %v4196_v0  ;;  %v18397_v5 = vld [vmem:[#allocation261_spill] sm:$0xff] }
 0x4c9   : > { %v15145_v14 = vpop.eup %11252  ;;  %11266 = vpow2.f32 %v4380_v1  ;;  %4468 = vadd.xlane.f32.xlu1 %v4467_v43 }
 0x4ca   : > { %18394 = vst [vmem:[#allocation61_spill] sm:$0xff] %v15145_v14  ;;  %v15147_v53 = vpop.eup %11254  ;;  %v4382_v24 = vmul.f32 1.442695, %v4262_v19  ;;  %v4384_v63 = vmul.f32 1.442695, %v4263_v59  ;;  %v18399_v59 = vld [vmem:[#allocation262_spill] sm:$0xff] }
 0x4cb   : > { %18395 = vst [vmem:[#allocation67_spill] sm:$0xff] %v15147_v53  ;;  %v4199_v48 = vpop.xlane.xlu0 %4198  ;;  %v4470_v17 = vadd.f32 %v15147_v53, %v15145_v14 }
 0x4cc   : > { %11268 = vpow2.f32 %v4382_v24  ;;  %v4264_v13 = vsub.f32 %v18396_v9, %v4199_v48  ;;  %v4265_v18 = vsub.f32 %v18397_v5, %v4199_v48  ;;  %v18400_v24 = vld [vmem:[#allocation263_spill] sm:$0xff] }
 0x4cd   : > { %v15153_v55 = vpop.eup %11256  ;;  %11270 = vpow2.f32 %v4384_v63  ;;  %4471 = vadd.xlane.f32.xlu0 %v4470_v17 }
 0x4ce   : > { %18398 = vst [vmem:[#allocation65_spill] sm:$0xff] %v15153_v55  ;;  %v15155_v0 = vpop.eup %11258  ;;  %v4386_v1 = vmul.f32 1.442695, %v4264_v13  ;;  %v4388_v43 = vmul.f32 1.442695, %v4265_v18 }
 0x4cf   : > { %v4202_v8 = vpop.xlane.xlu0 %4201  ;;  %v4473_v19 = vadd.f32 %v15155_v0, %v15153_v55 }
 0x4d0   : > { %11272 = vpow2.f32 %v4386_v1  ;;  %v4266_v14 = vsub.f32 %v18399_v59, %v4202_v8  ;;  %v4267_v53 = vsub.f32 %v18400_v24, %v4202_v8  ;;  %v18401_v1 = vld [vmem:[#allocation264_spill] sm:$0xff] }
 0x4d1   : > { %v15161_v9 = vpop.eup %11260  ;;  %11274 = vpow2.f32 %v4388_v43  ;;  %4474 = vadd.xlane.f32.xlu1 %v4473_v19 }
 0x4d2   : > { %v15163_v48 = vpop.eup %11262  ;;  %v4390_v63 = vmul.f32 1.442695, %v4266_v14  ;;  %v4392_v17 = vmul.f32 1.442695, %v4267_v53 }
 0x4d3   : > { %v4205_v5 = vpop.xlane.xlu0 %4204  ;;  %v4476_v13 = vadd.f32 %v15163_v48, %v15161_v9 }
 0x4d4   : > { %11276 = vpow2.f32 %v4390_v63  ;;  %v4268_v18 = vsub.f32 %v14937_v57, %v4205_v5  ;;  %v4269_v55 = vsub.f32 %v18401_v1, %v4205_v5 }
 0x4d5   : > { %v15169_v59 = vpop.eup %11264  ;;  %11278 = vpow2.f32 %v4392_v17  ;;  %4477 = vadd.xlane.f32.xlu0 %v4476_v13 }
 0x4d6   : > { %18402 = vst [vmem:[#allocation257_spill] sm:$0xff] %v15169_v59  ;;  %v15171_v8 = vpop.eup %11266  ;;  %v4394_v43 = vmul.f32 1.442695, %v4268_v18  ;;  %v4396_v19 = vmul.f32 1.442695, %v4269_v55 }
 0x4d7   : > { %v4479_v14 = vadd.f32 %v15171_v8, %v15169_v59 }
 0x4d8   : > { %11280 = vpow2.f32 %v4394_v43 }
 0x4d9   : > { %v15175_v53 = vpop.eup %11268  ;;  %11282 = vpow2.f32 %v4396_v19  ;;  %4480 = vadd.xlane.f32.xlu1 %v4479_v14 }
 0x4da   : > { %18403 = vst [vmem:[#allocation258_spill] sm:$0xff] %v15175_v53  ;;  %v15177_v24 = vpop.eup %11270 }
 0x4db   : > { %18404 = vst [vmem:[#allocation259_spill] sm:$0xff] %v15177_v24  ;;  %v4482_v57 = vadd.f32 %v15177_v24, %v15175_v53  ;;  %v18411_v53 = vld [vmem:[#allocation82_spill] sm:$0xff]  ;;  %v18412_v24 = vld [vmem:[#allocation221_spill] sm:$0xff] }
 0x4dc   : > { %v3740_v59 = vadd.f32 %v18412_v24, %v18411_v53 }
 0x4dd   : > { %v15181_v63 = vpop.eup %11272  ;;  %4483 = vadd.xlane.f32.xlu0 %v4482_v57 }
 0x4de   : > { %18405 = vst [vmem:[#allocation260_spill] sm:$0xff] %v15181_v63  ;;  %v15183_v17 = vpop.eup %11274 }
 0x4df   : > { %18406 = vst [vmem:[#allocation261_spill] sm:$0xff] %v15183_v17  ;;  %v4485_v55 = vadd.f32 %v15183_v17, %v15181_v63 }
 0x4e1   : > { %v15187_v5 = vpop.eup %11276  ;;  %4486 = vadd.xlane.f32.xlu1 %v4485_v55 }
 0x4e2   : > { %18407 = vst [vmem:[#allocation262_spill] sm:$0xff] %v15187_v5  ;;  %v15189_v13 = vpop.eup %11278 }
 0x4e3   : > { %18408 = vst [vmem:[#allocation263_spill] sm:$0xff] %v15189_v13  ;;  %v4488_v18 = vadd.f32 %v15189_v13, %v15187_v5 }
 0x4e5   : > { %v15193_v1 = vpop.eup %11280  ;;  %4489 = vadd.xlane.f32.xlu0 %v4488_v18 }
 0x4e6   : > { %18409 = vst [vmem:[#allocation264_spill] sm:$0xff] %v15193_v1  ;;  %v15195_v43 = vpop.eup %11282 }
 0x4e7   : > { %18410 = vst [vmem:[#allocation265_spill] sm:$0xff] %v15195_v43  ;;  %v4491_v19 = vadd.f32 %v15195_v43, %v15193_v1  ;;  %v18414_v1 = vld [vmem:[#allocation225_spill] sm:$0xff]  ;;  %v18415_v43 = vld [vmem:[#allocation83_spill] sm:$0xff] }
 0x4e9   : > { %4492 = vadd.xlane.f32.xlu1 %v4491_v19 }
 0x4f6   : > { %v4400_v14 = vpop.xlane.xlu1 %4399 }
 0x4f7   : > { %11284 = vrcp.f32 %v4400_v14  ;;  %v18413_v14 = vld [vmem:[#allocation92_spill] sm:$0xff] }
 0x4fa   : > { %v4403_v57 = vpop.xlane.xlu1 %4402 }
 0x4fb   : > { %11286 = vrcp.f32 %v4403_v57  ;;  %v3755_v57 = vadd.f32 %v18414_v1, %v18413_v14 }
 0x4fe   : > { %v4406_v63 = vpop.xlane.xlu1 %4405 }
 0x4ff   : > { %11288 = vrcp.f32 %v4406_v63 }
 0x502   : > { %v4409_v55 = vpop.xlane.xlu1 %4408 }
 0x503   : > { %11290 = vrcp.f32 %v4409_v55 }
 0x504   : > { %v11285_v17 = vpop.eup %11284 }
 0x505   : > { %v4526_v5 = vmul.f32 %v11285_v17, %v14953_v26  ;;  %v4527_v13 = vmul.f32 %v11285_v17, %v14955_v30  ;;  %v18416_v30 = vld [vmem:[#allocation226_spill] sm:$0xff] }
 0x506   : > { %v4412_v18 = vpop.xlane.xlu1 %4411  ;;  %v3739_v17 = vadd.f32 %v18416_v30, %v18415_v43 }
 0x507   : > { %11292 = vrcp.f32 %v4412_v18  ;;  %4686 = vmatprep.mubr.f32.mxu0 %v4527_v13  ;;  %v18417_v13 = vld [vmem:[#allocation86_spill] sm:$0xff]  ;;  %v18418_v18 = vld [vmem:[#allocation227_spill] sm:$0xff] }
 0x508   : > { %v11287_v19 = vpop.eup %11286  ;;  %4687 = vmatmul.mubr.f32.vlgmr.msra.gmra.mxu0 %v4526_v5  ;;  %v3754_v5 = vadd.f32 %v18418_v18, %v18417_v13 }
 0x509   : > { %9611 = vmatpush3.xpose.msra.mxu0 %v3740_v59  ;;  %v4529_v63 = vmul.f32 %v11287_v19, %v14963_v61  ;;  %v4528_v55 = vmul.f32 %v11287_v19, %v14961_v45  ;;  %v18419_v45 = vld [vmem:[#allocation80_spill] sm:$0xff]  ;;  %v18420_v19 = vld [vmem:[#allocation230_spill] sm:$0xff] }
 0x50a   : > { %9612 = vmatprep.subr.mxu0 %v3755_v57  ;;  %v4415_v26 = vpop.xlane.xlu1 %4414  ;;  %v3738_v57 = vadd.f32 %v18420_v19, %v18419_v45 }
 0x50b   : > { %11294 = vrcp.f32 %v4415_v26  ;;  %4691 = vmatprep.mubr.f32.mxu0 %v4529_v63  ;;  %v18421_v63 = vld [vmem:[#allocation88_spill] sm:$0xff]  ;;  %v18422_v26 = vld [vmem:[#allocation231_spill] sm:$0xff] }
 0x50c   : > { %v11289_v24 = vpop.eup %11288  ;;  %4692 = vmatmul.mubr.f32.gmra.mxu0 %v4528_v55  ;;  %v3753_v55 = vadd.f32 %v18422_v26, %v18421_v63 }
 0x50d   : > { %9613 = vmatpush3.xpose.msra.mxu0 %v3739_v17  ;;  %v4531_v1 = vmul.f32 %v11289_v24, %v14971_v34  ;;  %v4530_v59 = vmul.f32 %v11289_v24, %v14969_v54  ;;  %v18423_v54 = vld [vmem:[#allocation81_spill] sm:$0xff]  ;;  %v18424_v24 = vld [vmem:[#allocation234_spill] sm:$0xff] }
 0x50e   : > { %9614 = vmatprep.subr.mxu0 %v3754_v5  ;;  %v4418_v61 = vpop.xlane.xlu1 %4417  ;;  %v3737_v5 = vadd.f32 %v18424_v24, %v18423_v54 }
 0x50f   : > { %11296 = vrcp.f32 %v4418_v61  ;;  %4696 = vmatprep.mubr.f32.mxu0 %v4531_v1  ;;  %v18425_v1 = vld [vmem:[#allocation84_spill] sm:$0xff]  ;;  %v18426_v61 = vld [vmem:[#allocation235_spill] sm:$0xff] }
 0x510   : > { %v11291_v30 = vpop.eup %11290  ;;  %4697 = vmatmul.mubr.f32.gmra.mxu0 %v4530_v59  ;;  %v3752_v59 = vadd.f32 %v18426_v61, %v18425_v1 }
 0x511   : > { %9615 = vmatpush3.xpose.msra.mxu0 %v3738_v57  ;;  %v4533_v18 = vmul.f32 %v11291_v30, %v14979_v35  ;;  %v4532_v17 = vmul.f32 %v11291_v30, %v14977_v51  ;;  %v18427_v51 = vld [vmem:[#allocation78_spill] sm:$0xff] }
 0x512   : > { %9616 = vmatprep.subr.mxu0 %v3753_v55  ;;  %v4421_v34 = vpop.xlane.xlu1 %4420  ;;  %v18428_v30 = vld [vmem:[#allocation238_spill] sm:$0xff] }
 0x513   : > { %11298 = vrcp.f32 %v4421_v34  ;;  %4701 = vmatprep.mubr.f32.mxu0 %v4533_v18  ;;  %v3736_v55 = vadd.f32 %v18428_v30, %v18427_v51  ;;  %v18429_v18 = vld [vmem:[#allocation85_spill] sm:$0xff]  ;;  %v18430_v34 = vld [vmem:[#allocation239_spill] sm:$0xff] }
 0x514   : > { %v11293_v19 = vpop.eup %11292  ;;  %4702 = vmatmul.mubr.f32.gmra.mxu0 %v4532_v17  ;;  %v3751_v17 = vadd.f32 %v18430_v34, %v18429_v18  ;;  %v18435_v34 = vld [vmem:[#allocation244_spill] sm:$0xff] }
 0x515   : > { %9617 = vmatpush3.xpose.msra.mxu0 %v3737_v5  ;;  %v4535_v26 = vmul.f32 %v11293_v19, %v14987_v22  ;;  %v4534_v57 = vmul.f32 %v11293_v19, %v14985_v29  ;;  %v18431_v29 = vld [vmem:[#allocation79_spill] sm:$0xff]  ;;  %v18432_v19 = vld [vmem:[#allocation242_spill] sm:$0xff] }
 0x516   : > { %9618 = vmatprep.subr.mxu0 %v3752_v59  ;;  %v4424_v35 = vpop.xlane.xlu1 %4423  ;;  %v3735_v59 = vadd.f32 %v18432_v19, %v18431_v29 }
 0x517   : > { %11300 = vrcp.f32 %v4424_v35  ;;  %4706 = vmatprep.mubr.f32.mxu0 %v4535_v26  ;;  %v18433_v35 = vld [vmem:[#allocation219_spill] sm:$0xff] }
 0x518   : > { %v11295_v24 = vpop.eup %11294  ;;  %4707 = vmatmul.mubr.f32.gmra.mxu0 %v4534_v57 }
 0x519   : > { %9619 = vmatpush3.xpose.msra.mxu0 %v3736_v55  ;;  %v4537_v61 = vmul.f32 %v11295_v24, %v14995_v31  ;;  %v4536_v5 = vmul.f32 %v11295_v24, %v14993_v12  ;;  %v18434_v31 = vld [vmem:[#allocation76_spill] sm:$0xff] }
 0x51a   : > { %9620 = vmatprep.subr.mxu0 %v3751_v17  ;;  %v4427_v22 = vpop.xlane.xlu1 %4426  ;;  %v3734_v12 = vadd.f32 %v18435_v34, %v18434_v31 }
 0x51b   : > { %11302 = vrcp.f32 %v4427_v22  ;;  %4711 = vmatprep.mubr.f32.mxu0 %v4537_v61  ;;  %v18437_v22 = vld [vmem:[#allocation77_spill] sm:$0xff] }
 0x51c   : > { %v11297_v30 = vpop.eup %11296  ;;  %4712 = vmatmul.mubr.f32.gmra.mxu0 %v4536_v5  ;;  %v18436_v5 = vld [vmem:[#allocation220_spill] sm:$0xff] }
 0x51d   : > { %9621 = vmatpush3.xpose.msra.mxu0 %v3735_v59  ;;  %v4539_v26 = vmul.f32 %v11297_v30, %v15003_v10  ;;  %v4538_v57 = vmul.f32 %v11297_v30, %v15001_v50  ;;  %v18438_v50 = vld [vmem:[#allocation246_spill] sm:$0xff] }
 0x51e   : > { %9622 = vmatprep.subr.mxu0 %v18433_v35  ;;  %v4430_v55 = vpop.xlane.xlu0 %4429  ;;  %v3733_v19 = vadd.f32 %v18438_v50, %v18437_v22  ;;  %v18440_v35 = vld [vmem:[#allocation74_spill] sm:$0xff] }
 0x51f   : > { %11304 = vrcp.f32 %v4430_v55  ;;  %4716 = vmatprep.mubr.f32.mxu0 %v4539_v26 }
 0x520   : > { %v11299_v24 = vpop.eup %11298  ;;  %4717 = vmatmul.mubr.f32.gmra.mxu0 %v4538_v57  ;;  %v18439_v57 = vld [vmem:[#allocation217_spill] sm:$0xff] }
 0x521   : > { %9623 = vmatpush3.xpose.msra.mxu0 %v3734_v12  ;;  %v4541_v17 = vmul.f32 %v11299_v24, %v15011_v2  ;;  %v4540_v61 = vmul.f32 %v11299_v24, %v15009_v27  ;;  %v18441_v27 = vld [vmem:[#allocation248_spill] sm:$0xff] }
 0x522   : > { %9624 = vmatprep.subr.mxu0 %v18436_v5  ;;  %v4433_v10 = vpop.xlane.xlu1 %4432  ;;  %v3732_v55 = vadd.f32 %v18441_v27, %v18440_v35  ;;  %v18444_v5 = vld [vmem:[#allocation250_spill] sm:$0xff] }
 0x523   : > { %11306 = vrcp.f32 %v4433_v10  ;;  %4721 = vmatprep.mubr.f32.mxu0 %v4541_v17  ;;  %v15250_v17 = vld [vmem:[#allocation18 + $0x78] sm:$0xff] }
 0x524   : > { %v11301_v59 = vpop.eup %11300  ;;  %4722 = vmatmul.mubr.f32.gmra.mxu0 %v4540_v61  ;;  %10666 = vmatprep.subr.mxu1 %v15250_v17  ;;  %v18443_v61 = vld [vmem:[#allocation75_spill] sm:$0xff] }
 0x525   : > { %9625 = vmatpush3.xpose.msra.mxu0 %v3733_v19  ;;  %v4543_v30 = vmul.f32 %v11301_v59, %v15019_v32  ;;  %v4542_v26 = vmul.f32 %v11301_v59, %v15017_v20  ;;  %v18442_v32 = vld [vmem:[#allocation218_spill] sm:$0xff]  ;;  %v3731_v10 = vadd.f32 %v18444_v5, %v18443_v61  ;;  %10667 = vmatpush3.msra.mxu1 %v15250_v17  ;;  %v15259_v19 = vld [vmem:[#allocation18 + $0x70] sm:$0xff] }
 0x526   : > { %9626 = vmatprep.subr.mxu0 %v18439_v57  ;;  %v4436_v2 = vpop.xlane.xlu0 %4435  ;;  %v15261_v59 = vld [vmem:[#allocation18 + $0x68] sm:$0xff]  ;;  %10668 = vmatprep.subr.mxu1 %v15259_v19  ;;  %v18446_v57 = vld [vmem:[#allocation72_spill] sm:$0xff] }
 0x527   : > { %11308 = vrcp.f32 %v4436_v2  ;;  %4726 = vmatprep.mubr.f32.mxu0 %v4543_v30  ;;  %v18445_v30 = vld [vmem:[#allocation215_spill] sm:$0xff]  ;;  %v18447_v2 = vld [vmem:[#allocation252_spill] sm:$0xff]  ;;  %10669 = vmatpush3.msra.mxu1 %v15259_v19  ;;  %v18450_v5 = vld [vmem:[#allocation254_spill] sm:$0xff] }
 0x528   : > { %v11303_v34 = vpop.eup %11302  ;;  %4727 = vmatmul.mubr.f32.gmra.mxu0 %v4542_v26  ;;  %v3730_v27 = vadd.f32 %v18447_v2, %v18446_v57  ;;  %10670 = vmatprep.subr.mxu1 %v15261_v59  ;;  %v18452_v2 = vld [vmem:[#allocation70_spill] sm:$0xff] }
 0x529   : > { %9627 = vmatpush3.xpose.msra.mxu0 %v3732_v55  ;;  %v4545_v12 = vmul.f32 %v11303_v34, %v15027_v23  ;;  %v4544_v24 = vmul.f32 %v11303_v34, %v15025_v38  ;;  %10671 = vmatpush3.msra.mxu1 %v15261_v59  ;;  %v15272_v34 = vld [vmem:[#allocation18 + $0x60] sm:$0xff] }
 0x52a   : > { %9628 = vmatprep.subr.mxu0 %v18442_v32  ;;  %v4439_v20 = vpop.xlane.xlu1 %4438  ;;  %10672 = vmatprep.subr.mxu1 %v15272_v34 }
 0x52b   : > { %11310 = vrcp.f32 %v4439_v20  ;;  %4731 = vmatprep.mubr.f32.mxu0 %v4545_v12  ;;  %v15274_v12 = vld [vmem:[#allocation18 + $0x58] sm:$0xff]  ;;  %v18449_v20 = vld [vmem:[#allocation73_spill] sm:$0xff]  ;;  %10673 = vmatpush3.msra.mxu1 %v15272_v34 }
 0x52c   : > { %v11305_v50 = vpop.eup %11304  ;;  %4732 = vmatmul.mubr.f32.gmra.mxu0 %v4544_v24  ;;  %v18448_v24 = vld [vmem:[#allocation216_spill] sm:$0xff]  ;;  %10674 = vmatprep.subr.mxu1 %v15274_v12 }
 0x52d   : > { %9629 = vmatpush3.xpose.msra.mxu0 %v3731_v10  ;;  %v4547_v23 = vmul.f32 %v11305_v50, %v15035_v52  ;;  %v4546_v38 = vmul.f32 %v11305_v50, %v15033_v47  ;;  %v3729_v10 = vadd.f32 %v18450_v5, %v18449_v20  ;;  %10675 = vmatpush3.msra.mxu1 %v15274_v12 }
 0x52e   : > { %9630 = vmatprep.subr.mxu0 %v18445_v30  ;;  %v4442_v26 = vpop.xlane.xlu0 %4441  ;;  %v18451_v30 = vld [vmem:[#allocation213_spill] sm:$0xff] }
 0x52f   : > { %11312 = vrcp.f32 %v4442_v26  ;;  %4736 = vmatprep.mubr.f32.mxu0 %v4547_v23  ;;  %v15285_v23 = vld [vmem:[#allocation18 + $0x50] sm:$0xff] }
 0x530   : > { %v11307_v55 = vpop.eup %11306  ;;  %4737 = vmatmul.mubr.f32.gmra.mxu0 %v4546_v38  ;;  %v15287_v38 = vld [vmem:[#allocation18 + $0x48] sm:$0xff]  ;;  %10676 = vmatprep.subr.mxu1 %v15285_v23 }
 0x531   : > { %9631 = vmatpush3.xpose.msra.mxu0 %v3730_v27  ;;  %v4549_v47 = vmul.f32 %v11307_v55, %v15043_v42  ;;  %v4548_v52 = vmul.f32 %v11307_v55, %v15041_v41  ;;  %v18453_v27 = vld [vmem:[#allocation256_spill] sm:$0xff]  ;;  %10677 = vmatpush3.msra.mxu1 %v15285_v23 }
 0x532   : > { %9632 = vmatprep.subr.mxu0 %v18448_v24  ;;  %v4445_v32 = vpop.xlane.xlu1 %4444  ;;  %v3728_v55 = vadd.f32 %v18453_v27, %v18452_v2  ;;  %10678 = vmatprep.subr.mxu1 %v15287_v38  ;;  %v15300_v24 = vld [vmem:[#allocation18 + $0x38] sm:$0xff]  ;;  %v18457_v27 = vld [vmem:[#allocation209_spill] sm:$0xff] }
 0x533   : > { %11314 = vrcp.f32 %v4445_v32  ;;  %4741 = vmatprep.mubr.f32.mxu0 %v4549_v47  ;;  %10679 = vmatpush3.msra.mxu1 %v15287_v38  ;;  %v18454_v32 = vld [vmem:[#allocation214_spill] sm:$0xff] }
 0x534   : > { %v11309_v42 = vpop.eup %11308  ;;  %4742 = vmatmul.mubr.f32.gmra.mxu0 %v4548_v52  ;;  %v15298_v52 = vld [vmem:[#allocation18 + $0x40] sm:$0xff] }
 0x535   : > { %9633 = vmatpush3.xpose.msra.mxu0 %v3729_v10  ;;  %v4551_v41 = vmul.f32 %v11309_v42, %v15051_v40  ;;  %v4550_v50 = vmul.f32 %v11309_v42, %v15049_v36  ;;  %10680 = vmatprep.subr.mxu1 %v15298_v52  ;;  %v18455_v10 = vld [vmem:[#allocation71_spill] sm:$0xff]  ;;  %v18456_v42 = vld [vmem:[#allocation161_spill] sm:$0xff] }
 0x536   : > { %9634 = vmatprep.subr.mxu0 %v18451_v30  ;;  %v4448_v26 = vpop.xlane.xlu0 %4447  ;;  %10681 = vmatpush3.msra.mxu1 %v15298_v52  ;;  %v15311_v30 = vld [vmem:[#allocation18 + $0x30] sm:$0xff] }
 0x537   : > { %11316 = vrcp.f32 %v4448_v26  ;;  %4746 = vmatprep.mubr.f32.mxu0 %v4551_v41  ;;  %v3727_v41 = vadd.f32 %v18456_v42, %v18455_v10  ;;  %10682 = vmatprep.subr.mxu1 %v15300_v24  ;;  %v15313_v26 = vld [vmem:[#allocation18 + $0x28] sm:$0xff]  ;;  %v15326_v42 = vld [vmem:[#allocation18 + $0x18] sm:$0xff] }
 0x538   : > { %v11311_v40 = vpop.eup %11310  ;;  %4747 = vmatmul.mubr.f32.gmra.mxu0 %v4550_v50  ;;  %10683 = vmatpush3.msra.mxu1 %v15300_v24 }
 0x539   : > { %9635 = vmatpush3.xpose.msra.mxu0 %v3728_v55  ;;  %v4553_v36 = vmul.f32 %v11311_v40, %v15059_v39  ;;  %v4552_v47 = vmul.f32 %v11311_v40, %v15057_v6  ;;  %10684 = vmatprep.subr.mxu1 %v15311_v30  ;;  %v18458_v40 = vld [vmem:[#allocation68_spill] sm:$0xff] }
 0x53a   : > { %9636 = vmatprep.subr.mxu0 %v18454_v32  ;;  %v4451_v5 = vpop.xlane.xlu1 %4450  ;;  %10685 = vmatpush3.msra.mxu1 %v15311_v30 }
 0x53b   : > { %11318 = vrcp.f32 %v4451_v5  ;;  %4751 = vmatprep.mubr.f32.mxu0 %v4553_v36  ;;  %v18459_v36 = vld [vmem:[#allocation204_spill] sm:$0xff]  ;;  %10686 = vmatprep.subr.mxu1 %v15313_v26  ;;  %v15324_v5 = vld [vmem:[#allocation18 + $0x20] sm:$0xff] }
 0x53c   : > { %v11313_v39 = vpop.eup %11312  ;;  %4752 = vmatmul.mubr.f32.gmra.mxu0 %v4552_v47  ;;  %v3726_v47 = vadd.f32 %v18459_v36, %v18458_v40  ;;  %10687 = vmatpush3.msra.mxu1 %v15313_v26  ;;  %v15337_v36 = vld [vmem:[#allocation18 + $0x10] sm:$0xff] }
 0x53d   : > { %9637 = vmatpush3.xpose.msra.mxu0 %v3727_v41  ;;  %v4555_v6 = vmul.f32 %v11313_v39, %v15067_v21  ;;  %v4554_v50 = vmul.f32 %v11313_v39, %v15065_v46  ;;  %v18460_v41 = vld [vmem:[#allocation210_spill] sm:$0xff]  ;;  %10688 = vmatprep.subr.mxu1 %v15324_v5 }
 0x53e   : > { %9638 = vmatprep.subr.mxu0 %v18457_v27  ;;  %v4454_v55 = vpop.xlane.xlu0 %4453  ;;  %10689 = vmatpush3.msra.mxu1 %v15324_v5 }
 0x53f   : > { %11320 = vrcp.f32 %v4454_v55  ;;  %4756 = vmatprep.mubr.f32.mxu0 %v4555_v6  ;;  %v18461_v6 = vld [vmem:[#allocation69_spill] sm:$0xff]  ;;  %10690 = vmatprep.subr.mxu1 %v15326_v42 }
 0x540   : > { %v11315_v21 = vpop.eup %11314  ;;  %4757 = vmatmul.mubr.f32.gmra.mxu0 %v4554_v50  ;;  %v18462_v50 = vld [vmem:[#allocation211_spill] sm:$0xff]  ;;  %10691 = vmatpush3.msra.mxu1 %v15326_v42 }
 0x541   : > { %9639 = vmatpush3.xpose.msra.mxu0 %v3726_v47  ;;  %v4557_v46 = vmul.f32 %v11315_v21, %v15075_v60  ;;  %v4556_v32 = vmul.f32 %v11315_v21, %v15073_v62  ;;  %v3725_v27 = vadd.f32 %v18462_v50, %v18461_v6  ;;  %10692 = vmatprep.subr.mxu1 %v15337_v36 }
 0x542   : > { %9640 = vmatprep.subr.mxu0 %v18460_v41  ;;  %v4457_v39 = vpop.xlane.xlu1 %4456  ;;  %10693 = vmatpush3.msra.mxu1 %v15337_v36  ;;  %v15348_v41 = vld [vmem:[#allocation18] sm:$0xff] }
 0x543   : > { %11322 = vrcp.f32 %v4457_v39  ;;  %4761 = vmatprep.mubr.f32.mxu0 %v4557_v46  ;;  %v15342_v46 = vld [vmem:[#allocation18 + $0x8] sm:$0xff] }
 0x544   : > { %v11317_v60 = vpop.eup %11316  ;;  %4762 = vmatmul.mubr.f32.gmra.mxu0 %v4556_v32  ;;  %10694 = vmatprep.subr.mxu1 %v15342_v46 }
 0x545   : > { %9641 = vmatpush3.xpose.msra.mxu0 %v3725_v27  ;;  %v4559_v62 = vmul.f32 %v11317_v60, %v15083_v44  ;;  %v4558_v55 = vmul.f32 %v11317_v60, %v15081_v28  ;;  %10695 = vmatpush3.msra.mxu1 %v15342_v46 }
 0x546   : > { %v4460_v47 = vpop.xlane.xlu0 %4459  ;;  %10746 = vmatprep.subr.mxu0 %v15250_v17  ;;  %10696 = vmatprep.subr.mxu1 %v15348_v41 }
 0x547   : > { %11324 = vrcp.f32 %v4460_v47  ;;  %4766 = vmatprep.mubr.f32.mxu0 %v4559_v62  ;;  %10697 = vmatpush3.msra.mxu1 %v15348_v41 }
 0x548   : > { %v11319_v21 = vpop.eup %11318  ;;  %4767 = vmatmul.mubr.f32.gmra.mxu0 %v4558_v55 }
 0x549   : > { %v4561_v44 = vmul.f32 %v11319_v21, %v15091_v25  ;;  %v4560_v28 = vmul.f32 %v11319_v21, %v15089_v3  ;;  %v18463_v3 = vmov 0.0  }
 0x54a   : > { %v4463_v32 = vpop.xlane.xlu1 %4462  ;;  %6152 = vmatprep.subr.mxu1 %v18463_v3 }
 0x54b   : > { %11326 = vrcp.f32 %v4463_v32  ;;  %4771 = vmatprep.mubr.f32.mxu0 %v4561_v44 }
 0x54c   : > { %v11321_v39 = vpop.eup %11320  ;;  %4772 = vmatmul.mubr.f32.gmra.mxu0 %v4560_v28 }
 0x54d   : > { %v4563_v50 = vmul.f32 %v11321_v39, %v15099_v15  ;;  %v4562_v25 = vmul.f32 %v11321_v39, %v15097_v49 }
 0x54e   : > { %v4466_v27 = vpop.xlane.xlu0 %4465 }
 0x54f   : > { %11328 = vrcp.f32 %v4466_v27  ;;  %4776 = vmatprep.mubr.f32.mxu0 %v4563_v50  ;;  %v18464_v27 = vld [vmem:[#allocation63_spill] sm:$0xff] }
 0x550   : > { %v11323_v60 = vpop.eup %11322  ;;  %4777 = vmatmul.mubr.f32.gmra.mxu0 %v4562_v25 }
 0x551   : > { %v4565_v62 = vmul.f32 %v11323_v60, %v15107_v33  ;;  %v4564_v55 = vmul.f32 %v11323_v60, %v15105_v16 }
 0x552   : > { %v4469_v47 = vpop.xlane.xlu1 %4468 }
 0x553   : > { %11330 = vrcp.f32 %v4469_v47  ;;  %4781 = vmatprep.mubr.f32.mxu0 %v4565_v62  ;;  %v18465_v62 = vld [vmem:[#allocation57_spill] sm:$0xff]  ;;  %v18466_v47 = vld [vmem:[#allocation67_spill] sm:$0xff] }
 0x554   : > { %v11325_v21 = vpop.eup %11324  ;;  %4782 = vmatmul.mubr.f32.gmra.mxu0 %v4564_v55 }
 0x555   : > { %v4567_v15 = vmul.f32 %v11325_v21, %v15115_v7  ;;  %v4566_v49 = vmul.f32 %v11325_v21, %v15113_v11 }
 0x556   : > { %v4472_v44 = vpop.xlane.xlu0 %4471 }
 0x557   : > { %11332 = vrcp.f32 %v4472_v44  ;;  %4786 = vmatprep.mubr.f32.mxu0 %v4567_v15  ;;  %v18467_v15 = vld [vmem:[#allocation61_spill] sm:$0xff] }
 0x558   : > { %v11327_v28 = vpop.eup %11326  ;;  %4787 = vmatmul.mubr.f32.gmra.mxu0 %v4566_v49 }
 0x559   : > { %v4569_v32 = vmul.f32 %v11327_v28, %v15123_v58  ;;  %v4568_v33 = vmul.f32 %v11327_v28, %v15121_v4  ;;  %v18468_v28 = vld [vmem:[#allocation65_spill] sm:$0xff] }
 0x55a   : > { %v4475_v39 = vpop.xlane.xlu1 %4474 }
 0x55b   : > { %11334 = vrcp.f32 %v4475_v39  ;;  %4791 = vmatprep.mubr.f32.mxu0 %v4569_v32 }
 0x55c   : > { %v11329_v16 = vpop.eup %11328  ;;  %4792 = vmatmul.mubr.f32.gmra.mxu0 %v4568_v33 }
 0x55d   : > { %v4571_v50 = vmul.f32 %v11329_v16, %v15131_v37  ;;  %v4570_v7 = vmul.f32 %v11329_v16, %v15129_v56 }
 0x55e   : > { %v4478_v25 = vpop.xlane.xlu0 %4477 }
 0x55f   : > { %11336 = vrcp.f32 %v4478_v25  ;;  %4796 = vmatprep.mubr.f32.mxu0 %v4571_v50 }
 0x560   : > { %v11331_v11 = vpop.eup %11330  ;;  %4797 = vmatmul.mubr.f32.gmra.mxu0 %v4570_v7 }
 0x561   : > { %v4573_v60 = vmul.f32 %v11331_v11, %v18464_v27  ;;  %v4572_v58 = vmul.f32 %v11331_v11, %v18465_v62  ;;  %v18469_v27 = vld [vmem:[#allocation257_spill] sm:$0xff] }
 0x562   : > { %v4481_v55 = vpop.xlane.xlu1 %4480 }
 0x563   : > { %11338 = vrcp.f32 %v4481_v55  ;;  %4801 = vmatprep.mubr.f32.mxu0 %v4573_v60 }
 0x564   : > { %v11333_v4 = vpop.eup %11332  ;;  %4802 = vmatmul.mubr.f32.gmra.mxu0 %v4572_v58  ;;  %v18470_v58 = vld [vmem:[#allocation259_spill] sm:$0xff] }
 0x565   : > { %v4575_v21 = vmul.f32 %v11333_v4, %v18466_v47  ;;  %v4574_v37 = vmul.f32 %v11333_v4, %v18467_v15  ;;  %v18471_v4 = vld [vmem:[#allocation258_spill] sm:$0xff]  ;;  %v18472_v47 = vld [vmem:[#allocation261_spill] sm:$0xff]  ;;  %v18473_v15 = vld [vmem:[#allocation260_spill] sm:$0xff] }
 0x566   : > { %v4484_v49 = vpop.xlane.xlu0 %4483 }
 0x567   : > { %11340 = vrcp.f32 %v4484_v49  ;;  %4806 = vmatprep.mubr.f32.mxu0 %v4575_v21  ;;  %v18474_v49 = vld [vmem:[#allocation263_spill] sm:$0xff] }
 0x568   : > { %v11335_v56 = vpop.eup %11334  ;;  %4807 = vmatmul.mubr.f32.gmra.mxu0 %v4574_v37 }
 0x569   : > { %v4577_v44 = vmul.f32 %v11335_v56, %v15155_v0  ;;  %v4576_v32 = vmul.f32 %v11335_v56, %v18468_v28 }
 0x56a   : > { %v4487_v33 = vpop.xlane.xlu1 %4486 }
 0x56b   : > { %11342 = vrcp.f32 %v4487_v33  ;;  %4811 = vmatprep.mubr.f32.mxu0 %v4577_v44  ;;  %v18475_v44 = vld [vmem:[#allocation262_spill] sm:$0xff]  ;;  %v18476_v33 = vld [vmem:[#allocation93_spill] sm:$0xff] }
 0x56c   : > { %v11337_v39 = vpop.eup %11336  ;;  %4812 = vmatmul.mubr.f32.gmra.mxu0 %v4576_v32  ;;  %v15382_v32 = vld [vmem:[%s17685_s5 + $0x1] ss:$0 sm:$0xff] }
 0x56d   : > { %v4579_v16 = vmul.f32 %v11337_v39, %v15163_v48  ;;  %v4578_v50 = vmul.f32 %v11337_v39, %v15161_v9  ;;  %v1794_v39 = vadd.f32 %v15382_v32, %v18476_v33  ;;  %v15467_v33 = vld [vmem:[%s18109_s19 + $0x1] ss:$0 sm:$0xff] }
 0x56e   : > { %v4490_v7 = vpop.xlane.xlu0 %4489 }
 0x56f   : > { %11344 = vrcp.f32 %v4490_v7  ;;  %4816 = vmatprep.mubr.f32.mxu0 %v4579_v16 }
 0x570   : > { %v11339_v25 = vpop.eup %11338  ;;  %4817 = vmatmul.mubr.f32.gmra.mxu0 %v4578_v50  ;;  %v18477_v50 = vld [vmem:[#allocation265_spill] sm:$0xff] }
 0x571   : > { %v4581_v11 = vmul.f32 %v11339_v25, %v15171_v8  ;;  %v4580_v0 = vmul.f32 %v11339_v25, %v18469_v27  ;;  %v18478_v25 = vld [vmem:[#allocation264_spill] sm:$0xff]  ;;  %v18479_v27 = vld [vmem:[#allocation90_spill] sm:$0xff] }
 0x572   : > { %v4493_v60 = vpop.xlane.xlu1 %4492 }
 0x573   : > { %11346 = vrcp.f32 %v4493_v60  ;;  %4821 = vmatprep.mubr.f32.mxu0 %v4581_v11  ;;  %v18480_v60 = vld [vmem:[#allocation97_spill] sm:$0xff] }
 0x574   : > { %v11341_v62 = vpop.eup %11340  ;;  %4822 = vmatmul.mubr.f32.gmra.mxu0 %v4580_v0  ;;  %v1954_v0 = vmul.f32 %v18479_v27, %v1794_v39  ;;  %v18498_v39 = vld [vmem:[#allocation120_spill] sm:$0xff] }
 0x575   : > { %v4583_v55 = vmul.f32 %v11341_v62, %v18470_v58  ;;  %v4582_v48 = vmul.f32 %v11341_v62, %v18471_v4  ;;  %v1804_v62 = vadd.f32 %v15382_v32, %v18480_v60  ;;  %v18481_v58 = vld [vmem:[#allocation95_spill] sm:$0xff]  ;;  %v18482_v4 = vld [vmem:[#allocation101_spill] sm:$0xff] }
 0x577   : > { %4826 = vmatprep.mubr.f32.mxu0 %v4583_v55  ;;  %v1956_v55 = vmul.f32 %v18479_v27, %v1804_v62 }
 0x578   : > { %v11343_v9 = vpop.eup %11342  ;;  %4827 = vmatmul.mubr.f32.gmra.mxu0 %v4582_v48  ;;  %v1814_v48 = vadd.f32 %v15382_v32, %v18482_v4  ;;  %v18505_v4 = vld [vmem:[#allocation130_spill] sm:$0xff] }
 0x579   : > { %v4585_v21 = vmul.f32 %v11343_v9, %v18472_v47  ;;  %v4584_v37 = vmul.f32 %v11343_v9, %v18473_v15  ;;  %v18490_v9 = vld [vmem:[#allocation117_spill] sm:$0xff]  ;;  %v18491_v47 = vld [vmem:[#allocation115_spill] sm:$0xff] }
 0x57b   : > { %4831 = vmatprep.mubr.f32.mxu0 %v4585_v21 }
 0x57c   : > { %v11345_v8 = vpop.eup %11344  ;;  %4832 = vmatmul.mubr.f32.gmra.mxu0 %v4584_v37  ;;  %v18493_v37 = vld [vmem:[#allocation119_spill] sm:$0xff] }
 0x57d   : > { %v4587_v56 = vmul.f32 %v11345_v8, %v18474_v49  ;;  %v4586_v28 = vmul.f32 %v11345_v8, %v18475_v44  ;;  %v18494_v49 = vld [vmem:[#allocation123_spill] sm:$0xff] }
 0x57f   : > { %4836 = vmatprep.mubr.f32.mxu0 %v4587_v56  ;;  %v18495_v56 = vld [vmem:[#allocation128_spill] sm:$0xff] }
 0x580   : > { %v11347_v16 = vpop.eup %11346  ;;  %4837 = vmatmul.mubr.f32.gmra.mxu0 %v4586_v28  ;;  %v18497_v28 = vld [vmem:[#allocation126_spill] sm:$0xff] }
 0x581   : > { %v4589_v7 = vmul.f32 %v11347_v16, %v18477_v50  ;;  %v4588_v11 = vmul.f32 %v11347_v16, %v18478_v25  ;;  %v2186_v16 = vadd.f32 %v18498_v39, %v15467_v33  ;;  %v18501_v25 = vld [vmem:[#allocation122_spill] sm:$0xff] }
 0x582   : > { %v18521_v39 = vld [vmem:[#allocation138_spill] sm:$0xff] }
 0x583   : > { %4841 = vmatprep.mubr.f32.mxu0 %v4589_v7  ;;  %v18500_v7 = vld [vmem:[#allocation132_spill] sm:$0xff] }
 0x584   : > { %4842 = vmatmul.mubr.f32.gmra.mxu0 %v4588_v11  ;;  %v2181_v11 = vadd.f32 %v15467_v33, %v18501_v25 }
 0x585   : > { %9642 = vmatprep.mubr.f32.mxu0 %v1954_v0 }
 0x588   : > { %9643 = vmatmul.mubr.f32.vlgmr.msra.gmra.mxu0 %v1954_v0  ;;  %v18502_v0 = vld [vmem:[#allocation116_spill] sm:$0xff] }
 0x589   : > { %9644 = vmatprep.mubr.f32.mxu0 %v18481_v58  ;;  %10747 = vmatpush3.msra.mxu0 %v15250_v17  ;;  %v18483_v17 = vld [vmem:[#allocation99_spill] sm:$0xff]  ;;  %v2176_v60 = vadd.f32 %v18502_v0, %v15467_v33 }
 0x58a   : > { %10748 = vmatprep.subr.mxu0 %v15259_v19 }
 0x58b   : > { %10749 = vmatpush3.msra.mxu0 %v15259_v19  ;;  %v1958_v19 = vmul.f32 %v18479_v27, %v1814_v48 }
 0x58c   : > { %9645 = vmatmul.mubr.f32.gmra.mxu0 %v18481_v58  ;;  %10750 = vmatprep.subr.mxu0 %v15261_v59  ;;  %v18504_v58 = vld [vmem:[#allocation118_spill] sm:$0xff] }
 0x58d   : > { %9646 = vmatprep.mubr.f32.mxu0 %v1956_v55  ;;  %10751 = vmatpush3.msra.mxu0 %v15261_v59  ;;  %v18484_v59 = vld [vmem:[#allocation105_spill] sm:$0xff] }
 0x58e   : > { %10752 = vmatprep.subr.mxu0 %v15272_v34 }
 0x58f   : > { %10753 = vmatpush3.msra.mxu0 %v15272_v34  ;;  %v1824_v34 = vadd.f32 %v15382_v32, %v18484_v59 }
 0x590   : > { %9647 = vmatmul.mubr.f32.gmra.mxu0 %v1956_v55  ;;  %10754 = vmatprep.subr.mxu0 %v15274_v12  ;;  %v2171_v55 = vadd.f32 %v15467_v33, %v18504_v58 }
 0x591   : > { %9648 = vmatprep.mubr.f32.mxu0 %v18483_v17  ;;  %10755 = vmatpush3.msra.mxu0 %v15274_v12  ;;  %v18485_v12 = vld [vmem:[#allocation103_spill] sm:$0xff] }
 0x592   : > { %10756 = vmatprep.subr.mxu0 %v15285_v23 }
 0x593   : > { %10757 = vmatpush3.msra.mxu0 %v15285_v23  ;;  %v1960_v23 = vmul.f32 %v18479_v27, %v1824_v34  ;;  %v18508_v34 = vld [vmem:[#allocation114_spill] sm:$0xff] }
 0x594   : > { %9649 = vmatmul.mubr.f32.gmra.mxu0 %v18483_v17  ;;  %10758 = vmatprep.subr.mxu0 %v15287_v38  ;;  %v18506_v17 = vld [vmem:[#allocation112_spill] sm:$0xff] }
 0x595   : > { %9650 = vmatprep.mubr.f32.mxu0 %v1958_v19  ;;  %10759 = vmatpush3.msra.mxu0 %v15287_v38  ;;  %v18486_v38 = vld [vmem:[#allocation109_spill] sm:$0xff] }
 0x596   : > { %10760 = vmatprep.subr.mxu0 %v15298_v52 }
 0x597   : > { %10761 = vmatpush3.msra.mxu0 %v15298_v52  ;;  %v1834_v52 = vadd.f32 %v15382_v32, %v18486_v38 }
 0x598   : > { %9651 = vmatmul.mubr.f32.gmra.mxu0 %v1958_v19  ;;  %10762 = vmatprep.subr.mxu0 %v15300_v24  ;;  %v2166_v19 = vadd.f32 %v18506_v17, %v15467_v33  ;;  %v18528_v17 = vld [vmem:[#allocation94_spill] sm:$0xff] }
 0x599   : > { %9652 = vmatprep.mubr.f32.mxu0 %v18485_v12  ;;  %10763 = vmatpush3.msra.mxu0 %v15300_v24  ;;  %v18487_v24 = vld [vmem:[#allocation107_spill] sm:$0xff] }
 0x59a   : > { %10764 = vmatprep.subr.mxu0 %v15311_v30 }
 0x59b   : > { %10765 = vmatpush3.msra.mxu0 %v15311_v30  ;;  %v1962_v30 = vmul.f32 %v18479_v27, %v1834_v52  ;;  %v18510_v52 = vld [vmem:[#allocation108_spill] sm:$0xff] }
 0x59c   : > { %9653 = vmatmul.mubr.f32.gmra.mxu0 %v18485_v12  ;;  %10766 = vmatprep.subr.mxu0 %v15313_v26  ;;  %v2161_v12 = vadd.f32 %v15467_v33, %v18508_v34  ;;  %v18529_v34 = vld [vmem:[#allocation142_spill] sm:$0xff] }
 0x59d   : > { %9654 = vmatprep.mubr.f32.mxu0 %v1960_v23  ;;  %10767 = vmatpush3.msra.mxu0 %v15313_v26  ;;  %v18488_v26 = vld [vmem:[#allocation113_spill] sm:$0xff] }
 0x59e   : > { %10768 = vmatprep.subr.mxu0 %v15324_v5 }
 0x59f   : > { %10769 = vmatpush3.msra.mxu0 %v15324_v5  ;;  %v1844_v5 = vadd.f32 %v15382_v32, %v18488_v26  ;;  %v18512_v26 = vld [vmem:[#allocation110_spill] sm:$0xff] }
 0x5a0   : > { %9655 = vmatmul.mubr.f32.gmra.mxu0 %v1960_v23  ;;  %10770 = vmatprep.subr.mxu0 %v15326_v42  ;;  %v18509_v23 = vld [vmem:[#allocation136_spill] sm:$0xff] }
 0x5a1   : > { %9656 = vmatprep.mubr.f32.mxu0 %v18487_v24  ;;  %10771 = vmatpush3.msra.mxu0 %v15326_v42  ;;  %v18489_v42 = vld [vmem:[#allocation111_spill] sm:$0xff] }
 0x5a2   : > { %10772 = vmatprep.subr.mxu0 %v15337_v36 }
 0x5a3   : > { %10773 = vmatpush3.msra.mxu0 %v15337_v36  ;;  %v1964_v36 = vmul.f32 %v18479_v27, %v1844_v5  ;;  %v2151_v5 = vadd.f32 %v15467_v33, %v18512_v26 }
 0x5a4   : > { %9657 = vmatmul.mubr.f32.gmra.mxu0 %v18487_v24  ;;  %10774 = vmatprep.subr.mxu0 %v15342_v46  ;;  %v2156_v24 = vadd.f32 %v18510_v52, %v15467_v33 }
 0x5a5   : > { %9658 = vmatprep.mubr.f32.mxu0 %v1962_v30  ;;  %10775 = vmatpush3.msra.mxu0 %v15342_v46  ;;  %v1854_v46 = vadd.f32 %v15382_v32, %v18490_v9  ;;  %v18514_v9 = vld [vmem:[#allocation104_spill] sm:$0xff] }
 0x5a6   : > { %10776 = vmatprep.subr.mxu0 %v15348_v41 }
 0x5a7   : > { %10777 = vmatpush3.msra.mxu0 %v15348_v41  ;;  %v1966_v21 = vmul.f32 %v18479_v27, %v1854_v46  ;;  %v18492_v41 = vld [vmem:[#allocation121_spill] sm:$0xff]  ;;  %v2146_v46 = vadd.f32 %v18514_v9, %v15467_v33 }
 0x5a8   : > { %9659 = vmatmul.mubr.f32.gmra.mxu0 %v1962_v30  ;;  %7691 = vmatprep.subr.mxu0 %v18463_v3  ;;  %v1864_v15 = vadd.f32 %v15382_v32, %v18492_v41 }
 0x5a9   : > { %9660 = vmatprep.mubr.f32.mxu0 %v18489_v42 }
 0x5aa   : > { %v1968_v8 = vmul.f32 %v18479_v27, %v1864_v15  ;;  %v18517_v15 = vld [vmem:[#allocation140_spill] sm:$0xff] }
 0x5ac   : > { %9661 = vmatmul.mubr.f32.gmra.mxu0 %v18489_v42  ;;  %v18513_v42 = vld [vmem:[#allocation134_spill] sm:$0xff] }
 0x5ad   : > { %9662 = vmatprep.mubr.f32.mxu0 %v1964_v36 }
 0x5b0   : > { %9663 = vmatmul.mubr.f32.gmra.mxu0 %v1964_v36 }
 0x5b1   : > { %9664 = vmatprep.mubr.f32.mxu0 %v18491_v47 }
 0x5b4   : > { %9665 = vmatmul.mubr.f32.gmra.mxu0 %v18491_v47 }
 0x5b5   : > { %9666 = vmatprep.mubr.f32.mxu0 %v1966_v21 }
 0x5b8   : > { %9667 = vmatmul.mubr.f32.gmra.mxu0 %v1966_v21  ;;  %v18516_v21 = vld [vmem:[#allocation106_spill] sm:$0xff] }
 0x5b9   : > { %9668 = vmatprep.mubr.f32.mxu0 %v18493_v37  ;;  %v2141_v41 = vadd.f32 %v15467_v33, %v18516_v21  ;;  %v18536_v21 = vld [vmem:[#allocation149_spill] sm:$0xff] }
 0x5bc   : > { %9669 = vmatmul.mubr.f32.gmra.mxu0 %v18493_v37 }
 0x5bd   : > { %9670 = vmatprep.mubr.f32.mxu0 %v1968_v8 }
 0x5c0   : > { %9671 = vmatmul.mubr.f32.gmra.mxu0 %v1968_v8  ;;  %v18518_v8 = vld [vmem:[#allocation100_spill] sm:$0xff] }
 0x5c1   : > { %9672 = vmatprep.mubr.f32.mxu0 %v18494_v49 }
 0x5c4   : > { %9673 = vmatmul.mubr.f32.gmra.mxu0 %v18494_v49  ;;  %v2136_v49 = vadd.f32 %v18518_v8, %v15467_v33  ;;  %v18538_v8 = vld [vmem:[#allocation143_spill] sm:$0xff] }
 0x5c5   : > { %9674 = vmatprep.mubr.f32.mxu0 %v18495_v56 }
 0x5c8   : > { %v15459_v44 = vpop.f32.mrf.mxu0  ;;  %9675 = vmatmul.mubr.f32.gmra.mxu0 %v18495_v56 }
 0x5c9   : > { %18496 = vst [vmem:[#allocation221_spill] sm:$0xff] %v15459_v44  ;;  %10698 = vmatprep.mubr.f32.mxu1 %v15459_v44  ;;  %9676 = vmatprep.mubr.f32.mxu0 %v18497_v28 }
 0x5ca   : > { %v4690_v32 = vpop.f32.mrf.mxu0 }
 0x5cc   : > { %v15471_v50 = vpop.f32.mrf.mxu0  ;;  %9677 = vmatmul.mubr.f32.gmra.mxu0 %v18497_v28  ;;  %v18520_v28 = vld [vmem:[#allocation102_spill] sm:$0xff] }
 0x5cd   : > { %18499 = vst [vmem:[#allocation225_spill] sm:$0xff] %v15471_v50  ;;  %10699 = vmatmul.mubr.f32.vlgmr.msra.gmra.mxu1 %v15471_v50  ;;  %9678 = vmatprep.mubr.f32.mxu0 %v18500_v7  ;;  %v2131_v32 = vadd.f32 %v15467_v33, %v18520_v28 }
 0x5ce   : > { %6153 = vmatpush1.msra.mxu1 %v2186_v16  ;;  %v4695_v27 = vpop.f32.mrf.mxu0 }
 0x5cf   : > { %6154 = vmatprep.subr.mxu1 %v18463_v3  ;;  %v18524_v27 = vld [vmem:[#allocation98_spill] sm:$0xff] }
 0x5d0   : > { %6155 = vmatpush1.msra.mxu1 %v2181_v11  ;;  %v15481_v62 = vpop.f32.mrf.mxu0  ;;  %9679 = vmatmul.mubr.f32.gmra.mxu0 %v18500_v7  ;;  %v18522_v7 = vld [vmem:[#allocation96_spill] sm:$0xff]  ;;  %v2121_v0 = vadd.f32 %v15467_v33, %v18524_v27 }
 0x5d1   : > { %18503 = vst [vmem:[#allocation226_spill] sm:$0xff] %v15481_v62  ;;  %6156 = vmatprep.subr.mxu1 %v18463_v3  ;;  %10701 = vmatprep.mubr.f32.mxu1 %v15481_v62  ;;  %v2126_v25 = vadd.f32 %v18522_v7, %v15467_v33 }
 0x5d2   : > { %9680 = vmatprep.mubr.f32.mxu0 %v18505_v4  ;;  %6157 = vmatpush1.msra.mxu1 %v2176_v60  ;;  %v4700_v48 = vpop.f32.mrf.mxu0  ;;  %v18525_v60 = vld [vmem:[#allocation144_spill] sm:$0xff] }
 0x5d3   : > { %6158 = vmatprep.subr.mxu1 %v18463_v3 }
 0x5d4   : > { %6159 = vmatpush1.msra.mxu1 %v2171_v55  ;;  %v15492_v59 = vpop.f32.mrf.mxu0  ;;  %9681 = vmatmul.mubr.f32.gmra.mxu0 %v18505_v4  ;;  %v18526_v55 = vld [vmem:[#allocation91_spill] sm:$0xff] }
 0x5d5   : > { %18507 = vst [vmem:[#allocation227_spill] sm:$0xff] %v15492_v59  ;;  %6160 = vmatprep.subr.mxu1 %v18463_v3  ;;  %10702 = vmatmul.mubr.f32.gmra.mxu1 %v15492_v59  ;;  %v2116_v4 = vadd.f32 %v18526_v55, %v15467_v33  ;;  %v18545_v55 = vld [vmem:[#allocation150_spill] sm:$0xff] }
 0x5d6   : > { %9682 = vmatprep.mubr.f32.mxu0 %v18509_v23  ;;  %6161 = vmatpush1.msra.mxu1 %v2166_v19  ;;  %v4705_v38 = vpop.f32.mrf.mxu0  ;;  %v2111_v19 = vadd.f32 %v15467_v33, %v18528_v17  ;;  %v18546_v17 = vld [vmem:[#allocation135_spill] sm:$0xff] }
 0x5d7   : > { %6162 = vmatprep.subr.mxu1 %v18463_v3 }
 0x5d8   : > { %6163 = vmatpush1.msra.mxu1 %v2161_v12  ;;  %v15503_v30 = vpop.f32.mrf.mxu0  ;;  %9683 = vmatmul.mubr.f32.gmra.mxu0 %v18509_v23  ;;  %v18530_v23 = vld [vmem:[#allocation151_spill] sm:$0xff] }
 0x5d9   : > { %18511 = vst [vmem:[#allocation230_spill] sm:$0xff] %v15503_v30  ;;  %6164 = vmatprep.subr.mxu1 %v18463_v3  ;;  %10704 = vmatprep.mubr.f32.mxu1 %v15503_v30  ;;  %v2266_v38 = vadd.f32 %v18530_v23, %v15467_v33 }
 0x5da   : > { %9684 = vmatprep.mubr.f32.mxu0 %v18513_v42  ;;  %6165 = vmatpush1.msra.mxu1 %v2156_v24  ;;  %v4710_v36 = vpop.f32.mrf.mxu0  ;;  %v18532_v24 = vld [vmem:[#allocation153_spill] sm:$0xff] }
 0x5db   : > { %6166 = vmatprep.subr.mxu1 %v18463_v3  ;;  %v2261_v26 = vadd.f32 %v15467_v33, %v18532_v24  ;;  %v18534_v36 = vld [vmem:[#allocation147_spill] sm:$0xff] }
 0x5dc   : > { %6167 = vmatpush1.msra.mxu1 %v2151_v5  ;;  %v15514_v47 = vpop.f32.mrf.mxu0  ;;  %9685 = vmatmul.mubr.f32.gmra.mxu0 %v18513_v42  ;;  %v18533_v5 = vld [vmem:[#allocation148_spill] sm:$0xff]  ;;  %v2256_v9 = vadd.f32 %v18534_v36, %v15467_v33  ;;  %v18552_v36 = vld [vmem:[#allocation133_spill] sm:$0xff] }
 0x5dd   : > { %18515 = vst [vmem:[#allocation231_spill] sm:$0xff] %v15514_v47  ;;  %6168 = vmatprep.subr.mxu1 %v18463_v3  ;;  %10705 = vmatmul.mubr.f32.gmra.mxu1 %v15514_v47 }
 0x5de   : > { %9686 = vmatprep.mubr.f32.mxu0 %v18517_v15  ;;  %6169 = vmatpush1.msra.mxu1 %v2146_v46  ;;  %v4715_v37 = vpop.f32.mrf.mxu0 }
 0x5df   : > { %6170 = vmatprep.subr.mxu1 %v18463_v3 }
 0x5e0   : > { %6171 = vmatpush1.msra.mxu1 %v2141_v41  ;;  %v15525_v56 = vpop.f32.mrf.mxu0  ;;  %9687 = vmatmul.mubr.f32.gmra.mxu0 %v18517_v15  ;;  %v2251_v41 = vadd.f32 %v15467_v33, %v18536_v21  ;;  %v18537_v15 = vld [vmem:[#allocation146_spill] sm:$0xff] }
 0x5e1   : > { %18519 = vst [vmem:[#allocation234_spill] sm:$0xff] %v15525_v56  ;;  %6172 = vmatprep.subr.mxu1 %v18463_v3  ;;  %10707 = vmatprep.mubr.f32.mxu1 %v15525_v56  ;;  %v18553_v21 = vld [vmem:[#allocation154_spill] sm:$0xff] }
 0x5e2   : > { %9688 = vmatprep.mubr.f32.mxu0 %v18521_v39  ;;  %6173 = vmatpush1.msra.mxu1 %v2136_v49  ;;  %v4720_v16 = vpop.f32.mrf.mxu0  ;;  %v2246_v49 = vadd.f32 %v18538_v8, %v15467_v33 }
 0x5e3   : > { %6174 = vmatprep.subr.mxu1 %v18463_v3  ;;  %v18541_v16 = vld [vmem:[#allocation152_spill] sm:$0xff] }
 0x5e4   : > { %6175 = vmatpush1.msra.mxu1 %v2131_v32  ;;  %v15536_v11 = vpop.f32.mrf.mxu0  ;;  %9689 = vmatmul.mubr.f32.gmra.mxu0 %v18521_v39  ;;  %v18540_v32 = vld [vmem:[#allocation145_spill] sm:$0xff] }
 0x5e5   : > { %18523 = vst [vmem:[#allocation235_spill] sm:$0xff] %v15536_v11  ;;  %6176 = vmatprep.subr.mxu1 %v18463_v3  ;;  %10708 = vmatmul.mubr.f32.gmra.mxu1 %v15536_v11  ;;  %v2241_v39 = vadd.f32 %v15467_v33, %v18540_v32 }
 0x5e6   : > { %9690 = vmatprep.mubr.f32.mxu0 %v18525_v60  ;;  %6177 = vmatpush1.msra.mxu1 %v2126_v25  ;;  %v4725_v58 = vpop.f32.mrf.mxu0  ;;  %v18542_v25 = vld [vmem:[#allocation139_spill] sm:$0xff] }
 0x5e7   : > { %6178 = vmatprep.subr.mxu1 %v18463_v3  ;;  %v2236_v27 = vadd.f32 %v18542_v25, %v15467_v33 }
 0x5e8   : > { %6179 = vmatpush1.msra.mxu1 %v2121_v0  ;;  %v15547_v48 = vpop.f32.mrf.mxu0  ;;  %9691 = vmatmul.mubr.f32.gmra.mxu0 %v18525_v60  ;;  %v18544_v60 = vld [vmem:[#allocation141_spill] sm:$0xff] }
 0x5e9   : > { %18527 = vst [vmem:[#allocation238_spill] sm:$0xff] %v15547_v48  ;;  %6180 = vmatprep.subr.mxu1 %v18463_v3  ;;  %10710 = vmatprep.mubr.f32.mxu1 %v15547_v48  ;;  %v2231_v58 = vadd.f32 %v15467_v33, %v18544_v60 }
 0x5ea   : > { %9692 = vmatprep.mubr.f32.mxu0 %v18529_v34  ;;  %6181 = vmatpush1.msra.mxu1 %v2116_v4  ;;  %v4730_v12 = vpop.f32.mrf.mxu0 }
 0x5eb   : > { %6182 = vmatprep.subr.mxu1 %v18463_v3  ;;  %v18548_v12 = vld [vmem:[#allocation137_spill] sm:$0xff] }
 0x5ec   : > { %6183 = vmatpush1.msra.mxu1 %v2111_v19  ;;  %v15558_v52 = vpop.f32.mrf.mxu0  ;;  %9693 = vmatmul.mubr.f32.gmra.mxu0 %v18529_v34  ;;  %v2226_v19 = vadd.f32 %v18546_v17, %v15467_v33  ;;  %v2221_v23 = vadd.f32 %v15467_v33, %v18548_v12 }
 0x5ed   : > { %18531 = vst [vmem:[#allocation239_spill] sm:$0xff] %v15558_v52  ;;  %6184 = vmatprep.subr.mxu1 %v18463_v3  ;;  %10711 = vmatmul.mubr.f32.gmra.mxu1 %v15558_v52 }
 0x5ee   : > { %9694 = vmatprep.mubr.f32.mxu0 %v18533_v5  ;;  %6185 = vmatpush2.msra.mxu1 %v2266_v38  ;;  %v4735_v42 = vpop.f32.mrf.mxu0  ;;  %v18549_v38 = vld [vmem:[#allocation157_spill] sm:$0xff] }
 0x5ef   : > { %6186 = vmatprep.subr.mxu1 %v18463_v3 }
 0x5f0   : > { %6187 = vmatpush2.msra.mxu1 %v2261_v26  ;;  %v15569_v46 = vpop.f32.mrf.mxu0  ;;  %9695 = vmatmul.mubr.f32.gmra.mxu0 %v18533_v5  ;;  %v18550_v26 = vld [vmem:[#allocation131_spill] sm:$0xff] }
 0x5f1   : > { %18535 = vst [vmem:[#allocation242_spill] sm:$0xff] %v15569_v46  ;;  %6188 = vmatprep.subr.mxu1 %v18463_v3  ;;  %10713 = vmatprep.mubr.f32.mxu1 %v15569_v46  ;;  %v2216_v5 = vadd.f32 %v18550_v26, %v15467_v33 }
 0x5f2   : > { %9696 = vmatprep.mubr.f32.mxu0 %v18537_v15  ;;  %6189 = vmatpush2.msra.mxu1 %v2256_v9  ;;  %v4740_v37 = vpop.f32.mrf.mxu0  ;;  %v2211_v9 = vadd.f32 %v15467_v33, %v18552_v36 }
 0x5f3   : > { %6190 = vmatprep.subr.mxu1 %v18463_v3 }
 0x5f4   : > { %6191 = vmatpush2.msra.mxu1 %v2251_v41  ;;  %v15580_v28 = vpop.f32.mrf.mxu0  ;;  %9697 = vmatmul.mubr.f32.gmra.mxu0 %v18537_v15  ;;  %v18554_v15 = vld [vmem:[#allocation127_spill] sm:$0xff] }
 0x5f5   : > { %18539 = vst [vmem:[#allocation219_spill] sm:$0xff] %v15580_v28  ;;  %6192 = vmatprep.subr.mxu1 %v18463_v3  ;;  %10714 = vmatmul.mubr.f32.gmra.mxu1 %v15580_v28  ;;  %v2206_v37 = vadd.f32 %v18554_v15, %v15467_v33 }
 0x5f6   : > { %9698 = vmatprep.mubr.f32.mxu0 %v18541_v16  ;;  %6193 = vmatpush2.msra.mxu1 %v2246_v49  ;;  %v4745_v7 = vpop.f32.mrf.mxu0  ;;  %v18556_v49 = vld [vmem:[#allocation129_spill] sm:$0xff] }
 0x5f7   : > { %6194 = vmatprep.subr.mxu1 %v18463_v3  ;;  %v2201_v32 = vadd.f32 %v15467_v33, %v18556_v49 }
 0x5f8   : > { %6195 = vmatpush2.msra.mxu1 %v2241_v39  ;;  %v15591_v0 = vpop.f32.mrf.mxu0  ;;  %9699 = vmatmul.mubr.f32.gmra.mxu0 %v18541_v16  ;;  %v18557_v16 = vld [vmem:[#allocation124_spill] sm:$0xff] }
 0x5f9   : > { %18543 = vst [vmem:[#allocation244_spill] sm:$0xff] %v15591_v0  ;;  %6196 = vmatprep.subr.mxu1 %v18463_v3  ;;  %10716 = vmatprep.mubr.f32.mxu1 %v15591_v0  ;;  %v2196_v7 = vadd.f32 %v18557_v16, %v15467_v33 }
 0x5fa   : > { %9700 = vmatprep.mubr.f32.mxu0 %v18545_v55  ;;  %6197 = vmatpush2.msra.mxu1 %v2236_v27  ;;  %v4750_v4 = vpop.f32.mrf.mxu0  ;;  %v18559_v27 = vld [vmem:[#allocation125_spill] sm:$0xff] }
 0x5fb   : > { %6198 = vmatprep.subr.mxu1 %v18463_v3  ;;  %v2191_v60 = vadd.f32 %v15467_v33, %v18559_v27  ;;  %v18561_v4 = vld [vmem:[#allocation222_spill] sm:$0xff] }
 0x5fc   : > { %6199 = vmatpush2.msra.mxu1 %v2231_v58  ;;  %v15602_v34 = vpop.f32.mrf.mxu0  ;;  %9701 = vmatmul.mubr.f32.gmra.mxu0 %v18545_v55  ;;  %v18560_v55 = vld [vmem:[#allocation89_spill] sm:$0xff] }
 0x5fd   : > { %18547 = vst [vmem:[#allocation220_spill] sm:$0xff] %v15602_v34  ;;  %6200 = vmatprep.subr.mxu1 %v18463_v3  ;;  %10717 = vmatmul.mubr.f32.gmra.mxu1 %v15602_v34  ;;  %v2680_v17 = vadd.f32 %v18561_v4, %v18560_v55 }
 0x5fe   : > { %9702 = vmatprep.mubr.f32.mxu0 %v18549_v38  ;;  %6201 = vmatpush2.msra.mxu1 %v2226_v19  ;;  %v4755_v24 = vpop.f32.mrf.mxu0 }
 0x5ff   : > { %6202 = vmatprep.subr.mxu1 %v18463_v3 }
 0x600   : > { %6203 = vmatpush2.msra.mxu1 %v2221_v23  ;;  %v15613_v42 = vpop.f32.mrf.mxu0  ;;  %9703 = vmatmul.mubr.f32.gmra.mxu0 %v18549_v38 }
 0x601   : > { %18551 = vst [vmem:[#allocation246_spill] sm:$0xff] %v15613_v42  ;;  %6204 = vmatprep.subr.mxu1 %v18463_v3  ;;  %10719 = vmatprep.mubr.f32.mxu1 %v15613_v42 }
 0x602   : > { %9704 = vmatprep.mubr.f32.mxu0 %v18553_v21  ;;  %6205 = vmatpush2.msra.mxu1 %v2216_v5  ;;  %v4760_v41 = vpop.f32.mrf.mxu0 }
 0x603   : > { %6206 = vmatprep.subr.mxu1 %v18463_v3 }
 0x604   : > { %6207 = vmatpush2.msra.mxu1 %v2211_v9  ;;  %v15624_v8 = vpop.f32.mrf.mxu0  ;;  %9705 = vmatmul.mubr.f32.gmra.mxu0 %v18553_v21 }
 0x605   : > { %18555 = vst [vmem:[#allocation217_spill] sm:$0xff] %v15624_v8  ;;  %6208 = vmatprep.subr.mxu1 %v18463_v3  ;;  %10720 = vmatmul.mubr.f32.gmra.mxu1 %v15624_v8 }
 0x606   : > { %6209 = vmatpush2.msra.mxu1 %v2206_v37  ;;  %v4765_v39 = vpop.f32.mrf.mxu0 }
 0x607   : > { %6210 = vmatprep.subr.mxu1 %v18463_v3 }
 0x608   : > { %6211 = vmatpush2.msra.mxu1 %v2201_v32  ;;  %v15634_v25 = vpop.f32.mrf.mxu0 }
 0x609   : > { %18558 = vst [vmem:[#allocation248_spill] sm:$0xff] %v15634_v25  ;;  %6212 = vmatprep.subr.mxu1 %v18463_v3  ;;  %10722 = vmatprep.mubr.f32.mxu1 %v15634_v25 }
 0x60a   : > { %6213 = vmatpush2.msra.mxu1 %v2196_v7  ;;  %v4770_v58 = vpop.f32.mrf.mxu0 }
 0x60b   : > { %6214 = vmatprep.subr.mxu1 %v18463_v3 }
 0x60c   : > { %6215 = vmatpush2.msra.mxu1 %v2191_v60  ;;  %v15643_v19 = vpop.f32.mrf.mxu0 }
 0x60d   : > { %18562 = vst [vmem:[#allocation218_spill] sm:$0xff] %v15643_v19  ;;  %9754 = vmatprep.subr.mxu1 %v2680_v17  ;;  %10723 = vmatmul.mubr.f32.gmra.mxu1 %v15643_v19 }
 0x60e   : > { %v4775_v12 = vpop.f32.mrf.mxu0 }
 0x610   : > { %v15646_v23 = vpop.f32.mrf.mxu0 }
 0x611   : > { %18563 = vst [vmem:[#allocation250_spill] sm:$0xff] %v15646_v23  ;;  %10725 = vmatprep.mubr.f32.mxu1 %v15646_v23 }
 0x612   : > { %v4780_v38 = vpop.f32.mrf.mxu0 }
 0x614   : > { %v15649_v33 = vpop.f32.mrf.mxu0 }
 0x615   : > { %18564 = vst [vmem:[#allocation215_spill] sm:$0xff] %v15649_v33  ;;  %10726 = vmatmul.mubr.f32.gmra.mxu1 %v15649_v33 }
 0x616   : > { %v4785_v24 = vpop.f32.mrf.mxu0 }
 0x618   : > { %v15652_v26 = vpop.f32.mrf.mxu0 }
 0x619   : > { %18565 = vst [vmem:[#allocation252_spill] sm:$0xff] %v15652_v26  ;;  %10728 = vmatprep.mubr.f32.mxu1 %v15652_v26 }
 0x61a   : > { %v4790_v5 = vpop.f32.mrf.mxu0 }
 0x61c   : > { %v15655_v36 = vpop.f32.mrf.mxu0 }
 0x61d   : > { %18566 = vst [vmem:[#allocation216_spill] sm:$0xff] %v15655_v36  ;;  %10729 = vmatmul.mubr.f32.gmra.mxu1 %v15655_v36 }
 0x61e   : > { %v4795_v9 = vpop.f32.mrf.mxu0 }
 0x620   : > { %v15658_v21 = vpop.f32.mrf.mxu0 }
 0x621   : > { %18567 = vst [vmem:[#allocation254_spill] sm:$0xff] %v15658_v21  ;;  %10731 = vmatprep.mubr.f32.mxu1 %v15658_v21 }
 0x622   : > { %v4800_v41 = vpop.f32.mrf.mxu0 }
 0x624   : > { %v15661_v15 = vpop.f32.mrf.mxu0 }
 0x625   : > { %18568 = vst [vmem:[#allocation213_spill] sm:$0xff] %v15661_v15  ;;  %10732 = vmatmul.mubr.f32.gmra.mxu1 %v15661_v15 }
 0x626   : > { %v4805_v37 = vpop.f32.mrf.mxu0 }
 0x628   : > { %v15664_v49 = vpop.f32.mrf.mxu0 }
 0x629   : > { %18569 = vst [vmem:[#allocation256_spill] sm:$0xff] %v15664_v49  ;;  %10734 = vmatprep.mubr.f32.mxu1 %v15664_v49 }
 0x62a   : > { %v4810_v32 = vpop.f32.mrf.mxu0 }
 0x62c   : > { %v15667_v39 = vpop.f32.mrf.mxu0 }
 0x62d   : > { %18570 = vst [vmem:[#allocation214_spill] sm:$0xff] %v15667_v39  ;;  %10735 = vmatmul.mubr.f32.gmra.mxu1 %v15667_v39 }
 0x62e   : > { %v4815_v16 = vpop.f32.mrf.mxu0 }
 0x630   : > { %v15670_v7 = vpop.f32.mrf.mxu0 }
 0x631   : > { %18571 = vst [vmem:[#allocation161_spill] sm:$0xff] %v15670_v7  ;;  %10737 = vmatprep.mubr.f32.mxu1 %v15670_v7 }
 0x632   : > { %v4820_v27 = vpop.f32.mrf.mxu0 }
 0x634   : > { %v15673_v60 = vpop.f32.mrf.mxu0 }
 0x635   : > { %18572 = vst [vmem:[#allocation209_spill] sm:$0xff] %v15673_v60  ;;  %10738 = vmatmul.mubr.f32.gmra.mxu1 %v15673_v60 }
 0x636   : > { %v4825_v58 = vpop.f32.mrf.mxu0 }
 0x638   : > { %v15676_v55 = vpop.f32.mrf.mxu0 }
 0x639   : > { %18573 = vst [vmem:[#allocation204_spill] sm:$0xff] %v15676_v55  ;;  %10740 = vmatprep.mubr.f32.mxu1 %v15676_v55 }
 0x63a   : > { %v4830_v4 = vpop.f32.mrf.mxu0 }
 0x63c   : > { %v15679_v17 = vpop.f32.mrf.mxu0 }
 0x63d   : > { %18574 = vst [vmem:[#allocation210_spill] sm:$0xff] %v15679_v17  ;;  %10741 = vmatmul.mubr.f32.gmra.mxu1 %v15679_v17 }
 0x63e   : > { %v4835_v12 = vpop.f32.mrf.mxu0 }
 0x640   : > { %v15682_v38 = vpop.f32.mrf.mxu0 }
 0x641   : > { %18575 = vst [vmem:[#allocation211_spill] sm:$0xff] %v15682_v38  ;;  %10743 = vmatprep.mubr.f32.mxu1 %v15682_v38 }
 0x642   : > { %v4840_v24 = vpop.f32.mrf.mxu0 }
 0x644   : > { %v15685_v5 = vpop.f32.mrf.mxu0 }
 0x645   : > { %18576 = vst [vmem:[#allocation63_spill] sm:$0xff] %v15685_v5  ;;  %10744 = vmatmul.mubr.f32.gmra.mxu1 %v15685_v5 }
 0x646   : > { %v4845_v9 = vpop.f32.mrf.mxu0 }
 0x648   : > { %v15688_v41 = vpop.f32.mrf.mxu0 }
 0x64a   : > { %v15690_v37 = vpop.f32.mrf.mxu0 }
 0x64b   : > { %v5640_v32 = vmax.f32 %v15688_v41, %v15690_v37 }
 0x64c   : > { %v15694_v16 = vpop.f32.mrf.mxu0 }
 0x64d   : > { %5641 = vmax.xlane.f32.xlu0 %v5640_v32 }
 0x64e   : > { %v15696_v27 = vpop.f32.mrf.mxu0 }
 0x64f   : > { %v5643_v58 = vmax.f32 %v15694_v16, %v15696_v27 }
 0x650   : > { %v15700_v4 = vpop.f32.mrf.mxu0 }
 0x651   : > { %5644 = vmax.xlane.f32.xlu1 %v5643_v58 }
 0x652   : > { %v15702_v12 = vpop.f32.mrf.mxu0 }
 0x653   : > { %v5646_v24 = vmax.f32 %v15700_v4, %v15702_v12 }
 0x654   : > { %v15706_v9 = vpop.f32.mrf.mxu0 }
 0x655   : > { %5647 = vmax.xlane.f32.xlu0 %v5646_v24 }
 0x656   : > { %v15708_v38 = vpop.f32.mrf.mxu0 }
 0x657   : > { %v5649_v32 = vmax.f32 %v15706_v9, %v15708_v38 }
 0x658   : > { %v15712_v55 = vpop.f32.mrf.mxu0 }
 0x659   : > { %5650 = vmax.xlane.f32.xlu1 %v5649_v32 }
 0x65a   : > { %v15714_v7 = vpop.f32.mrf.mxu0 }
 0x65b   : > { %v5652_v58 = vmax.f32 %v15712_v55, %v15714_v7 }
 0x65c   : > { %v15718_v49 = vpop.f32.mrf.mxu0 }
 0x65d   : > { %5653 = vmax.xlane.f32.xlu0 %v5652_v58 }
 0x65e   : > { %v15720_v21 = vpop.f32.mrf.mxu0 }
 0x65f   : > { %v5655_v24 = vmax.f32 %v15718_v49, %v15720_v21 }
 0x660   : > { %v15724_v26 = vpop.f32.mrf.mxu0 }
 0x661   : > { %5656 = vmax.xlane.f32.xlu1 %v5655_v24 }
 0x662   : > { %v15726_v23 = vpop.f32.mrf.mxu0 }
 0x663   : > { %v5658_v32 = vmax.f32 %v15724_v26, %v15726_v23 }
 0x664   : > { %v15730_v25 = vpop.f32.mrf.mxu0 }
 0x665   : > { %5659 = vmax.xlane.f32.xlu0 %v5658_v32 }
 0x666   : > { %v15732_v42 = vpop.f32.mrf.mxu0 }
 0x667   : > { %v5661_v58 = vmax.f32 %v15730_v25, %v15732_v42 }
 0x668   : > { %v15736_v0 = vpop.f32.mrf.mxu0 }
 0x669   : > { %5662 = vmax.xlane.f32.xlu1 %v5661_v58 }
 0x66a   : > { %v15738_v46 = vpop.f32.mrf.mxu0 }
 0x66b   : > { %v5664_v24 = vmax.f32 %v15736_v0, %v15738_v46 }
 0x66c   : > { %v15742_v48 = vpop.f32.mrf.mxu0 }
 0x66d   : > { %5665 = vmax.xlane.f32.xlu0 %v5664_v24 }
 0x66e   : > { %v15744_v56 = vpop.f32.mrf.mxu0 }
 0x66f   : > { %v5667_v32 = vmax.f32 %v15742_v48, %v15744_v56 }
 0x670   : > { %v15748_v30 = vpop.f32.mrf.mxu0 }
 0x671   : > { %5668 = vmax.xlane.f32.xlu1 %v5667_v32 }
 0x672   : > { %v15750_v62 = vpop.f32.mrf.mxu0 }
 0x673   : > { %v5670_v58 = vmax.f32 %v15748_v30, %v15750_v62 }
 0x674   : > { %v15754_v44 = vpop.f32.mrf.mxu0 }
 0x675   : > { %5671 = vmax.xlane.f32.xlu0 %v5670_v58 }
 0x676   : > { %v15756_v5 = vpop.f32.mrf.mxu0 }
 0x677   : > { %v5673_v24 = vmax.f32 %v15754_v44, %v15756_v5 }
 0x678   : > { %v15760_v17 = vpop.f32.mrf.mxu0 }
 0x679   : > { %5674 = vmax.xlane.f32.xlu1 %v5673_v24 }
 0x67a   : > { %v15762_v60 = vpop.f32.mrf.mxu0 }
 0x67b   : > { %v5676_v32 = vmax.f32 %v15760_v17, %v15762_v60 }
 0x67c   : > { %v15766_v39 = vpop.f32.mrf.mxu0 }
 0x67d   : > { %5677 = vmax.xlane.f32.xlu0 %v5676_v32 }
 0x67e   : > { %v15768_v15 = vpop.f32.mrf.mxu0 }
 0x67f   : > { %v5679_v58 = vmax.f32 %v15766_v39, %v15768_v15 }
 0x680   : > { %v15772_v36 = vpop.f32.mrf.mxu0 }
 0x681   : > { %5680 = vmax.xlane.f32.xlu1 %v5679_v58 }
 0x682   : > { %v15774_v33 = vpop.f32.mrf.mxu0 }
 0x683   : > { %v5682_v24 = vmax.f32 %v15772_v36, %v15774_v33 }
 0x684   : > { %v15778_v19 = vpop.f32.mrf.mxu0 }
 0x685   : > { %5683 = vmax.xlane.f32.xlu0 %v5682_v24 }
 0x686   : > { %v15780_v8 = vpop.f32.mrf.mxu0 }
 0x687   : > { %v5685_v32 = vmax.f32 %v15778_v19, %v15780_v8 }
 0x688   : > { %v15784_v34 = vpop.f32.mrf.mxu0 }
 0x689   : > { %5686 = vmax.xlane.f32.xlu1 %v5685_v32 }
 0x68a   : > { %v15786_v28 = vpop.f32.mrf.mxu0 }
 0x68b   : > { %v5688_v58 = vmax.f32 %v15784_v34, %v15786_v28 }
 0x68c   : > { %v15790_v52 = vpop.f32.mrf.mxu0 }
 0x68d   : > { %5689 = vmax.xlane.f32.xlu0 %v5688_v58 }
 0x68e   : > { %v15792_v11 = vpop.f32.mrf.mxu0 }
 0x68f   : > { %v5691_v24 = vmax.f32 %v15790_v52, %v15792_v11 }
 0x690   : > { %v15796_v47 = vpop.f32.mrf.mxu0 }
 0x691   : > { %5692 = vmax.xlane.f32.xlu1 %v5691_v24 }
 0x692   : > { %v15798_v59 = vpop.f32.mrf.mxu0 }
 0x693   : > { %v5694_v32 = vmax.f32 %v15796_v47, %v15798_v59 }
 0x694   : > { %v15802_v50 = vpop.f32.mrf.mxu0 }
 0x695   : > { %5695 = vmax.xlane.f32.xlu0 %v5694_v32 }
 0x696   : > { %v15804_v3 = vpop.f32.mrf.mxu0 }
 0x697   : > { %v5697_v58 = vmax.f32 %v15802_v50, %v15804_v3 }
 0x698   : > { %v15808_v6 = vpop.f32.mrf.mxu0 }
 0x699   : > { %5698 = vmax.xlane.f32.xlu1 %v5697_v58 }
 0x69a   : > { %v15810_v40 = vpop.f32.mrf.mxu0 }
 0x69b   : > { %v5700_v24 = vmax.f32 %v15808_v6, %v15810_v40 }
 0x69c   : > { %v15814_v10 = vpop.f32.mrf.mxu0 }
 0x69d   : > { %5701 = vmax.xlane.f32.xlu0 %v5700_v24 }
 0x69e   : > { %v15816_v2 = vpop.f32.mrf.mxu0 }
 0x69f   : > { %v5703_v32 = vmax.f32 %v15814_v10, %v15816_v2 }
 0x6a0   : > { %v15820_v20 = vpop.f32.mrf.mxu0 }
 0x6a1   : > { %5704 = vmax.xlane.f32.xlu1 %v5703_v32 }
 0x6a2   : > { %v15822_v57 = vpop.f32.mrf.mxu0 }
 0x6a3   : > { %v5706_v58 = vmax.f32 %v15820_v20, %v15822_v57 }
 0x6a4   : > { %v15826_v61 = vpop.f32.mrf.mxu0 }
 0x6a5   : > { %5707 = vmax.xlane.f32.xlu0 %v5706_v58 }
 0x6a6   : > { %v15828_v35 = vpop.f32.mrf.mxu0 }
 0x6a7   : > { %v5709_v24 = vmax.f32 %v15826_v61, %v15828_v35 }
 0x6a8   : > { %v15832_v22 = vpop.f32.mrf.mxu0 }
 0x6a9   : > { %5710 = vmax.xlane.f32.xlu0 %v5709_v24 }
 0x6aa   : > { %v15834_v31 = vpop.f32.mrf.mxu0 }
 0x6ab   : > { %v5712_v32 = vmax.f32 %v15832_v22, %v15834_v31 }
 0x6ac   : > { %v15838_v29 = vpop.f32.mrf.mxu0 }
 0x6ad   : > { %18577 = vst [vmem:[#allocation57_spill] sm:$0xff] %v15838_v29  ;;  %5713 = vmax.xlane.f32.xlu0 %v5712_v32 }
 0x6ae   : > { %v15840_v18 = vpop.f32.mrf.mxu0 }
 0x6af   : > { %18578 = vst [vmem:[#allocation67_spill] sm:$0xff] %v15840_v18  ;;  %v5715_v58 = vmax.f32 %v15838_v29, %v15840_v18 }
 0x6b0   : > { %v15844_v51 = vpop.f32.mrf.mxu0 }
 0x6b1   : > { %18579 = vst [vmem:[#allocation61_spill] sm:$0xff] %v15844_v51  ;;  %5716 = vmax.xlane.f32.xlu0 %v5715_v58 }
 0x6b2   : > { %v15846_v1 = vpop.f32.mrf.mxu0 }
 0x6b3   : > { %18580 = vst [vmem:[#allocation65_spill] sm:$0xff] %v15846_v1  ;;  %v5718_v24 = vmax.f32 %v15844_v51, %v15846_v1 }
 0x6b4   : > { %v15850_v54 = vpop.f32.mrf.mxu0 }
 0x6b5   : > { %18581 = vst [vmem:[#allocation257_spill] sm:$0xff] %v15850_v54  ;;  %5719 = vmax.xlane.f32.xlu0 %v5718_v24 }
 0x6b6   : > { %v15852_v63 = vpop.f32.mrf.mxu0 }
 0x6b7   : > { %18582 = vst [vmem:[#allocation259_spill] sm:$0xff] %v15852_v63  ;;  %v5721_v32 = vmax.f32 %v15850_v54, %v15852_v63 }
 0x6b8   : > { %v15856_v45 = vpop.f32.mrf.mxu0 }
 0x6b9   : > { %18583 = vst [vmem:[#allocation258_spill] sm:$0xff] %v15856_v45  ;;  %5722 = vmax.xlane.f32.xlu0 %v5721_v32 }
 0x6ba   : > { %v15858_v13 = vpop.f32.mrf.mxu0 }
 0x6bb   : > { %18584 = vst [vmem:[#allocation261_spill] sm:$0xff] %v15858_v13  ;;  %v5724_v58 = vmax.f32 %v15856_v45, %v15858_v13 }
 0x6bc   : > { %v15862_v43 = vpop.f32.mrf.mxu0 }
 0x6bd   : > { %18585 = vst [vmem:[#allocation260_spill] sm:$0xff] %v15862_v43  ;;  %5725 = vmax.xlane.f32.xlu0 %v5724_v58 }
 0x6be   : > { %v15864_v14 = vpop.f32.mrf.mxu0 }
 0x6bf   : > { %18586 = vst [vmem:[#allocation263_spill] sm:$0xff] %v15864_v14  ;;  %v5727_v24 = vmax.f32 %v15862_v43, %v15864_v14 }
 0x6c0   : > { %v15868_v53 = vpop.f32.mrf.mxu0 }
 0x6c1   : > { %18587 = vst [vmem:[#allocation262_spill] sm:$0xff] %v15868_v53  ;;  %5728 = vmax.xlane.f32.xlu0 %v5727_v24 }
 0x6c2   : > { %v15870_v63 = vpop.f32.mrf.mxu0 }
 0x6c3   : > { %18588 = vst [vmem:[#allocation93_spill] sm:$0xff] %v15870_v63  ;;  %v5730_v32 = vmax.f32 %v15868_v53, %v15870_v63 }
 0x6c4   : > { %v15874_v54 = vpop.f32.mrf.mxu0 }
 0x6c5   : > { %5731 = vmax.xlane.f32.xlu0 %v5730_v32 }
 0x6c6   : > { %v15876_v13 = vpop.f32.mrf.mxu0 }
 0x6c7   : > { %18589 = vst [vmem:[#allocation265_spill] sm:$0xff] %v15876_v13  ;;  %v5733_v58 = vmax.f32 %v15874_v54, %v15876_v13 }
 0x6c9   : > { %5734 = vmax.xlane.f32.xlu0 %v5733_v58 }
 0x6d6   : > { %v5642_v45 = vpop.xlane.xlu0 %5641 }
 0x6d7   : > { %v5736_v14 = vsub.f32 %v15688_v41, %v5642_v45  ;;  %v5737_v43 = vsub.f32 %v15690_v37, %v5642_v45 }
 0x6d9   : > { %v5800_v24 = vmul.f32 1.442695, %v5736_v14  ;;  %v5802_v1 = vmul.f32 1.442695, %v5737_v43 }
 0x6da   : > { %v5645_v51 = vpop.xlane.xlu1 %5644 }
 0x6db   : > { %v5738_v18 = vsub.f32 %v15694_v16, %v5645_v51  ;;  %v5739_v63 = vsub.f32 %v15696_v27, %v5645_v51  ;;  %11348 = vpow2.f32 %v5800_v24 }
 0x6dc   : > { %11350 = vpow2.f32 %v5802_v1 }
 0x6dd   : > { %v5804_v32 = vmul.f32 1.442695, %v5738_v18  ;;  %v5806_v53 = vmul.f32 1.442695, %v5739_v63 }
 0x6de   : > { %v5648_v29 = vpop.xlane.xlu0 %5647 }
 0x6df   : > { %v5740_v13 = vsub.f32 %v15700_v4, %v5648_v29  ;;  %v5741_v58 = vsub.f32 %v15702_v12, %v5648_v29  ;;  %11352 = vpow2.f32 %v5804_v32 }
 0x6e0   : > { %11354 = vpow2.f32 %v5806_v53 }
 0x6e1   : > { %v5808_v41 = vmul.f32 1.442695, %v5740_v13  ;;  %v5810_v45 = vmul.f32 1.442695, %v5741_v58 }
 0x6e2   : > { %v5651_v14 = vpop.xlane.xlu1 %5650 }
 0x6e3   : > { %v5742_v43 = vsub.f32 %v15706_v9, %v5651_v14  ;;  %v5743_v37 = vsub.f32 %v15708_v38, %v5651_v14  ;;  %11356 = vpow2.f32 %v5808_v41 }
 0x6e4   : > { %11358 = vpow2.f32 %v5810_v45 }
 0x6e5   : > { %v5812_v51 = vmul.f32 1.442695, %v5742_v43  ;;  %v5814_v16 = vmul.f32 1.442695, %v5743_v37 }
 0x6e6   : > { %v5654_v63 = vpop.xlane.xlu0 %5653 }
 0x6e7   : > { %v5744_v1 = vsub.f32 %v15712_v55, %v5654_v63  ;;  %v5745_v18 = vsub.f32 %v15714_v7, %v5654_v63  ;;  %11360 = vpow2.f32 %v5812_v51 }
 0x6e8   : > { %v15890_v29 = vpop.eup %11348  ;;  %11362 = vpow2.f32 %v5814_v16 }
 0x6e9   : > { %v5816_v53 = vmul.f32 1.442695, %v5744_v1  ;;  %v5818_v13 = vmul.f32 1.442695, %v5745_v18  ;;  %v15892_v4 = vpop.eup %11350 }
 0x6ea   : > { %v5657_v27 = vpop.xlane.xlu1 %5656  ;;  %v5928_v9 = vadd.f32 %v15892_v4, %v15890_v29 }
 0x6eb   : > { %v5746_v38 = vsub.f32 %v15718_v49, %v5657_v27  ;;  %v5747_v12 = vsub.f32 %v15720_v21, %v5657_v27  ;;  %11364 = vpow2.f32 %v5816_v53 }
 0x6ec   : > { %v15898_v55 = vpop.eup %11352  ;;  %11366 = vpow2.f32 %v5818_v13  ;;  %5929 = vadd.xlane.f32.xlu1 %v5928_v9 }
 0x6ed   : > { %v5820_v7 = vmul.f32 1.442695, %v5746_v38  ;;  %v5822_v24 = vmul.f32 1.442695, %v5747_v12  ;;  %v15900_v32 = vpop.eup %11354 }
 0x6ee   : > { %v5660_v58 = vpop.xlane.xlu0 %5659  ;;  %v5931_v21 = vadd.f32 %v15900_v32, %v15898_v55 }
 0x6ef   : > { %v5748_v41 = vsub.f32 %v15724_v26, %v5660_v58  ;;  %v5749_v45 = vsub.f32 %v15726_v23, %v5660_v58  ;;  %11368 = vpow2.f32 %v5820_v7 }
 0x6f0   : > { %11370 = vpow2.f32 %v5822_v24  ;;  %v15906_v43 = vpop.eup %11356  ;;  %5932 = vadd.xlane.f32.xlu1 %v5931_v21 }
 0x6f1   : > { %v5824_v49 = vmul.f32 1.442695, %v5748_v41  ;;  %v5826_v14 = vmul.f32 1.442695, %v5749_v45  ;;  %v15908_v51 = vpop.eup %11358 }
 0x6f2   : > { %v5663_v37 = vpop.xlane.xlu1 %5662  ;;  %v5934_v23 = vadd.f32 %v15908_v51, %v15906_v43 }
 0x6f3   : > { %v5750_v16 = vsub.f32 %v15730_v25, %v5663_v37  ;;  %v5751_v63 = vsub.f32 %v15732_v42, %v5663_v37  ;;  %11372 = vpow2.f32 %v5824_v49 }
 0x6f4   : > { %v15914_v26 = vpop.eup %11360  ;;  %11374 = vpow2.f32 %v5826_v14  ;;  %5935 = vadd.xlane.f32.xlu1 %v5934_v23 }
 0x6f5   : > { %v5828_v1 = vmul.f32 1.442695, %v5750_v16  ;;  %v5830_v18 = vmul.f32 1.442695, %v5751_v63  ;;  %v15916_v53 = vpop.eup %11362 }
 0x6f6   : > { %v5666_v13 = vpop.xlane.xlu0 %5665  ;;  %v5937_v42 = vadd.f32 %v15916_v53, %v15914_v26 }
 0x6f7   : > { %v5752_v27 = vsub.f32 %v15736_v0, %v5666_v13  ;;  %v5753_v38 = vsub.f32 %v15738_v46, %v5666_v13  ;;  %11376 = vpow2.f32 %v5828_v1 }
 0x6f8   : > { %v15922_v25 = vpop.eup %11364  ;;  %11378 = vpow2.f32 %v5830_v18  ;;  %5938 = vadd.xlane.f32.xlu1 %v5937_v42 }
 0x6f9   : > { %v5832_v12 = vmul.f32 1.442695, %v5752_v27  ;;  %v5834_v9 = vmul.f32 1.442695, %v5753_v38  ;;  %v15924_v7 = vpop.eup %11366 }
 0x6fa   : > { %v5669_v24 = vpop.xlane.xlu1 %5668  ;;  %v5940_v46 = vadd.f32 %v15924_v7, %v15922_v25 }
 0x6fb   : > { %v5754_v58 = vsub.f32 %v15742_v48, %v5669_v24  ;;  %v5755_v41 = vsub.f32 %v15744_v56, %v5669_v24  ;;  %11380 = vpow2.f32 %v5832_v12 }
 0x6fc   : > { %v15930_v0 = vpop.eup %11368  ;;  %11382 = vpow2.f32 %v5834_v9  ;;  %5941 = vadd.xlane.f32.xlu1 %v5940_v46 }
 0x6fd   : > { %v5836_v45 = vmul.f32 1.442695, %v5754_v58  ;;  %v5838_v21 = vmul.f32 1.442695, %v5755_v41  ;;  %v15932_v49 = vpop.eup %11370 }
 0x6fe   : > { %v5672_v14 = vpop.xlane.xlu0 %5671  ;;  %v5943_v56 = vadd.f32 %v15932_v49, %v15930_v0 }
 0x6ff   : > { %v5756_v37 = vsub.f32 %v15748_v30, %v5672_v14  ;;  %v5757_v16 = vsub.f32 %v15750_v62, %v5672_v14  ;;  %11384 = vpow2.f32 %v5836_v45 }
 0x700   : > { %v15938_v48 = vpop.eup %11372  ;;  %11386 = vpow2.f32 %v5838_v21  ;;  %5944 = vadd.xlane.f32.xlu1 %v5943_v56 }
 0x701   : > { %v5840_v63 = vmul.f32 1.442695, %v5756_v37  ;;  %v5842_v23 = vmul.f32 1.442695, %v5757_v16  ;;  %v15940_v1 = vpop.eup %11374 }
 0x702   : > { %v5675_v18 = vpop.xlane.xlu1 %5674  ;;  %v5946_v62 = vadd.f32 %v15940_v1, %v15938_v48 }
 0x703   : > { %v5758_v13 = vsub.f32 %v15754_v44, %v5675_v18  ;;  %v5759_v27 = vsub.f32 %v15756_v5, %v5675_v18  ;;  %11388 = vpow2.f32 %v5840_v63 }
 0x704   : > { %v15946_v30 = vpop.eup %11376  ;;  %11390 = vpow2.f32 %v5842_v23  ;;  %5947 = vadd.xlane.f32.xlu1 %v5946_v62 }
 0x705   : > { %v5844_v38 = vmul.f32 1.442695, %v5758_v13  ;;  %v5846_v42 = vmul.f32 1.442695, %v5759_v27  ;;  %v15948_v12 = vpop.eup %11378 }
 0x706   : > { %v5678_v9 = vpop.xlane.xlu0 %5677  ;;  %v5949_v44 = vadd.f32 %v15948_v12, %v15946_v30 }
 0x707   : > { %v5760_v24 = vsub.f32 %v15760_v17, %v5678_v9  ;;  %v5761_v58 = vsub.f32 %v15762_v60, %v5678_v9  ;;  %11392 = vpow2.f32 %v5844_v38 }
 0x708   : > { %v15954_v5 = vpop.eup %11380  ;;  %11394 = vpow2.f32 %v5846_v42  ;;  %5950 = vadd.xlane.f32.xlu1 %v5949_v44 }
 0x709   : > { %v5848_v41 = vmul.f32 1.442695, %v5760_v24  ;;  %v5850_v46 = vmul.f32 1.442695, %v5761_v58  ;;  %v15956_v45 = vpop.eup %11382 }
 0x70a   : > { %v5681_v21 = vpop.xlane.xlu1 %5680  ;;  %v5952_v60 = vadd.f32 %v15956_v45, %v15954_v5 }
 0x70b   : > { %v5762_v14 = vsub.f32 %v15766_v39, %v5681_v21  ;;  %v5763_v37 = vsub.f32 %v15768_v15, %v5681_v21  ;;  %11396 = vpow2.f32 %v5848_v41 }
 0x70c   : > { %v15962_v17 = vpop.eup %11384  ;;  %11398 = vpow2.f32 %v5850_v46  ;;  %5953 = vadd.xlane.f32.xlu1 %v5952_v60 }
 0x70d   : > { %v5852_v16 = vmul.f32 1.442695, %v5762_v14  ;;  %v5854_v56 = vmul.f32 1.442695, %v5763_v37  ;;  %v15964_v63 = vpop.eup %11386 }
 0x70e   : > { %v5684_v23 = vpop.xlane.xlu0 %5683  ;;  %v5955_v15 = vadd.f32 %v15964_v63, %v15962_v17 }
 0x70f   : > { %v5764_v18 = vsub.f32 %v15772_v36, %v5684_v23  ;;  %v5765_v13 = vsub.f32 %v15774_v33, %v5684_v23  ;;  %11400 = vpow2.f32 %v5852_v16 }
 0x710   : > { %v15970_v39 = vpop.eup %11388  ;;  %11402 = vpow2.f32 %v5854_v56  ;;  %5956 = vadd.xlane.f32.xlu1 %v5955_v15 }
 0x711   : > { %v5856_v27 = vmul.f32 1.442695, %v5764_v18  ;;  %v5858_v62 = vmul.f32 1.442695, %v5765_v13  ;;  %v15972_v38 = vpop.eup %11390 }
 0x712   : > { %v5687_v42 = vpop.xlane.xlu1 %5686  ;;  %v5958_v33 = vadd.f32 %v15972_v38, %v15970_v39 }
 0x713   : > { %v5766_v9 = vsub.f32 %v15778_v19, %v5687_v42  ;;  %v5767_v24 = vsub.f32 %v15780_v8, %v5687_v42  ;;  %11404 = vpow2.f32 %v5856_v27 }
 0x714   : > { %v15978_v36 = vpop.eup %11392  ;;  %11406 = vpow2.f32 %v5858_v62  ;;  %5959 = vadd.xlane.f32.xlu0 %v5958_v33 }
 0x715   : > { %v5860_v58 = vmul.f32 1.442695, %v5766_v9  ;;  %v5862_v44 = vmul.f32 1.442695, %v5767_v24  ;;  %v15980_v41 = vpop.eup %11394 }
 0x716   : > { %v5690_v46 = vpop.xlane.xlu0 %5689  ;;  %v5961_v8 = vadd.f32 %v15980_v41, %v15978_v36 }
 0x717   : > { %v5768_v21 = vsub.f32 %v15784_v34, %v5690_v46  ;;  %v5769_v14 = vsub.f32 %v15786_v28, %v5690_v46  ;;  %11408 = vpow2.f32 %v5860_v58 }
 0x718   : > { %v15986_v19 = vpop.eup %11396  ;;  %11410 = vpow2.f32 %v5862_v44  ;;  %5962 = vadd.xlane.f32.xlu1 %v5961_v8 }
 0x719   : > { %v5864_v37 = vmul.f32 1.442695, %v5768_v21  ;;  %v5866_v60 = vmul.f32 1.442695, %v5769_v14  ;;  %v15988_v16 = vpop.eup %11398 }
 0x71a   : > { %v5693_v56 = vpop.xlane.xlu1 %5692  ;;  %v5964_v28 = vadd.f32 %v15988_v16, %v15986_v19 }
 0x71b   : > { %v5770_v23 = vsub.f32 %v15790_v52, %v5693_v56  ;;  %v5771_v18 = vsub.f32 %v15792_v11, %v5693_v56  ;;  %11412 = vpow2.f32 %v5864_v37 }
 0x71c   : > { %v15994_v34 = vpop.eup %11400  ;;  %11414 = vpow2.f32 %v5866_v60  ;;  %5965 = vadd.xlane.f32.xlu0 %v5964_v28 }
 0x71d   : > { %v5868_v13 = vmul.f32 1.442695, %v5770_v23  ;;  %v5870_v15 = vmul.f32 1.442695, %v5771_v18  ;;  %v15996_v27 = vpop.eup %11402 }
 0x71e   : > { %v5696_v62 = vpop.xlane.xlu0 %5695  ;;  %v5967_v11 = vadd.f32 %v15996_v27, %v15994_v34 }
 0x71f   : > { %11416 = vpow2.f32 %v5868_v13  ;;  %v5772_v42 = vsub.f32 %v15796_v47, %v5696_v62  ;;  %v5773_v52 = vsub.f32 %v15798_v59, %v5696_v62 }
 0x720   : > { %11418 = vpow2.f32 %v5870_v15  ;;  %v16002_v9 = vpop.eup %11404  ;;  %5968 = vadd.xlane.f32.xlu1 %v5967_v11 }
 0x721   : > { %v5872_v24 = vmul.f32 1.442695, %v5772_v42  ;;  %v5874_v33 = vmul.f32 1.442695, %v5773_v52  ;;  %v16004_v58 = vpop.eup %11406 }
 0x722   : > { %v5699_v44 = vpop.xlane.xlu1 %5698  ;;  %v5970_v59 = vadd.f32 %v16004_v58, %v16002_v9 }
 0x723   : > { %11420 = vpow2.f32 %v5872_v24  ;;  %v5774_v46 = vsub.f32 %v15802_v50, %v5699_v44  ;;  %v5775_v21 = vsub.f32 %v15804_v3, %v5699_v44 }
 0x724   : > { %11422 = vpow2.f32 %v5874_v33  ;;  %v16010_v47 = vpop.eup %11408  ;;  %5971 = vadd.xlane.f32.xlu0 %v5970_v59 }
 0x725   : > { %v5876_v14 = vmul.f32 1.442695, %v5774_v46  ;;  %v5878_v8 = vmul.f32 1.442695, %v5775_v21  ;;  %v16012_v37 = vpop.eup %11410 }
 0x726   : > { %v5702_v60 = vpop.xlane.xlu0 %5701  ;;  %v5973_v3 = vadd.f32 %v16012_v37, %v16010_v47 }
 0x727   : > { %11424 = vpow2.f32 %v5876_v14  ;;  %v5776_v56 = vsub.f32 %v15808_v6, %v5702_v60  ;;  %v5777_v23 = vsub.f32 %v15810_v40, %v5702_v60 }
 0x728   : > { %11426 = vpow2.f32 %v5878_v8  ;;  %v16018_v50 = vpop.eup %11412  ;;  %5974 = vadd.xlane.f32.xlu1 %v5973_v3 }
 0x729   : > { %v5880_v18 = vmul.f32 1.442695, %v5776_v56  ;;  %v5882_v28 = vmul.f32 1.442695, %v5777_v23  ;;  %v16020_v13 = vpop.eup %11414 }
 0x72a   : > { %v5705_v15 = vpop.xlane.xlu1 %5704  ;;  %v5976_v40 = vadd.f32 %v16020_v13, %v16018_v50 }
 0x72b   : > { %11428 = vpow2.f32 %v5880_v18  ;;  %v5778_v62 = vsub.f32 %v15814_v10, %v5705_v15  ;;  %v5779_v42 = vsub.f32 %v15816_v2, %v5705_v15 }
 0x72c   : > { %v16026_v6 = vpop.eup %11416  ;;  %11430 = vpow2.f32 %v5882_v28  ;;  %5977 = vadd.xlane.f32.xlu0 %v5976_v40 }
 0x72d   : > { %v16028_v52 = vpop.eup %11418  ;;  %v5884_v11 = vmul.f32 1.442695, %v5778_v62  ;;  %v5886_v24 = vmul.f32 1.442695, %v5779_v42 }
 0x72e   : > { %v5708_v33 = vpop.xlane.xlu0 %5707  ;;  %v5979_v44 = vadd.f32 %v16028_v52, %v16026_v6 }
 0x72f   : > { %11432 = vpow2.f32 %v5884_v11  ;;  %v5780_v10 = vsub.f32 %v15820_v20, %v5708_v33  ;;  %v5781_v2 = vsub.f32 %v15822_v57, %v5708_v33 }
 0x730   : > { %v16034_v46 = vpop.eup %11420  ;;  %11434 = vpow2.f32 %v5886_v24  ;;  %5980 = vadd.xlane.f32.xlu1 %v5979_v44  ;;  %v18590_v44 = vld [vmem:[#allocation57_spill] sm:$0xff] }
 0x731   : > { %v16036_v21 = vpop.eup %11422  ;;  %v5888_v59 = vmul.f32 1.442695, %v5780_v10  ;;  %v5890_v14 = vmul.f32 1.442695, %v5781_v2  ;;  %v18591_v2 = vld [vmem:[#allocation67_spill] sm:$0xff] }
 0x732   : > { %v5711_v8 = vpop.xlane.xlu0 %5710  ;;  %v5982_v60 = vadd.f32 %v16036_v21, %v16034_v46 }
 0x733   : > { %11436 = vpow2.f32 %v5888_v59  ;;  %v5782_v56 = vsub.f32 %v15826_v61, %v5711_v8  ;;  %v5783_v23 = vsub.f32 %v15828_v35, %v5711_v8 }
 0x734   : > { %v16042_v20 = vpop.eup %11424  ;;  %11438 = vpow2.f32 %v5890_v14  ;;  %5983 = vadd.xlane.f32.xlu0 %v5982_v60 }
 0x735   : > { %v16044_v57 = vpop.eup %11426  ;;  %v5892_v3 = vmul.f32 1.442695, %v5782_v56  ;;  %v5894_v18 = vmul.f32 1.442695, %v5783_v23  ;;  %v18592_v23 = vld [vmem:[#allocation61_spill] sm:$0xff] }
 0x736   : > { %v5714_v28 = vpop.xlane.xlu0 %5713  ;;  %v5985_v15 = vadd.f32 %v16044_v57, %v16042_v20 }
 0x737   : > { %11440 = vpow2.f32 %v5892_v3  ;;  %v5784_v62 = vsub.f32 %v15832_v22, %v5714_v28  ;;  %v5785_v42 = vsub.f32 %v15834_v31, %v5714_v28 }
 0x738   : > { %v16050_v61 = vpop.eup %11428  ;;  %11442 = vpow2.f32 %v5894_v18  ;;  %5986 = vadd.xlane.f32.xlu1 %v5985_v15  ;;  %v18593_v18 = vld [vmem:[#allocation65_spill] sm:$0xff] }
 0x739   : > { %v16052_v35 = vpop.eup %11430  ;;  %v5896_v40 = vmul.f32 1.442695, %v5784_v62  ;;  %v5898_v11 = vmul.f32 1.442695, %v5785_v42 }
 0x73a   : > { %v5717_v24 = vpop.xlane.xlu0 %5716  ;;  %v5988_v33 = vadd.f32 %v16052_v35, %v16050_v61 }
 0x73b   : > { %11444 = vpow2.f32 %v5896_v40  ;;  %v5786_v10 = vsub.f32 %v18590_v44, %v5717_v24  ;;  %v5787_v59 = vsub.f32 %v18591_v2, %v5717_v24 }
 0x73c   : > { %v16058_v22 = vpop.eup %11432  ;;  %11446 = vpow2.f32 %v5898_v11  ;;  %5989 = vadd.xlane.f32.xlu0 %v5988_v33  ;;  %v18594_v33 = vld [vmem:[#allocation257_spill] sm:$0xff] }
 0x73d   : > { %v16060_v31 = vpop.eup %11434  ;;  %v5900_v14 = vmul.f32 1.442695, %v5786_v10  ;;  %v5902_v8 = vmul.f32 1.442695, %v5787_v59  ;;  %v18595_v10 = vld [vmem:[#allocation259_spill] sm:$0xff] }
 0x73e   : > { %v5720_v60 = vpop.xlane.xlu0 %5719  ;;  %v5991_v56 = vadd.f32 %v16060_v31, %v16058_v22 }
 0x73f   : > { %11448 = vpow2.f32 %v5900_v14  ;;  %v5788_v3 = vsub.f32 %v18592_v23, %v5720_v60  ;;  %v5789_v28 = vsub.f32 %v18593_v18, %v5720_v60 }
 0x740   : > { %v16066_v15 = vpop.eup %11436  ;;  %11450 = vpow2.f32 %v5902_v8  ;;  %5992 = vadd.xlane.f32.xlu1 %v5991_v56 }
 0x741   : > { %v16068_v62 = vpop.eup %11438  ;;  %v5904_v42 = vmul.f32 1.442695, %v5788_v3  ;;  %v5906_v40 = vmul.f32 1.442695, %v5789_v28  ;;  %v18598_v3 = vld [vmem:[#allocation258_spill] sm:$0xff]  ;;  %v18599_v28 = vld [vmem:[#allocation261_spill] sm:$0xff] }
 0x742   : > { %v5723_v11 = vpop.xlane.xlu0 %5722  ;;  %v5994_v24 = vadd.f32 %v16068_v62, %v16066_v15 }
 0x743   : > { %11452 = vpow2.f32 %v5904_v42  ;;  %v5790_v44 = vsub.f32 %v18594_v33, %v5723_v11  ;;  %v5791_v2 = vsub.f32 %v18595_v10, %v5723_v11 }
 0x744   : > { %v16074_v59 = vpop.eup %11440  ;;  %11454 = vpow2.f32 %v5906_v40  ;;  %5995 = vadd.xlane.f32.xlu0 %v5994_v24 }
 0x745   : > { %18596 = vst [vmem:[#allocation264_spill] sm:$0xff] %v16074_v59  ;;  %v16076_v14 = vpop.eup %11442  ;;  %v5908_v8 = vmul.f32 1.442695, %v5790_v44  ;;  %v5910_v60 = vmul.f32 1.442695, %v5791_v2  ;;  %v18602_v2 = vld [vmem:[#allocation260_spill] sm:$0xff] }
 0x746   : > { %18597 = vst [vmem:[#allocation90_spill] sm:$0xff] %v16076_v14  ;;  %v5726_v56 = vpop.xlane.xlu0 %5725  ;;  %v5997_v23 = vadd.f32 %v16076_v14, %v16074_v59 }
 0x747   : > { %11456 = vpow2.f32 %v5908_v8  ;;  %v5792_v18 = vsub.f32 %v18598_v3, %v5726_v56  ;;  %v5793_v42 = vsub.f32 %v18599_v28, %v5726_v56  ;;  %v18603_v8 = vld [vmem:[#allocation263_spill] sm:$0xff] }
 0x748   : > { %v16082_v33 = vpop.eup %11444  ;;  %11458 = vpow2.f32 %v5910_v60  ;;  %5998 = vadd.xlane.f32.xlu1 %v5997_v23 }
 0x749   : > { %18600 = vst [vmem:[#allocation97_spill] sm:$0xff] %v16082_v33  ;;  %v16084_v11 = vpop.eup %11446  ;;  %v5912_v40 = vmul.f32 1.442695, %v5792_v18  ;;  %v5914_v24 = vmul.f32 1.442695, %v5793_v42  ;;  %v18605_v42 = vld [vmem:[#allocation262_spill] sm:$0xff] }
 0x74a   : > { %18601 = vst [vmem:[#allocation95_spill] sm:$0xff] %v16084_v11  ;;  %v5729_v10 = vpop.xlane.xlu0 %5728  ;;  %v6000_v44 = vadd.f32 %v16084_v11, %v16082_v33 }
 0x74b   : > { %11460 = vpow2.f32 %v5912_v40  ;;  %v5794_v59 = vsub.f32 %v18602_v2, %v5729_v10  ;;  %v5795_v14 = vsub.f32 %v18603_v8, %v5729_v10  ;;  %v18606_v40 = vld [vmem:[#allocation93_spill] sm:$0xff] }
 0x74c   : > { %v16090_v3 = vpop.eup %11448  ;;  %11462 = vpow2.f32 %v5914_v24  ;;  %6001 = vadd.xlane.f32.xlu0 %v6000_v44 }
 0x74d   : > { %18604 = vst [vmem:[#allocation101_spill] sm:$0xff] %v16090_v3  ;;  %v16092_v56 = vpop.eup %11450  ;;  %v5916_v60 = vmul.f32 1.442695, %v5794_v59  ;;  %v5918_v23 = vmul.f32 1.442695, %v5795_v14 }
 0x74e   : > { %v5732_v28 = vpop.xlane.xlu0 %5731  ;;  %v6003_v18 = vadd.f32 %v16092_v56, %v16090_v3 }
 0x74f   : > { %11464 = vpow2.f32 %v5916_v60  ;;  %v5796_v33 = vsub.f32 %v18605_v42, %v5732_v28  ;;  %v5797_v11 = vsub.f32 %v18606_v40, %v5732_v28  ;;  %v18607_v60 = vld [vmem:[#allocation265_spill] sm:$0xff] }
 0x750   : > { %v16098_v2 = vpop.eup %11452  ;;  %11466 = vpow2.f32 %v5918_v23  ;;  %6004 = vadd.xlane.f32.xlu1 %v6003_v18 }
 0x751   : > { %v16100_v10 = vpop.eup %11454  ;;  %v5920_v24 = vmul.f32 1.442695, %v5796_v33  ;;  %v5922_v44 = vmul.f32 1.442695, %v5797_v11 }
 0x752   : > { %v5735_v8 = vpop.xlane.xlu0 %5734  ;;  %v6006_v59 = vadd.f32 %v16100_v10, %v16098_v2 }
 0x753   : > { %11468 = vpow2.f32 %v5920_v24  ;;  %v5798_v14 = vsub.f32 %v15874_v54, %v5735_v8  ;;  %v5799_v3 = vsub.f32 %v18607_v60, %v5735_v8 }
 0x754   : > { %v16106_v42 = vpop.eup %11456  ;;  %11470 = vpow2.f32 %v5922_v44  ;;  %6007 = vadd.xlane.f32.xlu0 %v6006_v59 }
 0x755   : > { %18608 = vst [vmem:[#allocation99_spill] sm:$0xff] %v16106_v42  ;;  %v16108_v28 = vpop.eup %11458  ;;  %v5924_v23 = vmul.f32 1.442695, %v5798_v14  ;;  %v5926_v18 = vmul.f32 1.442695, %v5799_v3 }
 0x756   : > { %v6009_v33 = vadd.f32 %v16108_v28, %v16106_v42 }
 0x757   : > { %11472 = vpow2.f32 %v5924_v23 }
 0x758   : > { %v16112_v11 = vpop.eup %11460  ;;  %11474 = vpow2.f32 %v5926_v18  ;;  %6010 = vadd.xlane.f32.xlu1 %v6009_v33 }
 0x759   : > { %18609 = vst [vmem:[#allocation105_spill] sm:$0xff] %v16112_v11  ;;  %v16114_v40 = vpop.eup %11462 }
 0x75a   : > { %18610 = vst [vmem:[#allocation103_spill] sm:$0xff] %v16114_v40  ;;  %v6012_v54 = vadd.f32 %v16114_v40, %v16112_v11  ;;  %v18617_v11 = vld [vmem:[#allocation82_spill] sm:$0xff]  ;;  %v18618_v40 = vld [vmem:[#allocation223_spill] sm:$0xff] }
 0x75b   : > { %v2664_v42 = vadd.f32 %v18618_v40, %v18617_v11  ;;  %v18623_v40 = vld [vmem:[#allocation86_spill] sm:$0xff] }
 0x75c   : > { %v16118_v24 = vpop.eup %11464  ;;  %6013 = vadd.xlane.f32.xlu0 %v6012_v54 }
 0x75d   : > { %18611 = vst [vmem:[#allocation109_spill] sm:$0xff] %v16118_v24  ;;  %v16120_v44 = vpop.eup %11466 }
 0x75e   : > { %18612 = vst [vmem:[#allocation107_spill] sm:$0xff] %v16120_v44  ;;  %v6015_v3 = vadd.f32 %v16120_v44, %v16118_v24 }
 0x760   : > { %v16124_v8 = vpop.eup %11468  ;;  %6016 = vadd.xlane.f32.xlu1 %v6015_v3 }
 0x761   : > { %18613 = vst [vmem:[#allocation113_spill] sm:$0xff] %v16124_v8  ;;  %v16126_v59 = vpop.eup %11470 }
 0x762   : > { %18614 = vst [vmem:[#allocation111_spill] sm:$0xff] %v16126_v59  ;;  %v6018_v14 = vadd.f32 %v16126_v59, %v16124_v8 }
 0x764   : > { %v16130_v60 = vpop.eup %11472  ;;  %6019 = vadd.xlane.f32.xlu0 %v6018_v14 }
 0x765   : > { %18615 = vst [vmem:[#allocation117_spill] sm:$0xff] %v16130_v60  ;;  %v16132_v23 = vpop.eup %11474 }
 0x766   : > { %18616 = vst [vmem:[#allocation115_spill] sm:$0xff] %v16132_v23  ;;  %v6021_v18 = vadd.f32 %v16132_v23, %v16130_v60  ;;  %v18620_v60 = vld [vmem:[#allocation224_spill] sm:$0xff]  ;;  %v18621_v23 = vld [vmem:[#allocation83_spill] sm:$0xff] }
 0x768   : > { %6022 = vadd.xlane.f32.xlu1 %v6021_v18 }
 0x775   : > { %v5930_v33 = vpop.xlane.xlu1 %5929 }
 0x776   : > { %11476 = vrcp.f32 %v5930_v33  ;;  %v18619_v33 = vld [vmem:[#allocation92_spill] sm:$0xff] }
 0x779   : > { %v5933_v54 = vpop.xlane.xlu1 %5932 }
 0x77a   : > { %11478 = vrcp.f32 %v5933_v54  ;;  %v2679_v54 = vadd.f32 %v18620_v60, %v18619_v33  ;;  %v18627_v33 = vld [vmem:[#allocation88_spill] sm:$0xff] }
 0x77d   : > { %v5936_v24 = vpop.xlane.xlu1 %5935 }
 0x77e   : > { %11480 = vrcp.f32 %v5936_v24 }
 0x781   : > { %v5939_v3 = vpop.xlane.xlu1 %5938 }
 0x782   : > { %11482 = vrcp.f32 %v5939_v3 }
 0x783   : > { %v11477_v44 = vpop.eup %11476 }
 0x784   : > { %v6056_v8 = vmul.f32 %v11477_v44, %v15890_v29  ;;  %v6057_v59 = vmul.f32 %v11477_v44, %v15892_v4  ;;  %v18622_v4 = vld [vmem:[#allocation228_spill] sm:$0xff] }
 0x785   : > { %v5942_v14 = vpop.xlane.xlu1 %5941  ;;  %v2663_v44 = vadd.f32 %v18622_v4, %v18621_v23  ;;  %v18630_v4 = vld [vmem:[#allocation236_spill] sm:$0xff] }
 0x786   : > { %11484 = vrcp.f32 %v5942_v14  ;;  %6216 = vmatprep.mubr.f32.mxu1 %v6057_v59  ;;  %v18624_v59 = vld [vmem:[#allocation229_spill] sm:$0xff]  ;;  %v18626_v14 = vld [vmem:[#allocation232_spill] sm:$0xff] }
 0x787   : > { %v11479_v18 = vpop.eup %11478  ;;  %6217 = vmatmul.mubr.f32.vlgmr.msra.gmra.mxu1 %v6056_v8  ;;  %v2678_v8 = vadd.f32 %v18624_v59, %v18623_v40  ;;  %v18631_v40 = vld [vmem:[#allocation84_spill] sm:$0xff]  ;;  %v18632_v59 = vld [vmem:[#allocation237_spill] sm:$0xff] }
 0x788   : > { %9755 = vmatpush3.xpose.msra.mxu1 %v2664_v42  ;;  %v6059_v24 = vmul.f32 %v11479_v18, %v15900_v32  ;;  %v6058_v3 = vmul.f32 %v11479_v18, %v15898_v55  ;;  %v18625_v55 = vld [vmem:[#allocation80_spill] sm:$0xff] }
 0x789   : > { %9756 = vmatprep.subr.mxu1 %v2679_v54  ;;  %v5945_v29 = vpop.xlane.xlu1 %5944  ;;  %v2662_v18 = vadd.f32 %v18626_v14, %v18625_v55  ;;  %v18628_v54 = vld [vmem:[#allocation233_spill] sm:$0xff] }
 0x78a   : > { %11486 = vrcp.f32 %v5945_v29  ;;  %6221 = vmatprep.mubr.f32.mxu1 %v6059_v24  ;;  %v2677_v24 = vadd.f32 %v18628_v54, %v18627_v33 }
 0x78b   : > { %v11481_v11 = vpop.eup %11480  ;;  %6222 = vmatmul.mubr.f32.gmra.mxu1 %v6058_v3 }
 0x78c   : > { %9757 = vmatpush3.xpose.msra.mxu1 %v2663_v44  ;;  %v6061_v60 = vmul.f32 %v11481_v11, %v15908_v51  ;;  %v6060_v42 = vmul.f32 %v11481_v11, %v15906_v43  ;;  %v18629_v43 = vld [vmem:[#allocation81_spill] sm:$0xff] }
 0x78d   : > { %9758 = vmatprep.subr.mxu1 %v2678_v8  ;;  %v5948_v32 = vpop.xlane.xlu1 %5947  ;;  %v2661_v44 = vadd.f32 %v18630_v4, %v18629_v43  ;;  %v2676_v8 = vadd.f32 %v18632_v59, %v18631_v40 }
 0x78e   : > { %11488 = vrcp.f32 %v5948_v32  ;;  %6226 = vmatprep.mubr.f32.mxu1 %v6061_v60  ;;  %v18634_v32 = vld [vmem:[#allocation240_spill] sm:$0xff] }
 0x78f   : > { %v11483_v23 = vpop.eup %11482  ;;  %6227 = vmatmul.mubr.f32.gmra.mxu1 %v6060_v42 }
 0x790   : > { %9759 = vmatpush3.xpose.msra.mxu1 %v2662_v18  ;;  %v6063_v3 = vmul.f32 %v11483_v23, %v15916_v53  ;;  %v6062_v29 = vmul.f32 %v11483_v23, %v15914_v26  ;;  %v18633_v26 = vld [vmem:[#allocation78_spill] sm:$0xff]  ;;  %v18635_v18 = vld [vmem:[#allocation85_spill] sm:$0xff] }
 0x791   : > { %9760 = vmatprep.subr.mxu1 %v2677_v24  ;;  %v5951_v51 = vpop.xlane.xlu1 %5950  ;;  %v2660_v55 = vadd.f32 %v18634_v32, %v18633_v26  ;;  %v18636_v23 = vld [vmem:[#allocation241_spill] sm:$0xff] }
 0x792   : > { %11490 = vrcp.f32 %v5951_v51  ;;  %6231 = vmatprep.mubr.f32.mxu1 %v6063_v3  ;;  %v2675_v33 = vadd.f32 %v18636_v23, %v18635_v18  ;;  %v18638_v3 = vld [vmem:[#allocation243_spill] sm:$0xff]  ;;  %v18645_v23 = vld [vmem:[#allocation192_spill] sm:$0xff] }
 0x793   : > { %v11485_v11 = vpop.eup %11484  ;;  %6232 = vmatmul.mubr.f32.gmra.mxu1 %v6062_v29 }
 0x794   : > { %9761 = vmatpush3.xpose.msra.mxu1 %v2661_v44  ;;  %v6065_v60 = vmul.f32 %v11485_v11, %v15924_v7  ;;  %v6064_v42 = vmul.f32 %v11485_v11, %v15922_v25  ;;  %v18637_v25 = vld [vmem:[#allocation79_spill] sm:$0xff]  ;;  %v18639_v11 = vld [vmem:[#allocation196_spill] sm:$0xff] }
 0x795   : > { %9762 = vmatprep.subr.mxu1 %v2676_v8  ;;  %v5954_v53 = vpop.xlane.xlu1 %5953  ;;  %v2659_v29 = vadd.f32 %v18638_v3, %v18637_v25  ;;  %v18648_v3 = vld [vmem:[#allocation194_spill] sm:$0xff] }
 0x796   : > { %11492 = vrcp.f32 %v5954_v53  ;;  %6236 = vmatprep.mubr.f32.mxu1 %v6065_v60  ;;  %v18642_v53 = vld [vmem:[#allocation198_spill] sm:$0xff] }
 0x797   : > { %v11487_v14 = vpop.eup %11486  ;;  %6237 = vmatmul.mubr.f32.gmra.mxu1 %v6064_v42 }
 0x798   : > { %9763 = vmatpush3.xpose.msra.mxu1 %v2660_v55  ;;  %v6067_v54 = vmul.f32 %v11487_v14, %v15932_v49  ;;  %v6066_v24 = vmul.f32 %v11487_v14, %v15930_v0  ;;  %v18640_v49 = vld [vmem:[#allocation76_spill] sm:$0xff]  ;;  %v18641_v0 = vld [vmem:[#allocation245_spill] sm:$0xff] }
 0x799   : > { %9764 = vmatprep.subr.mxu1 %v2675_v33  ;;  %v5957_v7 = vpop.xlane.xlu1 %5956  ;;  %v2658_v40 = vadd.f32 %v18641_v0, %v18640_v49  ;;  %v18653_v49 = vld [vmem:[#allocation253_spill] sm:$0xff] }
 0x79a   : > { %11494 = vrcp.f32 %v5957_v7  ;;  %6241 = vmatprep.mubr.f32.mxu1 %v6067_v54 }
 0x79b   : > { %v11489_v51 = vpop.eup %11488  ;;  %6242 = vmatmul.mubr.f32.gmra.mxu1 %v6066_v24 }
 0x79c   : > { %9765 = vmatpush3.xpose.msra.mxu1 %v2659_v29  ;;  %v6069_v4 = vmul.f32 %v11489_v51, %v15940_v1  ;;  %v6068_v44 = vmul.f32 %v11489_v51, %v15938_v48  ;;  %v18643_v1 = vld [vmem:[#allocation77_spill] sm:$0xff]  ;;  %v18644_v48 = vld [vmem:[#allocation247_spill] sm:$0xff] }
 0x79d   : > { %v5960_v43 = vpop.xlane.xlu0 %5959  ;;  %9766 = vmatprep.subr.mxu1 %v18639_v11  ;;  %v2657_v26 = vadd.f32 %v18644_v48, %v18643_v1  ;;  %v18650_v29 = vld [vmem:[#allocation251_spill] sm:$0xff]  ;;  %v18651_v11 = vld [vmem:[#allocation188_spill] sm:$0xff] }
 0x79e   : > { %11496 = vrcp.f32 %v5960_v43  ;;  %6246 = vmatprep.mubr.f32.mxu1 %v6069_v4 }
 0x79f   : > { %v11491_v59 = vpop.eup %11490  ;;  %6247 = vmatmul.mubr.f32.gmra.mxu1 %v6068_v44 }
 0x7a0   : > { %9767 = vmatpush3.xpose.msra.mxu1 %v2658_v40  ;;  %v6071_v60 = vmul.f32 %v11491_v59, %v15948_v12  ;;  %v6070_v42 = vmul.f32 %v11491_v59, %v15946_v30  ;;  %v18646_v12 = vld [vmem:[#allocation74_spill] sm:$0xff]  ;;  %v18647_v30 = vld [vmem:[#allocation249_spill] sm:$0xff] }
 0x7a1   : > { %v5963_v8 = vpop.xlane.xlu1 %5962  ;;  %9768 = vmatprep.subr.mxu1 %v18642_v53  ;;  %v2656_v33 = vadd.f32 %v18647_v30, %v18646_v12  ;;  %v18661_v30 = vld [vmem:[#allocation71_spill] sm:$0xff] }
 0x7a2   : > { %11498 = vrcp.f32 %v5963_v8  ;;  %6251 = vmatprep.mubr.f32.mxu1 %v6071_v60  ;;  %v18655_v60 = vld [vmem:[#allocation73_spill] sm:$0xff] }
 0x7a3   : > { %v11493_v32 = vpop.eup %11492  ;;  %6252 = vmatmul.mubr.f32.gmra.mxu1 %v6070_v42  ;;  %v18656_v42 = vld [vmem:[#allocation255_spill] sm:$0xff] }
 0x7a4   : > { %9769 = vmatpush3.xpose.msra.mxu1 %v2657_v26  ;;  %v6073_v14 = vmul.f32 %v11493_v32, %v15956_v45  ;;  %v6072_v18 = vmul.f32 %v11493_v32, %v15954_v5  ;;  %v18649_v5 = vld [vmem:[#allocation75_spill] sm:$0xff]  ;;  %v2653_v53 = vadd.f32 %v18656_v42, %v18655_v60  ;;  %v18658_v32 = vld [vmem:[#allocation70_spill] sm:$0xff] }
 0x7a5   : > { %v5966_v55 = vpop.xlane.xlu0 %5965  ;;  %9770 = vmatprep.subr.mxu1 %v18645_v23  ;;  %v2655_v51 = vadd.f32 %v18650_v29, %v18649_v5 }
 0x7a6   : > { %11500 = vrcp.f32 %v5966_v55  ;;  %6256 = vmatprep.mubr.f32.mxu1 %v6073_v14  ;;  %v18659_v55 = vld [vmem:[#allocation206_spill] sm:$0xff] }
 0x7a7   : > { %v11495_v54 = vpop.eup %11494  ;;  %6257 = vmatmul.mubr.f32.gmra.mxu1 %v6072_v18  ;;  %v2652_v14 = vadd.f32 %v18659_v55, %v18658_v32  ;;  %v18669_v32 = vld [vmem:[#allocation90_spill] sm:$0xff] }
 0x7a8   : > { %9771 = vmatpush3.xpose.msra.mxu1 %v2656_v33  ;;  %v6075_v7 = vmul.f32 %v11495_v54, %v15964_v63  ;;  %v6074_v25 = vmul.f32 %v11495_v54, %v15962_v17  ;;  %v18652_v63 = vld [vmem:[#allocation72_spill] sm:$0xff] }
 0x7a9   : > { %v5969_v24 = vpop.xlane.xlu1 %5968  ;;  %9772 = vmatprep.subr.mxu1 %v18648_v3  ;;  %v2654_v0 = vadd.f32 %v18653_v49, %v18652_v63  ;;  %v18662_v33 = vld [vmem:[#allocation212_spill] sm:$0xff] }
 0x7aa   : > { %11502 = vrcp.f32 %v5969_v24  ;;  %6261 = vmatprep.mubr.f32.mxu1 %v6075_v7  ;;  %v2651_v54 = vadd.f32 %v18662_v33, %v18661_v30  ;;  %v18664_v3 = vld [vmem:[#allocation68_spill] sm:$0xff]  ;;  %v16242_v33 = vpop.f32.mrf.mxu1 }
 0x7ab   : > { %v11497_v45 = vpop.eup %11496  ;;  %6262 = vmatmul.mubr.f32.gmra.mxu1 %v6074_v25 }
 0x7ac   : > { %v6077_v43 = vmul.f32 %v11497_v45, %v15972_v38  ;;  %v6076_v4 = vmul.f32 %v11497_v45, %v15970_v39  ;;  %9773 = vmatpush3.xpose.msra.mxu1 %v2655_v51  ;;  %v18654_v38 = vld [vmem:[#allocation190_spill] sm:$0xff] }
 0x7ad   : > { %v5972_v44 = vpop.xlane.xlu0 %5971  ;;  %9774 = vmatprep.subr.mxu1 %v18651_v11  ;;  %v18665_v45 = vld [vmem:[#allocation182_spill] sm:$0xff] }
 0x7ae   : > { %11504 = vrcp.f32 %v5972_v44  ;;  %6266 = vmatprep.mubr.f32.mxu1 %v6077_v43  ;;  %v2650_v5 = vadd.f32 %v18665_v45, %v18664_v3  ;;  %v18668_v44 = vld [vmem:[#allocation155_spill] sm:$0xff] }
 0x7af   : > { %v11499_v17 = vpop.eup %11498  ;;  %6267 = vmatmul.mubr.f32.gmra.mxu1 %v6076_v4  ;;  %v18667_v4 = vld [vmem:[#allocation69_spill] sm:$0xff] }
 0x7b0   : > { %v6079_v40 = vmul.f32 %v11499_v17, %v15980_v41  ;;  %v6078_v59 = vmul.f32 %v11499_v17, %v15978_v36  ;;  %9775 = vmatpush3.xpose.msra.mxu1 %v2654_v0  ;;  %v18657_v41 = vld [vmem:[#allocation184_spill] sm:$0xff]  ;;  %v2649_v11 = vadd.f32 %v18668_v44, %v18667_v4  ;;  %v18677_v4 = vld [vmem:[#allocation103_spill] sm:$0xff] }
 0x7b1   : > { %v5975_v8 = vpop.xlane.xlu1 %5974  ;;  %9776 = vmatprep.subr.mxu1 %v18654_v38 }
 0x7b2   : > { %11506 = vrcp.f32 %v5975_v8  ;;  %6271 = vmatprep.mubr.f32.mxu1 %v6079_v40 }
 0x7b3   : > { %v11501_v39 = vpop.eup %11500  ;;  %6272 = vmatmul.mubr.f32.gmra.mxu1 %v6078_v59 }
 0x7b4   : > { %v6081_v1 = vmul.f32 %v11501_v39, %v15988_v16  ;;  %v6080_v48 = vmul.f32 %v11501_v39, %v15986_v19  ;;  %9777 = vmatpush3.xpose.msra.mxu1 %v2653_v53  ;;  %v18660_v16 = vld [vmem:[#allocation186_spill] sm:$0xff] }
 0x7b5   : > { %v5978_v26 = vpop.xlane.xlu0 %5977  ;;  %9778 = vmatprep.subr.mxu1 %v18657_v41 }
 0x7b6   : > { %11508 = vrcp.f32 %v5978_v26  ;;  %6276 = vmatprep.mubr.f32.mxu1 %v6081_v1 }
 0x7b7   : > { %v11503_v36 = vpop.eup %11502  ;;  %6277 = vmatmul.mubr.f32.gmra.mxu1 %v6080_v48 }
 0x7b8   : > { %v6083_v23 = vmul.f32 %v11503_v36, %v15996_v27  ;;  %v6082_v12 = vmul.f32 %v11503_v36, %v15994_v34  ;;  %9779 = vmatpush3.xpose.msra.mxu1 %v2652_v14  ;;  %v18663_v27 = vld [vmem:[#allocation179_spill] sm:$0xff]  ;;  %v18670_v14 = vld [vmem:[#allocation264_spill] sm:$0xff] }
 0x7b9   : > { %v5981_v18 = vpop.xlane.xlu1 %5980  ;;  %9780 = vmatprep.subr.mxu1 %v18660_v16  ;;  %v18672_v16 = vld [vmem:[#allocation97_spill] sm:$0xff] }
 0x7ba   : > { %11510 = vrcp.f32 %v5981_v18  ;;  %6281 = vmatprep.mubr.f32.mxu1 %v6083_v23  ;;  %v18671_v23 = vld [vmem:[#allocation95_spill] sm:$0xff] }
 0x7bb   : > { %v11505_v19 = vpop.eup %11504  ;;  %6282 = vmatmul.mubr.f32.gmra.mxu1 %v6082_v12 }
 0x7bc   : > { %v6085_v7 = vmul.f32 %v11505_v19, %v16004_v58  ;;  %v6084_v25 = vmul.f32 %v11505_v19, %v16002_v9  ;;  %9781 = vmatpush3.xpose.msra.mxu1 %v2651_v54  ;;  %v18666_v58 = vld [vmem:[#allocation181_spill] sm:$0xff] }
 0x7bd   : > { %v5984_v24 = vpop.xlane.xlu0 %5983  ;;  %9782 = vmatprep.subr.mxu1 %v18663_v27 }
 0x7be   : > { %11512 = vrcp.f32 %v5984_v24  ;;  %6286 = vmatprep.mubr.f32.mxu1 %v6085_v7  ;;  %v18673_v24 = vld [vmem:[#allocation101_spill] sm:$0xff] }
 0x7bf   : > { %v11507_v34 = vpop.eup %11506  ;;  %6287 = vmatmul.mubr.f32.gmra.mxu1 %v6084_v25 }
 0x7c0   : > { %v6087_v51 = vmul.f32 %v11507_v34, %v16012_v37  ;;  %v6086_v43 = vmul.f32 %v11507_v34, %v16010_v47  ;;  %9783 = vmatpush3.xpose.msra.mxu1 %v2650_v5  ;;  %v16222_v47 = vld [vmem:[#allocation18 + $0x78] sm:$0xff]  ;;  %v16246_v34 = vpop.f32.mrf.mxu1 }
 0x7c1   : > { %v5987_v29 = vpop.xlane.xlu1 %5986  ;;  %9784 = vmatprep.subr.mxu1 %v18666_v58  ;;  %18674 = vst [vmem:[#allocation121_spill] sm:$0xff] %v16246_v34 }
 0x7c2   : > { %11514 = vrcp.f32 %v5987_v29  ;;  %6291 = vmatprep.mubr.f32.mxu1 %v6087_v51  ;;  %v16249_v5 = vpop.f32.mrf.mxu1 }
 0x7c3   : > { %v11509_v9 = vpop.eup %11508  ;;  %6292 = vmatmul.mubr.f32.gmra.mxu1 %v6086_v43  ;;  %v18675_v43 = vld [vmem:[#allocation99_spill] sm:$0xff] }
 0x7c4   : > { %v6089_v63 = vmul.f32 %v11509_v9, %v16020_v13  ;;  %v6088_v49 = vmul.f32 %v11509_v9, %v16018_v50  ;;  %9785 = vmatpush3.xpose.msra.mxu1 %v2649_v11  ;;  %v16253_v9 = vpop.f32.mrf.mxu1 }
 0x7c5   : > { %v5990_v17 = vpop.xlane.xlu0 %5989  ;;  %10826 = vmatprep.subr.mxu1 %v16222_v47  ;;  %18676 = vst [vmem:[#allocation119_spill] sm:$0xff] %v16253_v9 }
 0x7c6   : > { %11516 = vrcp.f32 %v5990_v17  ;;  %6296 = vmatprep.mubr.f32.mxu1 %v6089_v63  ;;  %v16256_v11 = vpop.f32.mrf.mxu1 }
 0x7c7   : > { %v11511_v37 = vpop.eup %11510  ;;  %6297 = vmatmul.mubr.f32.gmra.mxu1 %v6088_v49  ;;  %v18679_v49 = vld [vmem:[#allocation107_spill] sm:$0xff] }
 0x7c8   : > { %v6091_v0 = vmul.f32 %v11511_v37, %v16028_v52  ;;  %v6090_v59 = vmul.f32 %v11511_v37, %v16026_v6  ;;  %v16260_v37 = vpop.f32.mrf.mxu1 }
 0x7c9   : > { %v5993_v40 = vpop.xlane.xlu1 %5992  ;;  %18680 = vst [vmem:[#allocation123_spill] sm:$0xff] %v16260_v37 }
 0x7ca   : > { %11518 = vrcp.f32 %v5993_v40  ;;  %6301 = vmatprep.mubr.f32.mxu1 %v6091_v0  ;;  %v18681_v0 = vld [vmem:[#allocation109_spill] sm:$0xff] }
 0x7cb   : > { %v11513_v8 = vpop.eup %11512  ;;  %6302 = vmatmul.mubr.f32.gmra.mxu1 %v6090_v59 }
 0x7cc   : > { %v6093_v13 = vmul.f32 %v11513_v8, %v16036_v21  ;;  %v6092_v38 = vmul.f32 %v11513_v8, %v16034_v46  ;;  %v16263_v8 = vpop.f32.mrf.mxu1 }
 0x7cd   : > { %v5996_v50 = vpop.xlane.xlu0 %5995 }
 0x7ce   : > { %11520 = vrcp.f32 %v5996_v50  ;;  %6306 = vmatprep.mubr.f32.mxu1 %v6093_v13  ;;  %v18682_v13 = vld [vmem:[#allocation111_spill] sm:$0xff] }
 0x7cf   : > { %v11515_v39 = vpop.eup %11514  ;;  %6307 = vmatmul.mubr.f32.gmra.mxu1 %v6092_v38  ;;  %v18683_v38 = vld [vmem:[#allocation113_spill] sm:$0xff] }
 0x7d0   : > { %v6095_v60 = vmul.f32 %v11515_v39, %v16044_v57  ;;  %v6094_v42 = vmul.f32 %v11515_v39, %v16042_v20 }
 0x7d1   : > { %v5999_v52 = vpop.xlane.xlu1 %5998 }
 0x7d2   : > { %11522 = vrcp.f32 %v5999_v52  ;;  %6311 = vmatprep.mubr.f32.mxu1 %v6095_v60  ;;  %v16267_v52 = vpop.f32.mrf.mxu1 }
 0x7d3   : > { %v11517_v6 = vpop.eup %11516  ;;  %6312 = vmatmul.mubr.f32.gmra.mxu1 %v6094_v42  ;;  %18684 = vst [vmem:[#allocation128_spill] sm:$0xff] %v16267_v52  ;;  %v16272_v42 = vld [vmem:[%s17685_s5 + $0x2] ss:$0 sm:$0xff] }
 0x7d4   : > { %v6097_v53 = vmul.f32 %v11517_v6, %v16052_v35  ;;  %v6096_v1 = vmul.f32 %v11517_v6, %v16050_v61  ;;  %v18685_v6 = vld [vmem:[#allocation159_spill] sm:$0xff] }
 0x7d5   : > { %v6002_v21 = vpop.xlane.xlu0 %6001 }
 0x7d6   : > { %11524 = vrcp.f32 %v6002_v21  ;;  %6316 = vmatprep.mubr.f32.mxu1 %v6097_v53  ;;  %v2806_v53 = vadd.f32 %v16272_v42, %v18685_v6  ;;  %v18686_v21 = vld [vmem:[#allocation115_spill] sm:$0xff]  ;;  %v18705_v6 = vld [vmem:[#allocation169_spill] sm:$0xff] }
 0x7d7   : > { %v11519_v46 = vpop.eup %11518  ;;  %6317 = vmatmul.mubr.f32.gmra.mxu1 %v6096_v1 }
 0x7d8   : > { %v6099_v48 = vmul.f32 %v11519_v46, %v16060_v31  ;;  %v6098_v26 = vmul.f32 %v11519_v46, %v16058_v22  ;;  %v16277_v46 = vpop.f32.mrf.mxu1 }
 0x7d9   : > { %v6005_v57 = vpop.xlane.xlu1 %6004 }
 0x7da   : > { %11526 = vrcp.f32 %v6005_v57  ;;  %6321 = vmatprep.mubr.f32.mxu1 %v6099_v48  ;;  %v18687_v48 = vld [vmem:[#allocation117_spill] sm:$0xff] }
 0x7db   : > { %v11521_v20 = vpop.eup %11520  ;;  %6322 = vmatmul.mubr.f32.gmra.mxu1 %v6098_v26  ;;  %v18688_v26 = vld [vmem:[#allocation156_spill] sm:$0xff] }
 0x7dc   : > { %v6101_v41 = vmul.f32 %v11521_v20, %v16068_v62  ;;  %v6100_v36 = vmul.f32 %v11521_v20, %v16066_v15  ;;  %v2966_v20 = vmul.f32 %v18688_v26, %v2806_v53 }
 0x7dd   : > { %v6008_v35 = vpop.xlane.xlu0 %6007 }
 0x7de   : > { %11528 = vrcp.f32 %v6008_v35  ;;  %6326 = vmatprep.mubr.f32.mxu1 %v6101_v41  ;;  %v16281_v41 = vpop.f32.mrf.mxu1 }
 0x7df   : > { %v11523_v61 = vpop.eup %11522  ;;  %6327 = vmatmul.mubr.f32.gmra.mxu1 %v6100_v36  ;;  %18689 = vst [vmem:[#allocation126_spill] sm:$0xff] %v16281_v41  ;;  %v18690_v36 = vld [vmem:[#allocation162_spill] sm:$0xff] }
 0x7e0   : > { %v6103_v55 = vmul.f32 %v11523_v61, %v18669_v32  ;;  %v6102_v18 = vmul.f32 %v11523_v61, %v18670_v14  ;;  %v16283_v35 = vpop.f32.mrf.mxu1  ;;  %v2816_v61 = vadd.f32 %v16272_v42, %v18690_v36  ;;  %v18691_v32 = vld [vmem:[#allocation160_spill] sm:$0xff]  ;;  %v18708_v36 = vld [vmem:[#allocation171_spill] sm:$0xff] }
 0x7e1   : > { %v6011_v31 = vpop.xlane.xlu1 %6010 }
 0x7e2   : > { %11530 = vrcp.f32 %v6011_v31  ;;  %6331 = vmatprep.mubr.f32.mxu1 %v6103_v55  ;;  %v16289_v55 = vpop.f32.mrf.mxu1  ;;  %v12119_v31 = vld [vmem:[#allocation18 + $0x70] sm:$0xff]  ;;  %v2968_v14 = vmul.f32 %v18688_v26, %v2816_v61 }
 0x7e3   : > { %v11525_v22 = vpop.eup %11524  ;;  %6332 = vmatmul.mubr.f32.gmra.mxu1 %v6102_v18  ;;  %18692 = vst [vmem:[#allocation120_spill] sm:$0xff] %v16289_v55 }
 0x7e4   : > { %v6105_v12 = vmul.f32 %v11525_v22, %v18671_v23  ;;  %v6104_v19 = vmul.f32 %v11525_v22, %v18672_v16  ;;  %v16292_v18 = vpop.f32.mrf.mxu1  ;;  %v12120_v22 = vld [vmem:[#allocation18 + $0x68] sm:$0xff]  ;;  %v12121_v23 = vld [vmem:[#allocation18 + $0x60] sm:$0xff]  ;;  %v12122_v16 = vld [vmem:[#allocation18 + $0x58] sm:$0xff] }
 0x7e5   : > { %v6014_v62 = vpop.xlane.xlu0 %6013 }
 0x7e6   : > { %11532 = vrcp.f32 %v6014_v62  ;;  %6336 = vmatprep.mubr.f32.mxu1 %v6105_v12  ;;  %v18693_v12 = vld [vmem:[#allocation164_spill] sm:$0xff]  ;;  %v16297_v62 = vpop.f32.mrf.mxu1 }
 0x7e7   : > { %v11527_v15 = vpop.eup %11526  ;;  %6337 = vmatmul.mubr.f32.gmra.mxu1 %v6104_v19  ;;  %18694 = vst [vmem:[#allocation132_spill] sm:$0xff] %v16297_v62  ;;  %v18695_v19 = vld [vmem:[#allocation163_spill] sm:$0xff] }
 0x7e8   : > { %v6107_v30 = vmul.f32 %v11527_v15, %v16092_v56  ;;  %v6106_v7 = vmul.f32 %v11527_v15, %v18673_v24  ;;  %v16300_v15 = vpop.f32.mrf.mxu1  ;;  %v12124_v24 = vld [vmem:[#allocation18 + $0x48] sm:$0xff] }
 0x7e9   : > { %v6017_v54 = vpop.xlane.xlu1 %6016 }
 0x7ea   : > { %11534 = vrcp.f32 %v6017_v54  ;;  %6341 = vmatprep.mubr.f32.mxu1 %v6107_v30  ;;  %v12123_v30 = vld [vmem:[#allocation18 + $0x50] sm:$0xff] }
 0x7eb   : > { %v11529_v25 = vpop.eup %11528  ;;  %6342 = vmatmul.mubr.f32.gmra.mxu1 %v6106_v7  ;;  %v16304_v7 = vpop.f32.mrf.mxu1 }
 0x7ec   : > { %v6109_v27 = vmul.f32 %v11529_v25, %v16100_v10  ;;  %v6108_v45 = vmul.f32 %v11529_v25, %v16098_v2  ;;  %v18678_v2 = vld [vmem:[#allocation105_spill] sm:$0xff]  ;;  %18696 = vst [vmem:[#allocation122_spill] sm:$0xff] %v16304_v7 }
 0x7ed   : > { %v6020_v3 = vpop.xlane.xlu0 %6019  ;;  %v12125_v25 = vld [vmem:[#allocation18 + $0x40] sm:$0xff] }
 0x7ee   : > { %11536 = vrcp.f32 %v6020_v3  ;;  %6346 = vmatprep.mubr.f32.mxu1 %v6109_v27  ;;  %v18697_v27 = vld [vmem:[#allocation166_spill] sm:$0xff] }
 0x7ef   : > { %v11531_v56 = vpop.eup %11530  ;;  %6347 = vmatmul.mubr.f32.gmra.mxu1 %v6108_v45  ;;  %v2836_v3 = vadd.f32 %v16272_v42, %v18697_v27  ;;  %v16308_v45 = vpop.f32.mrf.mxu1 }
 0x7f0   : > { %v6111_v29 = vmul.f32 %v11531_v56, %v16108_v28  ;;  %v6110_v58 = vmul.f32 %v11531_v56, %v18675_v43  ;;  %v12126_v56 = vld [vmem:[#allocation18 + $0x38] sm:$0xff] }
 0x7f1   : > { %v6023_v51 = vpop.xlane.xlu1 %6022  ;;  %v2972_v43 = vmul.f32 %v18688_v26, %v2836_v3  ;;  %v16374_v3 = vld [vmem:[%s18109_s19 + $0x2] ss:$0 sm:$0xff] }
 0x7f2   : > { %11538 = vrcp.f32 %v6023_v51  ;;  %6351 = vmatprep.mubr.f32.mxu1 %v6111_v29  ;;  %v18698_v29 = vld [vmem:[#allocation165_spill] sm:$0xff]  ;;  %v12127_v51 = vld [vmem:[#allocation18 + $0x30] sm:$0xff] }
 0x7f3   : > { %v11533_v10 = vpop.eup %11532  ;;  %6352 = vmatmul.mubr.f32.gmra.mxu1 %v6110_v58  ;;  %v16312_v58 = vpop.f32.mrf.mxu1 }
 0x7f4   : > { %v6113_v44 = vmul.f32 %v11533_v10, %v18677_v4  ;;  %v6112_v17 = vmul.f32 %v11533_v10, %v18678_v2  ;;  %18699 = vst [vmem:[#allocation116_spill] sm:$0xff] %v16312_v58  ;;  %v12128_v10 = vld [vmem:[#allocation18 + $0x28] sm:$0xff]  ;;  %v18700_v2 = vld [vmem:[#allocation168_spill] sm:$0xff] }
 0x7f5   : > { %v16315_v4 = vpop.f32.mrf.mxu1 }
 0x7f6   : > { %6356 = vmatprep.mubr.f32.mxu1 %v6113_v44  ;;  %v12129_v44 = vld [vmem:[#allocation18 + $0x20] sm:$0xff] }
 0x7f7   : > { %v11535_v63 = vpop.eup %11534  ;;  %6357 = vmatmul.mubr.f32.gmra.mxu1 %v6112_v17  ;;  %v2846_v17 = vadd.f32 %v16272_v42, %v18700_v2 }
 0x7f8   : > { %v6115_v28 = vmul.f32 %v11535_v63, %v18679_v49  ;;  %v6114_v40 = vmul.f32 %v11535_v63, %v18681_v0  ;;  %v12130_v63 = vld [vmem:[#allocation18 + $0x18] sm:$0xff]  ;;  %v18701_v49 = vld [vmem:[#allocation167_spill] sm:$0xff] }
 0x7f9   : > { %v12131_v0 = vld [vmem:[#allocation18 + $0x10] sm:$0xff] }
 0x7fa   : > { %6361 = vmatprep.mubr.f32.mxu1 %v6115_v28  ;;  %v16320_v28 = vpop.f32.mrf.mxu1 }
 0x7fb   : > { %v11537_v59 = vpop.eup %11536  ;;  %6362 = vmatmul.mubr.f32.gmra.mxu1 %v6114_v40  ;;  %18702 = vst [vmem:[#allocation118_spill] sm:$0xff] %v16320_v28  ;;  %v2974_v40 = vmul.f32 %v18688_v26, %v2846_v17  ;;  %v18722_v17 = vmov 0.0  }
 0x7fc   : > { %v6117_v50 = vmul.f32 %v11537_v59, %v18682_v13  ;;  %v6116_v39 = vmul.f32 %v11537_v59, %v18683_v38  ;;  %v16323_v59 = vpop.f32.mrf.mxu1  ;;  %v12132_v13 = vld [vmem:[#allocation18 + $0x8] sm:$0xff] }
 0x7fd   : > { %v18703_v38 = vld [vmem:[#allocation170_spill] sm:$0xff] }
 0x7fe   : > { %6366 = vmatprep.mubr.f32.mxu1 %v6117_v50  ;;  %v12133_v50 = vld [vmem:[#allocation18] sm:$0xff] }
 0x7ff   : > { %v11539_v60 = vpop.eup %11538  ;;  %6367 = vmatmul.mubr.f32.gmra.mxu1 %v6116_v39  ;;  %v2856_v39 = vadd.f32 %v16272_v42, %v18703_v38 }
 0x800   : > { %v6119_v1 = vmul.f32 %v11539_v60, %v18686_v21  ;;  %v6118_v57 = vmul.f32 %v11539_v60, %v18687_v48  ;;  %v16328_v60 = vpop.f32.mrf.mxu1  ;;  %v18707_v48 = vld [vmem:[#allocation172_spill] sm:$0xff] }
 0x801   : > { %18704 = vst [vmem:[#allocation130_spill] sm:$0xff] %v16328_v60  ;;  %v2976_v21 = vmul.f32 %v18688_v26, %v2856_v39  ;;  %v18727_v39 = vld [vmem:[#allocation44_spill] sm:$0xff] }
 0x802   : > { %6371 = vmatprep.mubr.f32.mxu1 %v6119_v1  ;;  %v16331_v53 = vpop.f32.mrf.mxu1 }
 0x803   : > { %6372 = vmatmul.mubr.f32.gmra.mxu1 %v6118_v57  ;;  %v2866_v57 = vadd.f32 %v16272_v42, %v18707_v48  ;;  %v18728_v48 = vld [vmem:[#allocation50_spill] sm:$0xff] }
 0x804   : > { %9786 = vmatprep.mubr.f32.mxu1 %v2966_v20  ;;  %v16335_v1 = vpop.f32.mrf.mxu1 }
 0x805   : > { %18706 = vst [vmem:[#allocation112_spill] sm:$0xff] %v16335_v1  ;;  %v2978_v61 = vmul.f32 %v18688_v26, %v2866_v57  ;;  %v3173_v57 = vadd.f32 %v16374_v3, %v18728_v48 }
 0x807   : > { %9787 = vmatmul.mubr.f32.vlgmr.msra.gmra.mxu1 %v2966_v20  ;;  %v16339_v20 = vpop.f32.mrf.mxu1 }
 0x808   : > { %9788 = vmatprep.mubr.f32.mxu1 %v18691_v32  ;;  %10827 = vmatpush3.msra.mxu1 %v16222_v47  ;;  %v2826_v47 = vadd.f32 %v16272_v42, %v18693_v12 }
 0x809   : > { %10828 = vmatprep.subr.mxu1 %v12119_v31 }
 0x80a   : > { %10829 = vmatpush3.msra.mxu1 %v12119_v31  ;;  %v2970_v54 = vmul.f32 %v18688_v26, %v2826_v47 }
 0x80b   : > { %9789 = vmatmul.mubr.f32.gmra.mxu1 %v18691_v32  ;;  %10830 = vmatprep.subr.mxu1 %v12120_v22  ;;  %v16343_v32 = vpop.f32.mrf.mxu1 }
 0x80c   : > { %9790 = vmatprep.mubr.f32.mxu1 %v2968_v14  ;;  %10831 = vmatpush3.msra.mxu1 %v12120_v22  ;;  %18709 = vst [vmem:[#allocation114_spill] sm:$0xff] %v16343_v32 }
 0x80d   : > { %10832 = vmatprep.subr.mxu1 %v12121_v23  ;;  %v16346_v31 = vpop.f32.mrf.mxu1 }
 0x80e   : > { %10833 = vmatpush3.msra.mxu1 %v12121_v23  ;;  %v18711_v23 = vld [vmem:[#allocation173_spill] sm:$0xff] }
 0x80f   : > { %9791 = vmatmul.mubr.f32.gmra.mxu1 %v2968_v14  ;;  %10834 = vmatprep.subr.mxu1 %v12122_v16  ;;  %v18710_v14 = vld [vmem:[#allocation174_spill] sm:$0xff]  ;;  %v16351_v12 = vpop.f32.mrf.mxu1 }
 0x810   : > { %9792 = vmatprep.mubr.f32.mxu1 %v18695_v19  ;;  %10835 = vmatpush3.msra.mxu1 %v12122_v16  ;;  %v2876_v22 = vadd.f32 %v16272_v42, %v18710_v14  ;;  %18712 = vst [vmem:[#allocation136_spill] sm:$0xff] %v16351_v12  ;;  %v18715_v42 = vld [vmem:[#allocation178_spill] sm:$0xff]  ;;  %v18730_v14 = vld [vmem:[#allocation40_spill] sm:$0xff] }
 0x811   : > { %10836 = vmatprep.subr.mxu1 %v12123_v30  ;;  %v16354_v16 = vpop.f32.mrf.mxu1 }
 0x812   : > { %10837 = vmatpush3.msra.mxu1 %v12123_v30  ;;  %v2980_v47 = vmul.f32 %v18688_v26, %v2876_v22  ;;  %v18714_v30 = vld [vmem:[#allocation175_spill] sm:$0xff]  ;;  %v18718_v26 = vld [vmem:[#allocation176_spill] sm:$0xff]  ;;  %v3168_v22 = vadd.f32 %v18730_v14, %v16374_v3 }
 0x813   : > { %9793 = vmatmul.mubr.f32.gmra.mxu1 %v18695_v19  ;;  %10838 = vmatprep.subr.mxu1 %v12124_v24  ;;  %v16357_v19 = vpop.f32.mrf.mxu1  ;;  %v18743_v14 = vld [vmem:[#allocation195_spill] sm:$0xff] }
 0x814   : > { %9794 = vmatprep.mubr.f32.mxu1 %v2970_v54  ;;  %10839 = vmatpush3.msra.mxu1 %v12124_v24  ;;  %18713 = vst [vmem:[#allocation108_spill] sm:$0xff] %v16357_v19 }
 0x815   : > { %10840 = vmatprep.subr.mxu1 %v12125_v25 }
 0x816   : > { %10841 = vmatpush3.msra.mxu1 %v12125_v25 }
 0x817   : > { %9795 = vmatmul.mubr.f32.gmra.mxu1 %v2970_v54  ;;  %10842 = vmatprep.subr.mxu1 %v12126_v56  ;;  %v16360_v54 = vpop.f32.mrf.mxu1 }
 0x818   : > { %9796 = vmatprep.mubr.f32.mxu1 %v18698_v29  ;;  %10843 = vmatpush3.msra.mxu1 %v12126_v56  ;;  %v18719_v56 = vld [vmem:[#allocation52_spill] sm:$0xff] }
 0x819   : > { %10844 = vmatprep.subr.mxu1 %v12127_v51  ;;  %v16364_v24 = vpop.f32.mrf.mxu1 }
 0x81a   : > { %10845 = vmatpush3.msra.mxu1 %v12127_v51  ;;  %18716 = vst [vmem:[#allocation110_spill] sm:$0xff] %v16364_v24 }
 0x81b   : > { %9797 = vmatmul.mubr.f32.gmra.mxu1 %v18698_v29  ;;  %10846 = vmatprep.subr.mxu1 %v12128_v10  ;;  %v3198_v29 = vadd.f32 %v18719_v56, %v16374_v3 }
 0x81c   : > { %9798 = vmatprep.mubr.f32.mxu1 %v2972_v43  ;;  %10847 = vmatpush3.msra.mxu1 %v12128_v10  ;;  %v18721_v10 = vld [vmem:[#allocation58_spill] sm:$0xff] }
 0x81d   : > { %10848 = vmatprep.subr.mxu1 %v12129_v44 }
 0x81e   : > { %10849 = vmatpush3.msra.mxu1 %v12129_v44  ;;  %v3193_v44 = vadd.f32 %v16374_v3, %v18721_v10 }
 0x81f   : > { %9799 = vmatmul.mubr.f32.gmra.mxu1 %v2972_v43  ;;  %10850 = vmatprep.subr.mxu1 %v12130_v63  ;;  %v18720_v43 = vld [vmem:[#allocation183_spill] sm:$0xff] }
 0x820   : > { %9800 = vmatprep.mubr.f32.mxu1 %v18701_v49  ;;  %10851 = vmatpush3.msra.mxu1 %v12130_v63  ;;  %v18723_v63 = vld [vmem:[#allocation48_spill] sm:$0xff] }
 0x821   : > { %10852 = vmatprep.subr.mxu1 %v12131_v0 }
 0x822   : > { %10853 = vmatpush3.msra.mxu1 %v12131_v0 }
 0x823   : > { %9801 = vmatmul.mubr.f32.gmra.mxu1 %v18701_v49  ;;  %10854 = vmatprep.subr.mxu1 %v12132_v13  ;;  %v3188_v49 = vadd.f32 %v18723_v63, %v16374_v3  ;;  %v18737_v63 = vld [vmem:[#allocation207_spill] sm:$0xff] }
 0x824   : > { %9802 = vmatprep.mubr.f32.mxu1 %v2974_v40  ;;  %10855 = vmatpush3.msra.mxu1 %v12132_v13 }
 0x825   : > { %10856 = vmatprep.subr.mxu1 %v12133_v50 }
 0x826   : > { %10857 = vmatpush3.msra.mxu1 %v12133_v50  ;;  %v18726_v50 = vld [vmem:[#allocation180_spill] sm:$0xff] }
 0x827   : > { %9803 = vmatmul.mubr.f32.gmra.mxu1 %v2974_v40  ;;  %v18725_v40 = vld [vmem:[#allocation54_spill] sm:$0xff] }
 0x828   : > { %9804 = vmatprep.mubr.f32.mxu1 %v18705_v6  ;;  %v3183_v13 = vadd.f32 %v16374_v3, %v18725_v40 }
 0x82b   : > { %9805 = vmatmul.mubr.f32.gmra.mxu1 %v18705_v6  ;;  %v3178_v6 = vadd.f32 %v18727_v39, %v16374_v3 }
 0x82c   : > { %9806 = vmatprep.mubr.f32.mxu1 %v2976_v21 }
 0x82f   : > { %9807 = vmatmul.mubr.f32.gmra.mxu1 %v2976_v21 }
 0x830   : > { %9808 = vmatprep.mubr.f32.mxu1 %v18708_v36 }
 0x833   : > { %9809 = vmatmul.mubr.f32.gmra.mxu1 %v18708_v36  ;;  %v18729_v36 = vld [vmem:[#allocation187_spill] sm:$0xff] }
 0x834   : > { %9810 = vmatprep.mubr.f32.mxu1 %v2978_v61 }
 0x837   : > { %9811 = vmatmul.mubr.f32.gmra.mxu1 %v2978_v61 }
 0x838   : > { %9812 = vmatprep.mubr.f32.mxu1 %v18711_v23 }
 0x83b   : > { %9813 = vmatmul.mubr.f32.gmra.mxu1 %v18711_v23 }
 0x83c   : > { %9814 = vmatprep.mubr.f32.mxu1 %v2980_v47 }
 0x83f   : > { %9815 = vmatmul.mubr.f32.gmra.mxu1 %v2980_v47  ;;  %v18732_v47 = vld [vmem:[#allocation46_spill] sm:$0xff] }
 0x840   : > { %9816 = vmatprep.mubr.f32.mxu1 %v18714_v30 }
 0x843   : > { %9817 = vmatmul.mubr.f32.gmra.mxu1 %v18714_v30  ;;  %v3163_v30 = vadd.f32 %v16374_v3, %v18732_v47  ;;  %v18744_v47 = vld [vmem:[#allocation205_spill] sm:$0xff] }
 0x844   : > { %9818 = vmatprep.mubr.f32.mxu1 %v18715_v42 }
 0x847   : > { %v16366_v25 = vpop.f32.mrf.mxu1  ;;  %9819 = vmatmul.mubr.f32.gmra.mxu1 %v18715_v42  ;;  %v18733_v42 = vld [vmem:[#allocation185_spill] sm:$0xff] }
 0x848   : > { %18717 = vst [vmem:[#allocation134_spill] sm:$0xff] %v16366_v25  ;;  %10778 = vmatprep.mubr.f32.mxu0 %v16366_v25  ;;  %9820 = vmatprep.mubr.f32.mxu1 %v18718_v26 }
 0x849   : > { %v6220_v27 = vpop.f32.mrf.mxu1 }
 0x84a   : > { %v18734_v27 = vld [vmem:[#allocation37_spill] sm:$0xff] }
 0x84b   : > { %v16378_v51 = vpop.f32.mrf.mxu1  ;;  %9821 = vmatmul.mubr.f32.gmra.mxu1 %v18718_v26  ;;  %v3158_v56 = vadd.f32 %v18734_v27, %v16374_v3 }
 0x84c   : > { %10779 = vmatmul.mubr.f32.vlgmr.msra.gmra.mxu0 %v16378_v51  ;;  %9822 = vmatprep.mubr.f32.mxu1 %v18720_v43 }
 0x84d   : > { %7692 = vmatpush1.msra.mxu0 %v3198_v29  ;;  %v6225_v2 = vpop.f32.mrf.mxu1 }
 0x84e   : > { %7693 = vmatprep.subr.mxu0 %v18722_v17 }
 0x84f   : > { %7694 = vmatpush1.msra.mxu0 %v3193_v44  ;;  %v16388_v0 = vpop.f32.mrf.mxu1  ;;  %9823 = vmatmul.mubr.f32.gmra.mxu1 %v18720_v43  ;;  %v18735_v43 = vld [vmem:[#allocation42_spill] sm:$0xff]  ;;  %v18736_v44 = vld [vmem:[#allocation191_spill] sm:$0xff] }
 0x850   : > { %18724 = vst [vmem:[#allocation104_spill] sm:$0xff] %v16388_v0  ;;  %7695 = vmatprep.subr.mxu0 %v18722_v17  ;;  %10781 = vmatprep.mubr.f32.mxu0 %v16388_v0  ;;  %v3153_v10 = vadd.f32 %v16374_v3, %v18735_v43 }
 0x851   : > { %9824 = vmatprep.mubr.f32.mxu1 %v18726_v50  ;;  %7696 = vmatpush1.msra.mxu0 %v3188_v49  ;;  %v6230_v38 = vpop.f32.mrf.mxu1  ;;  %v3148_v49 = vadd.f32 %v18737_v63, %v16374_v3  ;;  %v18749_v63 = vld [vmem:[#allocation59_spill] sm:$0xff] }
 0x852   : > { %7697 = vmatprep.subr.mxu0 %v18722_v17  ;;  %v18740_v38 = vld [vmem:[#allocation189_spill] sm:$0xff] }
 0x853   : > { %7698 = vmatpush1.msra.mxu0 %v3183_v13  ;;  %v16399_v21 = vpop.f32.mrf.mxu1  ;;  %9825 = vmatmul.mubr.f32.gmra.mxu1 %v18726_v50  ;;  %v18739_v13 = vld [vmem:[#allocation87_spill] sm:$0xff] }
 0x854   : > { %7699 = vmatprep.subr.mxu0 %v18722_v17  ;;  %10782 = vmatmul.mubr.f32.gmra.mxu0 %v16399_v21  ;;  %v3143_v50 = vadd.f32 %v16374_v3, %v18739_v13  ;;  %v18750_v13 = vld [vmem:[#allocation199_spill] sm:$0xff] }
 0x855   : > { %9826 = vmatprep.mubr.f32.mxu1 %v18729_v36  ;;  %7700 = vmatpush1.msra.mxu0 %v3178_v6  ;;  %v6235_v61 = vpop.f32.mrf.mxu1  ;;  %v18741_v6 = vld [vmem:[#allocation208_spill] sm:$0xff] }
 0x856   : > { %7701 = vmatprep.subr.mxu0 %v18722_v17  ;;  %v3138_v48 = vadd.f32 %v18741_v6, %v16374_v3 }
 0x857   : > { %7702 = vmatpush1.msra.mxu0 %v3173_v57  ;;  %v16410_v23 = vpop.f32.mrf.mxu1  ;;  %9827 = vmatmul.mubr.f32.gmra.mxu1 %v18729_v36  ;;  %v18742_v36 = vld [vmem:[#allocation177_spill] sm:$0xff] }
 0x858   : > { %18731 = vst [vmem:[#allocation106_spill] sm:$0xff] %v16410_v23  ;;  %7703 = vmatprep.subr.mxu0 %v18722_v17  ;;  %10784 = vmatprep.mubr.f32.mxu0 %v16410_v23  ;;  %v3133_v61 = vadd.f32 %v16374_v3, %v18742_v36 }
 0x859   : > { %9828 = vmatprep.mubr.f32.mxu1 %v18733_v42  ;;  %7704 = vmatpush1.msra.mxu0 %v3168_v22  ;;  %v6240_v26 = vpop.f32.mrf.mxu1 }
 0x85a   : > { %7705 = vmatprep.subr.mxu0 %v18722_v17  ;;  %v18746_v26 = vld [vmem:[#allocation158_spill] sm:$0xff] }
 0x85b   : > { %7706 = vmatpush1.msra.mxu0 %v3163_v30  ;;  %v16421_v29 = vpop.f32.mrf.mxu1  ;;  %9829 = vmatmul.mubr.f32.gmra.mxu1 %v18733_v42  ;;  %v3128_v30 = vadd.f32 %v18744_v47, %v16374_v3  ;;  %v3123_v27 = vadd.f32 %v16374_v3, %v18746_v26  ;;  %v18756_v26 = vld [vmem:[#allocation51_spill] sm:$0xff] }
 0x85c   : > { %7707 = vmatprep.subr.mxu0 %v18722_v17  ;;  %10785 = vmatmul.mubr.f32.gmra.mxu0 %v16421_v29 }
 0x85d   : > { %9830 = vmatprep.mubr.f32.mxu1 %v18736_v44  ;;  %7708 = vmatpush1.msra.mxu0 %v3158_v56  ;;  %v6245_v2 = vpop.f32.mrf.mxu1  ;;  %v18747_v56 = vld [vmem:[#allocation193_spill] sm:$0xff] }
 0x85e   : > { %7709 = vmatprep.subr.mxu0 %v18722_v17 }
 0x85f   : > { %7710 = vmatpush1.msra.mxu0 %v3153_v10  ;;  %v16432_v40 = vpop.f32.mrf.mxu1  ;;  %9831 = vmatmul.mubr.f32.gmra.mxu1 %v18736_v44  ;;  %v18748_v10 = vld [vmem:[#allocation53_spill] sm:$0xff] }
 0x860   : > { %18738 = vst [vmem:[#allocation140_spill] sm:$0xff] %v16432_v40  ;;  %7711 = vmatprep.subr.mxu0 %v18722_v17  ;;  %10787 = vmatprep.mubr.f32.mxu0 %v16432_v40  ;;  %v3278_v44 = vadd.f32 %v18748_v10, %v16374_v3  ;;  %v18758_v10 = vld [vmem:[#allocation41_spill] sm:$0xff] }
 0x861   : > { %9832 = vmatprep.mubr.f32.mxu1 %v18740_v38  ;;  %7712 = vmatpush1.msra.mxu0 %v3148_v49  ;;  %v6250_v39 = vpop.f32.mrf.mxu1  ;;  %v3273_v49 = vadd.f32 %v16374_v3, %v18749_v63 }
 0x862   : > { %7713 = vmatprep.subr.mxu0 %v18722_v17 }
 0x863   : > { %7714 = vmatpush1.msra.mxu0 %v3143_v50  ;;  %v16443_v57 = vpop.f32.mrf.mxu1  ;;  %9833 = vmatmul.mubr.f32.gmra.mxu1 %v18740_v38  ;;  %v18751_v38 = vld [vmem:[#allocation49_spill] sm:$0xff] }
 0x864   : > { %7715 = vmatprep.subr.mxu0 %v18722_v17  ;;  %10788 = vmatmul.mubr.f32.gmra.mxu0 %v16443_v57  ;;  %v3268_v39 = vadd.f32 %v18751_v38, %v16374_v3 }
 0x865   : > { %9834 = vmatprep.mubr.f32.mxu1 %v18743_v14  ;;  %7716 = vmatpush1.msra.mxu0 %v3138_v48  ;;  %v6255_v22 = vpop.f32.mrf.mxu1  ;;  %v18753_v48 = vld [vmem:[#allocation55_spill] sm:$0xff] }
 0x866   : > { %7717 = vmatprep.subr.mxu0 %v18722_v17  ;;  %v3263_v36 = vadd.f32 %v16374_v3, %v18753_v48  ;;  %v18755_v22 = vld [vmem:[#allocation45_spill] sm:$0xff] }
 0x867   : > { %7718 = vmatpush1.msra.mxu0 %v3133_v61  ;;  %v16454_v42 = vpop.f32.mrf.mxu1  ;;  %9835 = vmatmul.mubr.f32.gmra.mxu1 %v18743_v14  ;;  %v18754_v61 = vld [vmem:[#allocation197_spill] sm:$0xff]  ;;  %v3258_v47 = vadd.f32 %v18755_v22, %v16374_v3  ;;  %v18764_v22 = vld [vmem:[#allocation203_spill] sm:$0xff] }
 0x868   : > { %18745 = vst [vmem:[#allocation100_spill] sm:$0xff] %v16454_v42  ;;  %7719 = vmatprep.subr.mxu0 %v18722_v17  ;;  %10790 = vmatprep.mubr.f32.mxu0 %v16454_v42 }
 0x869   : > { %9836 = vmatprep.mubr.f32.mxu1 %v18747_v56  ;;  %7720 = vmatpush1.msra.mxu0 %v3128_v30  ;;  %v6260_v43 = vpop.f32.mrf.mxu1 }
 0x86a   : > { %7721 = vmatprep.subr.mxu0 %v18722_v17 }
 0x86b   : > { %7722 = vmatpush1.msra.mxu0 %v3123_v27  ;;  %v16465_v2 = vpop.f32.mrf.mxu1  ;;  %9837 = vmatmul.mubr.f32.gmra.mxu1 %v18747_v56  ;;  %v3253_v27 = vadd.f32 %v16374_v3, %v18756_v26  ;;  %v18757_v56 = vld [vmem:[#allocation201_spill] sm:$0xff]  ;;  %v18765_v26 = vld [vmem:[#allocation64_spill] sm:$0xff] }
 0x86c   : > { %7723 = vmatprep.subr.mxu0 %v18722_v17  ;;  %10791 = vmatmul.mubr.f32.gmra.mxu0 %v16465_v2 }
 0x86d   : > { %9838 = vmatprep.mubr.f32.mxu1 %v18750_v13  ;;  %7724 = vmatpush2.msra.mxu0 %v3278_v44  ;;  %v6265_v50 = vpop.f32.mrf.mxu1  ;;  %v3248_v44 = vadd.f32 %v18758_v10, %v16374_v3 }
 0x86e   : > { %7725 = vmatprep.subr.mxu0 %v18722_v17  ;;  %v18761_v50 = vld [vmem:[#allocation200_spill] sm:$0xff] }
 0x86f   : > { %7726 = vmatpush2.msra.mxu0 %v3273_v49  ;;  %v16476_v6 = vpop.f32.mrf.mxu1  ;;  %9839 = vmatmul.mubr.f32.gmra.mxu1 %v18750_v13  ;;  %v18760_v49 = vld [vmem:[#allocation47_spill] sm:$0xff] }
 0x870   : > { %18752 = vst [vmem:[#allocation102_spill] sm:$0xff] %v16476_v6  ;;  %7727 = vmatprep.subr.mxu0 %v18722_v17  ;;  %10793 = vmatprep.mubr.f32.mxu0 %v16476_v6  ;;  %v3243_v13 = vadd.f32 %v16374_v3, %v18760_v49 }
 0x871   : > { %9840 = vmatprep.mubr.f32.mxu1 %v18754_v61  ;;  %7728 = vmatpush2.msra.mxu0 %v3268_v39  ;;  %v6270_v14 = vpop.f32.mrf.mxu1  ;;  %v18762_v39 = vld [vmem:[#allocation38_spill] sm:$0xff] }
 0x872   : > { %7729 = vmatprep.subr.mxu0 %v18722_v17  ;;  %v3238_v48 = vadd.f32 %v18762_v39, %v16374_v3  ;;  %v18770_v39 = vld [vmem:[#allocation66_spill] sm:$0xff] }
 0x873   : > { %7730 = vmatpush2.msra.mxu0 %v3263_v36  ;;  %v16487_v30 = vpop.f32.mrf.mxu1  ;;  %9841 = vmatmul.mubr.f32.gmra.mxu1 %v18754_v61  ;;  %v18763_v61 = vld [vmem:[#allocation43_spill] sm:$0xff] }
 0x874   : > { %7731 = vmatprep.subr.mxu0 %v18722_v17  ;;  %10794 = vmatmul.mubr.f32.gmra.mxu0 %v16487_v30  ;;  %v3233_v14 = vadd.f32 %v16374_v3, %v18763_v61 }
 0x875   : > { %9842 = vmatprep.mubr.f32.mxu1 %v18757_v56  ;;  %7732 = vmatpush2.msra.mxu0 %v3258_v47  ;;  %v6275_v43 = vpop.f32.mrf.mxu1 }
 0x876   : > { %7733 = vmatprep.subr.mxu0 %v18722_v17  ;;  %v18767_v43 = vld [vmem:[#allocation39_spill] sm:$0xff] }
 0x877   : > { %7734 = vmatpush2.msra.mxu0 %v3253_v27  ;;  %v16498_v63 = vpop.f32.mrf.mxu1  ;;  %9843 = vmatmul.mubr.f32.gmra.mxu1 %v18757_v56  ;;  %v3228_v27 = vadd.f32 %v18765_v26, %v16374_v3  ;;  %v3223_v10 = vadd.f32 %v16374_v3, %v18767_v43  ;;  %v18773_v26 = vld [vmem:[#allocation62_spill] sm:$0xff] }
 0x878   : > { %18759 = vst [vmem:[#allocation138_spill] sm:$0xff] %v16498_v63  ;;  %7735 = vmatprep.subr.mxu0 %v18722_v17  ;;  %10796 = vmatprep.mubr.f32.mxu0 %v16498_v63 }
 0x879   : > { %9844 = vmatprep.mubr.f32.mxu1 %v18761_v50  ;;  %7736 = vmatpush2.msra.mxu0 %v3248_v44  ;;  %v6280_v38 = vpop.f32.mrf.mxu1  ;;  %v18768_v44 = vld [vmem:[#allocation202_spill] sm:$0xff] }
 0x87a   : > { %7737 = vmatprep.subr.mxu0 %v18722_v17 }
 0x87b   : > { %7738 = vmatpush2.msra.mxu0 %v3243_v13  ;;  %v16509_v36 = vpop.f32.mrf.mxu1  ;;  %9845 = vmatmul.mubr.f32.gmra.mxu1 %v18761_v50  ;;  %v18769_v13 = vld [vmem:[#allocation60_spill] sm:$0xff] }
 0x87c   : > { %7739 = vmatprep.subr.mxu0 %v18722_v17  ;;  %10797 = vmatmul.mubr.f32.gmra.mxu0 %v16509_v36  ;;  %v3218_v50 = vadd.f32 %v18769_v13, %v16374_v3 }
 0x87d   : > { %9846 = vmatprep.mubr.f32.mxu1 %v18764_v22  ;;  %7740 = vmatpush2.msra.mxu0 %v3238_v48  ;;  %v6285_v47 = vpop.f32.mrf.mxu1  ;;  %v3213_v48 = vadd.f32 %v16374_v3, %v18770_v39 }
 0x87e   : > { %7741 = vmatprep.subr.mxu0 %v18722_v17 }
 0x87f   : > { %7742 = vmatpush2.msra.mxu0 %v3233_v14  ;;  %v16520_v56 = vpop.f32.mrf.mxu1  ;;  %9847 = vmatmul.mubr.f32.gmra.mxu1 %v18764_v22  ;;  %v18771_v14 = vld [vmem:[#allocation56_spill] sm:$0xff] }
 0x880   : > { %18766 = vst [vmem:[#allocation96_spill] sm:$0xff] %v16520_v56  ;;  %7743 = vmatprep.subr.mxu0 %v18722_v17  ;;  %10799 = vmatprep.mubr.f32.mxu0 %v16520_v56  ;;  %v3208_v22 = vadd.f32 %v18771_v14, %v16374_v3 }
 0x881   : > { %9848 = vmatprep.mubr.f32.mxu1 %v18768_v44  ;;  %7744 = vmatpush2.msra.mxu0 %v3228_v27  ;;  %v6290_v49 = vpop.f32.mrf.mxu1  ;;  %v3203_v27 = vadd.f32 %v16374_v3, %v18773_v26 }
 0x882   : > { %7745 = vmatprep.subr.mxu0 %v18722_v17 }
 0x883   : > { %7746 = vmatpush2.msra.mxu0 %v3223_v10  ;;  %v16531_v38 = vpop.f32.mrf.mxu1  ;;  %9849 = vmatmul.mubr.f32.gmra.mxu1 %v18768_v44 }
 0x884   : > { %7747 = vmatprep.subr.mxu0 %v18722_v17  ;;  %10800 = vmatmul.mubr.f32.gmra.mxu0 %v16531_v38 }
 0x885   : > { %7748 = vmatpush2.msra.mxu0 %v3218_v50  ;;  %v6295_v61 = vpop.f32.mrf.mxu1 }
 0x886   : > { %7749 = vmatprep.subr.mxu0 %v18722_v17 }
 0x887   : > { %7750 = vmatpush2.msra.mxu0 %v3213_v48  ;;  %v16541_v47 = vpop.f32.mrf.mxu1 }
 0x888   : > { %18772 = vst [vmem:[#allocation98_spill] sm:$0xff] %v16541_v47  ;;  %7751 = vmatprep.subr.mxu0 %v18722_v17  ;;  %10802 = vmatprep.mubr.f32.mxu0 %v16541_v47 }
 0x889   : > { %7752 = vmatpush2.msra.mxu0 %v3208_v22  ;;  %v6300_v43 = vpop.f32.mrf.mxu1 }
 0x88a   : > { %7753 = vmatprep.subr.mxu0 %v18722_v17 }
 0x88b   : > { %7754 = vmatpush2.msra.mxu0 %v3203_v27  ;;  %v16548_v10 = vpop.f32.mrf.mxu1 }
 0x88c   : > { %10803 = vmatmul.mubr.f32.gmra.mxu0 %v16548_v10 }
 0x88d   : > { %v6305_v44 = vpop.f32.mrf.mxu1 }
 0x88f   : > { %v16551_v49 = vpop.f32.mrf.mxu1 }
 0x890   : > { %18774 = vst [vmem:[#allocation144_spill] sm:$0xff] %v16551_v49  ;;  %10805 = vmatprep.mubr.f32.mxu0 %v16551_v49 }
 0x891   : > { %v6310_v13 = vpop.f32.mrf.mxu1 }
 0x893   : > { %v16554_v50 = vpop.f32.mrf.mxu1 }
 0x894   : > { %10806 = vmatmul.mubr.f32.gmra.mxu0 %v16554_v50 }
 0x895   : > { %v6315_v3 = vpop.f32.mrf.mxu1 }
 0x897   : > { %v16557_v39 = vpop.f32.mrf.mxu1 }
 0x898   : > { %18775 = vst [vmem:[#allocation91_spill] sm:$0xff] %v16557_v39  ;;  %10808 = vmatprep.mubr.f32.mxu0 %v16557_v39 }
 0x899   : > { %v6320_v17 = vpop.f32.mrf.mxu1 }
 0x89b   : > { %v16560_v48 = vpop.f32.mrf.mxu1 }
 0x89c   : > { %10809 = vmatmul.mubr.f32.gmra.mxu0 %v16560_v48 }
 0x89d   : > { %v6325_v61 = vpop.f32.mrf.mxu1 }
 0x89f   : > { %v16563_v14 = vpop.f32.mrf.mxu1 }
 0x8a0   : > { %18776 = vst [vmem:[#allocation94_spill] sm:$0xff] %v16563_v14  ;;  %10811 = vmatprep.mubr.f32.mxu0 %v16563_v14 }
 0x8a1   : > { %v6330_v22 = vpop.f32.mrf.mxu1 }
 0x8a3   : > { %v16566_v26 = vpop.f32.mrf.mxu1 }
 0x8a4   : > { %18777 = vst [vmem:[#allocation142_spill] sm:$0xff] %v16566_v26  ;;  %10812 = vmatmul.mubr.f32.gmra.mxu0 %v16566_v26 }
 0x8a5   : > { %v6335_v27 = vpop.f32.mrf.mxu1 }
 0x8a7   : > { %v16569_v43 = vpop.f32.mrf.mxu1 }
 0x8a8   : > { %18778 = vst [vmem:[#allocation151_spill] sm:$0xff] %v16569_v43  ;;  %10814 = vmatprep.mubr.f32.mxu0 %v16569_v43 }
 0x8a9   : > { %v6340_v44 = vpop.f32.mrf.mxu1 }
 0x8ab   : > { %v16572_v13 = vpop.f32.mrf.mxu1 }
 0x8ac   : > { %18779 = vst [vmem:[#allocation153_spill] sm:$0xff] %v16572_v13  ;;  %10815 = vmatmul.mubr.f32.gmra.mxu0 %v16572_v13 }
 0x8ad   : > { %v6345_v3 = vpop.f32.mrf.mxu1 }
 0x8af   : > { %v16575_v17 = vpop.f32.mrf.mxu1 }
 0x8b0   : > { %18780 = vst [vmem:[#allocation148_spill] sm:$0xff] %v16575_v17  ;;  %10817 = vmatprep.mubr.f32.mxu0 %v16575_v17 }
 0x8b1   : > { %v6350_v61 = vpop.f32.mrf.mxu1 }
 0x8b3   : > { %v16578_v22 = vpop.f32.mrf.mxu1 }
 0x8b4   : > { %18781 = vst [vmem:[#allocation147_spill] sm:$0xff] %v16578_v22  ;;  %10818 = vmatmul.mubr.f32.gmra.mxu0 %v16578_v22 }
 0x8b5   : > { %v6355_v27 = vpop.f32.mrf.mxu1 }
 0x8b7   : > { %v16581_v14 = vpop.f32.mrf.mxu1 }
 0x8b8   : > { %18782 = vst [vmem:[#allocation149_spill] sm:$0xff] %v16581_v14  ;;  %10820 = vmatprep.mubr.f32.mxu0 %v16581_v14 }
 0x8b9   : > { %v6360_v44 = vpop.f32.mrf.mxu1 }
 0x8bb   : > { %v16584_v43 = vpop.f32.mrf.mxu1 }
 0x8bc   : > { %18783 = vst [vmem:[#allocation146_spill] sm:$0xff] %v16584_v43  ;;  %10821 = vmatmul.mubr.f32.gmra.mxu0 %v16584_v43 }
 0x8bd   : > { %v6365_v3 = vpop.f32.mrf.mxu1 }
 0x8bf   : > { %v16587_v39 = vpop.f32.mrf.mxu1 }
 0x8c0   : > { %18784 = vst [vmem:[#allocation143_spill] sm:$0xff] %v16587_v39  ;;  %10823 = vmatprep.mubr.f32.mxu0 %v16587_v39 }
 0x8c1   : > { %v6370_v61 = vpop.f32.mrf.mxu1 }
 0x8c3   : > { %v16590_v17 = vpop.f32.mrf.mxu1 }
 0x8c4   : > { %18785 = vst [vmem:[#allocation145_spill] sm:$0xff] %v16590_v17  ;;  %10824 = vmatmul.mubr.f32.gmra.mxu0 %v16590_v17  ;;  %v16682_v17 = vld [vmem:[%s18792_s8] ss:$0 sm:$0xff] }
 0x8c5   : > { %v6375_v27 = vpop.f32.mrf.mxu1 }
 0x8c7   : > { %v16593_v24 = vpop.f32.mrf.mxu1 }
 0x8c9   : > { %v16595_v49 = vpop.f32.mrf.mxu1 }
 0x8ca   : > { %v7179_v44 = vmax.f32 %v16593_v24, %v16595_v49 }
 0x8cb   : > { %v16599_v14 = vpop.f32.mrf.mxu1 }
 0x8cc   : > { %7180 = vmax.xlane.f32.xlu0 %v7179_v44 }
 0x8cd   : > { %v16601_v3 = vpop.f32.mrf.mxu1 }
 0x8ce   : > { %v7182_v61 = vmax.f32 %v16599_v14, %v16601_v3 }
 0x8cf   : > { %v16605_v39 = vpop.f32.mrf.mxu1 }
 0x8d0   : > { %7183 = vmax.xlane.f32.xlu1 %v7182_v61 }
 0x8d1   : > { %v16607_v47 = vpop.f32.mrf.mxu1 }
 0x8d2   : > { %v7185_v27 = vmax.f32 %v16605_v39, %v16607_v47 }
 0x8d3   : > { %v16611_v19 = vpop.f32.mrf.mxu1 }
 0x8d4   : > { %7186 = vmax.xlane.f32.xlu0 %v7185_v27 }
 0x8d5   : > { %v16613_v12 = vpop.f32.mrf.mxu1 }
 0x8d6   : > { %v7188_v44 = vmax.f32 %v16611_v19, %v16613_v12 }
 0x8d7   : > { %v16617_v56 = vpop.f32.mrf.mxu1 }
 0x8d8   : > { %7189 = vmax.xlane.f32.xlu1 %v7188_v44 }
 0x8d9   : > { %v16619_v63 = vpop.f32.mrf.mxu1 }
 0x8da   : > { %v7191_v61 = vmax.f32 %v16617_v56, %v16619_v63 }
 0x8db   : > { %v16623_v32 = vpop.f32.mrf.mxu1 }
 0x8dc   : > { %7192 = vmax.xlane.f32.xlu0 %v7191_v61 }
 0x8dd   : > { %v16625_v6 = vpop.f32.mrf.mxu1 }
 0x8de   : > { %v7194_v27 = vmax.f32 %v16623_v32, %v16625_v6 }
 0x8df   : > { %v16629_v1 = vpop.f32.mrf.mxu1 }
 0x8e0   : > { %7195 = vmax.xlane.f32.xlu1 %v7194_v27 }
 0x8e1   : > { %v16631_v42 = vpop.f32.mrf.mxu1 }
 0x8e2   : > { %v7197_v44 = vmax.f32 %v16629_v1, %v16631_v42 }
 0x8e3   : > { %v16635_v60 = vpop.f32.mrf.mxu1 }
 0x8e4   : > { %7198 = vmax.xlane.f32.xlu0 %v7197_v44 }
 0x8e5   : > { %v16637_v40 = vpop.f32.mrf.mxu1 }
 0x8e6   : > { %v7200_v61 = vmax.f32 %v16635_v60, %v16637_v40 }
 0x8e7   : > { %v16641_v23 = vpop.f32.mrf.mxu1 }
 0x8e8   : > { %7201 = vmax.xlane.f32.xlu1 %v7200_v61 }
 0x8e9   : > { %v16643_v28 = vpop.f32.mrf.mxu1 }
 0x8ea   : > { %v7203_v27 = vmax.f32 %v16641_v23, %v16643_v28 }
 0x8eb   : > { %v16647_v0 = vpop.f32.mrf.mxu1 }
 0x8ec   : > { %7204 = vmax.xlane.f32.xlu0 %v7203_v27 }
 0x8ed   : > { %v16649_v58 = vpop.f32.mrf.mxu1 }
 0x8ee   : > { %v7206_v44 = vmax.f32 %v16647_v0, %v16649_v58 }
 0x8ef   : > { %v16653_v25 = vpop.f32.mrf.mxu1 }
 0x8f0   : > { %7207 = vmax.xlane.f32.xlu1 %v7206_v44 }
 0x8f1   : > { %v16655_v7 = vpop.f32.mrf.mxu1 }
 0x8f2   : > { %v7209_v61 = vmax.f32 %v16653_v25, %v16655_v7 }
 0x8f3   : > { %v16659_v62 = vpop.f32.mrf.mxu1 }
 0x8f4   : > { %7210 = vmax.xlane.f32.xlu0 %v7209_v61 }
 0x8f5   : > { %v16661_v55 = vpop.f32.mrf.mxu1 }
 0x8f6   : > { %18786 = vst [vmem:[#allocation152_spill] sm:$0xff] %v16661_v55  ;;  %v7212_v27 = vmax.f32 %v16659_v62, %v16661_v55 }
 0x8f7   : > { %v16665_v41 = vpop.f32.mrf.mxu1 }
 0x8f8   : > { %18787 = vst [vmem:[#allocation139_spill] sm:$0xff] %v16665_v41  ;;  %7213 = vmax.xlane.f32.xlu1 %v7212_v27 }
 0x8f9   : > { %v16667_v52 = vpop.f32.mrf.mxu1 }
 0x8fa   : > { %18788 = vst [vmem:[#allocation141_spill] sm:$0xff] %v16667_v52  ;;  %v7215_v44 = vmax.f32 %v16665_v41, %v16667_v52 }
 0x8fb   : > { %v16671_v37 = vpop.f32.mrf.mxu1 }
 0x8fc   : > { %18789 = vst [vmem:[#allocation150_spill] sm:$0xff] %v16671_v37  ;;  %7216 = vmax.xlane.f32.xlu0 %v7215_v44  ;;  %v4942_v44 = vadd.f32 %v16242_v33, %v16682_v17  ;;  %v4952_v33 = vadd.f32 %v16249_v5, %v16682_v17 }
 0x8fd   : > { %v16673_v9 = vpop.f32.mrf.mxu1 }
 0x8fe   : > { %18790 = vst [vmem:[#allocation135_spill] sm:$0xff] %v16673_v9  ;;  %v7218_v61 = vmax.f32 %v16671_v37, %v16673_v9  ;;  %v8929_v37 = vmul.f32 -1.442695, %v4942_v44  ;;  %v8931_v44 = vmul.f32 -1.442695, %v4952_v33 }
 0x8ff   : > { %v16677_v34 = vpop.f32.mrf.mxu1 }
 0x900   : > { %18791 = vst [vmem:[#allocation137_spill] sm:$0xff] %v16677_v34  ;;  %7219 = vmax.xlane.f32.xlu1 %v7218_v61  ;;  %11540 = vpow2.f32 %v8929_v37 }
 0x901   : > { %v16684_v27 = vpop.f32.mrf.mxu1 }
 0x902   : > { %18793 = vst [vmem:[#allocation157_spill] sm:$0xff] %v16684_v27  ;;  %v7221_v43 = vmax.f32 %v16677_v34, %v16684_v27 }
 0x903   : > { %v16690_v22 = vpop.f32.mrf.mxu1 }
 0x904   : > { %18794 = vst [vmem:[#allocation131_spill] sm:$0xff] %v16690_v22  ;;  %7222 = vmax.xlane.f32.xlu0 %v7221_v43 }
 0x905   : > { %v16692_v13 = vpop.f32.mrf.mxu1 }
 0x906   : > { %18795 = vst [vmem:[#allocation133_spill] sm:$0xff] %v16692_v13  ;;  %v7224_v9 = vmax.f32 %v16690_v22, %v16692_v13 }
 0x907   : > { %v16696_v26 = vpop.f32.mrf.mxu1 }
 0x908   : > { %18796 = vst [vmem:[#allocation154_spill] sm:$0xff] %v16696_v26  ;;  %7225 = vmax.xlane.f32.xlu1 %v7224_v9 }
 0x909   : > { %v16698_v61 = vpop.f32.mrf.mxu1 }
 0x90a   : > { %18797 = vst [vmem:[#allocation127_spill] sm:$0xff] %v16698_v61  ;;  %v7227_v27 = vmax.f32 %v16696_v26, %v16698_v61  ;;  %v4962_v61 = vadd.f32 %v16256_v11, %v16682_v17 }
 0x90b   : > { %v16704_v34 = vpop.f32.mrf.mxu1 }
 0x90c   : > { %18798 = vst [vmem:[#allocation129_spill] sm:$0xff] %v16704_v34  ;;  %v10780_v43 = vpop.f32.mrf.mxu0  ;;  %7228 = vmax.xlane.f32.xlu0 %v7227_v27 }
 0x90d   : > { %v6449_v52 = vadd.f32 %v10780_v43, %v16682_v17  ;;  %v16707_v13 = vpop.f32.mrf.mxu1 }
 0x90e   : > { %18799 = vst [vmem:[#allocation124_spill] sm:$0xff] %v16707_v13  ;;  %v7230_v9 = vmax.f32 %v16704_v34, %v16707_v13  ;;  %v16715_v5 = vpop.f32.mrf.mxu0  ;;  %v11541_v34 = vpop.eup %11540 }
 0x90f   : > { %v8961_v22 = vmul.f32 -1.442695, %v6449_v52  ;;  %v16711_v41 = vpop.f32.mrf.mxu1  ;;  %18802 = vst [vmem:[#allocation222_spill] sm:$0xff] %v16715_v5 }
 0x910   : > { %18800 = vst [vmem:[#allocation125_spill] sm:$0xff] %v16711_v41  ;;  %7231 = vmax.xlane.f32.xlu1 %v7230_v9 }
 0x911   : > { %11542 = vpow2.f32 %v8961_v22  ;;  %v16713_v37 = vpop.f32.mrf.mxu1 }
 0x912   : > { %18801 = vst [vmem:[#allocation89_spill] sm:$0xff] %v16713_v37  ;;  %v7233_v27 = vmax.f32 %v16711_v41, %v16713_v37  ;;  %11544 = vpow2.f32 %v8931_v44  ;;  %v8933_v37 = vmul.f32 -1.442695, %v4962_v61 }
 0x913   : > { %v16719_v43 = vpop.f32.mrf.mxu1 }
 0x914   : > { %18803 = vst [vmem:[#allocation57_spill] sm:$0xff] %v16719_v43  ;;  %v10783_v13 = vpop.f32.mrf.mxu0  ;;  %7234 = vmax.xlane.f32.xlu0 %v7233_v27 }
 0x915   : > { %v6459_v52 = vadd.f32 %v10783_v13, %v16682_v17  ;;  %v16724_v33 = vpop.f32.mrf.mxu1  ;;  %v5192_v13 = vadd.f32 1.0, %v11541_v34 }
 0x916   : > { %18804 = vst [vmem:[#allocation67_spill] sm:$0xff] %v16724_v33  ;;  %v7236_v22 = vmax.f32 %v16719_v43, %v16724_v33  ;;  %v16732_v41 = vpop.f32.mrf.mxu0 }
 0x917   : > { %v8963_v9 = vmul.f32 -1.442695, %v6459_v52  ;;  %v16728_v5 = vpop.f32.mrf.mxu1  ;;  %18807 = vst [vmem:[#allocation257_spill] sm:$0xff] %v16732_v41  ;;  %v4972_v52 = vadd.f32 %v16263_v8, %v16682_v17 }
 0x918   : > { %18805 = vst [vmem:[#allocation61_spill] sm:$0xff] %v16728_v5  ;;  %7237 = vmax.xlane.f32.xlu1 %v7236_v22 }
 0x919   : > { %11546 = vpow2.f32 %v8963_v9  ;;  %v16730_v44 = vpop.f32.mrf.mxu1 }
 0x91a   : > { %18806 = vst [vmem:[#allocation65_spill] sm:$0xff] %v16730_v44  ;;  %v7239_v11 = vmax.f32 %v16728_v5, %v16730_v44  ;;  %11548 = vpow2.f32 %v8933_v37  ;;  %v8935_v37 = vmul.f32 -1.442695, %v4972_v52 }
 0x91b   : > { %v16736_v27 = vpop.f32.mrf.mxu1  ;;  %11550 = vrcp.f32 %v5192_v13  ;;  %v4982_v13 = vadd.f32 %v16277_v46, %v16682_v17 }
 0x91c   : > { %18808 = vst [vmem:[#allocation259_spill] sm:$0xff] %v16736_v27  ;;  %v10786_v33 = vpop.f32.mrf.mxu0  ;;  %7240 = vmax.xlane.f32.xlu0 %v7239_v11 }
 0x91d   : > { %v6469_v61 = vadd.f32 %v10786_v33, %v16682_v17  ;;  %v16741_v22 = vpop.f32.mrf.mxu1 }
 0x91e   : > { %18809 = vst [vmem:[#allocation258_spill] sm:$0xff] %v16741_v22  ;;  %v11543_v9 = vpop.eup %11542  ;;  %v7242_v41 = vmax.f32 %v16736_v27, %v16741_v22  ;;  %v16749_v11 = vpop.f32.mrf.mxu0 }
 0x91f   : > { %v6699_v43 = vadd.f32 1.0, %v11543_v9  ;;  %v8965_v44 = vmul.f32 -1.442695, %v6469_v61  ;;  %v16745_v34 = vpop.f32.mrf.mxu1  ;;  %v11545_v5 = vpop.eup %11544  ;;  %18812 = vst [vmem:[#allocation263_spill] sm:$0xff] %v16749_v11  ;;  %v8937_v11 = vmul.f32 -1.442695, %v4982_v13 }
 0x920   : > { %18810 = vst [vmem:[#allocation261_spill] sm:$0xff] %v16745_v34  ;;  %7243 = vmax.xlane.f32.xlu1 %v7242_v41  ;;  %v5194_v26 = vadd.f32 1.0, %v11545_v5 }
 0x921   : > { %11552 = vrcp.f32 %v6699_v43  ;;  %v16747_v8 = vpop.f32.mrf.mxu1 }
 0x922   : > { %18811 = vst [vmem:[#allocation260_spill] sm:$0xff] %v16747_v8  ;;  %11554 = vpow2.f32 %v8965_v44  ;;  %v7245_v33 = vmax.f32 %v16745_v34, %v16747_v8 }
 0x923   : > { %v16755_v9 = vpop.f32.mrf.mxu1  ;;  %11556 = vpow2.f32 %v8935_v37 }
 0x924   : > { %18813 = vst [vmem:[#allocation262_spill] sm:$0xff] %v16755_v9  ;;  %v10789_v61 = vpop.f32.mrf.mxu0  ;;  %7246 = vmax.xlane.f32.xlu0 %v7245_v33  ;;  %11558 = vrcp.f32 %v5194_v26  ;;  %v4992_v26 = vadd.f32 %v16283_v35, %v16682_v17 }
 0x925   : > { %v6479_v41 = vadd.f32 %v10789_v61, %v16682_v17  ;;  %v16758_v43 = vpop.f32.mrf.mxu1 }
 0x926   : > { %18814 = vst [vmem:[#allocation93_spill] sm:$0xff] %v16758_v43  ;;  %v11547_v52 = vpop.eup %11546  ;;  %v7248_v44 = vmax.f32 %v16755_v9, %v16758_v43  ;;  %v16766_v33 = vpop.f32.mrf.mxu0 }
 0x927   : > { %v6701_v8 = vadd.f32 1.0, %v11547_v52  ;;  %v8967_v5 = vmul.f32 -1.442695, %v6479_v41  ;;  %v16762_v34 = vpop.f32.mrf.mxu1  ;;  %v11549_v46 = vpop.eup %11548  ;;  %18817 = vst [vmem:[#allocation223_spill] sm:$0xff] %v16766_v33 }
 0x928   : > { %18815 = vst [vmem:[#allocation265_spill] sm:$0xff] %v16762_v34  ;;  %7249 = vmax.xlane.f32.xlu0 %v7248_v44  ;;  %v11551_v41 = vpop.eup %11550  ;;  %v5196_v52 = vadd.f32 1.0, %v11549_v46 }
 0x929   : > { %11560 = vrcp.f32 %v6701_v8  ;;  %v16764_v37 = vpop.f32.mrf.mxu1 }
 0x92a   : > { %18816 = vst [vmem:[#allocation82_spill] sm:$0xff] %v16764_v37  ;;  %11562 = vpow2.f32 %v8967_v5  ;;  %v7251_v61 = vmax.f32 %v16762_v34, %v16764_v37  ;;  %v18819_v37 = vld [vmem:[#allocation225_spill] sm:$0xff]  ;;  %v8939_v34 = vmul.f32 -1.442695, %v4992_v26 }
 0x92b   : > { %11564 = vpow2.f32 %v8937_v11  ;;  %v16772_v13 = vpop.f32.mrf.mxu1  ;;  %v5288_v11 = vmul.f32 %v11551_v41, %v18819_v37 }
 0x92c   : > { %v10792_v43 = vpop.f32.mrf.mxu0  ;;  %7252 = vmax.xlane.f32.xlu0 %v7251_v61  ;;  %11566 = vrcp.f32 %v5196_v52 }
 0x92d   : > { %v6489_v8 = vadd.f32 %v10792_v43, %v16682_v17  ;;  %v16775_v44 = vpop.f32.mrf.mxu1 }
 0x92e   : > { %18818 = vst [vmem:[#allocation92_spill] sm:$0xff] %v16775_v44  ;;  %v11553_v5 = vpop.eup %11552  ;;  %v7254_v33 = vmax.f32 %v16772_v13, %v16775_v44  ;;  %v16787_v44 = vpop.f32.mrf.mxu0 }
 0x92f   : > { %v11555_v9 = vpop.eup %11554  ;;  %v6795_v35 = vmul.f32 %v11553_v5, %v16378_v51  ;;  %v8969_v22 = vmul.f32 -1.442695, %v6489_v8  ;;  %v16781_v27 = vpop.f32.mrf.mxu1  ;;  %18822 = vst [vmem:[#allocation228_spill] sm:$0xff] %v16787_v44 }
 0x930   : > { %v6703_v46 = vadd.f32 1.0, %v11555_v9  ;;  %7255 = vmax.xlane.f32.xlu0 %v7254_v33  ;;  %v11557_v61 = vpop.eup %11556  ;;  %v5002_v9 = vadd.f32 %v16292_v18, %v16682_v17 }
 0x931   : > { %11568 = vpow2.f32 %v8969_v22  ;;  %v16783_v43 = vpop.f32.mrf.mxu1  ;;  %v16785_v55 = vadd.f32 %v6795_v35, %v5288_v11  ;;  %v11559_v26 = vpop.eup %11558  ;;  %v5198_v41 = vadd.f32 1.0, %v11557_v61 }
 0x932   : > { %18820 = vst [vmem:[#allocation224_spill] sm:$0xff] %v16783_v43  ;;  %11570 = vrcp.f32 %v6703_v46  ;;  %v7257_v37 = vmax.f32 %v16781_v27, %v16783_v43  ;;  %v18825_v46 = vld [vmem:[#allocation227_spill] sm:$0xff]  ;;  %v8941_v18 = vmul.f32 -1.442695, %v5002_v9 }
 0x933   : > { %18821 = vst [vmem:[#allocation83_spill] sm:$0xff] %v16785_v55  ;;  %11572 = vpow2.f32 %v8939_v34  ;;  %v16791_v51 = vpop.f32.mrf.mxu1  ;;  %v5290_v55 = vmul.f32 %v11559_v26, %v18825_v46 }
 0x934   : > { %18823 = vst [vmem:[#allocation86_spill] sm:$0xff] %v16791_v51  ;;  %v10795_v33 = vpop.f32.mrf.mxu0  ;;  %7258 = vmax.xlane.f32.xlu0 %v7257_v37  ;;  %11574 = vrcp.f32 %v5198_v41 }
 0x935   : > { %v6499_v22 = vadd.f32 %v10795_v33, %v16682_v17  ;;  %v16796_v52 = vpop.f32.mrf.mxu1 }
 0x936   : > { %18824 = vst [vmem:[#allocation229_spill] sm:$0xff] %v16796_v52  ;;  %v11561_v8 = vpop.eup %11560  ;;  %v7260_v5 = vmax.f32 %v16791_v51, %v16796_v52  ;;  %v16808_v52 = vpop.f32.mrf.mxu0 }
 0x937   : > { %v11563_v11 = vpop.eup %11562  ;;  %v8971_v35 = vmul.f32 -1.442695, %v6499_v22  ;;  %v16800_v34 = vpop.f32.mrf.mxu1  ;;  %v6797_v61 = vmul.f32 %v11561_v8, %v16399_v21  ;;  %18827 = vst [vmem:[#allocation232_spill] sm:$0xff] %v16808_v52  ;;  %v5012_v21 = vadd.f32 %v16300_v15, %v16682_v17 }
 0x938   : > { %v11565_v44 = vpop.eup %11564  ;;  %v6705_v37 = vadd.f32 1.0, %v11563_v11  ;;  %7261 = vmax.xlane.f32.xlu0 %v7260_v5 }
 0x939   : > { %11576 = vpow2.f32 %v8971_v35  ;;  %v16804_v33 = vpop.f32.mrf.mxu1  ;;  %v16806_v43 = vadd.f32 %v6797_v61, %v5290_v55  ;;  %v5200_v51 = vadd.f32 1.0, %v11565_v44  ;;  %v11567_v9 = vpop.eup %11566  ;;  %v8943_v44 = vmul.f32 -1.442695, %v5012_v21 }
 0x93a   : > { %11578 = vrcp.f32 %v6705_v37  ;;  %v7263_v22 = vmax.f32 %v16800_v34, %v16804_v33 }
 0x93b   : > { %18826 = vst [vmem:[#allocation80_spill] sm:$0xff] %v16806_v43  ;;  %v16814_v26 = vpop.f32.mrf.mxu1  ;;  %11580 = vpow2.f32 %v8941_v18  ;;  %v5022_v18 = vadd.f32 %v16308_v45, %v16682_v17 }
 0x93c   : > { %v10798_v41 = vpop.f32.mrf.mxu0  ;;  %7264 = vmax.xlane.f32.xlu0 %v7263_v22  ;;  %11582 = vrcp.f32 %v5200_v51  ;;  %v18829_v22 = vld [vmem:[#allocation231_spill] sm:$0xff] }
 0x93d   : > { %v6509_v8 = vadd.f32 %v10798_v41, %v16682_v17  ;;  %v16817_v55 = vpop.f32.mrf.mxu1  ;;  %v5292_v41 = vmul.f32 %v11567_v9, %v18829_v22  ;;  %v8945_v45 = vmul.f32 -1.442695, %v5022_v18  ;;  %v18835_v18 = vld [vmem:[#allocation235_spill] sm:$0xff] }
 0x93e   : > { %18828 = vst [vmem:[#allocation88_spill] sm:$0xff] %v16817_v55  ;;  %v11569_v5 = vpop.eup %11568  ;;  %v7266_v11 = vmax.f32 %v16814_v26, %v16817_v55  ;;  %v16829_v55 = vpop.f32.mrf.mxu0 }
 0x93f   : > { %v11571_v35 = vpop.eup %11570  ;;  %v6707_v46 = vadd.f32 1.0, %v11569_v5  ;;  %v8973_v61 = vmul.f32 -1.442695, %v6509_v8  ;;  %v16821_v15 = vpop.f32.mrf.mxu1  ;;  %18831 = vst [vmem:[#allocation81_spill] sm:$0xff] %v16829_v55 }
 0x940   : > { %v11573_v37 = vpop.eup %11572  ;;  %7267 = vmax.xlane.f32.xlu0 %v7266_v11  ;;  %v6799_v43 = vmul.f32 %v11571_v35, %v16421_v29 }
 0x941   : > { %11584 = vrcp.f32 %v6707_v46  ;;  %v16827_v52 = vpop.f32.mrf.mxu1  ;;  %v5202_v8 = vadd.f32 1.0, %v11573_v37  ;;  %v11575_v9 = vpop.eup %11574 }
 0x942   : > { %18830 = vst [vmem:[#allocation233_spill] sm:$0xff] %v16827_v52  ;;  %11586 = vpow2.f32 %v8973_v61  ;;  %v7269_v51 = vmax.f32 %v16821_v15, %v16827_v52  ;;  %v16833_v21 = vadd.f32 %v6799_v43, %v5292_v41  ;;  %v5032_v43 = vadd.f32 %v16315_v4, %v16682_v17 }
 0x943   : > { %11588 = vpow2.f32 %v8943_v44  ;;  %v16835_v5 = vpop.f32.mrf.mxu1  ;;  %v5294_v41 = vmul.f32 %v11575_v9, %v18835_v18  ;;  %v18838_v9 = vld [vmem:[#allocation239_spill] sm:$0xff] }
 0x944   : > { %18832 = vst [vmem:[#allocation236_spill] sm:$0xff] %v16833_v21  ;;  %18833 = vst [vmem:[#allocation84_spill] sm:$0xff] %v16835_v5  ;;  %v10801_v11 = vpop.f32.mrf.mxu0  ;;  %7270 = vmax.xlane.f32.xlu0 %v7269_v51  ;;  %11590 = vrcp.f32 %v5202_v8 }
 0x945   : > { %v6519_v29 = vadd.f32 %v10801_v11, %v16682_v17  ;;  %v16838_v35 = vpop.f32.mrf.mxu1  ;;  %11592 = vpow2.f32 %v8945_v45 }
 0x946   : > { %18834 = vst [vmem:[#allocation237_spill] sm:$0xff] %v16838_v35  ;;  %v11577_v46 = vpop.eup %11576  ;;  %v7272_v61 = vmax.f32 %v16835_v5, %v16838_v35  ;;  %v16846_v21 = vpop.f32.mrf.mxu0  ;;  %v8947_v35 = vmul.f32 -1.442695, %v5032_v43 }
 0x947   : > { %v11579_v22 = vpop.eup %11578  ;;  %v6709_v44 = vadd.f32 1.0, %v11577_v46  ;;  %v8975_v37 = vmul.f32 -1.442695, %v6519_v29  ;;  %18836 = vst [vmem:[#allocation78_spill] sm:$0xff] %v16846_v21 }
 0x948   : > { %7273 = vmax.xlane.f32.xlu0 %v7272_v61  ;;  %v6801_v51 = vmul.f32 %v11579_v22, %v16443_v57  ;;  %v11581_v11 = vpop.eup %11580 }
 0x949   : > { %11594 = vrcp.f32 %v6709_v44  ;;  %v11583_v8 = vpop.eup %11582  ;;  %v5204_v5 = vadd.f32 1.0, %v11581_v11  ;;  %v5042_v44 = vadd.f32 %v16323_v59, %v16682_v17 }
 0x94a   : > { %11596 = vpow2.f32 %v8975_v37  ;;  %v16848_v55 = vadd.f32 %v6801_v51, %v5294_v41  ;;  %v5296_v61 = vmul.f32 %v11583_v8, %v18838_v9  ;;  %v18841_v9 = vld [vmem:[#allocation219_spill] sm:$0xff] }
 0x94b   : > { %11598 = vpow2.f32 %v8947_v35  ;;  %v8949_v35 = vmul.f32 -1.442695, %v5042_v44 }
 0x94c   : > { %18837 = vst [vmem:[#allocation240_spill] sm:$0xff] %v16848_v55  ;;  %v10804_v52 = vpop.f32.mrf.mxu0  ;;  %11600 = vrcp.f32 %v5204_v5  ;;  %v5052_v5 = vadd.f32 %v16331_v53, %v16682_v17 }
 0x94d   : > { %v6529_v4 = vadd.f32 %v10804_v52, %v16682_v17 }
 0x94e   : > { %v11585_v29 = vpop.eup %11584  ;;  %v16857_v18 = vpop.f32.mrf.mxu0  ;;  %v8951_v53 = vmul.f32 -1.442695, %v5052_v5  ;;  %v5062_v5 = vadd.f32 %v16339_v20, %v16682_v17 }
 0x94f   : > { %v11587_v45 = vpop.eup %11586  ;;  %v8977_v46 = vmul.f32 -1.442695, %v6529_v4  ;;  %v6803_v57 = vmul.f32 %v11585_v29, %v16465_v2  ;;  %18840 = vst [vmem:[#allocation241_spill] sm:$0xff] %v16857_v18 }
 0x950   : > { %v11589_v22 = vpop.eup %11588  ;;  %v6711_v37 = vadd.f32 1.0, %v11587_v45 }
 0x951   : > { %11602 = vpow2.f32 %v8977_v46  ;;  %v16855_v43 = vadd.f32 %v6803_v57, %v5296_v61  ;;  %v5206_v52 = vadd.f32 1.0, %v11589_v22  ;;  %v11591_v41 = vpop.eup %11590 }
 0x952   : > { %11604 = vrcp.f32 %v6711_v37  ;;  %v11593_v11 = vpop.eup %11592  ;;  %v5298_v61 = vmul.f32 %v11591_v41, %v18841_v9 }
 0x953   : > { %18839 = vst [vmem:[#allocation85_spill] sm:$0xff] %v16855_v43  ;;  %11606 = vrcp.f32 %v5206_v52  ;;  %v5208_v22 = vadd.f32 1.0, %v11593_v11 }
 0x954   : > { %v10807_v51 = vpop.f32.mrf.mxu0  ;;  %11608 = vpow2.f32 %v8949_v35 }
 0x955   : > { %v6539_v8 = vadd.f32 %v10807_v51, %v16682_v17  ;;  %v7181_v2 = vpop.xlane.xlu0 %7180 }
 0x956   : > { %v11595_v4 = vpop.eup %11594  ;;  %v7275_v59 = vsub.f32 %v16593_v24, %v7181_v2  ;;  %v7276_v29 = vsub.f32 %v16595_v49, %v7181_v2  ;;  %v16868_v24 = vpop.f32.mrf.mxu0 }
 0x957   : > { %v11597_v45 = vpop.eup %11596  ;;  %v8979_v46 = vmul.f32 -1.442695, %v6539_v8  ;;  %v6805_v57 = vmul.f32 %v11595_v4, %v16487_v30  ;;  %18843 = vst [vmem:[#allocation243_spill] sm:$0xff] %v16868_v24 }
 0x958   : > { %v6713_v44 = vadd.f32 1.0, %v11597_v45  ;;  %v7339_v37 = vmul.f32 1.442695, %v7275_v59  ;;  %v7341_v51 = vmul.f32 1.442695, %v7276_v29  ;;  %v11599_v41 = vpop.eup %11598 }
 0x959   : > { %11610 = vpow2.f32 %v8979_v46  ;;  %v7184_v43 = vpop.xlane.xlu1 %7183  ;;  %v16866_v55 = vadd.f32 %v6805_v57, %v5298_v61  ;;  %v11601_v8 = vpop.eup %11600  ;;  %v5210_v29 = vadd.f32 1.0, %v11599_v41 }
 0x95a   : > { %11612 = vrcp.f32 %v6713_v44  ;;  %v7277_v49 = vsub.f32 %v16599_v14, %v7184_v43  ;;  %v7278_v52 = vsub.f32 %v16601_v3, %v7184_v43  ;;  %v18844_v44 = vld [vmem:[#allocation220_spill] sm:$0xff] }
 0x95b   : > { %18842 = vst [vmem:[#allocation79_spill] sm:$0xff] %v16866_v55  ;;  %11614 = vpow2.f32 %v7339_v37  ;;  %v5300_v37 = vmul.f32 %v11601_v8, %v18844_v44 }
 0x95c   : > { %11616 = vrcp.f32 %v5208_v22  ;;  %v7343_v30 = vmul.f32 1.442695, %v7277_v49  ;;  %v7345_v35 = vmul.f32 1.442695, %v7278_v52  ;;  %v10810_v11 = vpop.f32.mrf.mxu0 }
 0x95d   : > { %11618 = vpow2.f32 %v7341_v51  ;;  %v6549_v2 = vadd.f32 %v10810_v11, %v16682_v17  ;;  %v7187_v4 = vpop.xlane.xlu0 %7186  ;;  %v8953_v51 = vmul.f32 -1.442695, %v5062_v5 }
 0x95e   : > { %v11603_v59 = vpop.eup %11602  ;;  %11620 = vpow2.f32 %v8951_v53  ;;  %v7279_v14 = vsub.f32 %v16605_v39, %v7187_v4  ;;  %v7280_v3 = vsub.f32 %v16607_v47, %v7187_v4  ;;  %v16879_v20 = vpop.f32.mrf.mxu0 }
 0x95f   : > { %v11605_v43 = vpop.eup %11604  ;;  %v6715_v45 = vadd.f32 1.0, %v11603_v59  ;;  %11622 = vpow2.f32 %v7343_v30  ;;  %v8981_v46 = vmul.f32 -1.442695, %v6549_v2  ;;  %18845 = vst [vmem:[#allocation196_spill] sm:$0xff] %v16879_v20 }
 0x960   : > { %11624 = vpow2.f32 %v7345_v35  ;;  %v7347_v9 = vmul.f32 1.442695, %v7279_v14  ;;  %v6807_v61 = vmul.f32 %v11605_v43, %v16509_v36  ;;  %v7349_v57 = vmul.f32 1.442695, %v7280_v3  ;;  %v11607_v49 = vpop.eup %11606 }
 0x961   : > { %11626 = vrcp.f32 %v6715_v45  ;;  %v7190_v22 = vpop.xlane.xlu1 %7189  ;;  %v11609_v30 = vpop.eup %11608 }
 0x962   : > { %11628 = vpow2.f32 %v8981_v46  ;;  %v7281_v47 = vsub.f32 %v16611_v19, %v7190_v22  ;;  %v7282_v39 = vsub.f32 %v16613_v12, %v7190_v22  ;;  %v16883_v53 = vadd.f32 %v6807_v61, %v5300_v37 }
 0x963   : > { %11630 = vrcp.f32 %v5210_v29  ;;  %v5072_v19 = vadd.f32 %v16346_v31, %v16682_v17  ;;  %v5212_v46 = vadd.f32 1.0, %v11609_v30  ;;  %v18847_v31 = vld [vmem:[#allocation217_spill] sm:$0xff] }
 0x964   : > { %18846 = vst [vmem:[#allocation76_spill] sm:$0xff] %v16883_v53  ;;  %11632 = vpow2.f32 %v7347_v9  ;;  %v7351_v52 = vmul.f32 1.442695, %v7281_v47  ;;  %v7353_v36 = vmul.f32 1.442695, %v7282_v39  ;;  %v10813_v41 = vpop.f32.mrf.mxu0  ;;  %v5302_v61 = vmul.f32 %v11607_v49, %v18847_v31 }
 0x965   : > { %11634 = vpow2.f32 %v7349_v57  ;;  %v6559_v35 = vadd.f32 %v10813_v41, %v16682_v17  ;;  %v7193_v11 = vpop.xlane.xlu0 %7192 }
 0x966   : > { %v11611_v8 = vpop.eup %11610  ;;  %11636 = vpow2.f32 %v8953_v51  ;;  %v7283_v12 = vsub.f32 %v16617_v56, %v7193_v11  ;;  %v7284_v2 = vsub.f32 %v16619_v63, %v7193_v11  ;;  %v8955_v63 = vmul.f32 -1.442695, %v5072_v19  ;;  %v16896_v57 = vpop.f32.mrf.mxu0 }
 0x967   : > { %v11613_v4 = vpop.eup %11612  ;;  %v6717_v59 = vadd.f32 1.0, %v11611_v8  ;;  %11638 = vpow2.f32 %v7351_v52  ;;  %v8983_v5 = vmul.f32 -1.442695, %v6559_v35  ;;  %18848 = vst [vmem:[#allocation245_spill] sm:$0xff] %v16896_v57 }
 0x968   : > { %v16890_v14 = vpop.eup %11614  ;;  %11640 = vpow2.f32 %v7353_v36  ;;  %v7355_v3 = vmul.f32 1.442695, %v7283_v12  ;;  %v7357_v43 = vmul.f32 1.442695, %v7284_v2  ;;  %v6809_v29 = vmul.f32 %v11613_v4, %v16531_v38  ;;  %v18850_v12 = vld [vmem:[#allocation218_spill] sm:$0xff] }
 0x969   : > { %v11617_v45 = vpop.eup %11616  ;;  %11642 = vrcp.f32 %v6717_v59  ;;  %v7196_v9 = vpop.xlane.xlu1 %7195 }
 0x96a   : > { %v16894_v56 = vpop.eup %11618  ;;  %11644 = vpow2.f32 %v8983_v5  ;;  %v7285_v22 = vsub.f32 %v16623_v32, %v7196_v9  ;;  %v7286_v44 = vsub.f32 %v16625_v6, %v7196_v9  ;;  %v16902_v51 = vadd.f32 %v6809_v29, %v5302_v61 }
 0x96b   : > { %v11621_v37 = vpop.eup %11620  ;;  %11646 = vpow2.f32 %v7355_v3  ;;  %v7467_v38 = vadd.f32 %v16894_v56, %v16890_v14  ;;  %v5304_v2 = vmul.f32 %v11617_v45, %v18850_v12 }
 0x96c   : > { %18849 = vst [vmem:[#allocation198_spill] sm:$0xff] %v16902_v51  ;;  %v16904_v47 = vpop.eup %11622  ;;  %11648 = vpow2.f32 %v7357_v43  ;;  %v7359_v39 = vmul.f32 1.442695, %v7285_v22  ;;  %v7361_v49 = vmul.f32 1.442695, %v7286_v44  ;;  %v10816_v52 = vpop.f32.mrf.mxu0  ;;  %v5214_v9 = vadd.f32 1.0, %v11621_v37 }
 0x96d   : > { %v16906_v36 = vpop.eup %11624  ;;  %11650 = vrcp.f32 %v5212_v46  ;;  %7468 = vadd.xlane.f32.xlu1 %v7467_v38  ;;  %v6569_v32 = vadd.f32 %v10816_v52, %v16682_v17  ;;  %v7199_v6 = vpop.xlane.xlu0 %7198  ;;  %v5082_v37 = vadd.f32 %v16354_v16, %v16682_v17 }
 0x96e   : > { %v11627_v41 = vpop.eup %11626  ;;  %11652 = vpow2.f32 %v8955_v63  ;;  %v7287_v30 = vsub.f32 %v16629_v1, %v7199_v6  ;;  %v7288_v35 = vsub.f32 %v16631_v42, %v7199_v6  ;;  %v7470_v11 = vadd.f32 %v16906_v36, %v16904_v47  ;;  %v16921_v31 = vpop.f32.mrf.mxu0 }
 0x96f   : > { %v11629_v8 = vpop.eup %11628  ;;  %11654 = vpow2.f32 %v7359_v39  ;;  %v8985_v19 = vmul.f32 -1.442695, %v6569_v32  ;;  %v6811_v4 = vmul.f32 %v11627_v41, %v16548_v10  ;;  %18852 = vst [vmem:[#allocation247_spill] sm:$0xff] %v16921_v31 }
 0x970   : > { %v11631_v59 = vpop.eup %11630  ;;  %v6719_v5 = vadd.f32 1.0, %v11629_v8  ;;  %11656 = vpow2.f32 %v7361_v49  ;;  %v7363_v3 = vmul.f32 1.442695, %v7287_v30  ;;  %v7365_v43 = vmul.f32 1.442695, %v7288_v35 }
 0x971   : > { %v16915_v29 = vpop.eup %11632  ;;  %11658 = vpow2.f32 %v8985_v19  ;;  %7471 = vadd.xlane.f32.xlu1 %v7470_v11  ;;  %v7202_v1 = vpop.xlane.xlu1 %7201  ;;  %v16917_v42 = vadd.f32 %v6811_v4, %v5304_v2  ;;  %v18853_v11 = vld [vmem:[#allocation215_spill] sm:$0xff] }
 0x972   : > { %v16919_v46 = vpop.eup %11634  ;;  %11660 = vrcp.f32 %v6719_v5  ;;  %v7289_v10 = vsub.f32 %v16635_v60, %v7202_v1  ;;  %v7290_v45 = vsub.f32 %v16637_v40, %v7202_v1  ;;  %v5306_v8 = vmul.f32 %v11631_v59, %v18853_v11 }
 0x973   : > { %18851 = vst [vmem:[#allocation77_spill] sm:$0xff] %v16917_v42  ;;  %v11637_v61 = vpop.eup %11636  ;;  %11662 = vpow2.f32 %v7363_v3  ;;  %v7473_v63 = vadd.f32 %v16919_v46, %v16915_v29 }
 0x974   : > { %v16927_v22 = vpop.eup %11638  ;;  %11664 = vpow2.f32 %v7365_v43  ;;  %v7367_v44 = vmul.f32 1.442695, %v7289_v10  ;;  %v7369_v38 = vmul.f32 1.442695, %v7290_v45  ;;  %v10819_v39 = vpop.f32.mrf.mxu0 }
 0x975   : > { %v16929_v49 = vpop.eup %11640  ;;  %7474 = vadd.xlane.f32.xlu1 %v7473_v63  ;;  %v6579_v60 = vadd.f32 %v10819_v39, %v16682_v17  ;;  %v7205_v40 = vpop.xlane.xlu0 %7204  ;;  %11666 = vrcp.f32 %v5214_v9 }
 0x976   : > { %v11643_v52 = vpop.eup %11642  ;;  %v7291_v32 = vsub.f32 %v16641_v23, %v7205_v40  ;;  %v7292_v6 = vsub.f32 %v16643_v28, %v7205_v40  ;;  %v7476_v41 = vadd.f32 %v16929_v49, %v16927_v22  ;;  %11668 = vpow2.f32 %v7367_v44  ;;  %v16946_v59 = vpop.f32.mrf.mxu0 }
 0x977   : > { %v11645_v30 = vpop.eup %11644  ;;  %v8987_v35 = vmul.f32 -1.442695, %v6579_v60  ;;  %v6813_v16 = vmul.f32 %v11643_v52, %v16554_v50  ;;  %11670 = vpow2.f32 %v7369_v38  ;;  %v5216_v23 = vadd.f32 1.0, %v11637_v61  ;;  %18855 = vst [vmem:[#allocation74_spill] sm:$0xff] %v16946_v59 }
 0x978   : > { %v16940_v19 = vpop.eup %11646  ;;  %v6721_v12 = vadd.f32 1.0, %v11645_v30  ;;  %v7371_v2 = vmul.f32 1.442695, %v7291_v32  ;;  %v7373_v4 = vmul.f32 1.442695, %v7292_v6 }
 0x979   : > { %v16942_v5 = vpop.eup %11648  ;;  %v8957_v28 = vmul.f32 -1.442695, %v5082_v37  ;;  %11672 = vpow2.f32 %v8987_v35  ;;  %7477 = vadd.xlane.f32.xlu1 %v7476_v41  ;;  %v7208_v3 = vpop.xlane.xlu1 %7207  ;;  %v16944_v43 = vadd.f32 %v6813_v16, %v5306_v8  ;;  %v5092_v37 = vadd.f32 %v16360_v54, %v16682_v17  ;;  %v18856_v8 = vld [vmem:[#allocation216_spill] sm:$0xff] }
 0x97a   : > { %v11651_v1 = vpop.eup %11650  ;;  %11674 = vrcp.f32 %v6721_v12  ;;  %v7293_v50 = vsub.f32 %v16647_v0, %v7208_v3  ;;  %v7294_v9 = vsub.f32 %v16649_v58, %v7208_v3  ;;  %v7479_v10 = vadd.f32 %v16942_v5, %v16940_v19  ;;  %v18858_v3 = vld [vmem:[#allocation152_spill] sm:$0xff] }
 0x97b   : > { %18854 = vst [vmem:[#allocation192_spill] sm:$0xff] %v16944_v43  ;;  %v11653_v45 = vpop.eup %11652  ;;  %11676 = vpow2.f32 %v7371_v2  ;;  %v5308_v16 = vmul.f32 %v11651_v1, %v18856_v8  ;;  %v18880_v43 = vld [vmem:[#allocation124_spill] sm:$0xff] }
 0x97c   : > { %v16952_v61 = vpop.eup %11654  ;;  %11678 = vpow2.f32 %v7373_v4  ;;  %v7375_v63 = vmul.f32 1.442695, %v7293_v50  ;;  %v7377_v44 = vmul.f32 1.442695, %v7294_v9  ;;  %v10822_v38 = vpop.f32.mrf.mxu0  ;;  %v5218_v2 = vadd.f32 1.0, %v11653_v45 }
 0x97d   : > { %v16954_v39 = vpop.eup %11656  ;;  %11680 = vpow2.f32 %v8957_v28  ;;  %7480 = vadd.xlane.f32.xlu1 %v7479_v10  ;;  %v6589_v58 = vadd.f32 %v10822_v38, %v16682_v17  ;;  %v7211_v0 = vpop.xlane.xlu0 %7210 }
 0x97e   : > { %v11659_v60 = vpop.eup %11658  ;;  %11682 = vrcp.f32 %v5216_v23  ;;  %v7295_v40 = vsub.f32 %v16653_v25, %v7211_v0  ;;  %v7296_v52 = vsub.f32 %v16655_v7, %v7211_v0  ;;  %v7482_v32 = vadd.f32 %v16954_v39, %v16952_v61  ;;  %v16969_v23 = vpop.f32.mrf.mxu0  ;;  %v18860_v0 = vld [vmem:[#allocation139_spill] sm:$0xff] }
 0x97f   : > { %v11661_v6 = vpop.eup %11660  ;;  %v6723_v41 = vadd.f32 1.0, %v11659_v60  ;;  %11684 = vpow2.f32 %v7375_v63  ;;  %v8989_v30 = vmul.f32 -1.442695, %v6589_v58  ;;  %v8959_v25 = vmul.f32 -1.442695, %v5092_v37  ;;  %18857 = vst [vmem:[#allocation249_spill] sm:$0xff] %v16969_v23 }
 0x980   : > { %v16963_v35 = vpop.eup %11662  ;;  %11686 = vpow2.f32 %v7377_v44  ;;  %v7379_v54 = vmul.f32 1.442695, %v7295_v40  ;;  %v7381_v11 = vmul.f32 1.442695, %v7296_v52  ;;  %v6815_v4 = vmul.f32 %v11661_v6, %v16560_v48  ;;  %v18861_v40 = vld [vmem:[#allocation141_spill] sm:$0xff] }
 0x981   : > { %v16966_v12 = vpop.eup %11664  ;;  %11688 = vrcp.f32 %v6723_v41  ;;  %7483 = vadd.xlane.f32.xlu1 %v7482_v32  ;;  %v7214_v7 = vpop.xlane.xlu1 %7213 }
 0x982   : > { %11690 = vpow2.f32 %v8989_v30  ;;  %v7297_v28 = vsub.f32 %v16659_v62, %v7214_v7  ;;  %v7298_v50 = vsub.f32 %v18858_v3, %v7214_v7  ;;  %v7485_v9 = vadd.f32 %v16966_v12, %v16963_v35  ;;  %v11667_v1 = vpop.eup %11666  ;;  %v18863_v7 = vld [vmem:[#allocation142_spill] sm:$0xff] }
 0x983   : > { %11692 = vpow2.f32 %v7379_v54  ;;  %v16975_v10 = vadd.f32 %v6815_v4, %v5308_v16  ;;  %v16977_v45 = vpop.eup %11668  ;;  %v18864_v3 = vld [vmem:[#allocation150_spill] sm:$0xff] }
 0x984   : > { %11694 = vpow2.f32 %v7381_v11  ;;  %v7383_v63 = vmul.f32 1.442695, %v7297_v28  ;;  %v7385_v44 = vmul.f32 1.442695, %v7298_v50  ;;  %v10825_v48 = vpop.f32.mrf.mxu0  ;;  %v16979_v38 = vpop.eup %11670 }
 0x985   : > { %18859 = vst [vmem:[#allocation194_spill] sm:$0xff] %v16975_v10  ;;  %11696 = vpow2.f32 %v8959_v25  ;;  %7486 = vadd.xlane.f32.xlu1 %v7485_v9  ;;  %v6599_v62 = vadd.f32 %v10825_v48, %v16682_v17  ;;  %v7217_v37 = vpop.xlane.xlu0 %7216  ;;  %v7488_v32 = vadd.f32 %v16979_v38, %v16977_v45  ;;  %v18865_v9 = vld [vmem:[#allocation135_spill] sm:$0xff] }
 0x986   : > { %v11673_v58 = vpop.eup %11672  ;;  %11698 = vrcp.f32 %v5218_v2  ;;  %v7299_v60 = vsub.f32 %v18860_v0, %v7217_v37  ;;  %v7300_v52 = vsub.f32 %v18861_v40, %v7217_v37  ;;  %v18862_v2 = vld [vmem:[#allocation213_spill] sm:$0xff] }
 0x987   : > { %v11675_v6 = vpop.eup %11674  ;;  %v6725_v41 = vadd.f32 1.0, %v11673_v58  ;;  %11700 = vpow2.f32 %v7383_v63  ;;  %v8991_v30 = vmul.f32 -1.442695, %v6599_v62  ;;  %v5310_v25 = vmul.f32 %v11667_v1, %v18862_v2  ;;  %v18869_v2 = vld [vmem:[#allocation214_spill] sm:$0xff] }
 0x988   : > { %v16986_v54 = vpop.eup %11676  ;;  %11702 = vpow2.f32 %v7385_v44  ;;  %v7387_v11 = vmul.f32 1.442695, %v7299_v60  ;;  %v7389_v8 = vmul.f32 1.442695, %v7300_v52  ;;  %v6817_v4 = vmul.f32 %v11675_v6, %v18863_v7 }
 0x989   : > { %v16988_v17 = vpop.eup %11678  ;;  %11704 = vrcp.f32 %v6725_v41  ;;  %7489 = vadd.xlane.f32.xlu1 %v7488_v32  ;;  %v7220_v16 = vpop.xlane.xlu1 %7219  ;;  %v18867_v32 = vld [vmem:[#allocation137_spill] sm:$0xff] }
 0x98a   : > { %v11681_v28 = vpop.eup %11680  ;;  %11706 = vpow2.f32 %v8991_v30  ;;  %v7301_v50 = vsub.f32 %v18864_v3, %v7220_v16  ;;  %v7302_v63 = vsub.f32 %v18865_v9, %v7220_v16  ;;  %v7491_v44 = vadd.f32 %v16988_v17, %v16986_v54  ;;  %v18868_v41 = vld [vmem:[#allocation157_spill] sm:$0xff] }
 0x98b   : > { %v11683_v48 = vpop.eup %11682  ;;  %11708 = vpow2.f32 %v7387_v11  ;;  %v16996_v62 = vadd.f32 %v6817_v4, %v5310_v25  ;;  %v5220_v60 = vadd.f32 1.0, %v11681_v28 }
 0x98c   : > { %v16998_v37 = vpop.eup %11684  ;;  %11710 = vpow2.f32 %v7389_v8  ;;  %v7391_v58 = vmul.f32 1.442695, %v7301_v50  ;;  %v7393_v1 = vmul.f32 1.442695, %v7302_v63  ;;  %v5312_v25 = vmul.f32 %v11683_v48, %v18869_v2  ;;  %v18870_v8 = vld [vmem:[#allocation153_spill] sm:$0xff] }
 0x98d   : > { %18866 = vst [vmem:[#allocation75_spill] sm:$0xff] %v16996_v62  ;;  %v17000_v0 = vpop.eup %11686  ;;  %7492 = vadd.xlane.f32.xlu1 %v7491_v44  ;;  %v7223_v40 = vpop.xlane.xlu0 %7222  ;;  %v18873_v48 = vld [vmem:[#allocation133_spill] sm:$0xff] }
 0x98e   : > { %v11689_v52 = vpop.eup %11688  ;;  %v7303_v6 = vsub.f32 %v18867_v32, %v7223_v40  ;;  %v7304_v30 = vsub.f32 %v18868_v41, %v7223_v40  ;;  %v7494_v11 = vadd.f32 %v17000_v0, %v16998_v37  ;;  %11712 = vpow2.f32 %v7391_v58  ;;  %v18872_v58 = vld [vmem:[#allocation131_spill] sm:$0xff] }
 0x98f   : > { %v11691_v16 = vpop.eup %11690  ;;  %v6819_v7 = vmul.f32 %v11689_v52, %v18870_v8  ;;  %11714 = vpow2.f32 %v7393_v1  ;;  %v18874_v8 = vld [vmem:[#allocation154_spill] sm:$0xff] }
 0x990   : > { %v17008_v4 = vpop.eup %11692  ;;  %v6727_v3 = vadd.f32 1.0, %v11691_v16  ;;  %v7395_v28 = vmul.f32 1.442695, %v7303_v6  ;;  %v7397_v50 = vmul.f32 1.442695, %v7304_v30  ;;  %11716 = vrcp.f32 %v5220_v60 }
 0x991   : > { %v17010_v9 = vpop.eup %11694  ;;  %7495 = vadd.xlane.f32.xlu1 %v7494_v11  ;;  %v7226_v63 = vpop.xlane.xlu1 %7225  ;;  %v17012_v44 = vadd.f32 %v6819_v7, %v5312_v25 }
 0x992   : > { %v11697_v40 = vpop.eup %11696  ;;  %11718 = vrcp.f32 %v6727_v3  ;;  %v7305_v32 = vsub.f32 %v18872_v58, %v7226_v63  ;;  %v7306_v41 = vsub.f32 %v18873_v48, %v7226_v63  ;;  %v7497_v52 = vadd.f32 %v17010_v9, %v17008_v4  ;;  %v18875_v3 = vld [vmem:[#allocation127_spill] sm:$0xff] }
 0x993   : > { %18871 = vst [vmem:[#allocation251_spill] sm:$0xff] %v17012_v44  ;;  %v11699_v16 = vpop.eup %11698  ;;  %11720 = vpow2.f32 %v7395_v28  ;;  %v5222_v11 = vadd.f32 1.0, %v11697_v40  ;;  %v18876_v28 = vld [vmem:[#allocation209_spill] sm:$0xff] }
 0x994   : > { %v17018_v1 = vpop.eup %11700  ;;  %11722 = vpow2.f32 %v7397_v50  ;;  %v7399_v6 = vmul.f32 1.442695, %v7305_v32  ;;  %v7401_v60 = vmul.f32 1.442695, %v7306_v41  ;;  %7498 = vadd.xlane.f32.xlu0 %v7497_v52  ;;  %v5314_v44 = vmul.f32 %v11699_v16, %v18876_v28  ;;  %v18877_v50 = vld [vmem:[#allocation147_spill] sm:$0xff] }
 0x995   : > { %v17020_v30 = vpop.eup %11702  ;;  %v7229_v2 = vpop.xlane.xlu0 %7228 }
 0x996   : > { %v11705_v25 = vpop.eup %11704  ;;  %v7307_v7 = vsub.f32 %v18874_v8, %v7229_v2  ;;  %v7308_v63 = vsub.f32 %v18875_v3, %v7229_v2  ;;  %v7500_v58 = vadd.f32 %v17020_v30, %v17018_v1  ;;  %11724 = vpow2.f32 %v7399_v6  ;;  %v18879_v3 = vld [vmem:[#allocation129_spill] sm:$0xff] }
 0x997   : > { %v11707_v48 = vpop.eup %11706  ;;  %v6821_v32 = vmul.f32 %v11705_v25, %v18877_v50  ;;  %11726 = vpow2.f32 %v7401_v60  ;;  %v18882_v50 = vld [vmem:[#allocation89_spill] sm:$0xff] }
 0x998   : > { %v17028_v41 = vpop.eup %11708  ;;  %v6729_v52 = vadd.f32 1.0, %v11707_v48  ;;  %v7403_v40 = vmul.f32 1.442695, %v7307_v7  ;;  %v7405_v62 = vmul.f32 1.442695, %v7308_v63  ;;  %7501 = vadd.xlane.f32.xlu1 %v7500_v58  ;;  %11728 = vrcp.f32 %v5222_v11  ;;  %v18881_v58 = vld [vmem:[#allocation125_spill] sm:$0xff] }
 0x999   : > { %v17030_v10 = vpop.eup %11710  ;;  %v7232_v2 = vpop.xlane.xlu1 %7231  ;;  %v17032_v8 = vadd.f32 %v6821_v32, %v5314_v44 }
 0x99a   : > { %11730 = vrcp.f32 %v6729_v52  ;;  %v7309_v6 = vsub.f32 %v18879_v3, %v7232_v2  ;;  %v7310_v16 = vsub.f32 %v18880_v43, %v7232_v2  ;;  %v7503_v25 = vadd.f32 %v17030_v10, %v17028_v41  ;;  %v18883_v3 = vld [vmem:[#allocation146_spill] sm:$0xff] }
 0x99b   : > { %18878 = vst [vmem:[#allocation188_spill] sm:$0xff] %v17032_v8  ;;  %11732 = vpow2.f32 %v7403_v40  ;;  %v17038_v48 = vpop.eup %11712 }
 0x99c   : > { %11734 = vpow2.f32 %v7405_v62  ;;  %v7407_v60 = vmul.f32 1.442695, %v7309_v6  ;;  %v7409_v7 = vmul.f32 1.442695, %v7310_v16  ;;  %7504 = vadd.xlane.f32.xlu0 %v7503_v25  ;;  %v17040_v63 = vpop.eup %11714 }
 0x99d   : > { %v7235_v11 = vpop.xlane.xlu0 %7234  ;;  %v11717_v44 = vpop.eup %11716  ;;  %v7506_v43 = vadd.f32 %v17040_v63, %v17038_v48 }
 0x99e   : > { %11736 = vpow2.f32 %v7407_v60  ;;  %v7311_v28 = vsub.f32 %v18881_v58, %v7235_v11  ;;  %v7312_v32 = vsub.f32 %v18882_v50, %v7235_v11  ;;  %v18884_v60 = vld [vmem:[#allocation210_spill] sm:$0xff]  ;;  %v18885_v58 = vld [vmem:[#allocation57_spill] sm:$0xff]  ;;  %v18886_v50 = vld [vmem:[#allocation67_spill] sm:$0xff] }
 0x99f   : > { %v11719_v52 = vpop.eup %11718  ;;  %11738 = vpow2.f32 %v7409_v7  ;;  %7507 = vadd.xlane.f32.xlu1 %v7506_v43  ;;  %v5316_v8 = vmul.f32 %v11717_v44, %v18884_v60 }
 0x9a0   : > { %v17046_v40 = vpop.eup %11720  ;;  %v7411_v62 = vmul.f32 1.442695, %v7311_v28  ;;  %v7413_v2 = vmul.f32 1.442695, %v7312_v32  ;;  %v6823_v6 = vmul.f32 %v11719_v52, %v18883_v3 }
 0x9a1   : > { %v17049_v16 = vpop.eup %11722  ;;  %v7238_v25 = vpop.xlane.xlu1 %7237 }
 0x9a2   : > { %11740 = vpow2.f32 %v7411_v62  ;;  %v7313_v11 = vsub.f32 %v18885_v58, %v7238_v25  ;;  %v7314_v42 = vsub.f32 %v18886_v50, %v7238_v25  ;;  %v7509_v7 = vadd.f32 %v17049_v16, %v17046_v40  ;;  %v18888_v62 = vld [vmem:[#allocation61_spill] sm:$0xff] }
 0x9a3   : > { %11742 = vpow2.f32 %v7413_v2  ;;  %v17056_v23 = vadd.f32 %v6823_v6, %v5316_v8  ;;  %v17058_v28 = vpop.eup %11724  ;;  %v18889_v58 = vld [vmem:[#allocation65_spill] sm:$0xff] }
 0x9a4   : > { %v7415_v32 = vmul.f32 1.442695, %v7313_v11  ;;  %v7417_v43 = vmul.f32 1.442695, %v7314_v42  ;;  %7510 = vadd.xlane.f32.xlu0 %v7509_v7  ;;  %v17060_v52 = vpop.eup %11726  ;;  %v18890_v42 = vld [vmem:[#allocation145_spill] sm:$0xff] }
 0x9a5   : > { %18887 = vst [vmem:[#allocation72_spill] sm:$0xff] %v17056_v23  ;;  %v7241_v3 = vpop.xlane.xlu0 %7240  ;;  %v11729_v44 = vpop.eup %11728  ;;  %v7512_v50 = vadd.f32 %v17060_v52, %v17058_v28 }
 0x9a6   : > { %11744 = vpow2.f32 %v7415_v32  ;;  %v7315_v60 = vsub.f32 %v18888_v62, %v7241_v3  ;;  %v7316_v25 = vsub.f32 %v18889_v58, %v7241_v3  ;;  %v18891_v32 = vld [vmem:[#allocation63_spill] sm:$0xff]  ;;  %v18893_v58 = vld [vmem:[#allocation258_spill] sm:$0xff] }
 0x9a7   : > { %v11731_v2 = vpop.eup %11730  ;;  %11746 = vpow2.f32 %v7417_v43  ;;  %7513 = vadd.xlane.f32.xlu1 %v7512_v50  ;;  %v5318_v59 = vmul.f32 %v11729_v44, %v18891_v32  ;;  %v18892_v62 = vld [vmem:[#allocation259_spill] sm:$0xff]  ;;  %v18896_v32 = vld [vmem:[#allocation260_spill] sm:$0xff] }
 0x9a8   : > { %v17066_v8 = vpop.eup %11732  ;;  %v7419_v6 = vmul.f32 1.442695, %v7315_v60  ;;  %v7421_v11 = vmul.f32 1.442695, %v7316_v25  ;;  %v6825_v7 = vmul.f32 %v11731_v2, %v18890_v42 }
 0x9a9   : > { %v17069_v23 = vpop.eup %11734  ;;  %v7244_v51 = vpop.xlane.xlu1 %7243 }
 0x9aa   : > { %11748 = vpow2.f32 %v7419_v6  ;;  %v7317_v3 = vsub.f32 %v18892_v62, %v7244_v51  ;;  %v7318_v53 = vsub.f32 %v18893_v58, %v7244_v51  ;;  %v7515_v43 = vadd.f32 %v17069_v23, %v17066_v8  ;;  %v18895_v6 = vld [vmem:[#allocation261_spill] sm:$0xff] }
 0x9ab   : > { %v17076_v31 = vpop.eup %11736  ;;  %11750 = vpow2.f32 %v7421_v11  ;;  %v17078_v60 = vadd.f32 %v6825_v7, %v5318_v59 }
 0x9ac   : > { %v17080_v25 = vpop.eup %11738  ;;  %v7423_v50 = vmul.f32 1.442695, %v7317_v3  ;;  %v7425_v2 = vmul.f32 1.442695, %v7318_v53  ;;  %7516 = vadd.xlane.f32.xlu0 %v7515_v43  ;;  %v18897_v43 = vld [vmem:[#allocation262_spill] sm:$0xff] }
 0x9ad   : > { %18894 = vst [vmem:[#allocation253_spill] sm:$0xff] %v17078_v60  ;;  %v7247_v42 = vpop.xlane.xlu0 %7246  ;;  %v7518_v44 = vadd.f32 %v17080_v25, %v17076_v31 }
 0x9ae   : > { %11752 = vpow2.f32 %v7423_v50  ;;  %v7319_v51 = vsub.f32 %v18895_v6, %v7247_v42  ;;  %v7320_v62 = vsub.f32 %v18896_v32, %v7247_v42  ;;  %v18898_v50 = vld [vmem:[#allocation93_spill] sm:$0xff] }
 0x9af   : > { %v17086_v58 = vpop.eup %11740  ;;  %11754 = vpow2.f32 %v7425_v2  ;;  %7519 = vadd.xlane.f32.xlu1 %v7518_v44 }
 0x9b0   : > { %v17088_v59 = vpop.eup %11742  ;;  %v7427_v11 = vmul.f32 1.442695, %v7319_v51  ;;  %v7429_v7 = vmul.f32 1.442695, %v7320_v62  ;;  %v18899_v62 = vld [vmem:[#allocation265_spill] sm:$0xff] }
 0x9b1   : > { %v7250_v3 = vpop.xlane.xlu0 %7249  ;;  %v7521_v53 = vadd.f32 %v17088_v59, %v17086_v58 }
 0x9b2   : > { %11756 = vpow2.f32 %v7427_v11  ;;  %v7321_v60 = vsub.f32 %v18897_v43, %v7250_v3  ;;  %v7322_v55 = vsub.f32 %v18898_v50, %v7250_v3  ;;  %v18900_v11 = vld [vmem:[#allocation82_spill] sm:$0xff] }
 0x9b3   : > { %v17094_v6 = vpop.eup %11744  ;;  %11758 = vpow2.f32 %v7429_v7  ;;  %7522 = vadd.xlane.f32.xlu0 %v7521_v53 }
 0x9b4   : > { %v17096_v42 = vpop.eup %11746  ;;  %v7431_v2 = vmul.f32 1.442695, %v7321_v60  ;;  %v7433_v44 = vmul.f32 1.442695, %v7322_v55 }
 0x9b5   : > { %v7253_v32 = vpop.xlane.xlu0 %7252  ;;  %v7524_v51 = vadd.f32 %v17096_v42, %v17094_v6 }
 0x9b6   : > { %11760 = vpow2.f32 %v7431_v2  ;;  %v7323_v57 = vsub.f32 %v18899_v62, %v7253_v32  ;;  %v7324_v20 = vsub.f32 %v18900_v11, %v7253_v32  ;;  %v18901_v2 = vld [vmem:[#allocation92_spill] sm:$0xff] }
 0x9b7   : > { %v17102_v43 = vpop.eup %11748  ;;  %11762 = vpow2.f32 %v7433_v44  ;;  %7525 = vadd.xlane.f32.xlu1 %v7524_v51 }
 0x9b8   : > { %v17104_v3 = vpop.eup %11750  ;;  %v7435_v7 = vmul.f32 1.442695, %v7323_v57  ;;  %v7437_v53 = vmul.f32 1.442695, %v7324_v20 }
 0x9b9   : > { %v7256_v50 = vpop.xlane.xlu0 %7255  ;;  %v7527_v55 = vadd.f32 %v17104_v3, %v17102_v43 }
 0x9ba   : > { %11764 = vpow2.f32 %v7435_v7  ;;  %v7325_v60 = vsub.f32 %v16772_v13, %v7256_v50  ;;  %v7326_v24 = vsub.f32 %v18901_v2, %v7256_v50  ;;  %v18903_v7 = vld [vmem:[#allocation224_spill] sm:$0xff] }
 0x9bb   : > { %v17110_v62 = vpop.eup %11752  ;;  %11766 = vpow2.f32 %v7437_v53  ;;  %7528 = vadd.xlane.f32.xlu0 %v7527_v55 }
 0x9bc   : > { %18902 = vst [vmem:[#allocation190_spill] sm:$0xff] %v17110_v62  ;;  %v17112_v32 = vpop.eup %11754  ;;  %v7439_v44 = vmul.f32 1.442695, %v7325_v60  ;;  %v7441_v51 = vmul.f32 1.442695, %v7326_v24  ;;  %v18904_v60 = vld [vmem:[#allocation86_spill] sm:$0xff] }
 0x9bd   : > { %v7259_v11 = vpop.xlane.xlu0 %7258  ;;  %v7530_v20 = vadd.f32 %v17112_v32, %v17110_v62 }
 0x9be   : > { %11768 = vpow2.f32 %v7439_v44  ;;  %v7327_v57 = vsub.f32 %v16781_v27, %v7259_v11  ;;  %v7328_v18 = vsub.f32 %v18903_v7, %v7259_v11  ;;  %v18905_v44 = vld [vmem:[#allocation229_spill] sm:$0xff] }
 0x9bf   : > { %v17118_v13 = vpop.eup %11756  ;;  %11770 = vpow2.f32 %v7441_v51  ;;  %7531 = vadd.xlane.f32.xlu1 %v7530_v20 }
 0x9c0   : > { %v17120_v50 = vpop.eup %11758  ;;  %v7443_v53 = vmul.f32 1.442695, %v7327_v57  ;;  %v7445_v55 = vmul.f32 1.442695, %v7328_v18 }
 0x9c1   : > { %v7262_v2 = vpop.xlane.xlu0 %7261  ;;  %v7533_v24 = vadd.f32 %v17120_v50, %v17118_v13 }
 0x9c2   : > { %11772 = vpow2.f32 %v7443_v53  ;;  %v7329_v21 = vsub.f32 %v18904_v60, %v7262_v2  ;;  %v7330_v62 = vsub.f32 %v18905_v44, %v7262_v2 }
 0x9c3   : > { %v17126_v27 = vpop.eup %11760  ;;  %11774 = vpow2.f32 %v7445_v55  ;;  %7534 = vadd.xlane.f32.xlu0 %v7533_v24 }
 0x9c4   : > { %18906 = vst [vmem:[#allocation73_spill] sm:$0xff] %v17126_v27  ;;  %v17128_v11 = vpop.eup %11762  ;;  %v7447_v51 = vmul.f32 1.442695, %v7329_v21  ;;  %v7449_v20 = vmul.f32 1.442695, %v7330_v62 }
 0x9c5   : > { %v7265_v7 = vpop.xlane.xlu0 %7264  ;;  %v7536_v18 = vadd.f32 %v17128_v11, %v17126_v27 }
 0x9c6   : > { %11776 = vpow2.f32 %v7447_v51  ;;  %v7331_v57 = vsub.f32 %v16800_v34, %v7265_v7  ;;  %v7332_v53 = vsub.f32 %v16804_v33, %v7265_v7  ;;  %v18908_v51 = vld [vmem:[#allocation88_spill] sm:$0xff] }
 0x9c7   : > { %v17134_v60 = vpop.eup %11764  ;;  %11778 = vpow2.f32 %v7449_v20  ;;  %7537 = vadd.xlane.f32.xlu1 %v7536_v18 }
 0x9c8   : > { %18907 = vst [vmem:[#allocation255_spill] sm:$0xff] %v17134_v60  ;;  %v17136_v2 = vpop.eup %11766  ;;  %v7451_v55 = vmul.f32 1.442695, %v7331_v57  ;;  %v7453_v24 = vmul.f32 1.442695, %v7332_v53 }
 0x9c9   : > { %v7268_v44 = vpop.xlane.xlu0 %7267  ;;  %v7539_v21 = vadd.f32 %v17136_v2, %v17134_v60 }
 0x9ca   : > { %11780 = vpow2.f32 %v7451_v55  ;;  %v7333_v62 = vsub.f32 %v16814_v26, %v7268_v44  ;;  %v7334_v27 = vsub.f32 %v18908_v51, %v7268_v44  ;;  %v18911_v55 = vld [vmem:[#allocation233_spill] sm:$0xff] }
 0x9cb   : > { %v17142_v34 = vpop.eup %11768  ;;  %11782 = vpow2.f32 %v7453_v24  ;;  %7540 = vadd.xlane.f32.xlu0 %v7539_v21 }
 0x9cc   : > { %18909 = vst [vmem:[#allocation184_spill] sm:$0xff] %v17142_v34  ;;  %v17144_v33 = vpop.eup %11770  ;;  %v7455_v20 = vmul.f32 1.442695, %v7333_v62  ;;  %v7457_v7 = vmul.f32 1.442695, %v7334_v27  ;;  %v18912_v62 = vld [vmem:[#allocation84_spill] sm:$0xff] }
 0x9cd   : > { %18910 = vst [vmem:[#allocation70_spill] sm:$0xff] %v17144_v33  ;;  %v7271_v18 = vpop.xlane.xlu0 %7270  ;;  %v7542_v57 = vadd.f32 %v17144_v33, %v17142_v34 }
 0x9ce   : > { %11784 = vpow2.f32 %v7455_v20  ;;  %v7335_v53 = vsub.f32 %v16821_v15, %v7271_v18  ;;  %v7336_v60 = vsub.f32 %v18911_v55, %v7271_v18  ;;  %v18913_v20 = vld [vmem:[#allocation237_spill] sm:$0xff] }
 0x9cf   : > { %v17150_v26 = vpop.eup %11772  ;;  %11786 = vpow2.f32 %v7457_v7  ;;  %7543 = vadd.xlane.f32.xlu1 %v7542_v57 }
 0x9d0   : > { %v17152_v44 = vpop.eup %11774  ;;  %v7459_v24 = vmul.f32 1.442695, %v7335_v53  ;;  %v7461_v21 = vmul.f32 1.442695, %v7336_v60 }
 0x9d1   : > { %v7274_v51 = vpop.xlane.xlu0 %7273  ;;  %v7545_v27 = vadd.f32 %v17152_v44, %v17150_v26 }
 0x9d2   : > { %11788 = vpow2.f32 %v7459_v24  ;;  %v7337_v34 = vsub.f32 %v18912_v62, %v7274_v51  ;;  %v7338_v33 = vsub.f32 %v18913_v20, %v7274_v51 }
 0x9d3   : > { %v17158_v15 = vpop.eup %11776  ;;  %11790 = vpow2.f32 %v7461_v21  ;;  %7546 = vadd.xlane.f32.xlu0 %v7545_v27 }
 0x9d4   : > { %v17160_v18 = vpop.eup %11778  ;;  %v7463_v7 = vmul.f32 1.442695, %v7337_v34  ;;  %v7465_v57 = vmul.f32 1.442695, %v7338_v33 }
 0x9d5   : > { %v7548_v60 = vadd.f32 %v17160_v18, %v17158_v15 }
 0x9d6   : > { %11792 = vpow2.f32 %v7463_v7 }
 0x9d7   : > { %v17164_v53 = vpop.eup %11780  ;;  %11794 = vpow2.f32 %v7465_v57  ;;  %7549 = vadd.xlane.f32.xlu1 %v7548_v60 }
 0x9d8   : > { %18914 = vst [vmem:[#allocation206_spill] sm:$0xff] %v17164_v53  ;;  %v17166_v55 = vpop.eup %11782 }
 0x9d9   : > { %v7551_v24 = vadd.f32 %v17166_v55, %v17164_v53 }
 0x9db   : > { %v17170_v51 = vpop.eup %11784  ;;  %7552 = vadd.xlane.f32.xlu0 %v7551_v24 }
 0x9dc   : > { %18915 = vst [vmem:[#allocation186_spill] sm:$0xff] %v17170_v51  ;;  %v17172_v21 = vpop.eup %11786 }
 0x9dd   : > { %18916 = vst [vmem:[#allocation71_spill] sm:$0xff] %v17172_v21  ;;  %v7554_v34 = vadd.f32 %v17172_v21, %v17170_v51 }
 0x9df   : > { %v17176_v33 = vpop.eup %11788  ;;  %7555 = vadd.xlane.f32.xlu1 %v7554_v34 }
 0x9e0   : > { %18917 = vst [vmem:[#allocation212_spill] sm:$0xff] %v17176_v33  ;;  %v17178_v27 = vpop.eup %11790 }
 0x9e1   : > { %18918 = vst [vmem:[#allocation179_spill] sm:$0xff] %v17178_v27  ;;  %v7557_v62 = vadd.f32 %v17178_v27, %v17176_v33 }
 0x9e3   : > { %v17182_v20 = vpop.eup %11792  ;;  %7558 = vadd.xlane.f32.xlu0 %v7557_v62 }
 0x9e4   : > { %18919 = vst [vmem:[#allocation68_spill] sm:$0xff] %v17182_v20  ;;  %v17184_v7 = vpop.eup %11794 }
 0x9e5   : > { %v7560_v57 = vadd.f32 %v17184_v7, %v17182_v20 }
 0x9e7   : > { %7561 = vadd.xlane.f32.xlu1 %v7560_v57 }
 0x9f6   : > { %v7469_v60 = vpop.xlane.xlu1 %7468 }
 0x9f7   : > { %11796 = vrcp.f32 %v7469_v60 }
 0x9fa   : > { %v7472_v24 = vpop.xlane.xlu1 %7471 }
 0x9fb   : > { %11798 = vrcp.f32 %v7472_v24 }
 0x9fe   : > { %v7475_v51 = vpop.xlane.xlu1 %7474 }
 0x9ff   : > { %11800 = vrcp.f32 %v7475_v51 }
 0xa02   : > { %v7478_v34 = vpop.xlane.xlu1 %7477 }
 0xa03   : > { %11802 = vrcp.f32 %v7478_v34 }
 0xa04   : > { %v11797_v21 = vpop.eup %11796 }
 0xa05   : > { %v7595_v33 = vmul.f32 %v11797_v21, %v16890_v14  ;;  %v7596_v27 = vmul.f32 %v11797_v21, %v16894_v56 }
 0xa06   : > { %v7481_v62 = vpop.xlane.xlu1 %7480 }
 0xa07   : > { %11804 = vrcp.f32 %v7481_v62  ;;  %7755 = vmatprep.mubr.f32.mxu0 %v7596_v27 }
 0xa08   : > { %v11799_v53 = vpop.eup %11798  ;;  %7756 = vmatmul.mubr.f32.vlgmr.msra.gmra.mxu0 %v7595_v33 }
 0xa09   : > { %v7598_v57 = vmul.f32 %v11799_v53, %v16906_v36  ;;  %v7597_v60 = vmul.f32 %v11799_v53, %v16904_v47 }
 0xa0a   : > { %v7484_v20 = vpop.xlane.xlu1 %7483 }
 0xa0b   : > { %11806 = vrcp.f32 %v7484_v20  ;;  %7760 = vmatprep.mubr.f32.mxu0 %v7598_v57 }
 0xa0c   : > { %v11801_v51 = vpop.eup %11800  ;;  %7761 = vmatmul.mubr.f32.gmra.mxu0 %v7597_v60 }
 0xa0d   : > { %v7600_v24 = vmul.f32 %v11801_v51, %v16919_v46  ;;  %v7599_v14 = vmul.f32 %v11801_v51, %v16915_v29 }
 0xa0e   : > { %v7487_v34 = vpop.xlane.xlu1 %7486 }
 0xa0f   : > { %11808 = vrcp.f32 %v7487_v34  ;;  %7765 = vmatprep.mubr.f32.mxu0 %v7600_v24 }
 0xa10   : > { %v11803_v56 = vpop.eup %11802  ;;  %7766 = vmatmul.mubr.f32.gmra.mxu0 %v7599_v14 }
 0xa11   : > { %v7602_v21 = vmul.f32 %v11803_v56, %v16929_v49  ;;  %v7601_v36 = vmul.f32 %v11803_v56, %v16927_v22 }
 0xa12   : > { %v7490_v33 = vpop.xlane.xlu1 %7489 }
 0xa13   : > { %11810 = vrcp.f32 %v7490_v33  ;;  %7770 = vmatprep.mubr.f32.mxu0 %v7602_v21 }
 0xa14   : > { %v11805_v47 = vpop.eup %11804  ;;  %7771 = vmatmul.mubr.f32.gmra.mxu0 %v7601_v36 }
 0xa15   : > { %v7604_v53 = vmul.f32 %v11805_v47, %v16942_v5  ;;  %v7603_v46 = vmul.f32 %v11805_v47, %v16940_v19 }
 0xa16   : > { %v7493_v27 = vpop.xlane.xlu1 %7492 }
 0xa17   : > { %11812 = vrcp.f32 %v7493_v27  ;;  %7775 = vmatprep.mubr.f32.mxu0 %v7604_v53 }
 0xa18   : > { %v11807_v29 = vpop.eup %11806  ;;  %7776 = vmatmul.mubr.f32.gmra.mxu0 %v7603_v46 }
 0xa19   : > { %v7606_v20 = vmul.f32 %v11807_v29, %v16954_v39  ;;  %v7605_v49 = vmul.f32 %v11807_v29, %v16952_v61 }
 0xa1a   : > { %v7496_v62 = vpop.xlane.xlu1 %7495 }
 0xa1b   : > { %11814 = vrcp.f32 %v7496_v62  ;;  %7780 = vmatprep.mubr.f32.mxu0 %v7606_v20 }
 0xa1c   : > { %v11809_v22 = vpop.eup %11808  ;;  %7781 = vmatmul.mubr.f32.gmra.mxu0 %v7605_v49 }
 0xa1d   : > { %v7499_v57 = vpop.xlane.xlu0 %7498  ;;  %v7608_v60 = vmul.f32 %v11809_v22, %v16966_v12  ;;  %v7607_v5 = vmul.f32 %v11809_v22, %v16963_v35 }
 0xa1e   : > { %11816 = vrcp.f32 %v7499_v57 }
 0xa1f   : > { %7785 = vmatprep.mubr.f32.mxu0 %v7608_v60 }
 0xa20   : > { %v11811_v19 = vpop.eup %11810  ;;  %7786 = vmatmul.mubr.f32.gmra.mxu0 %v7607_v5 }
 0xa21   : > { %v7502_v51 = vpop.xlane.xlu1 %7501  ;;  %v7610_v24 = vmul.f32 %v11811_v19, %v16979_v38  ;;  %v7609_v39 = vmul.f32 %v11811_v19, %v16977_v45 }
 0xa22   : > { %11818 = vrcp.f32 %v7502_v51 }
 0xa23   : > { %7790 = vmatprep.mubr.f32.mxu0 %v7610_v24 }
 0xa24   : > { %v11813_v61 = vpop.eup %11812  ;;  %7791 = vmatmul.mubr.f32.gmra.mxu0 %v7609_v39 }
 0xa25   : > { %v7505_v14 = vpop.xlane.xlu0 %7504  ;;  %v7612_v34 = vmul.f32 %v11813_v61, %v16988_v17  ;;  %v7611_v12 = vmul.f32 %v11813_v61, %v16986_v54 }
 0xa26   : > { %11820 = vrcp.f32 %v7505_v14 }
 0xa27   : > { %7795 = vmatprep.mubr.f32.mxu0 %v7612_v34 }
 0xa28   : > { %v11815_v35 = vpop.eup %11814  ;;  %7796 = vmatmul.mubr.f32.gmra.mxu0 %v7611_v12  ;;  %v7508_v56 = vpop.xlane.xlu1 %7507 }
 0xa29   : > { %v7614_v21 = vmul.f32 %v11815_v35, %v17000_v0  ;;  %v7613_v38 = vmul.f32 %v11815_v35, %v16998_v37  ;;  %11822 = vrcp.f32 %v7508_v56  ;;  %v18920_v56 = vld [vmem:[#allocation190_spill] sm:$0xff] }
 0xa2b   : > { %v11817_v45 = vpop.eup %11816  ;;  %7800 = vmatprep.mubr.f32.mxu0 %v7614_v21 }
 0xa2c   : > { %7801 = vmatmul.mubr.f32.gmra.mxu0 %v7613_v38  ;;  %v7616_v36 = vmul.f32 %v11817_v45, %v17010_v9  ;;  %v7615_v33 = vmul.f32 %v11817_v45, %v17008_v4 }
 0xa2d   : > { %v7511_v17 = vpop.xlane.xlu0 %7510 }
 0xa2e   : > { %11824 = vrcp.f32 %v7511_v17  ;;  %7805 = vmatprep.mubr.f32.mxu0 %v7616_v36 }
 0xa2f   : > { %v11819_v54 = vpop.eup %11818 }
 0xa30   : > { %7806 = vmatmul.mubr.f32.gmra.mxu0 %v7615_v33  ;;  %v7618_v47 = vmul.f32 %v11819_v54, %v17020_v30  ;;  %v7617_v53 = vmul.f32 %v11819_v54, %v17018_v1  ;;  %v7514_v0 = vpop.xlane.xlu1 %7513  ;;  %v18921_v33 = vld [vmem:[#allocation73_spill] sm:$0xff] }
 0xa31   : > { %11826 = vrcp.f32 %v7514_v0 }
 0xa32   : > { %7810 = vmatprep.mubr.f32.mxu0 %v7618_v47 }
 0xa33   : > { %v11821_v37 = vpop.eup %11820 }
 0xa34   : > { %7811 = vmatmul.mubr.f32.gmra.mxu0 %v7617_v53  ;;  %v7620_v46 = vmul.f32 %v11821_v37, %v17030_v10  ;;  %v7619_v9 = vmul.f32 %v11821_v37, %v17028_v41  ;;  %v18922_v53 = vld [vmem:[#allocation255_spill] sm:$0xff]  ;;  %v18923_v37 = vld [vmem:[#allocation70_spill] sm:$0xff] }
 0xa35   : > { %v7517_v27 = vpop.xlane.xlu0 %7516 }
 0xa36   : > { %11828 = vrcp.f32 %v7517_v27  ;;  %7815 = vmatprep.mubr.f32.mxu0 %v7620_v46  ;;  %v11823_v4 = vpop.eup %11822 }
 0xa37   : > { %v7622_v20 = vmul.f32 %v11823_v4, %v17040_v63  ;;  %v7621_v30 = vmul.f32 %v11823_v4, %v17038_v48 }
 0xa38   : > { %7816 = vmatmul.mubr.f32.gmra.mxu0 %v7619_v9  ;;  %v7520_v29 = vpop.xlane.xlu1 %7519  ;;  %v18924_v9 = vld [vmem:[#allocation184_spill] sm:$0xff] }
 0xa39   : > { %11830 = vrcp.f32 %v7520_v29  ;;  %7820 = vmatprep.mubr.f32.mxu0 %v7622_v20 }
 0xa3b   : > { %v11825_v1 = vpop.eup %11824 }
 0xa3c   : > { %7821 = vmatmul.mubr.f32.gmra.mxu0 %v7621_v30  ;;  %v7523_v49 = vpop.xlane.xlu0 %7522  ;;  %v7624_v62 = vmul.f32 %v11825_v1, %v17049_v16  ;;  %v7623_v10 = vmul.f32 %v11825_v1, %v17046_v40 }
 0xa3d   : > { %11832 = vrcp.f32 %v7523_v49 }
 0xa3e   : > { %7825 = vmatprep.mubr.f32.mxu0 %v7624_v62  ;;  %v11827_v41 = vpop.eup %11826 }
 0xa3f   : > { %v7626_v57 = vmul.f32 %v11827_v41, %v17060_v52  ;;  %v7625_v63 = vmul.f32 %v11827_v41, %v17058_v28 }
 0xa40   : > { %7826 = vmatmul.mubr.f32.gmra.mxu0 %v7623_v10  ;;  %v7526_v22 = vpop.xlane.xlu1 %7525 }
 0xa41   : > { %11834 = vrcp.f32 %v7526_v22  ;;  %7830 = vmatprep.mubr.f32.mxu0 %v7626_v57 }
 0xa43   : > { %v11829_v48 = vpop.eup %11828 }
 0xa44   : > { %7831 = vmatmul.mubr.f32.gmra.mxu0 %v7625_v63  ;;  %v7529_v60 = vpop.xlane.xlu0 %7528  ;;  %v7628_v5 = vmul.f32 %v11829_v48, %v17069_v23  ;;  %v7627_v16 = vmul.f32 %v11829_v48, %v17066_v8  ;;  %v18927_v48 = vld [vmem:[#allocation186_spill] sm:$0xff] }
 0xa45   : > { %11836 = vrcp.f32 %v7529_v60 }
 0xa46   : > { %v11831_v40 = vpop.eup %11830  ;;  %7835 = vmatprep.mubr.f32.mxu0 %v7628_v5  ;;  %v18928_v5 = vld [vmem:[#allocation179_spill] sm:$0xff] }
 0xa47   : > { %v7630_v19 = vmul.f32 %v11831_v40, %v17080_v25  ;;  %v7629_v52 = vmul.f32 %v11831_v40, %v17076_v31 }
 0xa48   : > { %7836 = vmatmul.mubr.f32.gmra.mxu0 %v7627_v16  ;;  %v7532_v51 = vpop.xlane.xlu1 %7531 }
 0xa49   : > { %11838 = vrcp.f32 %v7532_v51  ;;  %7840 = vmatprep.mubr.f32.mxu0 %v7630_v19  ;;  %v18930_v51 = vld [vmem:[#allocation68_spill] sm:$0xff] }
 0xa4a   : > { %v11833_v28 = vpop.eup %11832 }
 0xa4b   : > { %v7632_v24 = vmul.f32 %v11833_v28, %v17088_v59  ;;  %v7631_v23 = vmul.f32 %v11833_v28, %v17086_v58  ;;  %v17252_v28 = vpop.f32.mrf.mxu0 }
 0xa4c   : > { %7841 = vmatmul.mubr.f32.gmra.mxu0 %v7629_v52  ;;  %v7535_v39 = vpop.xlane.xlu0 %7534 }
 0xa4d   : > { %11840 = vrcp.f32 %v7535_v39  ;;  %7845 = vmatprep.mubr.f32.mxu0 %v7632_v24  ;;  %v8412_v24 = vld [vmem:[#allocation19 + $0x78] sm:$0xff]  ;;  %v8411_v39 = vld [vmem:[#allocation19 + $0x70] sm:$0xff] }
 0xa4e   : > { %v11835_v8 = vpop.eup %11834  ;;  %10906 = vmatprep.subr.mxu0 %v8412_v24 }
 0xa4f   : > { %v7634_v61 = vmul.f32 %v11835_v8, %v17096_v42  ;;  %v7633_v14 = vmul.f32 %v11835_v8, %v17094_v6  ;;  %10907 = vmatpush3.msra.mxu0 %v8412_v24  ;;  %v8410_v8 = vld [vmem:[#allocation19 + $0x68] sm:$0xff] }
 0xa50   : > { %7846 = vmatmul.mubr.f32.gmra.mxu0 %v7631_v23  ;;  %v7538_v25 = vpop.xlane.xlu1 %7537  ;;  %10908 = vmatprep.subr.mxu0 %v8411_v39 }
 0xa51   : > { %11842 = vrcp.f32 %v7538_v25  ;;  %7850 = vmatprep.mubr.f32.mxu0 %v7634_v61  ;;  %10909 = vmatpush3.msra.mxu0 %v8411_v39  ;;  %v8400_v39 = vld [vmem:[#allocation19 + $0x18] sm:$0xff] }
 0xa52   : > { %v11837_v31 = vpop.eup %11836  ;;  %10910 = vmatprep.subr.mxu0 %v8410_v8 }
 0xa53   : > { %v7636_v34 = vmul.f32 %v11837_v31, %v17104_v3  ;;  %v7635_v12 = vmul.f32 %v11837_v31, %v17102_v43  ;;  %10911 = vmatpush3.msra.mxu0 %v8410_v8 }
 0xa54   : > { %7851 = vmatmul.mubr.f32.gmra.mxu0 %v7633_v14  ;;  %v7541_v59 = vpop.xlane.xlu0 %7540 }
 0xa55   : > { %11844 = vrcp.f32 %v7541_v59  ;;  %7855 = vmatprep.mubr.f32.mxu0 %v7636_v34 }
 0xa56   : > { %v11839_v58 = vpop.eup %11838 }
 0xa57   : > { %v7638_v35 = vmul.f32 %v11839_v58, %v17112_v32  ;;  %v7637_v21 = vmul.f32 %v11839_v58, %v18920_v56 }
 0xa58   : > { %7856 = vmatmul.mubr.f32.gmra.mxu0 %v7635_v12  ;;  %v7544_v42 = vpop.xlane.xlu1 %7543 }
 0xa59   : > { %11846 = vrcp.f32 %v7544_v42  ;;  %7860 = vmatprep.mubr.f32.mxu0 %v7638_v35 }
 0xa5a   : > { %v11841_v6 = vpop.eup %11840 }
 0xa5b   : > { %v7640_v38 = vmul.f32 %v11841_v6, %v17120_v50  ;;  %v7639_v45 = vmul.f32 %v11841_v6, %v17118_v13 }
 0xa5c   : > { %7861 = vmatmul.mubr.f32.gmra.mxu0 %v7637_v21  ;;  %v7547_v3 = vpop.xlane.xlu0 %7546 }
 0xa5d   : > { %11848 = vrcp.f32 %v7547_v3  ;;  %7865 = vmatprep.mubr.f32.mxu0 %v7640_v38 }
 0xa5e   : > { %v11843_v43 = vpop.eup %11842 }
 0xa5f   : > { %v7642_v36 = vmul.f32 %v11843_v43, %v17128_v11  ;;  %v7641_v17 = vmul.f32 %v11843_v43, %v18921_v33 }
 0xa60   : > { %7866 = vmatmul.mubr.f32.gmra.mxu0 %v7639_v45  ;;  %v7550_v32 = vpop.xlane.xlu1 %7549 }
 0xa61   : > { %11850 = vrcp.f32 %v7550_v32  ;;  %7870 = vmatprep.mubr.f32.mxu0 %v7642_v36 }
 0xa62   : > { %v11845_v54 = vpop.eup %11844 }
 0xa63   : > { %v7644_v47 = vmul.f32 %v11845_v54, %v17136_v2  ;;  %v7643_v0 = vmul.f32 %v11845_v54, %v18922_v53 }
 0xa64   : > { %7871 = vmatmul.mubr.f32.gmra.mxu0 %v7641_v17  ;;  %v7553_v50 = vpop.xlane.xlu0 %7552 }
 0xa65   : > { %11852 = vrcp.f32 %v7553_v50  ;;  %7875 = vmatprep.mubr.f32.mxu0 %v7644_v47 }
 0xa66   : > { %v11847_v13 = vpop.eup %11846 }
 0xa67   : > { %v7646_v46 = vmul.f32 %v11847_v13, %v18923_v37  ;;  %v7645_v27 = vmul.f32 %v11847_v13, %v18924_v9 }
 0xa68   : > { %7876 = vmatmul.mubr.f32.gmra.mxu0 %v7643_v0  ;;  %v7556_v11 = vpop.xlane.xlu1 %7555 }
 0xa69   : > { %11854 = vrcp.f32 %v7556_v11  ;;  %7880 = vmatprep.mubr.f32.mxu0 %v7646_v46 }
 0xa6a   : > { %v11849_v4 = vpop.eup %11848 }
 0xa6b   : > { %v7648_v29 = vmul.f32 %v11849_v4, %v17152_v44  ;;  %v7647_v20 = vmul.f32 %v11849_v4, %v17150_v26  ;;  %v18925_v44 = vld [vmem:[#allocation206_spill] sm:$0xff]  ;;  %v18926_v26 = vld [vmem:[#allocation71_spill] sm:$0xff] }
 0xa6c   : > { %7881 = vmatmul.mubr.f32.gmra.mxu0 %v7645_v27  ;;  %v7559_v2 = vpop.xlane.xlu0 %7558 }
 0xa6d   : > { %11856 = vrcp.f32 %v7559_v2  ;;  %7885 = vmatprep.mubr.f32.mxu0 %v7648_v29 }
 0xa6e   : > { %v11851_v30 = vpop.eup %11850 }
 0xa6f   : > { %v7650_v1 = vmul.f32 %v11851_v30, %v17160_v18  ;;  %v7649_v62 = vmul.f32 %v11851_v30, %v17158_v15  ;;  %v18929_v15 = vld [vmem:[#allocation212_spill] sm:$0xff] }
 0xa70   : > { %7886 = vmatmul.mubr.f32.gmra.mxu0 %v7647_v20  ;;  %v7562_v49 = vpop.xlane.xlu1 %7561 }
 0xa71   : > { %11858 = vrcp.f32 %v7562_v49  ;;  %7890 = vmatprep.mubr.f32.mxu0 %v7650_v1 }
 0xa72   : > { %v11853_v10 = vpop.eup %11852 }
 0xa73   : > { %v7652_v41 = vmul.f32 %v11853_v10, %v17166_v55  ;;  %v7651_v22 = vmul.f32 %v11853_v10, %v18925_v44 }
 0xa74   : > { %7891 = vmatmul.mubr.f32.gmra.mxu0 %v7649_v62 }
 0xa75   : > { %7895 = vmatprep.mubr.f32.mxu0 %v7652_v41 }
 0xa76   : > { %v11855_v57 = vpop.eup %11854 }
 0xa77   : > { %v7654_v63 = vmul.f32 %v11855_v57, %v18926_v26  ;;  %v7653_v60 = vmul.f32 %v11855_v57, %v18927_v48  ;;  %v8407_v26 = vld [vmem:[#allocation19 + $0x50] sm:$0xff]  ;;  %v8406_v48 = vld [vmem:[#allocation19 + $0x48] sm:$0xff] }
 0xa78   : > { %7896 = vmatmul.mubr.f32.gmra.mxu0 %v7651_v22  ;;  %v8408_v22 = vld [vmem:[#allocation19 + $0x58] sm:$0xff] }
 0xa79   : > { %7900 = vmatprep.mubr.f32.mxu0 %v7654_v63 }
 0xa7a   : > { %v11857_v18 = vpop.eup %11856 }
 0xa7b   : > { %v7656_v16 = vmul.f32 %v11857_v18, %v18928_v5  ;;  %v7655_v40 = vmul.f32 %v11857_v18, %v18929_v15  ;;  %v8405_v18 = vld [vmem:[#allocation19 + $0x40] sm:$0xff] }
 0xa7c   : > { %7901 = vmatmul.mubr.f32.gmra.mxu0 %v7653_v60 }
 0xa7d   : > { %7905 = vmatprep.mubr.f32.mxu0 %v7656_v16  ;;  %v8404_v16 = vld [vmem:[#allocation19 + $0x38] sm:$0xff] }
 0xa7e   : > { %v11859_v19 = vpop.eup %11858 }
 0xa7f   : > { %v7658_v55 = vmul.f32 %v11859_v19, %v17184_v7  ;;  %v7657_v52 = vmul.f32 %v11859_v19, %v18930_v51  ;;  %v8409_v7 = vld [vmem:[#allocation19 + $0x60] sm:$0xff] }
 0xa80   : > { %7906 = vmatmul.mubr.f32.gmra.mxu0 %v7655_v40  ;;  %10912 = vmatprep.subr.mxu0 %v8409_v7  ;;  %v8403_v40 = vld [vmem:[#allocation19 + $0x30] sm:$0xff] }
 0xa81   : > { %7910 = vmatprep.mubr.f32.mxu0 %v7658_v55  ;;  %10913 = vmatpush3.msra.mxu0 %v8409_v7  ;;  %v8402_v55 = vld [vmem:[#allocation19 + $0x28] sm:$0xff] }
 0xa82   : > { %10914 = vmatprep.subr.mxu0 %v8408_v22 }
 0xa83   : > { %10915 = vmatpush3.msra.mxu0 %v8408_v22 }
 0xa84   : > { %7911 = vmatmul.mubr.f32.gmra.mxu0 %v7657_v52  ;;  %10916 = vmatprep.subr.mxu0 %v8407_v26  ;;  %v8401_v52 = vld [vmem:[#allocation19 + $0x20] sm:$0xff] }
 0xa85   : > { %10917 = vmatpush3.msra.mxu0 %v8407_v26  ;;  %v18934_v26 = vld [vmem:[#allocation222_spill] sm:$0xff] }
 0xa86   : > { %10918 = vmatprep.subr.mxu0 %v8406_v48 }
 0xa87   : > { %10919 = vmatpush3.msra.mxu0 %v8406_v48  ;;  %v18935_v48 = vld [vmem:[#allocation257_spill] sm:$0xff] }
 0xa88   : > { %10920 = vmatprep.subr.mxu0 %v8405_v18 }
 0xa89   : > { %10921 = vmatpush3.msra.mxu0 %v8405_v18 }
 0xa8a   : > { %10922 = vmatprep.subr.mxu0 %v8404_v16 }
 0xa8b   : > { %10923 = vmatpush3.msra.mxu0 %v8404_v16 }
 0xa8c   : > { %10924 = vmatprep.subr.mxu0 %v8403_v40 }
 0xa8d   : > { %10925 = vmatpush3.msra.mxu0 %v8403_v40  ;;  %v18936_v40 = vld [vmem:[#allocation128_spill] sm:$0xff] }
 0xa8e   : > { %10926 = vmatprep.subr.mxu0 %v8402_v55 }
 0xa8f   : > { %10927 = vmatpush3.msra.mxu0 %v8402_v55  ;;  %v18937_v55 = vld [vmem:[#allocation126_spill] sm:$0xff] }
 0xa90   : > { %10928 = vmatprep.subr.mxu0 %v8401_v52 }
 0xa91   : > { %10929 = vmatpush3.msra.mxu0 %v8401_v52 }
 0xa92   : > { %10930 = vmatprep.subr.mxu0 %v8400_v39 }
 0xa93   : > { %10931 = vmatpush3.msra.mxu0 %v8400_v39 }
 0xac8   : > { %v17254_v23 = vpop.f32.mrf.mxu0 }
 0xac9   : > { %10858 = vmatprep.mubr.f32.mxu1 %v17254_v23 }
 0xaca   : > { %v7759_v61 = vpop.f32.mrf.mxu0 }
 0xacb   : > { %v8399_v61 = vld [vmem:[#allocation19 + $0x10] sm:$0xff] }
 0xacc   : > { %v17257_v25 = vpop.f32.mrf.mxu0  ;;  %10932 = vmatprep.subr.mxu0 %v8399_v61 }
 0xacd   : > { %10859 = vmatmul.mubr.f32.vlgmr.msra.gmra.mxu1 %v17257_v25  ;;  %10933 = vmatpush3.msra.mxu0 %v8399_v61 }
 0xace   : > { %v7764_v14 = vpop.f32.mrf.mxu0 }
 0xacf   : > { %v8398_v14 = vld [vmem:[#allocation19 + $0x8] sm:$0xff] }
 0xad0   : > { %v17260_v31 = vpop.f32.mrf.mxu0  ;;  %10934 = vmatprep.subr.mxu0 %v8398_v14 }
 0xad1   : > { %10861 = vmatprep.mubr.f32.mxu1 %v17260_v31  ;;  %10935 = vmatpush3.msra.mxu0 %v8398_v14 }
 0xad2   : > { %v7769_v34 = vpop.f32.mrf.mxu0 }
 0xad4   : > { %v17263_v59 = vpop.f32.mrf.mxu0 }
 0xad5   : > { %10862 = vmatmul.mubr.f32.gmra.mxu1 %v17263_v59 }
 0xad6   : > { %v7774_v12 = vpop.f32.mrf.mxu0 }
 0xad7   : > { %v8397_v12 = vld [vmem:[#allocation19] sm:$0xff] }
 0xad8   : > { %v17266_v58 = vpop.f32.mrf.mxu0  ;;  %10936 = vmatprep.subr.mxu0 %v8397_v12 }
 0xad9   : > { %10864 = vmatprep.mubr.f32.mxu1 %v17266_v58  ;;  %10937 = vmatpush3.msra.mxu0 %v8397_v12 }
 0xada   : > { %v7779_v35 = vpop.f32.mrf.mxu0 }
 0xadc   : > { %v17269_v42 = vpop.f32.mrf.mxu0 }
 0xadd   : > { %10865 = vmatmul.mubr.f32.gmra.mxu1 %v17269_v42 }
 0xade   : > { %v7784_v56 = vpop.f32.mrf.mxu0 }
 0xae0   : > { %v17272_v21 = vpop.f32.mrf.mxu0 }
 0xae1   : > { %10867 = vmatprep.mubr.f32.mxu1 %v17272_v21 }
 0xae2   : > { %v7789_v6 = vpop.f32.mrf.mxu0 }
 0xae4   : > { %v17275_v38 = vpop.f32.mrf.mxu0 }
 0xae5   : > { %10868 = vmatmul.mubr.f32.gmra.mxu1 %v17275_v38 }
 0xae6   : > { %v7794_v3 = vpop.f32.mrf.mxu0 }
 0xae8   : > { %v17278_v45 = vpop.f32.mrf.mxu0 }
 0xae9   : > { %10870 = vmatprep.mubr.f32.mxu1 %v17278_v45 }
 0xaea   : > { %v7799_v43 = vpop.f32.mrf.mxu0 }
 0xaec   : > { %v17281_v36 = vpop.f32.mrf.mxu0 }
 0xaed   : > { %10871 = vmatmul.mubr.f32.gmra.mxu1 %v17281_v36 }
 0xaee   : > { %v7804_v32 = vpop.f32.mrf.mxu0 }
 0xaf0   : > { %v17284_v33 = vpop.f32.mrf.mxu0 }
 0xaf1   : > { %10873 = vmatprep.mubr.f32.mxu1 %v17284_v33 }
 0xaf2   : > { %v7809_v17 = vpop.f32.mrf.mxu0 }
 0xaf4   : > { %v17287_v54 = vpop.f32.mrf.mxu0 }
 0xaf5   : > { %10874 = vmatmul.mubr.f32.gmra.mxu1 %v17287_v54 }
 0xaf6   : > { %v7814_v47 = vpop.f32.mrf.mxu0 }
 0xaf8   : > { %v17290_v50 = vpop.f32.mrf.mxu0 }
 0xaf9   : > { %10876 = vmatprep.mubr.f32.mxu1 %v17290_v50 }
 0xafa   : > { %v7819_v53 = vpop.f32.mrf.mxu0 }
 0xafc   : > { %v17293_v0 = vpop.f32.mrf.mxu0 }
 0xafd   : > { %10877 = vmatmul.mubr.f32.gmra.mxu1 %v17293_v0 }
 0xafe   : > { %v7824_v13 = vpop.f32.mrf.mxu0 }
 0xaff   : > { %v17353_v13 = vld [vmem:[%s18792_s8] ss:$0 sm:$0xff] }
 0xb00   : > { %v17296_v37 = vpop.f32.mrf.mxu0  ;;  %v6454_v18 = vadd.f32 %v17353_v13, %v18935_v48  ;;  %v4977_v52 = vadd.f32 %v17353_v13, %v18937_v55 }
 0xb01   : > { %10879 = vmatprep.mubr.f32.mxu1 %v17296_v37 }
 0xb02   : > { %v7829_v46 = vpop.f32.mrf.mxu0  ;;  %v8962_v16 = vmul.f32 -1.442695, %v6454_v18 }
 0xb03   : > { %v18931_v46 = vld [vmem:[#allocation121_spill] sm:$0xff] }
 0xb04   : > { %v17299_v11 = vpop.f32.mrf.mxu0 }
 0xb05   : > { %10880 = vmatmul.mubr.f32.gmra.mxu1 %v17299_v11 }
 0xb06   : > { %v7834_v9 = vpop.f32.mrf.mxu0 }
 0xb07   : > { %v4937_v9 = vadd.f32 %v17353_v13, %v18931_v46 }
 0xb08   : > { %v17302_v27 = vpop.f32.mrf.mxu0 }
 0xb09   : > { %10882 = vmatprep.mubr.f32.mxu1 %v17302_v27 }
 0xb0a   : > { %v7839_v4 = vpop.f32.mrf.mxu0 }
 0xb0b   : > { %v18932_v4 = vld [vmem:[#allocation119_spill] sm:$0xff] }
 0xb0c   : > { %v17305_v29 = vpop.f32.mrf.mxu0 }
 0xb0d   : > { %10883 = vmatmul.mubr.f32.gmra.mxu1 %v17305_v29 }
 0xb0e   : > { %v7844_v2 = vpop.f32.mrf.mxu0 }
 0xb0f   : > { %v4947_v2 = vadd.f32 %v17353_v13, %v18932_v4 }
 0xb10   : > { %v17308_v20 = vpop.f32.mrf.mxu0 }
 0xb11   : > { %10885 = vmatprep.mubr.f32.mxu1 %v17308_v20 }
 0xb12   : > { %v7849_v30 = vpop.f32.mrf.mxu0 }
 0xb13   : > { %v18933_v30 = vld [vmem:[#allocation123_spill] sm:$0xff] }
 0xb14   : > { %v17311_v1 = vpop.f32.mrf.mxu0 }
 0xb15   : > { %10886 = vmatmul.mubr.f32.gmra.mxu1 %v17311_v1 }
 0xb16   : > { %v7854_v49 = vpop.f32.mrf.mxu0 }
 0xb17   : > { %v4957_v49 = vadd.f32 %v17353_v13, %v18933_v30 }
 0xb18   : > { %v17314_v62 = vpop.f32.mrf.mxu0 }
 0xb19   : > { %10888 = vmatprep.mubr.f32.mxu1 %v17314_v62  ;;  %v8932_v22 = vmul.f32 -1.442695, %v4957_v49  ;;  %v18939_v49 = vld [vmem:[#allocation120_spill] sm:$0xff] }
 0xb1a   : > { %v7859_v10 = vpop.f32.mrf.mxu0 }
 0xb1b   : > { %v8928_v10 = vmul.f32 -1.442695, %v4937_v9  ;;  %v18938_v9 = vld [vmem:[#allocation263_spill] sm:$0xff] }
 0xb1c   : > { %v17317_v41 = vpop.f32.mrf.mxu0  ;;  %v6464_v4 = vadd.f32 %v17353_v13, %v18938_v9 }
 0xb1d   : > { %10889 = vmatmul.mubr.f32.gmra.mxu1 %v17317_v41  ;;  %11860 = vpow2.f32 %v8928_v10  ;;  %v4987_v10 = vadd.f32 %v17353_v13, %v18939_v49 }
 0xb1e   : > { %v7864_v44 = vpop.f32.mrf.mxu0 }
 0xb1f   : > { %v8930_v44 = vmul.f32 -1.442695, %v4947_v2 }
 0xb20   : > { %v17320_v57 = vpop.f32.mrf.mxu0 }
 0xb21   : > { %10891 = vmatprep.mubr.f32.mxu1 %v17320_v57  ;;  %11862 = vpow2.f32 %v8930_v44 }
 0xb22   : > { %v7869_v63 = vpop.f32.mrf.mxu0  ;;  %11864 = vpow2.f32 %v8932_v22 }
 0xb23   : > { %v6444_v63 = vadd.f32 %v17353_v13, %v18934_v26 }
 0xb24   : > { %v17323_v60 = vpop.f32.mrf.mxu0 }
 0xb25   : > { %10892 = vmatmul.mubr.f32.gmra.mxu1 %v17323_v60 }
 0xb26   : > { %v7874_v5 = vpop.f32.mrf.mxu0 }
 0xb27   : > { %v8960_v5 = vmul.f32 -1.442695, %v6444_v63  ;;  %v8964_v63 = vmul.f32 -1.442695, %v6464_v4 }
 0xb28   : > { %v17326_v15 = vpop.f32.mrf.mxu0 }
 0xb29   : > { %10894 = vmatprep.mubr.f32.mxu1 %v17326_v15  ;;  %11866 = vpow2.f32 %v8960_v5 }
 0xb2a   : > { %v7879_v19 = vpop.f32.mrf.mxu0  ;;  %11868 = vpow2.f32 %v8962_v16  ;;  %v11861_v12 = vpop.eup %11860 }
 0xb2b   : > { %v4967_v19 = vadd.f32 %v17353_v13, %v18936_v40  ;;  %v5191_v46 = vadd.f32 1.0, %v11861_v12  ;;  %v8938_v40 = vmul.f32 -1.442695, %v4987_v10 }
 0xb2c   : > { %v17329_v51 = vpop.f32.mrf.mxu0 }
 0xb2d   : > { %10895 = vmatmul.mubr.f32.gmra.mxu1 %v17329_v51 }
 0xb2e   : > { %v7884_v24 = vpop.f32.mrf.mxu0 }
 0xb2f   : > { %v8934_v24 = vmul.f32 -1.442695, %v4967_v19  ;;  %v18940_v19 = vld [vmem:[#allocation223_spill] sm:$0xff] }
 0xb30   : > { %v17332_v8 = vpop.f32.mrf.mxu0  ;;  %v6474_v55 = vadd.f32 %v17353_v13, %v18940_v19  ;;  %v18943_v19 = vld [vmem:[#allocation132_spill] sm:$0xff] }
 0xb31   : > { %10897 = vmatprep.mubr.f32.mxu1 %v17332_v8  ;;  %11870 = vpow2.f32 %v8934_v24 }
 0xb32   : > { %v7889_v7 = vpop.f32.mrf.mxu0 }
 0xb33   : > { %v8936_v7 = vmul.f32 -1.442695, %v4977_v52 }
 0xb34   : > { %v17335_v34 = vpop.f32.mrf.mxu0 }
 0xb35   : > { %10898 = vmatmul.mubr.f32.gmra.mxu1 %v17335_v34 }
 0xb36   : > { %v7894_v35 = vpop.f32.mrf.mxu0 }
 0xb38   : > { %v17338_v56 = vpop.f32.mrf.mxu0 }
 0xb39   : > { %10900 = vmatprep.mubr.f32.mxu1 %v17338_v56 }
 0xb3a   : > { %v7899_v6 = vpop.f32.mrf.mxu0 }
 0xb3c   : > { %v17341_v3 = vpop.f32.mrf.mxu0 }
 0xb3d   : > { %10901 = vmatmul.mubr.f32.gmra.mxu1 %v17341_v3 }
 0xb3e   : > { %v7904_v43 = vpop.f32.mrf.mxu0 }
 0xb3f   : > { %v11863_v43 = vpop.eup %11862 }
 0xb40   : > { %v17344_v32 = vpop.f32.mrf.mxu0  ;;  %v5193_v2 = vadd.f32 1.0, %v11863_v43 }
 0xb41   : > { %10903 = vmatprep.mubr.f32.mxu1 %v17344_v32 }
 0xb42   : > { %v7909_v17 = vpop.f32.mrf.mxu0 }
 0xb43   : > { %v11865_v17 = vpop.eup %11864 }
 0xb44   : > { %v17347_v47 = vpop.f32.mrf.mxu0  ;;  %v5195_v30 = vadd.f32 1.0, %v11865_v17  ;;  %v11867_v26 = vpop.eup %11866  ;;  %v18941_v17 = vld [vmem:[#allocation228_spill] sm:$0xff] }
 0xb45   : > { %10904 = vmatmul.mubr.f32.gmra.mxu1 %v17347_v47  ;;  %v11869_v18 = vpop.eup %11868  ;;  %v6698_v52 = vadd.f32 1.0, %v11867_v26 }
 0xb46   : > { %v7914_v53 = vpop.f32.mrf.mxu0 }
 0xb8d   : > { %v10860_v39 = vpop.f32.mrf.mxu1 }
 0xb8e   : > { %v7988_v61 = vadd.f32 %v17353_v13, %v10860_v39  ;;  %v6700_v39 = vadd.f32 1.0, %v11869_v18 }
 0xb8f   : > { %v7982_v14 = vpop.f32.mrf.mxu1 }
 0xb90   : > { %v8993_v35 = vmul.f32 -1.442695, %v7988_v61  ;;  %v7983_v6 = vadd.f32 %v17353_v13, %v7982_v14  ;;  %v8966_v61 = vmul.f32 -1.442695, %v6474_v55  ;;  %v11871_v14 = vpop.eup %11870  ;;  %v4997_v55 = vadd.f32 %v17353_v13, %v18943_v19  ;;  %v18946_v19 = vld [vmem:[#allocation221_spill] sm:$0xff] }
 0xb91   : > { %v5197_v10 = vadd.f32 1.0, %v11871_v14 }
 0xb92   : > { %11872 = vpow2.f32 %v8993_v35  ;;  %v8992_v53 = vmul.f32 -1.442695, %v7983_v6 }
 0xb93   : > { %11874 = vpow2.f32 %v8936_v7 }
 0xb94   : > { %11876 = vpow2.f32 %v8992_v53  ;;  %v6484_v53 = vadd.f32 %v17353_v13, %v18941_v17 }
 0xb95   : > { %v10863_v44 = vpop.f32.mrf.mxu1  ;;  %11878 = vrcp.f32 %v5191_v46 }
 0xb96   : > { %v7998_v22 = vadd.f32 %v17353_v13, %v10863_v44  ;;  %11880 = vrcp.f32 %v5193_v2 }
 0xb97   : > { %v7992_v48 = vpop.f32.mrf.mxu1  ;;  %11882 = vrcp.f32 %v5195_v30  ;;  %v18942_v30 = vld [vmem:[#allocation232_spill] sm:$0xff] }
 0xb98   : > { %v8995_v5 = vmul.f32 -1.442695, %v7998_v22  ;;  %v7993_v16 = vadd.f32 %v17353_v13, %v7992_v48  ;;  %v6494_v49 = vadd.f32 %v17353_v13, %v18942_v30  ;;  %v8968_v48 = vmul.f32 -1.442695, %v6484_v53 }
 0xb9a   : > { %11884 = vpow2.f32 %v8995_v5  ;;  %v8994_v24 = vmul.f32 -1.442695, %v7993_v16  ;;  %v8970_v5 = vmul.f32 -1.442695, %v6494_v49 }
 0xb9b   : > { %11886 = vpow2.f32 %v8964_v63 }
 0xb9c   : > { %11888 = vpow2.f32 %v8994_v24 }
 0xb9d   : > { %11890 = vpow2.f32 %v8938_v40  ;;  %v10866_v7 = vpop.f32.mrf.mxu1 }
 0xb9e   : > { %11892 = vrcp.f32 %v6698_v52  ;;  %v8008_v12 = vadd.f32 %v17353_v13, %v10866_v7 }
 0xb9f   : > { %v11873_v35 = vpop.eup %11872  ;;  %11894 = vrcp.f32 %v6700_v39  ;;  %v8002_v6 = vpop.f32.mrf.mxu1 }
 0xba0   : > { %v11875_v43 = vpop.eup %11874  ;;  %v8238_v46 = vadd.f32 1.0, %v11873_v35  ;;  %v8997_v9 = vmul.f32 -1.442695, %v8008_v12  ;;  %v8003_v4 = vadd.f32 %v17353_v13, %v8002_v6  ;;  %11896 = vpow2.f32 %v8966_v61 }
 0xba1   : > { %v11877_v2 = vpop.eup %11876  ;;  %v5199_v26 = vadd.f32 1.0, %v11875_v43  ;;  %v8940_v43 = vmul.f32 -1.442695, %v4997_v55 }
 0xba2   : > { %11898 = vrcp.f32 %v8238_v46  ;;  %v8237_v44 = vadd.f32 1.0, %v11877_v2  ;;  %v8996_v22 = vmul.f32 -1.442695, %v8003_v4  ;;  %v11879_v63 = vpop.eup %11878  ;;  %v18944_v2 = vld [vmem:[#allocation122_spill] sm:$0xff] }
 0xba3   : > { %11900 = vpow2.f32 %v8997_v9  ;;  %v17385_v18 = vpop.eup %11880  ;;  %v5007_v30 = vadd.f32 %v17353_v13, %v18944_v2  ;;  %v5287_v55 = vmul.f32 %v11879_v63, %v18946_v19 }
 0xba4   : > { %11902 = vrcp.f32 %v8237_v44  ;;  %v17387_v40 = vpop.eup %11882 }
 0xba5   : > { %11904 = vpow2.f32 %v8996_v22  ;;  %v10869_v16 = vpop.f32.mrf.mxu1 }
 0xba6   : > { %11906 = vrcp.f32 %v5197_v10  ;;  %v8018_v52 = vadd.f32 %v17353_v13, %v10869_v16 }
 0xba7   : > { %v11885_v24 = vpop.eup %11884  ;;  %11908 = vrcp.f32 %v5199_v26  ;;  %v8012_v39 = vpop.f32.mrf.mxu1  ;;  %v18945_v26 = vld [vmem:[#allocation134_spill] sm:$0xff] }
 0xba8   : > { %v11887_v61 = vpop.eup %11886  ;;  %11910 = vpow2.f32 %v8968_v48  ;;  %v8240_v7 = vadd.f32 1.0, %v11885_v24  ;;  %v8999_v14 = vmul.f32 -1.442695, %v8018_v52  ;;  %v8013_v12 = vadd.f32 %v17353_v13, %v8012_v39  ;;  %v18947_v39 = vld [vmem:[#allocation116_spill] sm:$0xff] }
 0xba9   : > { %v11889_v35 = vpop.eup %11888  ;;  %11912 = vpow2.f32 %v8970_v5  ;;  %v6702_v9 = vadd.f32 1.0, %v11887_v61  ;;  %v8942_v24 = vmul.f32 -1.442695, %v5007_v30  ;;  %v5017_v61 = vadd.f32 %v17353_v13, %v18947_v39  ;;  %v18950_v39 = vld [vmem:[#allocation83_spill] sm:$0xff] }
 0xbaa   : > { %v11891_v6 = vpop.eup %11890  ;;  %11914 = vrcp.f32 %v8240_v7  ;;  %v8239_v17 = vadd.f32 1.0, %v11889_v35  ;;  %v8998_v53 = vmul.f32 -1.442695, %v8013_v12  ;;  %v18948_v35 = vld [vmem:[#allocation81_spill] sm:$0xff] }
 0xbab   : > { %v11893_v46 = vpop.eup %11892  ;;  %11916 = vpow2.f32 %v8999_v14  ;;  %v5201_v49 = vadd.f32 1.0, %v11891_v6  ;;  %v6504_v6 = vadd.f32 %v17353_v13, %v18948_v35 }
 0xbac   : > { %v11895_v4 = vpop.eup %11894  ;;  %11918 = vrcp.f32 %v8239_v17  ;;  %v6794_v48 = vmul.f32 %v11893_v46, %v18945_v26 }
 0xbad   : > { %11920 = vpow2.f32 %v8998_v53  ;;  %v10872_v10 = vpop.f32.mrf.mxu1  ;;  %v11897_v44 = vpop.eup %11896 }
 0xbae   : > { %11922 = vpow2.f32 %v8940_v43  ;;  %v8028_v22 = vadd.f32 %v17353_v13, %v10872_v10  ;;  %v6826_v63 = vadd.f32 %v6794_v48, %v5287_v55  ;;  %v6704_v30 = vadd.f32 1.0, %v11897_v44  ;;  %v18951_v44 = vld [vmem:[#allocation226_spill] sm:$0xff] }
 0xbaf   : > { %v11899_v5 = vpop.eup %11898  ;;  %11924 = vrcp.f32 %v6702_v9  ;;  %v8022_v16 = vpop.f32.mrf.mxu1 }
 0xbb0   : > { %v11901_v52 = vpop.eup %11900  ;;  %v9001_v7 = vmul.f32 -1.442695, %v8028_v22  ;;  %v8023_v14 = vadd.f32 %v17353_v13, %v8022_v16  ;;  %11926 = vrcp.f32 %v5201_v49  ;;  %v8334_v17 = vmul.f32 %v11899_v5, %v17257_v25  ;;  %v18949_v16 = vld [vmem:[#allocation104_spill] sm:$0xff] }
 0xbb1   : > { %v11903_v12 = vpop.eup %11902  ;;  %v8242_v43 = vadd.f32 1.0, %v11901_v52  ;;  %v8944_v49 = vmul.f32 -1.442695, %v5017_v61  ;;  %v6796_v19 = vmul.f32 %v11895_v4, %v18949_v16  ;;  %v8972_v25 = vmul.f32 -1.442695, %v6504_v6 }
 0xbb2   : > { %v11905_v53 = vpop.eup %11904  ;;  %11928 = vpow2.f32 %v9001_v7  ;;  %v9000_v46 = vmul.f32 -1.442695, %v8023_v14  ;;  %v8333_v9 = vmul.f32 %v11903_v12, %v17254_v23  ;;  %v8366_v48 = vadd.f32 %v8334_v17, %v18950_v39  ;;  %v18952_v17 = vld [vmem:[#allocation78_spill] sm:$0xff]  ;;  %v18953_v39 = vld [vmem:[#allocation80_spill] sm:$0xff] }
 0xbb3   : > { %v17405_v2 = vpop.eup %11906  ;;  %11930 = vrcp.f32 %v8242_v43  ;;  %v8241_v10 = vadd.f32 1.0, %v11905_v53  ;;  %v5289_v7 = vmul.f32 %v17385_v18, %v18951_v44 }
 0xbb4   : > { %v17407_v22 = vpop.eup %11908  ;;  %11932 = vpow2.f32 %v9000_v46  ;;  %v8365_v26 = vadd.f32 %v8333_v9, %v6826_v63 }
 0xbb5   : > { %v11911_v52 = vpop.eup %11910  ;;  %11934 = vrcp.f32 %v8241_v10  ;;  %v10875_v5 = vpop.f32.mrf.mxu1  ;;  %v6828_v6 = vadd.f32 %v6796_v19, %v5289_v7  ;;  %v18955_v7 = vld [vmem:[#allocation106_spill] sm:$0xff] }
 0xbb6   : > { %v11913_v55 = vpop.eup %11912  ;;  %11936 = vpow2.f32 %v8942_v24  ;;  %v8038_v23 = vadd.f32 %v17353_v13, %v10875_v5  ;;  %10938 = vmatprep.mubr.f32.mxu0 %v8365_v26  ;;  %v6514_v24 = vadd.f32 %v17353_v13, %v18952_v17  ;;  %v6706_v18 = vadd.f32 1.0, %v11911_v52 }
 0xbb7   : > { %v11915_v14 = vpop.eup %11914  ;;  %11938 = vrcp.f32 %v6704_v30  ;;  %v8032_v61 = vpop.f32.mrf.mxu1  ;;  %10939 = vmatmul.mubr.f32.vlgmr.msra.gmra.mxu0 %v8366_v48 }
 0xbb8   : > { %v11917_v12 = vpop.eup %11916  ;;  %11940 = vpow2.f32 %v8944_v49  ;;  %v9003_v4 = vmul.f32 -1.442695, %v8038_v23  ;;  %v8033_v35 = vadd.f32 %v17353_v13, %v8032_v61  ;;  %v8336_v46 = vmul.f32 %v11915_v14, %v17263_v59 }
 0xbb9   : > { %v11919_v43 = vpop.eup %11918  ;;  %11942 = vpow2.f32 %v8972_v25  ;;  %v8244_v53 = vadd.f32 1.0, %v11917_v12  ;;  %v6708_v49 = vadd.f32 1.0, %v11913_v55  ;;  %v8974_v25 = vmul.f32 -1.442695, %v6514_v24  ;;  %v18956_v12 = vld [vmem:[#allocation241_spill] sm:$0xff] }
 0xbba   : > { %v11921_v63 = vpop.eup %11920  ;;  %11944 = vpow2.f32 %v9003_v4  ;;  %v9002_v9 = vmul.f32 -1.442695, %v8033_v35  ;;  %v8335_v30 = vmul.f32 %v11919_v43, %v17260_v31  ;;  %v8368_v48 = vadd.f32 %v8336_v46, %v18953_v39  ;;  %v18954_v31 = vld [vmem:[#allocation118_spill] sm:$0xff] }
 0xbbb   : > { %v11923_v10 = vpop.eup %11922  ;;  %11946 = vrcp.f32 %v8244_v53  ;;  %v8243_v26 = vadd.f32 1.0, %v11921_v63  ;;  %v5027_v55 = vadd.f32 %v17353_v13, %v18954_v31  ;;  %v6524_v4 = vadd.f32 %v17353_v13, %v18956_v12  ;;  %v18957_v53 = vld [vmem:[#allocation243_spill] sm:$0xff]  ;;  %v18958_v63 = vld [vmem:[#allocation230_spill] sm:$0xff] }
 0xbbc   : > { %v11925_v16 = vpop.eup %11924  ;;  %11948 = vpow2.f32 %v9002_v9  ;;  %v8367_v19 = vadd.f32 %v8335_v30, %v6828_v6  ;;  %v5203_v24 = vadd.f32 1.0, %v11923_v10  ;;  %v6534_v46 = vadd.f32 %v17353_v13, %v18957_v53 }
 0xbbd   : > { %11950 = vrcp.f32 %v8243_v26  ;;  %v10878_v5 = vpop.f32.mrf.mxu1  ;;  %v17420_v23 = vpop.eup %11926  ;;  %v6798_v14 = vmul.f32 %v11925_v16, %v18955_v7  ;;  %v18959_v7 = vld [vmem:[#allocation236_spill] sm:$0xff] }
 0xbbe   : > { %11952 = vrcp.f32 %v6706_v18  ;;  %v8048_v59 = vadd.f32 %v17353_v13, %v10878_v5  ;;  %10941 = vmatprep.mubr.f32.mxu0 %v8367_v19  ;;  %v5291_v18 = vmul.f32 %v17387_v40, %v18958_v63  ;;  %v8946_v19 = vmul.f32 -1.442695, %v5027_v55 }
 0xbbf   : > { %v11929_v52 = vpop.eup %11928  ;;  %11954 = vrcp.f32 %v6708_v49  ;;  %v8042_v44 = vpop.f32.mrf.mxu1  ;;  %10942 = vmatmul.mubr.f32.gmra.mxu0 %v8368_v48 }
 0xbc0   : > { %v11931_v61 = vpop.eup %11930  ;;  %v8246_v35 = vadd.f32 1.0, %v11929_v52  ;;  %v9005_v6 = vmul.f32 -1.442695, %v8048_v59  ;;  %v8043_v43 = vadd.f32 %v17353_v13, %v8042_v44  ;;  %11956 = vpow2.f32 %v8974_v25 }
 0xbc1   : > { %v11933_v17 = vpop.eup %11932  ;;  %v8338_v26 = vmul.f32 %v11931_v61, %v17269_v42  ;;  %v6830_v5 = vadd.f32 %v6798_v14, %v5291_v18  ;;  %v8976_v25 = vmul.f32 -1.442695, %v6524_v4  ;;  %v8978_v59 = vmul.f32 -1.442695, %v6534_v46  ;;  %v18960_v14 = vld [vmem:[#allocation140_spill] sm:$0xff]  ;;  %v18962_v46 = vld [vmem:[#allocation234_spill] sm:$0xff] }
 0xbc2   : > { %v11935_v9 = vpop.eup %11934  ;;  %11958 = vrcp.f32 %v8246_v35  ;;  %v8245_v30 = vadd.f32 1.0, %v11933_v17  ;;  %v9004_v49 = vmul.f32 -1.442695, %v8043_v43  ;;  %v5293_v63 = vmul.f32 %v17405_v2, %v18962_v46 }
 0xbc3   : > { %v11937_v16 = vpop.eup %11936  ;;  %11960 = vpow2.f32 %v9005_v6  ;;  %v8337_v39 = vmul.f32 %v11935_v9, %v17266_v58  ;;  %v8370_v42 = vadd.f32 %v8338_v26, %v18959_v7  ;;  %v18964_v7 = vld [vmem:[#allocation100_spill] sm:$0xff] }
 0xbc4   : > { %v11939_v10 = vpop.eup %11938  ;;  %11962 = vrcp.f32 %v8245_v30  ;;  %v5205_v17 = vadd.f32 1.0, %v11937_v16 }
 0xbc5   : > { %v11941_v48 = vpop.eup %11940  ;;  %11964 = vpow2.f32 %v9004_v49  ;;  %v10881_v52 = vpop.f32.mrf.mxu1  ;;  %v8369_v40 = vadd.f32 %v8337_v39, %v6830_v5  ;;  %v6800_v58 = vmul.f32 %v11939_v10, %v18960_v14 }
 0xbc6   : > { %v11943_v31 = vpop.eup %11942  ;;  %11966 = vrcp.f32 %v5203_v24  ;;  %v8058_v44 = vadd.f32 %v17353_v13, %v10881_v52  ;;  %v18961_v24 = vld [vmem:[#allocation130_spill] sm:$0xff]  ;;  %v5207_v14 = vadd.f32 1.0, %v11941_v48 }
 0xbc7   : > { %v11945_v61 = vpop.eup %11944  ;;  %11968 = vpow2.f32 %v8946_v19  ;;  %10944 = vmatprep.mubr.f32.mxu0 %v8369_v40  ;;  %v8052_v55 = vpop.f32.mrf.mxu1  ;;  %v5037_v53 = vadd.f32 %v17353_v13, %v18961_v24  ;;  %v6710_v19 = vadd.f32 1.0, %v11943_v31  ;;  %v6832_v5 = vadd.f32 %v6800_v58, %v5293_v63  ;;  %v18963_v40 = vld [vmem:[#allocation240_spill] sm:$0xff] }
 0xbc8   : > { %v11947_v12 = vpop.eup %11946  ;;  %11970 = vpow2.f32 %v8976_v25  ;;  %v8248_v4 = vadd.f32 1.0, %v11945_v61  ;;  %v9007_v35 = vmul.f32 -1.442695, %v8058_v44  ;;  %v8053_v6 = vadd.f32 %v17353_v13, %v8052_v55  ;;  %10945 = vmatmul.mubr.f32.gmra.mxu0 %v8370_v42  ;;  %v18965_v61 = vld [vmem:[#allocation238_spill] sm:$0xff]  ;;  %v18966_v58 = vld [vmem:[#allocation112_spill] sm:$0xff] }
 0xbc9   : > { %v11949_v43 = vpop.eup %11948  ;;  %11972 = vpow2.f32 %v8978_v59  ;;  %v8340_v49 = vmul.f32 %v11947_v12, %v17275_v38  ;;  %v8948_v10 = vmul.f32 -1.442695, %v5037_v53  ;;  %v5047_v12 = vadd.f32 %v17353_v13, %v18966_v58 }
 0xbca   : > { %v11951_v18 = vpop.eup %11950  ;;  %11974 = vrcp.f32 %v8248_v4  ;;  %v8247_v9 = vadd.f32 1.0, %v11949_v43  ;;  %v9006_v30 = vmul.f32 -1.442695, %v8053_v6  ;;  %v18967_v43 = vld [vmem:[#allocation196_spill] sm:$0xff] }
 0xbcb   : > { %v11953_v26 = vpop.eup %11952  ;;  %11976 = vpow2.f32 %v9007_v35  ;;  %v8339_v39 = vmul.f32 %v11951_v18, %v17272_v21  ;;  %v8372_v44 = vadd.f32 %v8340_v49, %v18963_v40  ;;  %v5295_v21 = vmul.f32 %v17407_v22, %v18965_v61 }
 0xbcc   : > { %v11955_v16 = vpop.eup %11954  ;;  %11978 = vrcp.f32 %v8247_v9  ;;  %v6802_v38 = vmul.f32 %v11953_v26, %v18964_v7  ;;  %v8950_v26 = vmul.f32 -1.442695, %v5047_v12  ;;  %v18970_v7 = vld [vmem:[#allocation242_spill] sm:$0xff] }
 0xbcd   : > { %11980 = vpow2.f32 %v9006_v30  ;;  %v10884_v25 = vpop.f32.mrf.mxu1  ;;  %v8371_v59 = vadd.f32 %v8339_v39, %v6832_v5  ;;  %v11957_v52 = vpop.eup %11956 }
 0xbce   : > { %11982 = vrcp.f32 %v5205_v17  ;;  %v8068_v2 = vadd.f32 %v17353_v13, %v10884_v25  ;;  %v6544_v17 = vadd.f32 %v17353_v13, %v18967_v43  ;;  %v6834_v63 = vadd.f32 %v6802_v38, %v5295_v21 }
 0xbcf   : > { %v11959_v42 = vpop.eup %11958  ;;  %11984 = vrcp.f32 %v6710_v19  ;;  %10947 = vmatprep.mubr.f32.mxu0 %v8371_v59  ;;  %v8062_v31 = vpop.f32.mrf.mxu1  ;;  %v6712_v9 = vadd.f32 1.0, %v11957_v52  ;;  %v18969_v59 = vld [vmem:[#allocation102_spill] sm:$0xff]  ;;  %v5297_v38 = vmul.f32 %v17420_v23, %v18970_v7  ;;  %v18976_v7 = vld [vmem:[#allocation244_spill] sm:$0xff] }
 0xbd0   : > { %v11961_v55 = vpop.eup %11960  ;;  %v9009_v4 = vmul.f32 -1.442695, %v8068_v2  ;;  %v8063_v35 = vadd.f32 %v17353_v13, %v8062_v31  ;;  %10948 = vmatmul.mubr.f32.gmra.mxu0 %v8372_v44  ;;  %11986 = vpow2.f32 %v8948_v10  ;;  %v8342_v53 = vmul.f32 %v11959_v42, %v17281_v36  ;;  %v18968_v36 = vld [vmem:[#allocation85_spill] sm:$0xff] }
 0xbd1   : > { %v11963_v6 = vpop.eup %11962  ;;  %v8250_v24 = vadd.f32 1.0, %v11961_v55  ;;  %v8980_v39 = vmul.f32 -1.442695, %v6544_v17  ;;  %v6804_v2 = vmul.f32 %v11955_v16, %v18969_v59  ;;  %v18971_v31 = vld [vmem:[#allocation245_spill] sm:$0xff] }
 0xbd2   : > { %v11965_v46 = vpop.eup %11964  ;;  %11988 = vpow2.f32 %v9009_v4  ;;  %v9008_v22 = vmul.f32 -1.442695, %v8063_v35  ;;  %v8341_v48 = vmul.f32 %v11963_v6, %v17278_v45  ;;  %v8374_v25 = vadd.f32 %v8342_v53, %v18968_v36 }
 0xbd3   : > { %v17457_v18 = vpop.eup %11966  ;;  %11990 = vrcp.f32 %v8250_v24  ;;  %v8249_v30 = vadd.f32 1.0, %v11965_v46  ;;  %v6554_v61 = vadd.f32 %v17353_v13, %v18971_v31  ;;  %v6836_v58 = vadd.f32 %v6804_v2, %v5297_v38 }
 0xbd4   : > { %v11969_v49 = vpop.eup %11968  ;;  %11992 = vpow2.f32 %v9008_v22  ;;  %v8373_v19 = vadd.f32 %v8341_v48, %v6834_v63  ;;  %v18972_v63 = vld [vmem:[#allocation114_spill] sm:$0xff]  ;;  %v5299_v38 = vmul.f32 %v17457_v18, %v18976_v7 }
 0xbd5   : > { %v11971_v5 = vpop.eup %11970  ;;  %11994 = vrcp.f32 %v8249_v30  ;;  %v10887_v10 = vpop.f32.mrf.mxu1  ;;  %v5209_v17 = vadd.f32 1.0, %v11969_v49  ;;  %v8982_v46 = vmul.f32 -1.442695, %v6554_v61  ;;  %v5057_v48 = vadd.f32 %v17353_v13, %v18972_v63  ;;  %v18973_v30 = vld [vmem:[#allocation79_spill] sm:$0xff] }
 0xbd6   : > { %v11973_v40 = vpop.eup %11972  ;;  %11996 = vrcp.f32 %v5207_v14  ;;  %v8078_v45 = vadd.f32 %v17353_v13, %v10887_v10  ;;  %10950 = vmatprep.mubr.f32.mxu0 %v8373_v19  ;;  %v6714_v35 = vadd.f32 1.0, %v11971_v5 }
 0xbd7   : > { %v11975_v52 = vpop.eup %11974  ;;  %11998 = vrcp.f32 %v6712_v9  ;;  %v8072_v44 = vpop.f32.mrf.mxu1  ;;  %10951 = vmatmul.mubr.f32.gmra.mxu0 %v8374_v25  ;;  %v6716_v9 = vadd.f32 1.0, %v11973_v40 }
 0xbd8   : > { %v11977_v42 = vpop.eup %11976  ;;  %12000 = vpow2.f32 %v8950_v26  ;;  %v9011_v21 = vmul.f32 -1.442695, %v8078_v45  ;;  %v8073_v16 = vadd.f32 %v17353_v13, %v8072_v44  ;;  %v8344_v12 = vmul.f32 %v11975_v52, %v17287_v54  ;;  %v18975_v52 = vld [vmem:[#allocation247_spill] sm:$0xff] }
 0xbd9   : > { %v11979_v55 = vpop.eup %11978  ;;  %12002 = vpow2.f32 %v8980_v39  ;;  %v8252_v14 = vadd.f32 1.0, %v11977_v42  ;;  %v18974_v39 = vld [vmem:[#allocation138_spill] sm:$0xff]  ;;  %v8952_v45 = vmul.f32 -1.442695, %v5057_v48  ;;  %v6564_v44 = vadd.f32 %v17353_v13, %v18975_v52  ;;  %v18979_v48 = vld [vmem:[#allocation136_spill] sm:$0xff] }
 0xbda   : > { %v11981_v4 = vpop.eup %11980  ;;  %12004 = vpow2.f32 %v9011_v21  ;;  %v9010_v6 = vmul.f32 -1.442695, %v8073_v16  ;;  %v8343_v23 = vmul.f32 %v11979_v55, %v17284_v33  ;;  %v8376_v26 = vadd.f32 %v8344_v12, %v18973_v30 }
 0xbdb   : > { %v17469_v43 = vpop.eup %11982  ;;  %12006 = vrcp.f32 %v8252_v14  ;;  %v8251_v24 = vadd.f32 1.0, %v11981_v4 }
 0xbdc   : > { %v11985_v53 = vpop.eup %11984  ;;  %12008 = vpow2.f32 %v9010_v6  ;;  %v8375_v22 = vadd.f32 %v8343_v23, %v6836_v58 }
 0xbdd   : > { %12010 = vrcp.f32 %v8251_v24  ;;  %v10890_v54 = vpop.f32.mrf.mxu1  ;;  %v11987_v19 = vpop.eup %11986  ;;  %v6806_v10 = vmul.f32 %v11985_v53, %v18974_v39  ;;  %v18977_v24 = vld [vmem:[#allocation76_spill] sm:$0xff]  ;;  %v18981_v39 = vld [vmem:[#allocation246_spill] sm:$0xff] }
 0xbde   : > { %12012 = vrcp.f32 %v6714_v35  ;;  %v8088_v33 = vadd.f32 %v17353_v13, %v10890_v54  ;;  %10953 = vmatprep.mubr.f32.mxu0 %v8375_v22  ;;  %v5211_v55 = vadd.f32 1.0, %v11987_v19  ;;  %v8984_v35 = vmul.f32 -1.442695, %v6564_v44  ;;  %v18978_v22 = vld [vmem:[#allocation96_spill] sm:$0xff] }
 0xbdf   : > { %v11989_v49 = vpop.eup %11988  ;;  %12014 = vrcp.f32 %v5209_v17  ;;  %v8082_v5 = vpop.f32.mrf.mxu1  ;;  %10954 = vmatmul.mubr.f32.gmra.mxu0 %v8376_v26  ;;  %v6838_v14 = vadd.f32 %v6806_v10, %v5299_v38  ;;  %v5301_v10 = vmul.f32 %v17469_v43, %v18981_v39  ;;  %v18987_v39 = vld [vmem:[#allocation144_spill] sm:$0xff] }
 0xbe0   : > { %v11991_v36 = vpop.eup %11990  ;;  %12016 = vpow2.f32 %v8982_v46  ;;  %v8254_v25 = vadd.f32 1.0, %v11989_v49  ;;  %v9013_v59 = vmul.f32 -1.442695, %v8088_v33  ;;  %v8083_v2 = vadd.f32 %v17353_v13, %v8082_v5  ;;  %v18980_v49 = vld [vmem:[#allocation74_spill] sm:$0xff] }
 0xbe1   : > { %v11993_v40 = vpop.eup %11992  ;;  %12018 = vrcp.f32 %v6716_v9  ;;  %v8346_v21 = vmul.f32 %v11991_v36, %v17293_v0  ;;  %v5067_v9 = vadd.f32 %v17353_v13, %v18979_v48  ;;  %v6574_v5 = vadd.f32 %v17353_v13, %v18980_v49 }
 0xbe2   : > { %v11995_v42 = vpop.eup %11994  ;;  %12020 = vrcp.f32 %v8254_v25  ;;  %v8253_v31 = vadd.f32 1.0, %v11993_v40  ;;  %v9012_v61 = vmul.f32 -1.442695, %v8083_v2 }
 0xbe3   : > { %v11997_v16 = vpop.eup %11996  ;;  %12022 = vpow2.f32 %v9013_v59  ;;  %v8345_v58 = vmul.f32 %v11995_v42, %v17290_v50  ;;  %v8378_v53 = vadd.f32 %v8346_v21, %v18977_v24  ;;  %v8954_v38 = vmul.f32 -1.442695, %v5067_v9  ;;  %v18982_v42 = vld [vmem:[#allocation108_spill] sm:$0xff] }
 0xbe4   : > { %v11999_v12 = vpop.eup %11998  ;;  %12024 = vrcp.f32 %v8253_v31  ;;  %v5077_v31 = vadd.f32 %v17353_v13, %v18982_v42  ;;  %v8986_v43 = vmul.f32 -1.442695, %v6574_v5  ;;  %v18990_v42 = vld [vmem:[#allocation110_spill] sm:$0xff] }
 0xbe5   : > { %v12001_v4 = vpop.eup %12000  ;;  %12026 = vpow2.f32 %v9012_v61  ;;  %v10893_v6 = vpop.f32.mrf.mxu1  ;;  %v8377_v23 = vadd.f32 %v8345_v58, %v6838_v14  ;;  %v6808_v63 = vmul.f32 %v11999_v12, %v18978_v22  ;;  %v18983_v58 = vld [vmem:[#allocation198_spill] sm:$0xff]  ;;  %v18986_v22 = vld [vmem:[#allocation249_spill] sm:$0xff] }
 0xbe6   : > { %v12003_v18 = vpop.eup %12002  ;;  %12028 = vpow2.f32 %v8952_v45  ;;  %v8098_v17 = vadd.f32 %v17353_v13, %v10893_v6  ;;  %v5213_v33 = vadd.f32 1.0, %v12001_v4  ;;  %v18984_v4 = vld [vmem:[#allocation98_spill] sm:$0xff]  ;;  %v8956_v24 = vmul.f32 -1.442695, %v5077_v31 }
 0xbe7   : > { %v12005_v0 = vpop.eup %12004  ;;  %12030 = vrcp.f32 %v5211_v55  ;;  %10956 = vmatprep.mubr.f32.mxu0 %v8377_v23  ;;  %v8092_v46 = vpop.f32.mrf.mxu1  ;;  %v6718_v45 = vadd.f32 1.0, %v12003_v18  ;;  %v6840_v52 = vadd.f32 %v6808_v63, %v5301_v10  ;;  %v18985_v23 = vld [vmem:[#allocation248_spill] sm:$0xff]  ;;  %v6584_v63 = vadd.f32 %v17353_v13, %v18986_v22 }
 0xbe8   : > { %v12007_v50 = vpop.eup %12006  ;;  %v8256_v54 = vadd.f32 1.0, %v12005_v0  ;;  %v9015_v30 = vmul.f32 -1.442695, %v8098_v17  ;;  %v8093_v26 = vadd.f32 %v17353_v13, %v8092_v46  ;;  %10957 = vmatmul.mubr.f32.gmra.mxu0 %v8378_v53  ;;  %12032 = vpow2.f32 %v8984_v35 }
 0xbe9   : > { %v12009_v19 = vpop.eup %12008  ;;  %v8348_v2 = vmul.f32 %v12007_v50, %v17299_v11  ;;  %v5303_v18 = vmul.f32 %v11997_v16, %v18985_v23  ;;  %v5087_v31 = vadd.f32 %v17353_v13, %v18990_v42  ;;  %v18994_v42 = vld [vmem:[#allocation194_spill] sm:$0xff] }
 0xbea   : > { %v12011_v36 = vpop.eup %12010  ;;  %12034 = vrcp.f32 %v8256_v54  ;;  %v8255_v25 = vadd.f32 1.0, %v12009_v19  ;;  %v9014_v59 = vmul.f32 -1.442695, %v8093_v26 }
 0xbeb   : > { %v12013_v40 = vpop.eup %12012  ;;  %12036 = vpow2.f32 %v9015_v30  ;;  %v8347_v44 = vmul.f32 %v12011_v36, %v17296_v37  ;;  %v8380_v12 = vadd.f32 %v8348_v2, %v18983_v58  ;;  %v8988_v36 = vmul.f32 -1.442695, %v6584_v63 }
 0xbec   : > { %v12015_v7 = vpop.eup %12014  ;;  %12038 = vrcp.f32 %v8255_v25  ;;  %v6810_v35 = vmul.f32 %v12013_v40, %v18984_v4 }
 0xbed   : > { %v12017_v61 = vpop.eup %12016  ;;  %12040 = vpow2.f32 %v9014_v59  ;;  %v10896_v21 = vpop.f32.mrf.mxu1  ;;  %v8379_v55 = vadd.f32 %v8347_v44, %v6840_v52  ;;  %v18988_v59 = vld [vmem:[#allocation77_spill] sm:$0xff] }
 0xbee   : > { %v12019_v14 = vpop.eup %12018  ;;  %12042 = vrcp.f32 %v5213_v33  ;;  %v8108_v11 = vadd.f32 %v17353_v13, %v10896_v21  ;;  %v6842_v30 = vadd.f32 %v6810_v35, %v5303_v18  ;;  %v6720_v19 = vadd.f32 1.0, %v12017_v61 }
 0xbef   : > { %v12021_v37 = vpop.eup %12020  ;;  %12044 = vrcp.f32 %v6718_v45  ;;  %10959 = vmatprep.mubr.f32.mxu0 %v8379_v55  ;;  %v8102_v6 = vpop.f32.mrf.mxu1  ;;  %v6812_v10 = vmul.f32 %v12019_v14, %v18987_v39  ;;  %v6594_v14 = vadd.f32 %v17353_v13, %v17252_v28 }
 0xbf0   : > { %v12023_v17 = vpop.eup %12022  ;;  %12046 = vpow2.f32 %v8954_v38  ;;  %v9017_v53 = vmul.f32 -1.442695, %v8108_v11  ;;  %v8103_v0 = vadd.f32 %v17353_v13, %v8102_v6  ;;  %10960 = vmatmul.mubr.f32.gmra.mxu0 %v8380_v12  ;;  %v8350_v48 = vmul.f32 %v12021_v37, %v17305_v29 }
 0xbf1   : > { %v12025_v46 = vpop.eup %12024  ;;  %12048 = vpow2.f32 %v8986_v43  ;;  %v8258_v50 = vadd.f32 1.0, %v12023_v17  ;;  %v8958_v17 = vmul.f32 -1.442695, %v5087_v31 }
 0xbf2   : > { %v12027_v9 = vpop.eup %12026  ;;  %12050 = vpow2.f32 %v9017_v53  ;;  %v9016_v54 = vmul.f32 -1.442695, %v8103_v0  ;;  %v8349_v16 = vmul.f32 %v12025_v46, %v17302_v27  ;;  %v8382_v29 = vadd.f32 %v8350_v48, %v18988_v59  ;;  %v18989_v27 = vld [vmem:[#allocation250_spill] sm:$0xff]  ;;  %v18991_v46 = vld [vmem:[#allocation192_spill] sm:$0xff]  ;;  %v18992_v48 = vld [vmem:[#allocation91_spill] sm:$0xff] }
 0xbf3   : > { %v12029_v26 = vpop.eup %12028  ;;  %12052 = vrcp.f32 %v8258_v50  ;;  %v8257_v33 = vadd.f32 1.0, %v12027_v9  ;;  %v5305_v45 = vmul.f32 %v12015_v7, %v18989_v27  ;;  %v8990_v0 = vmul.f32 -1.442695, %v6594_v14 }
 0xbf4   : > { %v12031_v49 = vpop.eup %12030  ;;  %12054 = vpow2.f32 %v9016_v54  ;;  %v8381_v5 = vadd.f32 %v8349_v16, %v6842_v30  ;;  %v5215_v6 = vadd.f32 1.0, %v12029_v26 }
 0xbf5   : > { %12056 = vrcp.f32 %v8257_v33  ;;  %v10899_v25 = vpop.f32.mrf.mxu1  ;;  %v12033_v2 = vpop.eup %12032  ;;  %v6844_v21 = vadd.f32 %v6812_v10, %v5305_v45 }
 0xbf6   : > { %12058 = vpow2.f32 %v8956_v24  ;;  %v8118_v40 = vadd.f32 %v17353_v13, %v10899_v25  ;;  %10962 = vmatprep.mubr.f32.mxu0 %v8381_v5  ;;  %v6722_v12 = vadd.f32 1.0, %v12033_v2  ;;  %v18993_v5 = vld [vmem:[#allocation252_spill] sm:$0xff] }
 0xbf7   : > { %v12035_v52 = vpop.eup %12034  ;;  %12060 = vrcp.f32 %v6720_v19  ;;  %v8112_v44 = vpop.f32.mrf.mxu1  ;;  %10963 = vmatmul.mubr.f32.gmra.mxu0 %v8382_v29  ;;  %v5307_v39 = vmul.f32 %v12031_v49, %v18993_v5  ;;  %v12135_v49 = vld [vmem:[%s18792_s8] ss:$0 sm:$0xff] }
 0xbf8   : > { %v12037_v38 = vpop.eup %12036  ;;  %v9019_v61 = vmul.f32 -1.442695, %v8118_v40  ;;  %v8113_v43 = vadd.f32 %v17353_v13, %v8112_v44  ;;  %12062 = vpow2.f32 %v8988_v36  ;;  %v8352_v7 = vmul.f32 %v12035_v52, %v17311_v1 }
 0xbf9   : > { %v12039_v55 = vpop.eup %12038  ;;  %v8260_v11 = vadd.f32 1.0, %v12037_v38 }
 0xbfa   : > { %v12041_v58 = vpop.eup %12040  ;;  %12064 = vpow2.f32 %v9019_v61  ;;  %v9018_v4 = vmul.f32 -1.442695, %v8113_v43  ;;  %v8351_v35 = vmul.f32 %v12039_v55, %v17308_v20  ;;  %v8384_v1 = vadd.f32 %v8352_v7, %v18991_v46  ;;  %v18995_v43 = vld [vmem:[#allocation94_spill] sm:$0xff] }
 0xbfb   : > { %v12043_v37 = vpop.eup %12042  ;;  %12066 = vrcp.f32 %v8260_v11  ;;  %v8259_v23 = vadd.f32 1.0, %v12041_v58  ;;  %v18996_v58 = vld [vmem:[#allocation254_spill] sm:$0xff] }
 0xbfc   : > { %v12045_v18 = vpop.eup %12044  ;;  %12068 = vpow2.f32 %v9018_v4  ;;  %v8383_v24 = vadd.f32 %v8351_v35, %v6844_v21 }
 0xbfd   : > { %v12047_v53 = vpop.eup %12046  ;;  %12070 = vrcp.f32 %v8259_v23  ;;  %v10902_v28 = vpop.f32.mrf.mxu1  ;;  %v6814_v9 = vmul.f32 %v12045_v18, %v18992_v48 }
 0xbfe   : > { %v12049_v22 = vpop.eup %12048  ;;  %12072 = vrcp.f32 %v6722_v12  ;;  %v8128_v63 = vadd.f32 %v17353_v13, %v10902_v28  ;;  %10965 = vmatprep.mubr.f32.mxu0 %v8383_v24  ;;  %v5217_v45 = vadd.f32 1.0, %v12047_v53  ;;  %v5309_v12 = vmul.f32 %v12043_v37, %v18996_v58  ;;  %v18997_v37 = vld [vmem:[#allocation75_spill] sm:$0xff]  ;;  %v19005_v58 = vld [vmem:[#allocation204_spill] sm:$0xff] }
 0xbff   : > { %v12051_v20 = vpop.eup %12050  ;;  %12074 = vrcp.f32 %v5215_v6  ;;  %v8122_v50 = vpop.f32.mrf.mxu1  ;;  %10966 = vmatmul.mubr.f32.gmra.mxu0 %v8384_v1  ;;  %v6724_v33 = vadd.f32 1.0, %v12049_v22  ;;  %v6846_v2 = vadd.f32 %v6814_v9, %v5307_v39  ;;  %v18999_v9 = vld [vmem:[#allocation256_spill] sm:$0xff] }
 0xc00   : > { %v12053_v54 = vpop.eup %12052  ;;  %12076 = vpow2.f32 %v8958_v17  ;;  %v8262_v30 = vadd.f32 1.0, %v12051_v20  ;;  %v9021_v16 = vmul.f32 -1.442695, %v8128_v63  ;;  %v8123_v26 = vadd.f32 %v17353_v13, %v8122_v50  ;;  %v18998_v20 = vld [vmem:[#allocation151_spill] sm:$0xff] }
 0xc01   : > { %v12055_v19 = vpop.eup %12054  ;;  %12078 = vpow2.f32 %v8990_v0  ;;  %v8354_v59 = vmul.f32 %v12053_v54, %v17317_v41 }
 0xc02   : > { %v12057_v10 = vpop.eup %12056  ;;  %12080 = vrcp.f32 %v8262_v30  ;;  %v8261_v36 = vadd.f32 1.0, %v12055_v19  ;;  %v9020_v25 = vmul.f32 -1.442695, %v8123_v26 }
 0xc03   : > { %v12059_v29 = vpop.eup %12058  ;;  %12082 = vpow2.f32 %v9021_v16  ;;  %v8353_v40 = vmul.f32 %v12057_v10, %v17314_v62  ;;  %v8386_v41 = vadd.f32 %v8354_v59, %v18994_v42 }
 0xc04   : > { %v12061_v27 = vpop.eup %12060  ;;  %12084 = vrcp.f32 %v8261_v36  ;;  %v5219_v46 = vadd.f32 1.0, %v12059_v29  ;;  %v19000_v29 = vld [vmem:[#allocation251_spill] sm:$0xff] }
 0xc05   : > { %12086 = vpow2.f32 %v9020_v25  ;;  %v10905_v13 = vpop.f32.mrf.mxu1  ;;  %v8385_v52 = vadd.f32 %v8353_v40, %v6846_v2  ;;  %v12063_v44 = vpop.eup %12062  ;;  %v6816_v62 = vmul.f32 %v12061_v27, %v18995_v43  ;;  %v19001_v40 = vld [vmem:[#allocation148_spill] sm:$0xff] }
 0xc06   : > { %12088 = vrcp.f32 %v6724_v33  ;;  %v8138_v38 = vadd.f32 %v12135_v49, %v10905_v13  ;;  %v6726_v17 = vadd.f32 1.0, %v12063_v44  ;;  %v19002_v13 = vld [vmem:[#allocation161_spill] sm:$0xff] }
 0xc07   : > { %v12065_v31 = vpop.eup %12064  ;;  %10968 = vmatprep.mubr.f32.mxu0 %v8385_v52  ;;  %v8132_v61 = vpop.f32.mrf.mxu1  ;;  %12090 = vrcp.f32 %v5217_v45  ;;  %v6848_v24 = vadd.f32 %v6816_v62, %v5309_v12  ;;  %v19003_v62 = vld [vmem:[#allocation188_spill] sm:$0xff] }
 0xc08   : > { %v12067_v21 = vpop.eup %12066  ;;  %v8264_v55 = vadd.f32 1.0, %v12065_v31  ;;  %v9023_v14 = vmul.f32 -1.442695, %v8138_v38  ;;  %v8133_v11 = vadd.f32 %v12135_v49, %v8132_v61  ;;  %10969 = vmatmul.mubr.f32.gmra.mxu0 %v8386_v41 }
 0xc09   : > { %v12069_v7 = vpop.eup %12068  ;;  %v8356_v23 = vmul.f32 %v12067_v21, %v17323_v60 }
 0xc0a   : > { %v12071_v4 = vpop.eup %12070  ;;  %12092 = vrcp.f32 %v8264_v55  ;;  %v8263_v35 = vadd.f32 1.0, %v12069_v7  ;;  %v9022_v6 = vmul.f32 -1.442695, %v8133_v11 }
 0xc0b   : > { %v12073_v18 = vpop.eup %12072  ;;  %12094 = vpow2.f32 %v9023_v14  ;;  %v8355_v53 = vmul.f32 %v12071_v4, %v17320_v57  ;;  %v8388_v63 = vadd.f32 %v8356_v23, %v18997_v37  ;;  %v19004_v14 = vld [vmem:[#allocation149_spill] sm:$0xff] }
 0xc0c   : > { %v12075_v0 = vpop.eup %12074  ;;  %12096 = vrcp.f32 %v8263_v35  ;;  %v6818_v50 = vmul.f32 %v12073_v18, %v18998_v20  ;;  %v19009_v20 = vld [vmem:[#allocation253_spill] sm:$0xff] }
 0xc0d   : > { %v12077_v28 = vpop.eup %12076  ;;  %12098 = vpow2.f32 %v9022_v6  ;;  %v8387_v1 = vadd.f32 %v8355_v53, %v6848_v24  ;;  %v5311_v54 = vmul.f32 %v12075_v0, %v18999_v9  ;;  %v19007_v53 = vld [vmem:[#allocation143_spill] sm:$0xff] }
 0xc0e   : > { %v12079_v22 = vpop.eup %12078  ;;  %12100 = vrcp.f32 %v6726_v17  ;;  %v5221_v59 = vadd.f32 1.0, %v12077_v28  ;;  %v19006_v17 = vld [vmem:[#allocation72_spill] sm:$0xff] }
 0xc0f   : > { %v12081_v48 = vpop.eup %12080  ;;  %10971 = vmatprep.mubr.f32.mxu0 %v8387_v1  ;;  %12102 = vrcp.f32 %v5219_v46  ;;  %v6850_v19 = vadd.f32 %v6818_v50, %v5311_v54  ;;  %v6728_v39 = vadd.f32 1.0, %v12079_v22  ;;  %v19008_v46 = vld [vmem:[#allocation211_spill] sm:$0xff] }
 0xc10   : > { %v12083_v60 = vpop.eup %12082  ;;  %10972 = vmatmul.mubr.f32.gmra.mxu0 %v8388_v63  ;;  %v8358_v16 = vmul.f32 %v12081_v48, %v17329_v51  ;;  %v17556_v48 = vld [vmem:[%s19010_s23] ss:$0 sm:$0xff] }
 0xc11   : > { %v12085_v30 = vpop.eup %12084  ;;  %v8266_v57 = vadd.f32 1.0, %v12083_v60 }
 0xc12   : > { %v12087_v26 = vpop.eup %12086  ;;  %v8357_v33 = vmul.f32 %v12085_v30, %v17326_v15  ;;  %v8390_v2 = vadd.f32 %v8358_v16, %v19000_v29 }
 0xc13   : > { %v12089_v5 = vpop.eup %12088  ;;  %12104 = vrcp.f32 %v8266_v57  ;;  %v8265_v10 = vadd.f32 1.0, %v12087_v26 }
 0xc14   : > { %v8389_v36 = vadd.f32 %v8357_v33, %v6850_v19  ;;  %v12091_v25 = vpop.eup %12090  ;;  %v6820_v27 = vmul.f32 %v12089_v5, %v19001_v40 }
 0xc15   : > { %12106 = vrcp.f32 %v8265_v10  ;;  %v5313_v52 = vmul.f32 %v12091_v25, %v19002_v13 }
 0xc16   : > { %10974 = vmatprep.mubr.f32.mxu0 %v8389_v36  ;;  %12108 = vrcp.f32 %v6728_v39 }
 0xc17   : > { %v12093_v45 = vpop.eup %12092  ;;  %10975 = vmatmul.mubr.f32.gmra.mxu0 %v8390_v2  ;;  %12110 = vrcp.f32 %v5221_v59  ;;  %v6852_v42 = vadd.f32 %v6820_v27, %v5313_v52 }
 0xc18   : > { %v12095_v51 = vpop.eup %12094  ;;  %v8360_v49 = vmul.f32 %v12093_v45, %v17335_v34 }
 0xc19   : > { %v12097_v15 = vpop.eup %12096  ;;  %v8268_v44 = vadd.f32 1.0, %v12095_v51 }
 0xc1a   : > { %v12099_v38 = vpop.eup %12098  ;;  %v8359_v41 = vmul.f32 %v12097_v15, %v17332_v8  ;;  %v8392_v21 = vadd.f32 %v8360_v49, %v19003_v62 }
 0xc1b   : > { %12112 = vrcp.f32 %v8268_v44  ;;  %v8267_v31 = vadd.f32 1.0, %v12099_v38  ;;  %v12101_v61 = vpop.eup %12100 }
 0xc1c   : > { %v8391_v43 = vadd.f32 %v8359_v41, %v6852_v42  ;;  %v12103_v55 = vpop.eup %12102  ;;  %v6822_v11 = vmul.f32 %v12101_v61, %v19004_v14 }
 0xc1d   : > { %12114 = vrcp.f32 %v8267_v31  ;;  %v5315_v12 = vmul.f32 %v12103_v55, %v19005_v58 }
 0xc1e   : > { %10977 = vmatprep.mubr.f32.mxu0 %v8391_v43 }
 0xc1f   : > { %10978 = vmatmul.mubr.f32.gmra.mxu0 %v8392_v21  ;;  %v6854_v35 = vadd.f32 %v6822_v11, %v5315_v12 }
 0xc20   : > { %v12105_v7 = vpop.eup %12104 }
 0xc21   : > { %v8362_v4 = vmul.f32 %v12105_v7, %v17341_v3 }
 0xc22   : > { %v12107_v34 = vpop.eup %12106 }
 0xc23   : > { %v8361_v8 = vmul.f32 %v12107_v34, %v17338_v56  ;;  %v12109_v6 = vpop.eup %12108  ;;  %v8394_v24 = vadd.f32 %v8362_v4, %v19006_v17 }
 0xc24   : > { %v12111_v18 = vpop.eup %12110  ;;  %v6824_v0 = vmul.f32 %v12109_v6, %v19007_v53 }
 0xc25   : > { %v8393_v23 = vadd.f32 %v8361_v8, %v6854_v35  ;;  %v5317_v1 = vmul.f32 %v12111_v18, %v19008_v46 }
 0xc27   : > { %10980 = vmatprep.mubr.f32.mxu0 %v8393_v23  ;;  %v6856_v3 = vadd.f32 %v6824_v0, %v5317_v1 }
 0xc28   : > { %v12113_v28 = vpop.eup %12112  ;;  %10981 = vmatmul.mubr.f32.gmra.mxu0 %v8394_v24 }
 0xc29   : > { %v8364_v37 = vmul.f32 %v12113_v28, %v17347_v47 }
 0xc2a   : > { %v12115_v22 = vpop.eup %12114 }
 0xc2b   : > { %v8363_v63 = vmul.f32 %v12115_v22, %v17344_v32  ;;  %v8396_v50 = vadd.f32 %v8364_v37, %v19009_v20 }
 0xc2d   : > { %v8395_v56 = vadd.f32 %v8363_v63, %v6856_v3 }
 0xc2f   : > { %10983 = vmatprep.mubr.f32.mxu0 %v8395_v56 }
 0xc30   : > { %10984 = vmatmul.mubr.f32.gmra.mxu0 %v8396_v50 }
 0xc77   : > { %v10940_v60 = vpop.f32.mrf.mxu0 }
 0xc78   : > { %v8492_v9 = vadd.f32 %v10940_v60, %v17556_v48 }
 0xc79   : > { %v8486_v54 = vpop.f32.mrf.mxu0 }
 0xc7a   : > { %8646 = vst [vmem:[%s17560_s11 + $0x8] sm:$0xff] %v8492_v9  ;;  %v8487_v32 = vadd.f32 %v17556_v48, %v8486_v54 }
 0xc7c   : > { %8645 = vst [vmem:[%s17560_s11] sm:$0xff] %v8487_v32 }
 0xc7f   : > { %v10943_v47 = vpop.f32.mrf.mxu0 }
 0xc80   : > { %v8502_v30 = vadd.f32 %v10943_v47, %v17556_v48 }
 0xc81   : > { %v8496_v57 = vpop.f32.mrf.mxu0 }
 0xc82   : > { %8648 = vst [vmem:[%s17560_s11 + $0x18] sm:$0xff] %v8502_v30  ;;  %v8497_v16 = vadd.f32 %v17556_v48, %v8496_v57 }
 0xc84   : > { %8647 = vst [vmem:[%s17560_s11 + $0x10] sm:$0xff] %v8497_v16 }
 0xc88   : > { %v10946_v26 = vpop.f32.mrf.mxu0 }
 0xc89   : > { %v8512_v19 = vadd.f32 %v10946_v26, %v17556_v48 }
 0xc8a   : > { %v8506_v33 = vpop.f32.mrf.mxu0 }
 0xc8b   : > { %8650 = vst [vmem:[%s17560_s11 + $0x28] sm:$0xff] %v8512_v19  ;;  %v8507_v5 = vadd.f32 %v17556_v48, %v8506_v33 }
 0xc8d   : > { %8649 = vst [vmem:[%s17560_s11 + $0x20] sm:$0xff] %v8507_v5 }
 0xc90   : > { %v10949_v39 = vpop.f32.mrf.mxu0 }
 0xc91   : > { %v8522_v10 = vadd.f32 %v10949_v39, %v17556_v48 }
 0xc92   : > { %v8516_v36 = vpop.f32.mrf.mxu0 }
 0xc93   : > { %8652 = vst [vmem:[%s17560_s11 + $0x38] sm:$0xff] %v8522_v10  ;;  %v8517_v25 = vadd.f32 %v17556_v48, %v8516_v36 }
 0xc95   : > { %8651 = vst [vmem:[%s17560_s11 + $0x30] sm:$0xff] %v8517_v25 }
 0xc97   : > { %v10952_v59 = vpop.f32.mrf.mxu0 }
 0xc98   : > { %v8532_v29 = vadd.f32 %v10952_v59, %v17556_v48 }
 0xc99   : > { %v8526_v2 = vpop.f32.mrf.mxu0 }
 0xc9a   : > { %8654 = vst [vmem:[%s17560_s11 + $0x48] sm:$0xff] %v8532_v29  ;;  %v8527_v40 = vadd.f32 %v17556_v48, %v8526_v2 }
 0xc9c   : > { %8653 = vst [vmem:[%s17560_s11 + $0x40] sm:$0xff] %v8527_v40 }
 0xc9f   : > { %v10955_v27 = vpop.f32.mrf.mxu0 }
 0xca0   : > { %v8542_v45 = vadd.f32 %v10955_v27, %v17556_v48 }
 0xca1   : > { %v8536_v51 = vpop.f32.mrf.mxu0 }
 0xca2   : > { %8656 = vst [vmem:[%s17560_s11 + $0x58] sm:$0xff] %v8542_v45  ;;  %v8537_v13 = vadd.f32 %v17556_v48, %v8536_v51 }
 0xca4   : > { %8655 = vst [vmem:[%s17560_s11 + $0x50] sm:$0xff] %v8537_v13 }
 0xca8   : > { %v10958_v52 = vpop.f32.mrf.mxu0 }
 0xca9   : > { %v8552_v15 = vadd.f32 %v10958_v52, %v17556_v48 }
 0xcaa   : > { %v8546_v44 = vpop.f32.mrf.mxu0 }
 0xcab   : > { %8658 = vst [vmem:[%s17560_s11 + $0x68] sm:$0xff] %v8552_v15  ;;  %v8547_v49 = vadd.f32 %v17556_v48, %v8546_v44 }
 0xcad   : > { %8657 = vst [vmem:[%s17560_s11 + $0x60] sm:$0xff] %v8547_v49 }
 0xcb0   : > { %v10961_v38 = vpop.f32.mrf.mxu0 }
 0xcb1   : > { %v8562_v42 = vadd.f32 %v10961_v38, %v17556_v48 }
 0xcb2   : > { %v8556_v41 = vpop.f32.mrf.mxu0 }
 0xcb3   : > { %8660 = vst [vmem:[%s17560_s11 + $0x78] sm:$0xff] %v8562_v42  ;;  %v8557_v31 = vadd.f32 %v17556_v48, %v8556_v41 }
 0xcb5   : > { %8659 = vst [vmem:[%s17560_s11 + $0x70] sm:$0xff] %v8557_v31 }
 0xcb7   : > { %v10964_v61 = vpop.f32.mrf.mxu0 }
 0xcb8   : > { %v8572_v43 = vadd.f32 %v10964_v61, %v17556_v48 }
 0xcb9   : > { %v8566_v62 = vpop.f32.mrf.mxu0 }
 0xcba   : > { %8662 = vst [vmem:[%s17560_s11 + $0x88] sm:$0xff] %v8572_v43  ;;  %v8567_v21 = vadd.f32 %v17556_v48, %v8566_v62 }
 0xcbc   : > { %8661 = vst [vmem:[%s17560_s11 + $0x80] sm:$0xff] %v8567_v21 }
 0xcbf   : > { %v10967_v55 = vpop.f32.mrf.mxu0 }
 0xcc0   : > { %v8582_v14 = vadd.f32 %v10967_v55, %v17556_v48 }
 0xcc1   : > { %v8576_v11 = vpop.f32.mrf.mxu0 }
 0xcc2   : > { %8664 = vst [vmem:[%s17560_s11 + $0x98] sm:$0xff] %v8582_v14  ;;  %v8577_v7 = vadd.f32 %v17556_v48, %v8576_v11 }
 0xcc4   : > { %8663 = vst [vmem:[%s17560_s11 + $0x90] sm:$0xff] %v8577_v7 }
 0xcc8   : > { %v10970_v58 = vpop.f32.mrf.mxu0 }
 0xcc9   : > { %v8592_v12 = vadd.f32 %v10970_v58, %v17556_v48 }
 0xcca   : > { %v8586_v34 = vpop.f32.mrf.mxu0 }
 0xccb   : > { %8666 = vst [vmem:[%s17560_s11 + $0xa8] sm:$0xff] %v8592_v12  ;;  %v8587_v4 = vadd.f32 %v17556_v48, %v8586_v34 }
 0xccd   : > { %8665 = vst [vmem:[%s17560_s11 + $0xa0] sm:$0xff] %v8587_v4 }
 0xcd0   : > { %v10973_v35 = vpop.f32.mrf.mxu0 }
 0xcd1   : > { %v8602_v8 = vadd.f32 %v10973_v35, %v17556_v48 }
 0xcd2   : > { %v8596_v6 = vpop.f32.mrf.mxu0 }
 0xcd3   : > { %8668 = vst [vmem:[%s17560_s11 + $0xb8] sm:$0xff] %v8602_v8  ;;  %v8597_v23 = vadd.f32 %v17556_v48, %v8596_v6 }
 0xcd5   : > { %8667 = vst [vmem:[%s17560_s11 + $0xb0] sm:$0xff] %v8597_v23 }
 0xcd7   : > { %v10976_v18 = vpop.f32.mrf.mxu0 }
 0xcd8   : > { %v8612_v17 = vadd.f32 %v10976_v18, %v17556_v48 }
 0xcd9   : > { %v8606_v24 = vpop.f32.mrf.mxu0 }
 0xcda   : > { %8670 = vst [vmem:[%s17560_s11 + $0xc8] sm:$0xff] %v8612_v17  ;;  %v8607_v53 = vadd.f32 %v17556_v48, %v8606_v24 }
 0xcdc   : > { %8669 = vst [vmem:[%s17560_s11 + $0xc0] sm:$0xff] %v8607_v53 }
 0xcdf   : > { %v10979_v0 = vpop.f32.mrf.mxu0 }
 0xce0   : > { %v8622_v28 = vadd.f32 %v10979_v0, %v17556_v48 }
 0xce1   : > { %v8616_v46 = vpop.f32.mrf.mxu0 }
 0xce2   : > { %8672 = vst [vmem:[%s17560_s11 + $0xd8] sm:$0xff] %v8622_v28  ;;  %v8617_v1 = vadd.f32 %v17556_v48, %v8616_v46 }
 0xce4   : > { %8671 = vst [vmem:[%s17560_s11 + $0xd0] sm:$0xff] %v8617_v1 }
 0xce8   : > { %v10982_v22 = vpop.f32.mrf.mxu0 }
 0xce9   : > { %v8632_v37 = vadd.f32 %v10982_v22, %v17556_v48 }
 0xcea   : > { %v8626_v3 = vpop.f32.mrf.mxu0 }
 0xceb   : > { %8674 = vst [vmem:[%s17560_s11 + $0xe8] sm:$0xff] %v8632_v37  ;;  %v8627_v63 = vadd.f32 %v17556_v48, %v8626_v3 }
 0xced   : > { %8673 = vst [vmem:[%s17560_s11 + $0xe0] sm:$0xff] %v8627_v63 }
 0xcf0   : > { %v10985_v56 = vpop.f32.mrf.mxu0 }
 0xcf1   : > { %v8642_v20 = vadd.f32 %v10985_v56, %v17556_v48 }
 0xcf2   : > { %v8636_v50 = vpop.f32.mrf.mxu0 }
 0xcf3   : > { %8676 = vst [vmem:[%s17560_s11 + $0xf8] sm:$0xff] %v8642_v20  ;;  %v8637_v60 = vadd.f32 %v17556_v48, %v8636_v50 }
 0xcf5   : > { %8675 = vst [vmem:[%s17560_s11 + $0xf0] sm:$0xff] %v8637_v60 }
 0xcf6   : > { %12374 = shalt.err (!%p12371_p0)
}
 0xcf7   : > { %s12375_s28 = scalar_lea.hbm %s17627_s14, 4096  ;;  %s12379_s23 = scalar_lea.hbm %s19013_s2, 8192 }
 0xcf8   : > { %p12376_p3 = scmp.ne.s32.totalorder %s17627_s14, %s12375_s28  ;;  %p12380_p5 = scmp.lt.s32.totalorder %s17627_s14, %s19013_s2 }
 0xcf9   : > { %p12381_p10 = scmp.lt.s32.totalorder %s12379_s23, %s12375_s28 }
 0xcfa   : > { %p12377_p12 = pnand %p12376_p3, %p19014_p7 }
 0xcfb   : > { %p12382_p13 = por %p12381_p10, %p12380_p5 }
 0xcfc   : > { %p12378_p8 = pneg %p12377_p12 }
 0xcfe   : > { %p12383_p1 = pnand %p12382_p13, %p12378_p8 }
 0xd00   : > { %12386 = shalt.err (!%p12383_p1)
}
 0xd01   : > { %s12476_s20 = smov 128   ;;  %s12477_s13 = smov 8  }
 0xd02   : > { %11048 = dma.vmem_to_hbm [thread:$0]  (%p19014_p7), %s17629_s4, 4096, %s17627_s14, %s8678_s24, %s12476_s20, %s12476_s20, %s12477_s13  }
 0xd03 PF: > { %s19015_s17 = sld [smem:[#allocation29_spill]] }
 0xd04   : > { %s19016_s9 = sld [smem:[#allocation36_spill]] }
 0xd05   : > { %s19017_s27 = sld [smem:[#allocation32_spill]] }
 0xd09   : > { %s8708_s22 = sand.u32 1, %s19015_s17  }
 0xd0a   : > { %p19018_p2 = scmp.ne.s32.totalorder %s19016_s9, 0  ;;  %s8709_s29 = scalar_lea.sflag [#allocation7], %s8708_s22 }
 0xd0b   : > { %p19019_p4 = scmp.ge.s32.totalorder %s19017_s27, 2 }
 0xd0d   : > { %p11080_p9 = pnand %p19019_p4, %p19018_p2 }
 0xd0f   : > { %p11081_p6 = pneg %p11080_p9 }
 0xd11   : > { %12436 = dma.done.wait (%p11081_p6), %s8709_s29, 4096  }
 0xd12   : > { %12438 = vsyncadd (%p11081_p6), %s8709_s29, 4294963200  ;;  %s37_s18 = sadd.s32 1, %s19017_s27   ;;  %s19020_s26 = sld [smem:[#allocation35_spill]] }
 0xd13   : > { %p34_p11 = scmp.ge.s32.totalorder %s37_s18, 4   ;;  %s19021_s16 = sld [smem:[#allocation31_spill]] }
 0xd14   : > { %s19022_s17 = sld [smem:[#allocation33_spill]]  ;;  %s19023_s29 = smov %s12445_s30 }
 0xd15   : > { %s19024_s30 = smov %s12449_s15  ;;  %36 = sbr.rel (!%p34_p11) target bundleno = 20 (0x14), region = 188 }
 0xd18   : > { %s19025_s15 = smov %s19020_s26 }
 0xd1a   :  { %8714 = vsyncpa [#allocation6], 1 }
 0xd1b   :  { %8716 = vsyncpa [#allocation6 + $0x1], 1 }
 0xd1c   :  { %8717 = vsyncpa [#allocation11], 1 }
 0xd1d   :  { %8719 = vsyncpa [#allocation11 + $0x1], 1 }
 0xd1e   :  { %8720 = vsyncpa [#allocation14], 1 }
 0xd1f   :  { %8721 = vsyncpa [#allocation17], 1 }
 0xd20   :  { %8722 = vsyncpa [#allocation20], 1 }
 0xd21   :  { %8723 = vsyncpa [#allocation7], 1 }
 0xd22   :  { %8725 = vsyncpa [#allocation7 + $0x1], 1 }
 0xd23   :  { %8726 = vsyncpa [#allocation8], 1 }
 0xd24   :  { %8728 = vsyncpa [#allocation8 + $0x1], 1 }

</bundles_post_ra>
